<compile_context>
chip_gen: v6e
topology: v6e:2x2x1
jax: 0.10.0
libtpu: 0.0.40
codegen_flags: <defaults>
</compile_context>

<pallas_src>
import jax
import jax.numpy as jnp
from jax import lax
from jax.experimental import pallas as pl
from jax.experimental.pallas import tpu as pltpu

# ---------------- model hyper-parameters (small, consistent with eegNet) -------
B_BLK   = 8                     # per-grid-step batch -> RB = F1*D*B_BLK = 128 MXU rows
NBLK    = 2                     # batch blocks (grid); v7x's two TCs split them
N_BATCH = B_BLK * NBLK          # 16
N_CHAN  = 4                     # EEG electrodes
N_TIME  = 64                    # time samples
N_CLASS = 2
F1      = 8
D       = 2
F2      = F1 * D                # pointwise conv output channels (=16)
F1D     = F1 * D                # depthwise conv output channels of block1 (=16)
C1      = 16                    # block1 temporal kernel (module default 64; shrunk for demo)
C2      = 22                    # block2 temporal kernel (hard-coded 22 in the module)
PAD1    = C1 // 2
PAD2    = C2 // 2               # 11
BN_EPS  = 1e-5

# derived activation sizes (same arithmetic PyTorch uses)
TPAD1 = N_TIME + 2 * PAD1       # 80  host-padded input length
T1    = TPAD1 - C1 + 1          # 65  after block1 temporal conv
T2    = T1 // 4                 # 16  after AvgPool2d((1,4))
T3PAD = T2 + 2 * PAD2           # 38  block2 input incl. zero padding
T3    = T3PAD - C2 + 1          # 17  after block2 depthwise temporal conv
T4    = T3 // 8                 # 2   after AvgPool2d((1,8)) == fSize[1]

CBB = N_CHAN * B_BLK            # 32  channel*batch rows per block
RBB = F1D * B_BLK               # 128 activation rows per block (= MXU M dim)
KIM = CBB * C1                  # 512 im2col contraction size of block1
OUT_LANES = 128                 # lane-dense output store

# packed weight slab: RBB rows x W_SLAB lanes, static column offsets
OFF_WC   = 0                    # (RBB, KIM)    block1 im2col weight (bn1/bn2 scales folded)
OFF_W4   = OFF_WC + KIM         # (RBB, RBB)    1x1 conv (bn3 scale folded), batch-block-diag
OFF_BSEL = OFF_W4 + RBB         # (B_BLK, RBB)  batch-row selector (rows 0..B_BLK-1)
OFF_BIAS = OFF_BSEL + RBB       # (1, 128)      classifier bias / F2 (row 0)
OFF_POOL = OFF_BIAS + OUT_LANES # (T1, T3PAD)   AvgPool(1,4) + block2 zero pad (rows 0..T1-1)
OFF_G    = OFF_POOL + T3PAD     # (RBB, nC*T3)  AvgPool(1,8) + last conv folded
OFF_W3   = OFF_G + N_CLASS * T3 # (RBB, C2)     block2 depthwise taps, lane-major
OFF_SH2  = OFF_W3 + C2          # (RBB, 1)      bn1-shift-through-dwconv + bn2 shift
OFF_SH3  = OFF_SH2 + 1          # (RBB, 1)      bn3 shift
W_SLAB   = OFF_SH3 + 1          # 992


def _elu(v):
    # torch.nn.ELU(alpha=1.0)
    return jnp.where(v > 0, v, jnp.exp(jnp.minimum(v, 0.0)) - 1.0)


# ------------------------------ the Pallas kernel ------------------------------
def eegnet_kernel(xin_ref, w_ref, out_ref):
    # ---- block1: temporal conv o depthwise spatial conv o BN1/BN2, one MXU dot ----
    out2 = jnp.dot(w_ref[:, OFF_WC:OFF_WC + KIM], xin_ref[...],
                   preferred_element_type=jnp.float32)               # (RBB, T1)
    out2 = _elu(out2 + w_ref[:, OFF_SH2:OFF_SH2 + 1])

    # ---- AvgPool2d((1,4)) with block2 zero padding baked into the matrix ----
    out3 = jnp.dot(out2, w_ref[0:T1, OFF_POOL:OFF_POOL + T3PAD],
                   preferred_element_type=jnp.float32)               # (RBB, T3PAD)

    # ---- block2 depthwise temporal conv (1, 22), per-row lane-major taps ----
    # TODO(synk): at realistic sizes (nTime in the thousands) move this serial
    # 22-tap chain onto the MXU via a host-built banded matrix per F1D group.
    w3 = w_ref[:, OFF_W3:OFF_W3 + C2]                                # (RBB, C2)
    acc2 = jnp.zeros((RBB, T3), jnp.float32)
    for k in range(C2):                                              # static unroll
        acc2 = acc2 + w3[:, k:k + 1] * out3[:, k:k + T3]

    # ---- pointwise 1x1 conv (bn3 scale folded) + bn3 shift + ELU ----
    out5 = jnp.dot(w_ref[:, OFF_W4:OFF_W4 + RBB], acc2,
                   preferred_element_type=jnp.float32)               # (RBB, T3)
    out5 = _elu(out5 + w_ref[:, OFF_SH3:OFF_SH3 + 1])

    # ---- AvgPool2d((1,8)) + last conv folded into G; per-class lane reduce ----
    g_all = w_ref[:, OFF_G:OFF_G + N_CLASS * T3]                     # (RBB, nClass*T3)
    lane = lax.broadcasted_iota(jnp.int32, (1, OUT_LANES), 1)
    rhs = w_ref[0:1, OFF_BIAS:OFF_BIAS + OUT_LANES]                  # bias/F2 row (1,128)
    for c in range(N_CLASS):
        col = jnp.sum(g_all[:, c * T3:(c + 1) * T3] * out5,
                      axis=1, keepdims=True)                         # (RBB, 1)
        rhs = rhs + col * jnp.where(lane == c, 1.0, 0.0)             # (RBB, 128)

    # ---- batch-row gather + bias in ONE lane-dense dot; single unmasked store ----
    out_ref[...] = jnp.dot(w_ref[0:B_BLK, OFF_BSEL:OFF_BSEL + RBB], rhs,
                           preferred_element_type=jnp.float32)       # (B_BLK, 128)


# ------------------------------ wrapper ----------------------------------------
def eegnet_forward(x, w1, w2, w3, w4, wl, bl,
                   bn1_s, bn1_b, bn2_s, bn2_b, bn3_s, bn3_b):
    f32 = jnp.float32

    # ----- im2col lift of the zero-padded input: row = blk*KIM + (c*B + b)*C1 + k ----
    xpad = jnp.pad(x, ((0, 0), (0, 0), (PAD1, PAD1)))                # (N, nChan, TPAD1)
    win = xpad[:, :, jnp.arange(T1)[:, None] + jnp.arange(C1)[None, :]]  # (N,nChan,T1,C1)
    win = win.reshape(NBLK, B_BLK, N_CHAN, T1, C1)
    win = jnp.transpose(win, (0, 2, 1, 4, 3))                        # (NBLK,nChan,B,C1,T1)
    xlift = win.reshape(NBLK * KIM, T1).astype(f32)

    # ----- block1 combined weight (bn1/bn2 scales folded), batch-block-diagonal -----
    f_of = jnp.arange(F1D) // D                                      # group index per fd
    w1g = w1[:, 0, 0, :][f_of]                                       # (F1D, C1)
    w2e = w2[:, 0, :, 0]                                             # (F1D, nChan)
    wc_fck = (bn2_s * bn1_s[f_of])[:, None, None] * w2e[:, :, None] * w1g[:, None, :]
    eyeB = jnp.eye(B_BLK, dtype=f32)
    wc_row = jnp.einsum('bq,fck->fbcqk', eyeB, wc_fck).reshape(RBB, KIM)

    # bn1 shift propagated through the spatial conv + bn2 shift; bn3 shift
    shift2 = bn2_b + bn2_s * bn1_b[f_of] * jnp.sum(w2e, axis=1)      # (F1D,)
    shift2_row = jnp.repeat(shift2, B_BLK)                           # (RBB,)
    shift3_row = jnp.repeat(bn3_b, B_BLK)                            # (RBB,)

    # AvgPool2d((1,4), floor) with block2 zero padding baked in
    i1 = jnp.arange(T1)[:, None]
    j1 = jnp.arange(T3PAD)[None, :]
    t_out = j1 - PAD2
    pool1p = jnp.where((t_out >= 0) & (t_out < T2) & (i1 // 4 == t_out)
                       & (i1 < T2 * 4), 0.25, 0.0).astype(f32)       # (T1, T3PAD)

    # block2 depthwise taps, lane-major (one 22-lane strip per activation row)
    w3taps = jnp.repeat(w3[:, 0, 0, :], B_BLK, axis=0)               # (RBB, C2)

    # pointwise 1x1 conv with bn3 scale folded, batch-block-diagonal
    w4f = w4[:, :, 0, 0] * bn3_s[:, None]                            # (F2, F1D)
    w4b = jnp.kron(w4f, eyeB)                                        # (RBB, RBB)

    # AvgPool2d((1,8), floor) + last conv folded: G[c,fd,t3]
    i2 = jnp.arange(T3)[:, None]
    j2 = jnp.arange(T4)[None, :]
    pool2 = jnp.where((i2 // 8 == j2) & (i2 < T4 * 8), 1.0 / 8.0, 0.0)    # (T3, T4)
    g = jnp.einsum('cot,st->cos', wl[:, :, 0, :], pool2)             # (nClass, F2, T3)
    gslab = jnp.transpose(jnp.repeat(g, B_BLK, axis=1),
                          (1, 0, 2)).reshape(RBB, N_CLASS * T3)      # (RBB, nClass*T3)

    # batch-row selector and bias/F2 row (each selector row has exactly F2 ones,
    # so adding bias/F2 to every activation row folds the bias into the final dot)
    bsel = jnp.tile(eyeB, (1, F2))                                   # (B_BLK, RBB)
    bias_row = jnp.zeros((OUT_LANES,), f32).at[:N_CLASS].set(bl / F2)

    # ----- single packed, lane-padded weight slab (one DMA instead of seven) -----
    wslab = jnp.zeros((RBB, W_SLAB), f32)
    wslab = wslab.at[:, OFF_WC:OFF_WC + KIM].set(wc_row.astype(f32))
    wslab = wslab.at[:, OFF_W4:OFF_W4 + RBB].set(w4b.astype(f32))
    wslab = wslab.at[:B_BLK, OFF_BSEL:OFF_BSEL + RBB].set(bsel)
    wslab = wslab.at[0, OFF_BIAS:OFF_BIAS + OUT_LANES].set(bias_row)
    wslab = wslab.at[:T1, OFF_POOL:OFF_POOL + T3PAD].set(pool1p)
    wslab = wslab.at[:, OFF_G:OFF_G + N_CLASS * T3].set(gslab.astype(f32))
    wslab = wslab.at[:, OFF_W3:OFF_W3 + C2].set(w3taps.astype(f32))
    wslab = wslab.at[:, OFF_SH2].set(shift2_row.astype(f32))
    wslab = wslab.at[:, OFF_SH3].set(shift3_row.astype(f32))

    flops_step = (2 * RBB * (KIM * T1 + T1 * T3PAD + C2 * T3 + RBB * T3
                             + N_CLASS * T3)
                  + 2 * B_BLK * RBB * OUT_LANES)
    cost = pl.CostEstimate(
        flops=NBLK * flops_step,
        transcendentals=NBLK * RBB * (T1 + T3),
        bytes_accessed=4 * (NBLK * KIM * T1 + RBB * W_SLAB + N_BATCH * OUT_LANES))

    grid_spec = pltpu.PrefetchScalarGridSpec(
        num_scalar_prefetch=0,
        grid=(NBLK,),                                   # batch blocks; v7x TCs split them
        in_specs=[pl.BlockSpec((KIM, T1), lambda i: (i, 0)),       # per-block im2col input
                  pl.BlockSpec((RBB, W_SLAB), lambda i: (0, 0))],  # shared weight slab
        out_specs=pl.BlockSpec((B_BLK, OUT_LANES), lambda i: (i, 0)),
    )

    out = pl.pallas_call(
        eegnet_kernel,
        out_shape=jax.ShapeDtypeStruct((N_BATCH, OUT_LANES), jnp.float32),
        grid_spec=grid_spec,
        compiler_params=pltpu.CompilerParams(dimension_semantics=("parallel",)),
        cost_estimate=cost,
    )(xlift, wslab)
    return out[:, :N_CLASS]                                          # (N, nClass)


# --------------------- independent pure-JAX (XLA) reference --------------------
def reference_forward(x, w1, w2, w3, w4, wl, bl,
                      bn1_s, bn1_b, bn2_s, bn2_b, bn3_s, bn3_b):
    dn = ('NCHW', 'OIHW', 'NCHW')
    prec = lax.Precision.HIGHEST
    h = x[:, None, :, :]
    h = lax.conv_general_dilated(h, w1, (1, 1), [(0, 0), (PAD1, PAD1)],
                                 dimension_numbers=dn, precision=prec)
    h = h * bn1_s[None, :, None, None] + bn1_b[None, :, None, None]
    h = lax.conv_general_dilated(h, w2, (1, 1), [(0, 0), (0, 0)], dimension_numbers=dn,
                                 feature_group_count=F1, precision=prec)
    h = _elu(h * bn2_s[None, :, None, None] + bn2_b[None, :, None, None])
    t = h.shape[-1] // 4
    h = h[..., :t * 4].reshape(h.shape[0], h.shape[1], h.shape[2], t, 4).mean(-1)
    h = lax.conv_general_dilated(h, w3, (1, 1), [(0, 0), (PAD2, PAD2)], dimension_numbers=dn,
                                 feature_group_count=F1D, precision=prec)
    h = lax.conv_general_dilated(h, w4, (1, 1), [(0, 0), (0, 0)],
                                 dimension_numbers=dn, precision=prec)
    h = _elu(h * bn3_s[None, :, None, None] + bn3_b[None, :, None, None])
    t = h.shape[-1] // 8
    h = h[..., :t * 8].reshape(h.shape[0], h.shape[1], h.shape[2], t, 8).mean(-1)
    h = lax.conv_general_dilated(h, wl, (1, 1), [(0, 0), (0, 0)],
                                 dimension_numbers=dn, precision=prec)
    h = h + bl[None, :, None, None]
    return h[:, :, 0, 0]


# ------------------------------ main --------------------------------------------
if __name__ == "__main__":
    key = jax.random.PRNGKey(0)
    ks = jax.random.split(key, 10)
    x = jax.random.normal(ks[0], (N_BATCH, N_CHAN, N_TIME), jnp.float32)

    # conv weights in PyTorch OIHW layout, deterministic
    w1 = 0.3 * jax.random.normal(ks[1], (F1, 1, 1, C1), jnp.float32)
    w2 = 0.6 * jax.random.normal(ks[2], (F1D, 1, N_CHAN, 1), jnp.float32)
    w3 = 0.3 * jax.random.normal(ks[3], (F1D, 1, 1, C2), jnp.float32)
    w4 = 0.3 * jax.random.normal(ks[4], (F2, F1D, 1, 1), jnp.float32)
    wl = 0.3 * jax.random.normal(ks[5], (N_CLASS, F2, 1, T4), jnp.float32)
    bl = 0.1 * jax.random.normal(ks[6], (N_CLASS,), jnp.float32)

    # Conv2dWithConstraint: torch.renorm(p=2, dim=0, maxnorm=1) applied to the
    # depthwise weight (host-side weight preprocessing, exactly as torch does)
    norms = jnp.sqrt(jnp.sum(w2 * w2, axis=(1, 2, 3), keepdims=True))
    w2 = w2 * jnp.where(norms > 1.0, 1.0 / (norms + 1e-7), 1.0)

    # BatchNorm2d params (eval mode, running stats) folded into scale/shift
    def bn_params(k, c):
        kg, kb, km, kv = jax.random.split(k, 4)
        gamma = 1.0 + 0.1 * jax.random.normal(kg, (c,), jnp.float32)
        beta  = 0.1 * jax.random.normal(kb, (c,), jnp.float32)
        mean  = 0.1 * jax.random.normal(km, (c,), jnp.float32)
        var   = 0.5 + 0.5 * jnp.abs(jax.random.normal(kv, (c,), jnp.float32))
        scale = gamma / jnp.sqrt(var + BN_EPS)
        shift = beta - mean * scale
        return scale, shift

    bn1_s, bn1_b = bn_params(ks[7], F1)
    bn2_s, bn2_b = bn_params(ks[8], F1D)
    bn3_s, bn3_b = bn_params(ks[9], F2)

    # Dropout layers are identity in eval mode (the module is left in eval()).
    out = eegnet_forward(x, w1, w2, w3, w4, wl, bl,
                         bn1_s, bn1_b, bn2_s, bn2_b, bn3_s, bn3_b)
    out = jax.block_until_ready(out)

    ref = reference_forward(x, w1, w2, w3, w4, wl, bl,
                            bn1_s, bn1_b, bn2_s, bn2_b, bn3_s, bn3_b)
    ref = jax.block_until_ready(ref)

    assert out.shape == (N_BATCH, N_CLASS), out.shape
    # Kernel MXU dots run at default (bf16-input) precision per perf feedback;
    # the reference runs at HIGHEST, hence the slightly relaxed tolerance.
    assert jnp.allclose(out, ref, atol=5e-2, rtol=5e-2), (out, ref)
    print("KERNEL_OK")
</pallas_src>

<mosaic_0001>
module attributes {stable_mosaic.version = 11 : i64} {
  func.func @eegnet_kernel(%arg0: i32, %arg1: memref<512x65xf32, #tpu.memory_space<vmem>>, %arg2: memref<128x992xf32, #tpu.memory_space<vmem>>, %arg3: memref<8x128xf32, #tpu.memory_space<vmem>>) attributes {dimension_semantics = [#tpu.dimension_semantics<parallel>], iteration_bounds = array<i64: 2>, scalar_prefetch = 0 : i64, scratch_operands = 0 : i64, tpu.core_type = #tpu.core_type<tc>, window_params = [{transform_indices = @transform_0, window_bounds = array<i64: 512, 65>}, {pipeline_mode = #tpu.pipeline_mode<synchronous>, transform_indices = @transform_1, window_bounds = array<i64: 128, 992>}, {transform_indices = @transform_2, window_bounds = array<i64: 8, 128>}]} {
    %c0 = arith.constant 0 : index
    %c0_0 = arith.constant 0 : index
    %0 = vector.load %arg2[%c0, %c0_0] : memref<128x992xf32, #tpu.memory_space<vmem>>, vector<128x512xf32>
    %c0_1 = arith.constant 0 : index
    %c0_2 = arith.constant 0 : index
    %1 = vector.load %arg1[%c0_1, %c0_2] : memref<512x65xf32, #tpu.memory_space<vmem>>, vector<512x65xf32>
    %cst = arith.constant dense<0.000000e+00> : vector<128x65xf32>
    %2 = tpu.matmul %0, %1, %cst {dimension_numbers = #tpu.dot_dimension_numbers<[1], [0], [0], [1], [0, 0, 1, 1], [], []>} : vector<128x512xf32>, vector<512x65xf32>, vector<128x65xf32> -> vector<128x65xf32>
    %c0_3 = arith.constant 0 : index
    %c990 = arith.constant 990 : index
    %3 = vector.load %arg2[%c0_3, %c990] : memref<128x992xf32, #tpu.memory_space<vmem>>, vector<128x1xf32>
    %4 = vector.broadcast %3 : vector<128x1xf32> to vector<128x65xf32>
    %5 = arith.addf %2, %4 : vector<128x65xf32>
    %cst_4 = arith.constant 0.000000e+00 : f32
    %6 = vector.broadcast %cst_4 : f32 to vector<128x65xf32>
    %7 = arith.cmpf ogt, %5, %6 : vector<128x65xf32>
    %cst_5 = arith.constant 0.000000e+00 : f32
    %8 = vector.broadcast %cst_5 : f32 to vector<128x65xf32>
    %9 = arith.minimumf %5, %8 : vector<128x65xf32>
    %10 = math.exp %9 : vector<128x65xf32>
    %cst_6 = arith.constant 1.000000e+00 : f32
    %11 = vector.broadcast %cst_6 : f32 to vector<128x65xf32>
    %12 = arith.subf %10, %11 : vector<128x65xf32>
    %13 = arith.select %7, %5, %12 : vector<128x65xi1>, vector<128x65xf32>
    %c0_7 = arith.constant 0 : index
    %c896 = arith.constant 896 : index
    %14 = vector.load %arg2[%c0_7, %c896] : memref<128x992xf32, #tpu.memory_space<vmem>>, vector<65x38xf32>
    %cst_8 = arith.constant dense<0.000000e+00> : vector<128x38xf32>
    %15 = tpu.matmul %13, %14, %cst_8 {dimension_numbers = #tpu.dot_dimension_numbers<[1], [0], [0], [1], [0, 0, 1, 1], [], []>} : vector<128x65xf32>, vector<65x38xf32>, vector<128x38xf32> -> vector<128x38xf32>
    %c0_9 = arith.constant 0 : index
    %c968 = arith.constant 968 : index
    %16 = vector.load %arg2[%c0_9, %c968] : memref<128x992xf32, #tpu.memory_space<vmem>>, vector<128x22xf32>
    %cst_10 = arith.constant 0.000000e+00 : f32
    %17 = vector.broadcast %cst_10 : f32 to vector<128x17xf32>
    %18 = vector.extract_strided_slice %16 {offsets = [0, 0], sizes = [128, 1], strides = [1, 1]} : vector<128x22xf32> to vector<128x1xf32>
    %19 = vector.extract_strided_slice %15 {offsets = [0, 0], sizes = [128, 17], strides = [1, 1]} : vector<128x38xf32> to vector<128x17xf32>
    %20 = vector.broadcast %18 : vector<128x1xf32> to vector<128x17xf32>
    %21 = arith.mulf %20, %19 : vector<128x17xf32>
    %22 = arith.addf %17, %21 : vector<128x17xf32>
    %23 = vector.extract_strided_slice %16 {offsets = [0, 1], sizes = [128, 1], strides = [1, 1]} : vector<128x22xf32> to vector<128x1xf32>
    %24 = vector.extract_strided_slice %15 {offsets = [0, 1], sizes = [128, 17], strides = [1, 1]} : vector<128x38xf32> to vector<128x17xf32>
    %25 = vector.broadcast %23 : vector<128x1xf32> to vector<128x17xf32>
    %26 = arith.mulf %25, %24 : vector<128x17xf32>
    %27 = arith.addf %22, %26 : vector<128x17xf32>
    %28 = vector.extract_strided_slice %16 {offsets = [0, 2], sizes = [128, 1], strides = [1, 1]} : vector<128x22xf32> to vector<128x1xf32>
    %29 = vector.extract_strided_slice %15 {offsets = [0, 2], sizes = [128, 17], strides = [1, 1]} : vector<128x38xf32> to vector<128x17xf32>
    %30 = vector.broadcast %28 : vector<128x1xf32> to vector<128x17xf32>
    %31 = arith.mulf %30, %29 : vector<128x17xf32>
    %32 = arith.addf %27, %31 : vector<128x17xf32>
    %33 = vector.extract_strided_slice %16 {offsets = [0, 3], sizes = [128, 1], strides = [1, 1]} : vector<128x22xf32> to vector<128x1xf32>
    %34 = vector.extract_strided_slice %15 {offsets = [0, 3], sizes = [128, 17], strides = [1, 1]} : vector<128x38xf32> to vector<128x17xf32>
    %35 = vector.broadcast %33 : vector<128x1xf32> to vector<128x17xf32>
    %36 = arith.mulf %35, %34 : vector<128x17xf32>
    %37 = arith.addf %32, %36 : vector<128x17xf32>
    %38 = vector.extract_strided_slice %16 {offsets = [0, 4], sizes = [128, 1], strides = [1, 1]} : vector<128x22xf32> to vector<128x1xf32>
    %39 = vector.extract_strided_slice %15 {offsets = [0, 4], sizes = [128, 17], strides = [1, 1]} : vector<128x38xf32> to vector<128x17xf32>
    %40 = vector.broadcast %38 : vector<128x1xf32> to vector<128x17xf32>
    %41 = arith.mulf %40, %39 : vector<128x17xf32>
    %42 = arith.addf %37, %41 : vector<128x17xf32>
    %43 = vector.extract_strided_slice %16 {offsets = [0, 5], sizes = [128, 1], strides = [1, 1]} : vector<128x22xf32> to vector<128x1xf32>
    %44 = vector.extract_strided_slice %15 {offsets = [0, 5], sizes = [128, 17], strides = [1, 1]} : vector<128x38xf32> to vector<128x17xf32>
    %45 = vector.broadcast %43 : vector<128x1xf32> to vector<128x17xf32>
    %46 = arith.mulf %45, %44 : vector<128x17xf32>
    %47 = arith.addf %42, %46 : vector<128x17xf32>
    %48 = vector.extract_strided_slice %16 {offsets = [0, 6], sizes = [128, 1], strides = [1, 1]} : vector<128x22xf32> to vector<128x1xf32>
    %49 = vector.extract_strided_slice %15 {offsets = [0, 6], sizes = [128, 17], strides = [1, 1]} : vector<128x38xf32> to vector<128x17xf32>
    %50 = vector.broadcast %48 : vector<128x1xf32> to vector<128x17xf32>
    %51 = arith.mulf %50, %49 : vector<128x17xf32>
    %52 = arith.addf %47, %51 : vector<128x17xf32>
    %53 = vector.extract_strided_slice %16 {offsets = [0, 7], sizes = [128, 1], strides = [1, 1]} : vector<128x22xf32> to vector<128x1xf32>
    %54 = vector.extract_strided_slice %15 {offsets = [0, 7], sizes = [128, 17], strides = [1, 1]} : vector<128x38xf32> to vector<128x17xf32>
    %55 = vector.broadcast %53 : vector<128x1xf32> to vector<128x17xf32>
    %56 = arith.mulf %55, %54 : vector<128x17xf32>
    %57 = arith.addf %52, %56 : vector<128x17xf32>
    %58 = vector.extract_strided_slice %16 {offsets = [0, 8], sizes = [128, 1], strides = [1, 1]} : vector<128x22xf32> to vector<128x1xf32>
    %59 = vector.extract_strided_slice %15 {offsets = [0, 8], sizes = [128, 17], strides = [1, 1]} : vector<128x38xf32> to vector<128x17xf32>
    %60 = vector.broadcast %58 : vector<128x1xf32> to vector<128x17xf32>
    %61 = arith.mulf %60, %59 : vector<128x17xf32>
    %62 = arith.addf %57, %61 : vector<128x17xf32>
    %63 = vector.extract_strided_slice %16 {offsets = [0, 9], sizes = [128, 1], strides = [1, 1]} : vector<128x22xf32> to vector<128x1xf32>
    %64 = vector.extract_strided_slice %15 {offsets = [0, 9], sizes = [128, 17], strides = [1, 1]} : vector<128x38xf32> to vector<128x17xf32>
    %65 = vector.broadcast %63 : vector<128x1xf32> to vector<128x17xf32>
    %66 = arith.mulf %65, %64 : vector<128x17xf32>
    %67 = arith.addf %62, %66 : vector<128x17xf32>
    %68 = vector.extract_strided_slice %16 {offsets = [0, 10], sizes = [128, 1], strides = [1, 1]} : vector<128x22xf32> to vector<128x1xf32>
    %69 = vector.extract_strided_slice %15 {offsets = [0, 10], sizes = [128, 17], strides = [1, 1]} : vector<128x38xf32> to vector<128x17xf32>
    %70 = vector.broadcast %68 : vector<128x1xf32> to vector<128x17xf32>
    %71 = arith.mulf %70, %69 : vector<128x17xf32>
    %72 = arith.addf %67, %71 : vector<128x17xf32>
    %73 = vector.extract_strided_slice %16 {offsets = [0, 11], sizes = [128, 1], strides = [1, 1]} : vector<128x22xf32> to vector<128x1xf32>
    %74 = vector.extract_strided_slice %15 {offsets = [0, 11], sizes = [128, 17], strides = [1, 1]} : vector<128x38xf32> to vector<128x17xf32>
    %75 = vector.broadcast %73 : vector<128x1xf32> to vector<128x17xf32>
    %76 = arith.mulf %75, %74 : vector<128x17xf32>
    %77 = arith.addf %72, %76 : vector<128x17xf32>
    %78 = vector.extract_strided_slice %16 {offsets = [0, 12], sizes = [128, 1], strides = [1, 1]} : vector<128x22xf32> to vector<128x1xf32>
    %79 = vector.extract_strided_slice %15 {offsets = [0, 12], sizes = [128, 17], strides = [1, 1]} : vector<128x38xf32> to vector<128x17xf32>
    %80 = vector.broadcast %78 : vector<128x1xf32> to vector<128x17xf32>
    %81 = arith.mulf %80, %79 : vector<128x17xf32>
    %82 = arith.addf %77, %81 : vector<128x17xf32>
    %83 = vector.extract_strided_slice %16 {offsets = [0, 13], sizes = [128, 1], strides = [1, 1]} : vector<128x22xf32> to vector<128x1xf32>
    %84 = vector.extract_strided_slice %15 {offsets = [0, 13], sizes = [128, 17], strides = [1, 1]} : vector<128x38xf32> to vector<128x17xf32>
    %85 = vector.broadcast %83 : vector<128x1xf32> to vector<128x17xf32>
    %86 = arith.mulf %85, %84 : vector<128x17xf32>
    %87 = arith.addf %82, %86 : vector<128x17xf32>
    %88 = vector.extract_strided_slice %16 {offsets = [0, 14], sizes = [128, 1], strides = [1, 1]} : vector<128x22xf32> to vector<128x1xf32>
    %89 = vector.extract_strided_slice %15 {offsets = [0, 14], sizes = [128, 17], strides = [1, 1]} : vector<128x38xf32> to vector<128x17xf32>
    %90 = vector.broadcast %88 : vector<128x1xf32> to vector<128x17xf32>
    %91 = arith.mulf %90, %89 : vector<128x17xf32>
    %92 = arith.addf %87, %91 : vector<128x17xf32>
    %93 = vector.extract_strided_slice %16 {offsets = [0, 15], sizes = [128, 1], strides = [1, 1]} : vector<128x22xf32> to vector<128x1xf32>
    %94 = vector.extract_strided_slice %15 {offsets = [0, 15], sizes = [128, 17], strides = [1, 1]} : vector<128x38xf32> to vector<128x17xf32>
    %95 = vector.broadcast %93 : vector<128x1xf32> to vector<128x17xf32>
    %96 = arith.mulf %95, %94 : vector<128x17xf32>
    %97 = arith.addf %92, %96 : vector<128x17xf32>
    %98 = vector.extract_strided_slice %16 {offsets = [0, 16], sizes = [128, 1], strides = [1, 1]} : vector<128x22xf32> to vector<128x1xf32>
    %99 = vector.extract_strided_slice %15 {offsets = [0, 16], sizes = [128, 17], strides = [1, 1]} : vector<128x38xf32> to vector<128x17xf32>
    %100 = vector.broadcast %98 : vector<128x1xf32> to vector<128x17xf32>
    %101 = arith.mulf %100, %99 : vector<128x17xf32>
    %102 = arith.addf %97, %101 : vector<128x17xf32>
    %103 = vector.extract_strided_slice %16 {offsets = [0, 17], sizes = [128, 1], strides = [1, 1]} : vector<128x22xf32> to vector<128x1xf32>
    %104 = vector.extract_strided_slice %15 {offsets = [0, 17], sizes = [128, 17], strides = [1, 1]} : vector<128x38xf32> to vector<128x17xf32>
    %105 = vector.broadcast %103 : vector<128x1xf32> to vector<128x17xf32>
    %106 = arith.mulf %105, %104 : vector<128x17xf32>
    %107 = arith.addf %102, %106 : vector<128x17xf32>
    %108 = vector.extract_strided_slice %16 {offsets = [0, 18], sizes = [128, 1], strides = [1, 1]} : vector<128x22xf32> to vector<128x1xf32>
    %109 = vector.extract_strided_slice %15 {offsets = [0, 18], sizes = [128, 17], strides = [1, 1]} : vector<128x38xf32> to vector<128x17xf32>
    %110 = vector.broadcast %108 : vector<128x1xf32> to vector<128x17xf32>
    %111 = arith.mulf %110, %109 : vector<128x17xf32>
    %112 = arith.addf %107, %111 : vector<128x17xf32>
    %113 = vector.extract_strided_slice %16 {offsets = [0, 19], sizes = [128, 1], strides = [1, 1]} : vector<128x22xf32> to vector<128x1xf32>
    %114 = vector.extract_strided_slice %15 {offsets = [0, 19], sizes = [128, 17], strides = [1, 1]} : vector<128x38xf32> to vector<128x17xf32>
    %115 = vector.broadcast %113 : vector<128x1xf32> to vector<128x17xf32>
    %116 = arith.mulf %115, %114 : vector<128x17xf32>
    %117 = arith.addf %112, %116 : vector<128x17xf32>
    %118 = vector.extract_strided_slice %16 {offsets = [0, 20], sizes = [128, 1], strides = [1, 1]} : vector<128x22xf32> to vector<128x1xf32>
    %119 = vector.extract_strided_slice %15 {offsets = [0, 20], sizes = [128, 17], strides = [1, 1]} : vector<128x38xf32> to vector<128x17xf32>
    %120 = vector.broadcast %118 : vector<128x1xf32> to vector<128x17xf32>
    %121 = arith.mulf %120, %119 : vector<128x17xf32>
    %122 = arith.addf %117, %121 : vector<128x17xf32>
    %123 = vector.extract_strided_slice %16 {offsets = [0, 21], sizes = [128, 1], strides = [1, 1]} : vector<128x22xf32> to vector<128x1xf32>
    %124 = vector.extract_strided_slice %15 {offsets = [0, 21], sizes = [128, 17], strides = [1, 1]} : vector<128x38xf32> to vector<128x17xf32>
    %125 = vector.broadcast %123 : vector<128x1xf32> to vector<128x17xf32>
    %126 = arith.mulf %125, %124 : vector<128x17xf32>
    %127 = arith.addf %122, %126 : vector<128x17xf32>
    %c0_11 = arith.constant 0 : index
    %c512 = arith.constant 512 : index
    %128 = vector.load %arg2[%c0_11, %c512] : memref<128x992xf32, #tpu.memory_space<vmem>>, vector<128x128xf32>
    %cst_12 = arith.constant dense<0.000000e+00> : vector<128x17xf32>
    %129 = tpu.matmul %128, %127, %cst_12 {dimension_numbers = #tpu.dot_dimension_numbers<[1], [0], [0], [1], [0, 0, 1, 1], [], []>} : vector<128x128xf32>, vector<128x17xf32>, vector<128x17xf32> -> vector<128x17xf32>
    %c0_13 = arith.constant 0 : index
    %c991 = arith.constant 991 : index
    %130 = vector.load %arg2[%c0_13, %c991] : memref<128x992xf32, #tpu.memory_space<vmem>>, vector<128x1xf32>
    %131 = vector.broadcast %130 : vector<128x1xf32> to vector<128x17xf32>
    %132 = arith.addf %129, %131 : vector<128x17xf32>
    %cst_14 = arith.constant 0.000000e+00 : f32
    %133 = vector.broadcast %cst_14 : f32 to vector<128x17xf32>
    %134 = arith.cmpf ogt, %132, %133 : vector<128x17xf32>
    %cst_15 = arith.constant 0.000000e+00 : f32
    %135 = vector.broadcast %cst_15 : f32 to vector<128x17xf32>
    %136 = arith.minimumf %132, %135 : vector<128x17xf32>
    %137 = math.exp %136 : vector<128x17xf32>
    %cst_16 = arith.constant 1.000000e+00 : f32
    %138 = vector.broadcast %cst_16 : f32 to vector<128x17xf32>
    %139 = arith.subf %137, %138 : vector<128x17xf32>
    %140 = arith.select %134, %132, %139 : vector<128x17xi1>, vector<128x17xf32>
    %c0_17 = arith.constant 0 : index
    %c934 = arith.constant 934 : index
    %141 = vector.load %arg2[%c0_17, %c934] : memref<128x992xf32, #tpu.memory_space<vmem>>, vector<128x34xf32>
    %142 = tpu.iota {dimensions = array<i32: 1>} : vector<1x128xi32>
    %c0_18 = arith.constant 0 : index
    %c768 = arith.constant 768 : index
    %143 = vector.load %arg2[%c0_18, %c768] : memref<128x992xf32, #tpu.memory_space<vmem>>, vector<1x128xf32>
    %144 = vector.extract_strided_slice %141 {offsets = [0, 0], sizes = [128, 17], strides = [1, 1]} : vector<128x34xf32> to vector<128x17xf32>
    %145 = arith.mulf %144, %140 : vector<128x17xf32>
    %cst_19 = arith.constant dense<0.000000e+00> : vector<128xf32>
    %146 = vector.multi_reduction <add>, %145, %cst_19 [1] : vector<128x17xf32> to vector<128xf32>
    %147 = vector.shape_cast %146 : vector<128xf32> to vector<128x1xf32>
    %c0_i32 = arith.constant 0 : i32
    %148 = vector.broadcast %c0_i32 : i32 to vector<1x128xi32>
    %149 = arith.cmpi eq, %142, %148 : vector<1x128xi32>
    %cst_20 = arith.constant 1.000000e+00 : f32
    %cst_21 = arith.constant 0.000000e+00 : f32
    %150 = vector.broadcast %cst_20 : f32 to vector<1x128xf32>
    %151 = vector.broadcast %cst_21 : f32 to vector<1x128xf32>
    %152 = arith.select %149, %150, %151 : vector<1x128xi1>, vector<1x128xf32>
    %153 = vector.broadcast %147 : vector<128x1xf32> to vector<128x128xf32>
    %154 = vector.broadcast %152 : vector<1x128xf32> to vector<128x128xf32>
    %155 = arith.mulf %153, %154 : vector<128x128xf32>
    %156 = vector.broadcast %143 : vector<1x128xf32> to vector<128x128xf32>
    %157 = arith.addf %156, %155 : vector<128x128xf32>
    %158 = vector.extract_strided_slice %141 {offsets = [0, 17], sizes = [128, 17], strides = [1, 1]} : vector<128x34xf32> to vector<128x17xf32>
    %159 = arith.mulf %158, %140 : vector<128x17xf32>
    %cst_22 = arith.constant dense<0.000000e+00> : vector<128xf32>
    %160 = vector.multi_reduction <add>, %159, %cst_22 [1] : vector<128x17xf32> to vector<128xf32>
    %161 = vector.shape_cast %160 : vector<128xf32> to vector<128x1xf32>
    %c1_i32 = arith.constant 1 : i32
    %162 = vector.broadcast %c1_i32 : i32 to vector<1x128xi32>
    %163 = arith.cmpi eq, %142, %162 : vector<1x128xi32>
    %cst_23 = arith.constant 1.000000e+00 : f32
    %cst_24 = arith.constant 0.000000e+00 : f32
    %164 = vector.broadcast %cst_23 : f32 to vector<1x128xf32>
    %165 = vector.broadcast %cst_24 : f32 to vector<1x128xf32>
    %166 = arith.select %163, %164, %165 : vector<1x128xi1>, vector<1x128xf32>
    %167 = vector.broadcast %161 : vector<128x1xf32> to vector<128x128xf32>
    %168 = vector.broadcast %166 : vector<1x128xf32> to vector<128x128xf32>
    %169 = arith.mulf %167, %168 : vector<128x128xf32>
    %170 = arith.addf %157, %169 : vector<128x128xf32>
    %c0_25 = arith.constant 0 : index
    %c640 = arith.constant 640 : index
    %171 = vector.load %arg2[%c0_25, %c640] : memref<128x992xf32, #tpu.memory_space<vmem>>, vector<8x128xf32>
    %cst_26 = arith.constant dense<0.000000e+00> : vector<8x128xf32>
    %172 = tpu.matmul %171, %170, %cst_26 {dimension_numbers = #tpu.dot_dimension_numbers<[1], [0], [0], [1], [0, 0, 1, 1], [], []>} : vector<8x128xf32>, vector<128x128xf32>, vector<8x128xf32> -> vector<8x128xf32>
    %c0_27 = arith.constant 0 : index
    %c0_28 = arith.constant 0 : index
    %173 = vector.load %arg3[%c0_27, %c0_28] : memref<8x128xf32, #tpu.memory_space<vmem>>, vector<8x128xf32>
    tpu.vector_store %arg3[%c0_27, %c0_28], %172 {strides = array<i32>} : memref<8x128xf32, #tpu.memory_space<vmem>>, vector<8x128xf32>,
    return
  }
  func.func @transform_0(%arg0: i32) -> (i32, i32) {
    %c0_i32 = arith.constant 0 : i32
    %c0_i32_0 = arith.constant 0 : i32
    return %arg0, %c0_i32 : i32, i32
  }
  func.func @transform_1(%arg0: i32) -> (i32, i32) {
    %c0_i32 = arith.constant 0 : i32
    %c0_i32_0 = arith.constant 0 : i32
    %c0_i32_1 = arith.constant 0 : i32
    return %c0_i32, %c0_i32_0 : i32, i32
  }
  func.func @transform_2(%arg0: i32) -> (i32, i32) {
    %c0_i32 = arith.constant 0 : i32
    %c0_i32_0 = arith.constant 0 : i32
    return %arg0, %c0_i32 : i32, i32
  }
}

</mosaic_0001>

<bundles_post_ra>
// kernel: tpu_custom_call.1
= control target key start
LH: loop header
LB: loop body
LE: loop exit
PB: predicated region body
PF: predicated region fallthrough
CT: control target
= control target key end

     0   :  { %7 = vsyncpa [#allocation3], 0  ;;  %s10038_s0 = inlined_call_operand.vmem [shape: f32[1024,65], index: 0, kind: input, shape index: {}]   ;;  %s10039_s1 = inlined_call_operand.vmem [shape: f32[128,992], index: 1, kind: input, shape index: {}]   ;;  %s10040_s2 = inlined_call_operand.hbm [shape: f32[16,128], index: 2, kind: output, shape index: {}]  }
   0x1   :  { %9 = vsyncpa [#allocation3 + $0x1], 0  ;;  %s6193_s9 = smov 0   ;;  %s6195_s10 = smov 0  }
   0x2   :  { %s6197_s11 = smov 0   ;;  %s6199_s12 = smov 0  }
   0x3 LB: > { %s6214_s13 = sadd.s32 4294967295, %s6124_s12   ;;  %s5323_s14 = sadd.s32 4294967294, %s6124_s12   ;;  %s6124_s12 = sphi %s6199_s12, %s10725_s12   ;;  %s6120_s11 = sphi %s6197_s11, %s10724_s11   ;;  %s6116_s10 = sphi %s6195_s10, %s10723_s10   ;;  %s6112_s9 = sphi %s6193_s9, %s10722_s9  }
   0x4   : > { %s6218_s15 = sadd.s32 1, %s6124_s12   ;;  %s69_s16 = sadd.s32 1, %s6120_s11 }
   0x5   : > { %s66_s17 = ssub.s32 %s6124_s12, %s6218_s15  ;;  %p79_p0 = scmp.ne.s32.totalorder %s6120_s11, %s6116_s10 }
   0x6   : > { %p67_p1 = scmp.eq.s32.totalorder %s66_s17, 0  ;;  %p80_p2 = scmp.eq.s32.totalorder %s6214_s13, 1 }
   0x7   : > { %p85_p3 = scmp.ne.s32.totalorder %s6116_s10, %s6112_s9  ;;  %p86_p4 = scmp.eq.s32.totalorder %s5323_s14, 1 }
   0x8   : > { %s6229_s18 = scalar_select %p67_p1, %s6120_s11, %s69_s16  }
   0x9   : > { %p6231_p5 = por %p80_p2, %p79_p0  ;;  %p6235_p6 = por %p86_p4, %p85_p3 }
   0xa   : > { %p5326_p7 = scmp.ge.s32.totalorder %s6124_s12, 1  ;;  %p116_p8 = scmp.lt.s32.totalorder %s6124_s12, 3 }
   0xc   : > { %p117_p9 = pnand %p5326_p7, %p116_p8 }
   0xe   : > { %120 = sbr.rel (%p117_p9) target bundleno = 3488 (0xda0), region = 28 }
  0x13   : > { %s5328_s21 = sshll.u32 %s6214_s13, 6  ;;  %v145_v0 = vld [vmem:[%s10039_s1 + $0x8] sm:$0xff]  ;;  %v147_v1 = vld [vmem:[%s10039_s1 + $0x18] sm:$0xff]  ;;  %v6126_v2 = vmov 94   ;;  %vm812_vm0 = vcmask 1040384   ;;  %vm763_vm1 = vcmask 531456  }
  0x14   : > { %p139_p10 = scmp.lt.s32.totalorder %s5328_s21, 127  ;;  %432 = vmatprep.mubr.f32.mxu0 %v145_v0  ;;  %577 = vmatprep.mubr.f32.mxu1 %v147_v1  ;;  %v6251_v3 = vld [vmem:[%s10039_s1 + $0xb8] sm:$0xff]  ;;  %s6135_s30 = smov 126  }
  0x15   : > { %5841 = vset.pattern.permute.xlu1 %v6126_v2  ;;  %5840 = vset.pattern.permute.xlu0 %v6126_v2  ;;  %s6137_s4 = smov 124   ;;  %s6138_s5 = smov 125  }
  0x16   : > { %s10727_s21 = smov (!%p139_p10, %s5328_s21), 127  ;;  %300 = vperm.xlu1 %5841, %v6251_v3   ;;  %s6139_s6 = smov 122  }
  0x17   : > { %s5329_s28 = sshll.u32 %s10727_s21, 3  ;;  %s6140_s7 = smov 123  }
  0x18   : > { %s6257_s3 = scalar_lea.vmem %s10038_s0, %s5329_s28  ;;  %s6141_s8 = smov 121  }
  0x19   : > { %v239_v4 = vld [vmem:[%s6257_s3 + $0xf8] sm:$0xff]  ;;  %v238_v8 = vld [vmem:[%s6257_s3 + $0xf0] sm:$0xff]  ;;  %v237_v12 = vld [vmem:[%s6257_s3 + $0xe8] sm:$0xff]  ;;  %s6144_s14 = smov 120   ;;  %s6158_s16 = smov 113  }
  0x1a   : > { %v271_v5 = vld [vmem:[%s6257_s3 + $0x1f8] sm:$0xff]  ;;  %5383 = vmatprep.subr.mxu0 %v239_v4  ;;  %v270_v9 = vld [vmem:[%s6257_s3 + $0x1f0] sm:$0xff]  ;;  %v269_v13 = vld [vmem:[%s6257_s3 + $0x1e8] sm:$0xff]  ;;  %s6171_s27 = smov 38   ;;  %s6172_s28 = smov 55  }
  0x1b   : > { %v223_v6 = vld [vmem:[%s6257_s3 + $0x78] sm:$0xff]  ;;  %5463 = vmatprep.subr.mxu1 %v271_v5  ;;  %v222_v10 = vld [vmem:[%s6257_s3 + $0x70] sm:$0xff]  ;;  %v221_v14 = vld [vmem:[%s6257_s3 + $0x68] sm:$0xff]  ;;  %s6173_s29 = smov 90   ;;  %s5380_s17 = sshll.u32 %s6214_s13, 7 }
  0x1c   : > { %v255_v7 = vld [vmem:[%s6257_s3 + $0x178] sm:$0xff]  ;;  %5384 = vmatpush3.msra.mxu0 %v223_v6  ;;  %v254_v11 = vld [vmem:[%s6257_s3 + $0x170] sm:$0xff]  ;;  %v253_v15 = vld [vmem:[%s6257_s3 + $0x168] sm:$0xff]  ;;  %s9999_s23 = scalar_lea.hbm %s10040_s2, %s5380_s17  ;;  %s6177_s13 = smov [#allocation2]  }
  0x1d   : > { %5464 = vmatpush3.msra.mxu1 %v255_v7  ;;  %5385 = vmatprep.subr.mxu0 %v238_v8  ;;  %v236_v16 = vld [vmem:[%s6257_s3 + $0xe0] sm:$0xff]  ;;  %v235_v20 = vld [vmem:[%s6257_s3 + $0xd8] sm:$0xff]  ;;  %v234_v24 = vld [vmem:[%s6257_s3 + $0xd0] sm:$0xff]  ;;  %s6068_s26 = sshll.u32 %s6177_s13, 4  ;;  %s6069_s26 = int_to_ptr.vmem [resolvable:$false] %s6068_s26 }
  0x1e   : > { %5465 = vmatprep.subr.mxu1 %v270_v9  ;;  %5386 = vmatpush3.msra.mxu0 %v222_v10  ;;  %v268_v17 = vld [vmem:[%s6257_s3 + $0x1e0] sm:$0xff]  ;;  %v267_v21 = vld [vmem:[%s6257_s3 + $0x1d8] sm:$0xff]  ;;  %v266_v25 = vld [vmem:[%s6257_s3 + $0x1d0] sm:$0xff] }
  0x1f   : > { %5466 = vmatpush3.msra.mxu1 %v254_v11  ;;  %5387 = vmatprep.subr.mxu0 %v237_v12  ;;  %v220_v18 = vld [vmem:[%s6257_s3 + $0x60] sm:$0xff]  ;;  %v219_v22 = vld [vmem:[%s6257_s3 + $0x58] sm:$0xff]  ;;  %v218_v26 = vld [vmem:[%s6257_s3 + $0x50] sm:$0xff] }
  0x20   : > { %5467 = vmatprep.subr.mxu1 %v269_v13  ;;  %v252_v19 = vld [vmem:[%s6257_s3 + $0x160] sm:$0xff]  ;;  %5388 = vmatpush3.msra.mxu0 %v221_v14  ;;  %v251_v23 = vld [vmem:[%s6257_s3 + $0x158] sm:$0xff]  ;;  %v250_v27 = vld [vmem:[%s6257_s3 + $0x150] sm:$0xff] }
  0x21   : > { %5468 = vmatpush3.msra.mxu1 %v253_v15  ;;  %5389 = vmatprep.subr.mxu0 %v236_v16  ;;  %v233_v28 = vld [vmem:[%s6257_s3 + $0xc8] sm:$0xff]  ;;  %v232_v32 = vld [vmem:[%s6257_s3 + $0xc0] sm:$0xff]  ;;  %v231_v36 = vld [vmem:[%s6257_s3 + $0xb8] sm:$0xff] }
  0x22   : > { %5469 = vmatprep.subr.mxu1 %v268_v17  ;;  %5390 = vmatpush3.msra.mxu0 %v220_v18  ;;  %v265_v29 = vld [vmem:[%s6257_s3 + $0x1c8] sm:$0xff]  ;;  %v264_v33 = vld [vmem:[%s6257_s3 + $0x1c0] sm:$0xff]  ;;  %v263_v37 = vld [vmem:[%s6257_s3 + $0x1b8] sm:$0xff] }
  0x23   : > { %5470 = vmatpush3.msra.mxu1 %v252_v19  ;;  %5391 = vmatprep.subr.mxu0 %v235_v20  ;;  %v217_v30 = vld [vmem:[%s6257_s3 + $0x48] sm:$0xff]  ;;  %v216_v34 = vld [vmem:[%s6257_s3 + $0x40] sm:$0xff]  ;;  %v215_v38 = vld [vmem:[%s6257_s3 + $0x38] sm:$0xff] }
  0x24   : > { %5471 = vmatprep.subr.mxu1 %v267_v21  ;;  %5392 = vmatpush3.msra.mxu0 %v219_v22  ;;  %v249_v31 = vld [vmem:[%s6257_s3 + $0x148] sm:$0xff]  ;;  %v248_v35 = vld [vmem:[%s6257_s3 + $0x140] sm:$0xff]  ;;  %v247_v39 = vld [vmem:[%s6257_s3 + $0x138] sm:$0xff] }
  0x25   : > { %5472 = vmatpush3.msra.mxu1 %v251_v23  ;;  %5393 = vmatprep.subr.mxu0 %v234_v24  ;;  %v230_v40 = vld [vmem:[%s6257_s3 + $0xb0] sm:$0xff]  ;;  %v229_v44 = vld [vmem:[%s6257_s3 + $0xa8] sm:$0xff]  ;;  %v228_v48 = vld [vmem:[%s6257_s3 + $0xa0] sm:$0xff] }
  0x26   : > { %5473 = vmatprep.subr.mxu1 %v266_v25  ;;  %5394 = vmatpush3.msra.mxu0 %v218_v26  ;;  %v262_v41 = vld [vmem:[%s6257_s3 + $0x1b0] sm:$0xff]  ;;  %v261_v45 = vld [vmem:[%s6257_s3 + $0x1a8] sm:$0xff]  ;;  %v260_v49 = vld [vmem:[%s6257_s3 + $0x1a0] sm:$0xff] }
  0x27   : > { %5474 = vmatpush3.msra.mxu1 %v250_v27  ;;  %5395 = vmatprep.subr.mxu0 %v233_v28  ;;  %v214_v42 = vld [vmem:[%s6257_s3 + $0x30] sm:$0xff]  ;;  %v213_v46 = vld [vmem:[%s6257_s3 + $0x28] sm:$0xff]  ;;  %v212_v50 = vld [vmem:[%s6257_s3 + $0x20] sm:$0xff] }
  0x28   : > { %5475 = vmatprep.subr.mxu1 %v265_v29  ;;  %5396 = vmatpush3.msra.mxu0 %v217_v30  ;;  %v246_v43 = vld [vmem:[%s6257_s3 + $0x130] sm:$0xff]  ;;  %v245_v47 = vld [vmem:[%s6257_s3 + $0x128] sm:$0xff]  ;;  %v244_v51 = vld [vmem:[%s6257_s3 + $0x120] sm:$0xff] }
  0x29   : > { %5476 = vmatpush3.msra.mxu1 %v249_v31  ;;  %5397 = vmatprep.subr.mxu0 %v232_v32  ;;  %v227_v52 = vld [vmem:[%s6257_s3 + $0x98] sm:$0xff]  ;;  %v226_v56 = vld [vmem:[%s6257_s3 + $0x90] sm:$0xff]  ;;  %v225_v60 = vld [vmem:[%s6257_s3 + $0x88] sm:$0xff] }
  0x2a   : > { %5477 = vmatprep.subr.mxu1 %v264_v33  ;;  %5398 = vmatpush3.msra.mxu0 %v216_v34  ;;  %v259_v53 = vld [vmem:[%s6257_s3 + $0x198] sm:$0xff]  ;;  %v258_v57 = vld [vmem:[%s6257_s3 + $0x190] sm:$0xff]  ;;  %v257_v61 = vld [vmem:[%s6257_s3 + $0x188] sm:$0xff] }
  0x2b   : > { %5478 = vmatpush3.msra.mxu1 %v248_v35  ;;  %5399 = vmatprep.subr.mxu0 %v231_v36  ;;  %v211_v54 = vld [vmem:[%s6257_s3 + $0x18] sm:$0xff]  ;;  %v210_v58 = vld [vmem:[%s6257_s3 + $0x10] sm:$0xff]  ;;  %v209_v62 = vld [vmem:[%s6257_s3 + $0x8] sm:$0xff] }
  0x2c   : > { %5479 = vmatprep.subr.mxu1 %v263_v37  ;;  %5400 = vmatpush3.msra.mxu0 %v215_v38  ;;  %v243_v55 = vld [vmem:[%s6257_s3 + $0x118] sm:$0xff]  ;;  %v242_v59 = vld [vmem:[%s6257_s3 + $0x110] sm:$0xff]  ;;  %v241_v63 = vld [vmem:[%s6257_s3 + $0x108] sm:$0xff] }
  0x2d   : > { %5480 = vmatpush3.msra.mxu1 %v247_v39  ;;  %5401 = vmatprep.subr.mxu0 %v230_v40  ;;  %v224_v0 = vld [vmem:[%s6257_s3 + $0x80] sm:$0xff]  ;;  %v146_v6 = vld [vmem:[%s10039_s1 + $0x10] sm:$0xff]  ;;  %v149_v7 = vld [vmem:[%s10039_s1 + $0x48] sm:$0xff] }
  0x2e   : > { %5481 = vmatprep.subr.mxu1 %v262_v41  ;;  %5402 = vmatpush3.msra.mxu0 %v214_v42  ;;  %v256_v1 = vld [vmem:[%s6257_s3 + $0x180] sm:$0xff]  ;;  %v151_v8 = vld [vmem:[%s10039_s1 + $0x58] sm:$0xff]  ;;  %v150_v12 = vld [vmem:[%s10039_s1 + $0x50] sm:$0xff] }
  0x2f   : > { %5482 = vmatpush3.msra.mxu1 %v246_v43  ;;  %5403 = vmatprep.subr.mxu0 %v229_v44  ;;  %v208_v2 = vld [vmem:[%s6257_s3] sm:$0xff]  ;;  %v6338_v9 = vld [vmem:[%s10039_s1 + $0xf8] sm:$0xff]  ;;  %v153_v13 = vld [vmem:[%s10039_s1 + $0x88] sm:$0xff] }
  0x30   : > { %5483 = vmatprep.subr.mxu1 %v261_v45  ;;  %5404 = vmatpush3.msra.mxu0 %v213_v46  ;;  %v240_v4 = vld [vmem:[%s6257_s3 + $0x100] sm:$0xff]  ;;  %v6343_v10 = vld [vmem:[%s10039_s1 + $0x38] sm:$0xff]  ;;  %v154_v18 = vld [vmem:[%s10039_s1 + $0x90] sm:$0xff]  ;;  %s6136_s3 = smov 127  }
  0x31   : > { %5484 = vmatpush3.msra.mxu1 %v245_v47  ;;  %5405 = vmatprep.subr.mxu0 %v228_v48  ;;  %v144_v5 = vld [vmem:[%s10039_s1] sm:$0xff]  ;;  %v155_v14 = vld [vmem:[%s10039_s1 + $0x98] sm:$0xff]  ;;  %v157_v19 = vld [vmem:[%s10039_s1 + $0xc8] sm:$0xff] }
  0x32   : > { %5485 = vmatprep.subr.mxu1 %v260_v49  ;;  %5406 = vmatpush3.msra.mxu0 %v212_v50  ;;  %v148_v11 = vld [vmem:[%s10039_s1 + $0x40] sm:$0xff]  ;;  %v6362_v15 = vld [vmem:[%s10039_s1 + $0x178] sm:$0xff]  ;;  %v158_v24 = vld [vmem:[%s10039_s1 + $0xd0] sm:$0xff] }
  0x33   : > { %5486 = vmatpush3.msra.mxu1 %v244_v51  ;;  %5407 = vmatprep.subr.mxu0 %v227_v52  ;;  %v6367_v16 = vld [vmem:[%s10039_s1 + $0x78] sm:$0xff]  ;;  %v152_v17 = vld [vmem:[%s10039_s1 + $0x80] sm:$0xff]  ;;  %v161_v25 = vld [vmem:[%s10039_s1 + $0x108] sm:$0xff] }
  0x34   : > { %5487 = vmatprep.subr.mxu1 %v259_v53  ;;  %5408 = vmatpush3.msra.mxu0 %v211_v54  ;;  %v159_v20 = vld [vmem:[%s10039_s1 + $0xd8] sm:$0xff]  ;;  %v156_v23 = vld [vmem:[%s10039_s1 + $0xc0] sm:$0xff]  ;;  %v162_v30 = vld [vmem:[%s10039_s1 + $0x110] sm:$0xff] }
  0x35   : > { %5488 = vmatpush3.msra.mxu1 %v243_v55  ;;  %5409 = vmatprep.subr.mxu0 %v226_v56  ;;  %v6386_v21 = vld [vmem:[%s10039_s1 + $0x1f8] sm:$0xff]  ;;  %v160_v29 = vld [vmem:[%s10039_s1 + $0x100] sm:$0xff]  ;;  %v165_v31 = vld [vmem:[%s10039_s1 + $0x148] sm:$0xff] }
  0x36   : > { %5489 = vmatprep.subr.mxu1 %v258_v57  ;;  %5410 = vmatpush3.msra.mxu0 %v210_v58  ;;  %v6391_v22 = vld [vmem:[%s10039_s1 + $0x138] sm:$0xff]  ;;  %v164_v35 = vld [vmem:[%s10039_s1 + $0x140] sm:$0xff]  ;;  %v166_v36 = vld [vmem:[%s10039_s1 + $0x150] sm:$0xff]  ;;  %v6127_v57 = vmov 72  }
  0x37   : > { %5490 = vmatpush3.msra.mxu1 %v242_v59  ;;  %5411 = vmatprep.subr.mxu0 %v225_v60  ;;  %v163_v26 = vld [vmem:[%s10039_s1 + $0x118] sm:$0xff]  ;;  %v169_v37 = vld [vmem:[%s10039_s1 + $0x188] sm:$0xff]  ;;  %v168_v41 = vld [vmem:[%s10039_s1 + $0x180] sm:$0xff] }
  0x38   : > { %5491 = vmatprep.subr.mxu1 %v257_v61  ;;  %5412 = vmatpush3.msra.mxu0 %v209_v62  ;;  %v6410_v27 = vld [vmem:[%s10039_s1 + $0x278] sm:$0xff]  ;;  %v170_v42 = vld [vmem:[%s10039_s1 + $0x190] sm:$0xff]  ;;  %v173_v43 = vld [vmem:[%s10039_s1 + $0x1c8] sm:$0xff] }
  0x39   : > { %5492 = vmatpush3.msra.mxu1 %v241_v63  ;;  %5413 = vmatprep.subr.mxu0 %v224_v0  ;;  %v6415_v28 = vld [vmem:[%s10039_s1 + $0x1b8] sm:$0xff]  ;;  %v172_v48 = vld [vmem:[%s10039_s1 + $0x1c0] sm:$0xff]  ;;  %v174_v49 = vld [vmem:[%s10039_s1 + $0x1d0] sm:$0xff] }
  0x3a   : > { %5493 = vmatprep.subr.mxu1 %v256_v1  ;;  %5414 = vmatpush3.msra.mxu0 %v208_v2  ;;  %v167_v32 = vld [vmem:[%s10039_s1 + $0x158] sm:$0xff]  ;;  %v177_v50 = vld [vmem:[%s10039_s1 + $0x208] sm:$0xff]  ;;  %v176_v53 = vld [vmem:[%s10039_s1 + $0x200] sm:$0xff] }
  0x3b   : > { %5494 = vmatpush3.msra.mxu1 %v240_v4  ;;  %433 = vmatmul.mubr.f32.vlgmr.msra.gmra.mxu0 %v144_v5  ;;  %v6434_v33 = vld [vmem:[%s10039_s1 + $0x2f8] sm:$0xff]  ;;  %v178_v54 = vld [vmem:[%s10039_s1 + $0x210] sm:$0xff]  ;;  %v181_v55 = vld [vmem:[%s10039_s1 + $0x248] sm:$0xff] }
  0x3c   : > { %578 = vmatmul.mubr.f32.vlgmr.msra.gmra.mxu1 %v146_v6  ;;  %437 = vmatprep.mubr.f32.mxu0 %v149_v7  ;;  %v6439_v34 = vld [vmem:[%s10039_s1 + $0x238] sm:$0xff]  ;;  %v180_v58 = vld [vmem:[%s10039_s1 + $0x240] sm:$0xff]  ;;  %v182_v59 = vld [vmem:[%s10039_s1 + $0x250] sm:$0xff] }
  0x3d   : > { %582 = vmatprep.mubr.f32.mxu1 %v151_v8  ;;  %305 = vperm.xlu1 %5841, %v6338_v9   ;;  %v171_v38 = vld [vmem:[%s10039_s1 + $0x198] sm:$0xff]  ;;  %v185_v60 = vld [vmem:[%s10039_s1 + $0x288] sm:$0xff]  ;;  %v184_v62 = vld [vmem:[%s10039_s1 + $0x280] sm:$0xff] }
  0x3e   : > { %290 = vperm.xlu0 %5840, %v6343_v10   ;;  %v6458_v39 = vld [vmem:[%s10039_s1 + $0x378] sm:$0xff]  ;;  %v186_v63 = vld [vmem:[%s10039_s1 + $0x290] sm:$0xff]  ;;  %v189_v0 = vld [vmem:[%s10039_s1 + $0x2c8] sm:$0xff] }
  0x3f   : > { %438 = vmatmul.mubr.f32.gmra.mxu0 %v148_v11  ;;  %v6463_v40 = vld [vmem:[%s10039_s1 + $0x2b8] sm:$0xff]  ;;  %v188_v2 = vld [vmem:[%s10039_s1 + $0x2c0] sm:$0xff]  ;;  %v190_v4 = vld [vmem:[%s10039_s1 + $0x2d0] sm:$0xff] }
  0x40   : > { %583 = vmatmul.mubr.f32.gmra.mxu1 %v150_v12  ;;  %442 = vmatprep.mubr.f32.mxu0 %v153_v13  ;;  %v175_v44 = vld [vmem:[%s10039_s1 + $0x1d8] sm:$0xff]  ;;  %v193_v5 = vld [vmem:[%s10039_s1 + $0x308] sm:$0xff]  ;;  %v192_v7 = vld [vmem:[%s10039_s1 + $0x300] sm:$0xff] }
  0x41   : > { %587 = vmatprep.mubr.f32.mxu1 %v155_v14  ;;  %315 = vperm.xlu1 %5841, %v6362_v15   ;;  %v762_v45 = vld [vmem:[%s10039_s1 + $0x238] sm:$0x1]  ;;  %v194_v8 = vld [vmem:[%s10039_s1 + $0x310] sm:$0xff]  ;;  %v197_v11 = vld [vmem:[%s10039_s1 + $0x348] sm:$0xff] }
  0x42   : > { %295 = vperm.xlu0 %5840, %v6367_v16   ;;  %v6485_v46 = vld [vmem:[%s10039_s1 + $0x3f8] sm:$0xff]  ;;  %5617 = vmatprep.subr.msk.mxu0 %vm812_vm0, %v762_v45  ;;  %v196_v13 = vld [vmem:[%s10039_s1 + $0x340] sm:$0xff]  ;;  %v198_v14 = vld [vmem:[%s10039_s1 + $0x350] sm:$0xff] }
  0x43   : > { %443 = vmatmul.mubr.f32.gmra.mxu0 %v152_v17  ;;  %v6490_v47 = vld [vmem:[%s10039_s1 + $0x338] sm:$0xff]  ;;  %v201_v17 = vld [vmem:[%s10039_s1 + $0x388] sm:$0xff] }
  0x44   : > { %588 = vmatmul.mubr.f32.gmra.mxu1 %v154_v18  ;;  %447 = vmatprep.mubr.f32.mxu0 %v157_v19  ;;  %v179_v51 = vld [vmem:[%s10039_s1 + $0x218] sm:$0xff]  ;;  %v200_v19 = vld [vmem:[%s10039_s1 + $0x380] sm:$0xff] }
  0x45   : > { %592 = vmatprep.mubr.f32.mxu1 %v159_v20  ;;  %325 = vperm.xlu1 %5841, %v6386_v21   ;;  %v6509_v52 = vld [vmem:[%s10039_s1 + $0x3b8] sm:$0xff]  ;;  %v202_v20 = vld [vmem:[%s10039_s1 + $0x390] sm:$0xff] }
  0x46   : > { %310 = vperm.xlu0 %5840, %v6391_v22   ;;  %5618 = vmatpush3.msk.msra.mxu0 %vm812_vm0, %v762_v45  ;;  %v183_v56 = vld [vmem:[%s10039_s1 + $0x258] sm:$0xff] }
  0x47   : > { %448 = vmatmul.mubr.f32.gmra.mxu0 %v156_v23  ;;  %5619 = vmatprep.subr.mxu0 %v6386_v21  ;;  %v187_v61 = vld [vmem:[%s10039_s1 + $0x298] sm:$0xff]  ;;  %v205_v23 = vld [vmem:[%s10039_s1 + $0x3c8] sm:$0xff] }
  0x48   : > { %593 = vmatmul.mubr.f32.gmra.mxu1 %v158_v24  ;;  %452 = vmatprep.mubr.f32.mxu0 %v161_v25  ;;  %v191_v1 = vld [vmem:[%s10039_s1 + $0x2d8] sm:$0xff]  ;;  %v204_v25 = vld [vmem:[%s10039_s1 + $0x3c0] sm:$0xff] }
  0x49   : > { %597 = vmatprep.mubr.f32.mxu1 %v163_v26  ;;  %335 = vperm.xlu1 %5841, %v6410_v27   ;;  %v195_v6 = vld [vmem:[%s10039_s1 + $0x318] sm:$0xff]  ;;  %v206_v26 = vld [vmem:[%s10039_s1 + $0x3d0] sm:$0xff] }
  0x4a   : > { %320 = vperm.xlu0 %5840, %v6415_v28   ;;  %5620 = vmatpush3.msra.mxu0 %v6386_v21  ;;  %v199_v12 = vld [vmem:[%s10039_s1 + $0x358] sm:$0xff] }
  0x4b   : > { %453 = vmatmul.mubr.f32.gmra.mxu0 %v160_v29  ;;  %5621 = vmatprep.subr.mxu0 %v6415_v28  ;;  %v203_v18 = vld [vmem:[%s10039_s1 + $0x398] sm:$0xff]  ;;  %v6128_v29 = vmov 73  }
  0x4c   : > { %598 = vmatmul.mubr.f32.gmra.mxu1 %v162_v30  ;;  %457 = vmatprep.mubr.f32.mxu0 %v165_v31  ;;  %v207_v24 = vld [vmem:[%s10039_s1 + $0x3d8] sm:$0xff]  ;;  %v6129_v30 = vmov 74  }
  0x4d   : > { %602 = vmatprep.mubr.f32.mxu1 %v167_v32  ;;  %345 = vperm.xlu1 %5841, %v6434_v33  }
  0x4e   : > { %330 = vperm.xlu0 %5840, %v6439_v34   ;;  %5622 = vmatpush3.msra.mxu0 %v6415_v28 }
  0x4f   : > { %458 = vmatmul.mubr.f32.gmra.mxu0 %v164_v35  ;;  %5623 = vmatprep.subr.mxu0 %v6362_v15 }
  0x50   : > { %603 = vmatmul.mubr.f32.gmra.mxu1 %v166_v36  ;;  %462 = vmatprep.mubr.f32.mxu0 %v169_v37  ;;  %v6130_v37 = vmov 75  }
  0x51   : > { %607 = vmatprep.mubr.f32.mxu1 %v171_v38  ;;  %355 = vperm.xlu1 %5841, %v6458_v39  }
  0x52   : > { %340 = vperm.xlu0 %5840, %v6463_v40   ;;  %5624 = vmatpush3.msra.mxu0 %v6362_v15 }
  0x53   : > { %463 = vmatmul.mubr.f32.gmra.mxu0 %v168_v41  ;;  %5625 = vmatprep.subr.mxu0 %v6391_v22 }
  0x54   : > { %608 = vmatmul.mubr.f32.gmra.mxu1 %v170_v42  ;;  %467 = vmatprep.mubr.f32.mxu0 %v173_v43 }
  0x55   : > { %612 = vmatprep.mubr.f32.mxu1 %v175_v44  ;;  %365 = vperm.xlu1 %5841, %v6485_v46  }
  0x56   : > { %350 = vperm.xlu0 %5840, %v6490_v47   ;;  %5626 = vmatpush3.msra.mxu0 %v6391_v22 }
  0x57   : > { %468 = vmatmul.mubr.f32.gmra.mxu0 %v172_v48  ;;  %5627 = vmatprep.subr.mxu0 %v6338_v9 }
  0x58   : > { %613 = vmatmul.mubr.f32.gmra.mxu1 %v174_v49  ;;  %472 = vmatprep.mubr.f32.mxu0 %v177_v50 }
  0x59   : > { %617 = vmatprep.mubr.f32.mxu1 %v179_v51  ;;  %5843 = vset.pattern.permute.xlu1 %v6127_v57 }
  0x5a   : > { %360 = vperm.xlu0 %5840, %v6509_v52   ;;  %966 = vperm.xlu1 %5843, %v6367_v16  }
  0x5b   : > { %473 = vmatmul.mubr.f32.gmra.mxu0 %v176_v53 }
  0x5c   : > { %618 = vmatmul.mubr.f32.gmra.mxu1 %v178_v54  ;;  %477 = vmatprep.mubr.f32.mxu0 %v181_v55 }
  0x5d   : > { %622 = vmatprep.mubr.f32.mxu1 %v183_v56  ;;  %5628 = vmatpush3.msra.mxu0 %v6338_v9 }
  0x5e   : > { %5842 = vset.pattern.permute.xlu0 %v6127_v57  ;;  %970 = vperm.xlu1 %5843, %v6251_v3   ;;  %v6131_v57 = vmov 76  }
  0x5f   : > { %962 = vperm.xlu0 %5842, %v6343_v10   ;;  %478 = vmatmul.mubr.f32.gmra.mxu0 %v180_v58 }
  0x60   : > { %623 = vmatmul.mubr.f32.gmra.mxu1 %v182_v59  ;;  %482 = vmatprep.mubr.f32.mxu0 %v185_v60 }
  0x61   : > { %627 = vmatprep.mubr.f32.mxu1 %v187_v61  ;;  %5629 = vmatprep.subr.mxu0 %v6251_v3 }
  0x62   : > { %978 = vperm.xlu1 %5843, %v6391_v22   ;;  %5630 = vmatpush3.msra.mxu0 %v6251_v3 }
  0x63   : > { %974 = vperm.xlu0 %5842, %v6338_v9   ;;  %483 = vmatmul.mubr.f32.gmra.mxu0 %v184_v62 }
  0x64   : > { %628 = vmatmul.mubr.f32.gmra.mxu1 %v186_v63  ;;  %487 = vmatprep.mubr.f32.mxu0 %v189_v0 }
  0x65   : > { %632 = vmatprep.mubr.f32.mxu1 %v191_v1  ;;  %5631 = vmatprep.subr.mxu0 %v6367_v16 }
  0x66   : > { %986 = vperm.xlu1 %5843, %v6415_v28   ;;  %5632 = vmatpush3.msra.mxu0 %v6367_v16 }
  0x67   : > { %982 = vperm.xlu0 %5842, %v6362_v15   ;;  %488 = vmatmul.mubr.f32.gmra.mxu0 %v188_v2 }
  0x68   : > { %633 = vmatmul.mubr.f32.gmra.mxu1 %v190_v4  ;;  %492 = vmatprep.mubr.f32.mxu0 %v193_v5 }
  0x69   : > { %637 = vmatprep.mubr.f32.mxu1 %v195_v6  ;;  %5633 = vmatprep.subr.mxu0 %v6343_v10 }
  0x6a   : > { %994 = vperm.xlu1 %5843, %v6439_v34   ;;  %5634 = vmatpush3.msra.mxu0 %v6343_v10 }
  0x6b   : > { %990 = vperm.xlu0 %5842, %v6386_v21   ;;  %493 = vmatmul.mubr.f32.gmra.mxu0 %v192_v7 }
  0x6c   : > { %638 = vmatmul.mubr.f32.gmra.mxu1 %v194_v8  ;;  %497 = vmatprep.mubr.f32.mxu0 %v197_v11 }
  0x6d   : > { %642 = vmatprep.mubr.f32.mxu1 %v199_v12 }
  0x6e   : > { %1002 = vperm.xlu1 %5843, %v6463_v40  }
  0x6f   : > { %998 = vperm.xlu0 %5842, %v6410_v27   ;;  %498 = vmatmul.mubr.f32.gmra.mxu0 %v196_v13  ;;  %v6132_v13 = vmov 77  }
  0x70   : > { %643 = vmatmul.mubr.f32.gmra.mxu1 %v198_v14  ;;  %502 = vmatprep.mubr.f32.mxu0 %v201_v17 }
  0x71   : > { %647 = vmatprep.mubr.f32.mxu1 %v203_v18 }
  0x72   : > { %1010 = vperm.xlu1 %5843, %v6490_v47  }
  0x73   : > { %1006 = vperm.xlu0 %5842, %v6434_v33   ;;  %503 = vmatmul.mubr.f32.gmra.mxu0 %v200_v19 }
  0x74   : > { %648 = vmatmul.mubr.f32.gmra.mxu1 %v202_v20  ;;  %507 = vmatprep.mubr.f32.mxu0 %v205_v23 }
  0x75   : > { %652 = vmatprep.mubr.f32.mxu1 %v207_v24 }
  0x76   : > { %1018 = vperm.xlu1 %5843, %v6509_v52  }
  0x77   : > { %1014 = vperm.xlu0 %5842, %v6458_v39   ;;  %508 = vmatmul.mubr.f32.gmra.mxu0 %v204_v25 }
  0x78   : > { %653 = vmatmul.mubr.f32.gmra.mxu1 %v206_v26 }
  0x7a   : > { %5844 = vset.pattern.permute.xlu1 %v6128_v29 }
  0x7b   : > { %1022 = vperm.xlu0 %5842, %v6485_v46   ;;  %1058 = vperm.xlu1 %5844, %v6343_v10  }
  0x7f   : > { %5845 = vset.pattern.permute.xlu0 %v6128_v29  ;;  %1066 = vperm.xlu1 %5844, %v6251_v3  }
  0x80   : > { %1062 = vperm.xlu0 %5845, %v6367_v16  }
  0x83   : > { %1070 = vperm.xlu1 %5844, %v6338_v9  }
  0x84   : > { %1074 = vperm.xlu0 %5845, %v6391_v22  }
  0x87   : > { %1078 = vperm.xlu1 %5844, %v6362_v15  }
  0x88   : > { %1082 = vperm.xlu0 %5845, %v6415_v28  }
  0x8b   : > { %1086 = vperm.xlu1 %5844, %v6386_v21  }
  0x8c   : > { %1090 = vperm.xlu0 %5845, %v6439_v34  }
  0x8f   : > { %1094 = vperm.xlu1 %5844, %v6410_v27  }
  0x90   : > { %1098 = vperm.xlu0 %5845, %v6463_v40  }
  0x91   : > { %v6661_v31 = vpop.permute.xlu1 %300 }
  0x93   : > { %1102 = vperm.xlu1 %5844, %v6434_v33  }
  0x94   : > { %1106 = vperm.xlu0 %5845, %v6490_v47  }
  0x97   : > { %1110 = vperm.xlu1 %5844, %v6458_v39  }
  0x98   : > { %1114 = vperm.xlu0 %5845, %v6509_v52  }
  0x9b   : > { %1118 = vperm.xlu1 %5844, %v6485_v46  }
  0x9c   : > { %5846 = vset.pattern.permute.xlu0 %v6129_v30 }
  0x9d   : > { %1218 = vperm.xlu0 %5846, %v6343_v10  }
  0x9f   : > { %5847 = vset.pattern.permute.xlu1 %v6129_v30 }
  0xa0   : > { %1222 = vperm.xlu1 %5847, %v6367_v16  }
  0xa1   : > { %1230 = vperm.xlu0 %5846, %v6338_v9  }
  0xa4   : > { %1226 = vperm.xlu1 %5847, %v6251_v3  }
  0xa5   : > { %1238 = vperm.xlu0 %5846, %v6362_v15  }
  0xa8   : > { %1234 = vperm.xlu1 %5847, %v6391_v22  }
  0xa9   : > { %1246 = vperm.xlu0 %5846, %v6386_v21  }
  0xac   : > { %1242 = vperm.xlu1 %5847, %v6415_v28  }
  0xad   : > { %1254 = vperm.xlu0 %5846, %v6410_v27  }
  0xb0   : > { %1250 = vperm.xlu1 %5847, %v6439_v34  }
  0xb1   : > { %1262 = vperm.xlu0 %5846, %v6434_v33  }
  0xb4   : > { %1258 = vperm.xlu1 %5847, %v6463_v40  }
  0xb5   : > { %1270 = vperm.xlu0 %5846, %v6458_v39  }
  0xb8   : > { %1266 = vperm.xlu1 %5847, %v6490_v47   ;;  %v6666_v32 = vpop.permute.xlu1 %305 }
  0xb9   : > { %1278 = vperm.xlu0 %5846, %v6485_v46   ;;  %v6669_v35 = vpop.permute.xlu0 %290 }
  0xbc   : > { %1274 = vperm.xlu1 %5847, %v6509_v52   ;;  %v6672_v36 = vpop.permute.xlu1 %315 }
  0xbd   : > { %5849 = vset.pattern.permute.xlu0 %v6130_v37  ;;  %v6674_v38 = vpop.permute.xlu0 %295 }
  0xbe   : > { %1382 = vperm.xlu0 %5849, %v6367_v16  }
  0xc0   : > { %5848 = vset.pattern.permute.xlu1 %v6130_v37  ;;  %v6677_v41 = vpop.permute.xlu1 %325 }
  0xc1   : > { %v6679_v42 = vpop.permute.xlu0 %310  ;;  %1378 = vperm.xlu1 %5848, %v6343_v10  }
  0xc2   : > { %1394 = vperm.xlu0 %5849, %v6391_v22  }
  0xc4   : > { %v6683_v43 = vpop.permute.xlu1 %335 }
  0xc5   : > { %v6685_v44 = vpop.permute.xlu0 %320  ;;  %1386 = vperm.xlu1 %5848, %v6251_v3  }
  0xc6   : > { %1402 = vperm.xlu0 %5849, %v6415_v28  }
  0xc8   : > { %v6689_v45 = vpop.permute.xlu1 %345 }
  0xc9   : > { %v6691_v48 = vpop.permute.xlu0 %330  ;;  %1390 = vperm.xlu1 %5848, %v6338_v9  }
  0xca   : > { %1410 = vperm.xlu0 %5849, %v6439_v34  }
  0xcc   : > { %v6695_v49 = vpop.permute.xlu1 %355 }
  0xcd   : > { %v6697_v50 = vpop.permute.xlu0 %340  ;;  %1398 = vperm.xlu1 %5848, %v6362_v15  }
  0xce   : > { %1418 = vperm.xlu0 %5849, %v6463_v40  }
  0xd0   : > { %v6701_v51 = vpop.permute.xlu1 %365 }
  0xd1   : > { %v6703_v53 = vpop.permute.xlu0 %350  ;;  %1406 = vperm.xlu1 %5848, %v6386_v21  }
  0xd2   : > { %1426 = vperm.xlu0 %5849, %v6490_v47  }
  0xd5   : > { %v6707_v54 = vpop.permute.xlu0 %360  ;;  %1414 = vperm.xlu1 %5848, %v6410_v27   ;;  %v6710_v55 = vpop.permute.xlu1 %966 }
  0xd6   : > { %10082 = vst [vmem:[#allocation5_spill] sm:$0xff] %v6710_v55  ;;  %1434 = vperm.xlu0 %5849, %v6509_v52  }
  0xd9   : > { %1422 = vperm.xlu1 %5848, %v6434_v33   ;;  %v6714_v56 = vpop.permute.xlu1 %970 }
  0xda   : > { %10083 = vst [vmem:[#allocation6_spill] sm:$0xff] %v6714_v56  ;;  %5850 = vset.pattern.permute.xlu0 %v6131_v57  ;;  %v6716_v58 = vpop.permute.xlu0 %962 }
  0xdb   : > { %10084 = vst [vmem:[#allocation7_spill] sm:$0xff] %v6716_v58  ;;  %1538 = vperm.xlu0 %5850, %v6343_v10  }
  0xdd   : > { %1430 = vperm.xlu1 %5848, %v6458_v39   ;;  %v6720_v59 = vpop.permute.xlu1 %978 }
  0xde   : > { %10085 = vst [vmem:[#allocation8_spill] sm:$0xff] %v6720_v59  ;;  %v6722_v60 = vpop.permute.xlu0 %974 }
  0xdf   : > { %10086 = vst [vmem:[#allocation9_spill] sm:$0xff] %v6722_v60  ;;  %1550 = vperm.xlu0 %5850, %v6338_v9  }
  0xe1   : > { %1438 = vperm.xlu1 %5848, %v6485_v46   ;;  %v6726_v61 = vpop.permute.xlu1 %986 }
  0xe2   : > { %10087 = vst [vmem:[#allocation10_spill] sm:$0xff] %v6726_v61  ;;  %v6728_v62 = vpop.permute.xlu0 %982 }
  0xe3   : > { %10088 = vst [vmem:[#allocation11_spill] sm:$0xff] %v6728_v62  ;;  %1558 = vperm.xlu0 %5850, %v6362_v15  }
  0xe5   : > { %5851 = vset.pattern.permute.xlu1 %v6131_v57  ;;  %v6731_v63 = vpop.permute.xlu1 %994 }
  0xe6   : > { %10089 = vst [vmem:[#allocation12_spill] sm:$0xff] %v6731_v63  ;;  %v6733_v0 = vpop.permute.xlu0 %990  ;;  %1542 = vperm.xlu1 %5851, %v6367_v16  }
  0xe7   : > { %10090 = vst [vmem:[#allocation13_spill] sm:$0xff] %v6733_v0  ;;  %1566 = vperm.xlu0 %5850, %v6386_v21  }
  0xe9   : > { %v6737_v1 = vpop.permute.xlu1 %1002 }
  0xea   : > { %10091 = vst [vmem:[#allocation14_spill] sm:$0xff] %v6737_v1  ;;  %v6739_v2 = vpop.permute.xlu0 %998  ;;  %1546 = vperm.xlu1 %5851, %v6251_v3  }
  0xeb   : > { %10092 = vst [vmem:[#allocation15_spill] sm:$0xff] %v6739_v2  ;;  %1574 = vperm.xlu0 %5850, %v6410_v27  }
  0xed   : > { %v6743_v4 = vpop.permute.xlu1 %1010 }
  0xee   : > { %10093 = vst [vmem:[#allocation16_spill] sm:$0xff] %v6743_v4  ;;  %v6745_v5 = vpop.permute.xlu0 %1006  ;;  %1554 = vperm.xlu1 %5851, %v6391_v22   ;;  %v7076_v4 = vld [vmem:[%s10039_s1 + $0x278] sm:$0xff] }
  0xef   : > { %10094 = vst [vmem:[#allocation17_spill] sm:$0xff] %v6745_v5  ;;  %1582 = vperm.xlu0 %5850, %v6434_v33   ;;  %10130 = vst [vmem:[#allocation51_spill] sm:$0xff] %v7076_v4 }
  0xf1   : > { %v6749_v6 = vpop.permute.xlu1 %1018 }
  0xf2   : > { %10095 = vst [vmem:[#allocation18_spill] sm:$0xff] %v6749_v6  ;;  %v6751_v7 = vpop.permute.xlu0 %1014  ;;  %1562 = vperm.xlu1 %5851, %v6415_v28  }
  0xf3   : > { %10096 = vst [vmem:[#allocation19_spill] sm:$0xff] %v6751_v7  ;;  %1590 = vperm.xlu0 %5850, %v6458_v39  }
  0xf6   : > { %1570 = vperm.xlu1 %5851, %v6439_v34   ;;  %v6756_v8 = vpop.permute.xlu1 %1058  ;;  %v6758_v11 = vpop.permute.xlu0 %1022 }
  0xf7   : > { %10097 = vst [vmem:[#allocation20_spill] sm:$0xff] %v6758_v11  ;;  %1598 = vperm.xlu0 %5850, %v6485_v46   ;;  %v7084_v11 = vld [vmem:[%s10039_s1 + $0x2f8] sm:$0xff] }
  0xf8   : > { %10131 = vst [vmem:[#allocation52_spill] sm:$0xff] %v7084_v11 }
  0xfa   : > { %1578 = vperm.xlu1 %5851, %v6463_v40   ;;  %v6762_v12 = vpop.permute.xlu1 %1066 }
  0xfb   : > { %5853 = vset.pattern.permute.xlu0 %v6132_v13  ;;  %v6764_v14 = vpop.permute.xlu0 %1062  ;;  %v5415_v17 = vpop.f32.mrf.mxu0 }
  0xfc   : > { %v5495_v18 = vpop.f32.mrf.mxu1  ;;  %1702 = vperm.xlu0 %5853, %v6367_v16  }
  0xfd   : > { %v5416_v19 = vpop.f32.mrf.mxu0 }
  0xfe   : > { %v5496_v20 = vpop.f32.mrf.mxu1  ;;  %v5417_v23 = vadd.f32 %v5416_v19, %v5415_v17  ;;  %1586 = vperm.xlu1 %5851, %v6490_v47   ;;  %v6768_v24 = vpop.permute.xlu1 %1070 }
  0xff   : > { %v6770_v25 = vpop.permute.xlu0 %1074  ;;  %v5418_v26 = vpop.f32.mrf.mxu0  ;;  %v5497_v37 = vadd.f32 %v5496_v20, %v5495_v18 }
 0x100   : > { %v5498_v29 = vpop.f32.mrf.mxu1  ;;  %1714 = vperm.xlu0 %5853, %v6391_v22   ;;  %v435_v30 = vadd.f32 %v5417_v23, %v6669_v35 }
 0x101   : > { %v5419_v57 = vpop.f32.mrf.mxu0 }
 0x102   : > { %v5499_v58 = vpop.f32.mrf.mxu1  ;;  %v6774_v55 = vadd.f32 %v5497_v37, %v435_v30  ;;  %v5420_v56 = vadd.f32 %v5419_v57, %v5418_v26  ;;  %1594 = vperm.xlu1 %5851, %v6509_v52   ;;  %v6777_v17 = vpop.permute.xlu1 %1078 }
 0x103   : > { %v6779_v19 = vpop.permute.xlu0 %1082  ;;  %v5421_v60 = vpop.f32.mrf.mxu0  ;;  %v5500_v18 = vadd.f32 %v5499_v58, %v5498_v29 }
 0x104   : > { %v5501_v59 = vpop.f32.mrf.mxu1  ;;  %1722 = vperm.xlu0 %5853, %v6415_v28   ;;  %v674_v22 = vmin.f32 %v6774_v55, 0.0  ;;  %v440_v35 = vadd.f32 %v5420_v56, %v6674_v38  ;;  %vm658_vm2 = vcmp.gt.f32.partialorder %v6774_v55, 0.0 }
 0x105   : > { %v5422_v20 = vpop.f32.mrf.mxu0 }
 0x106   : > { %v5502_v23 = vpop.f32.mrf.mxu1  ;;  %v690_v30 = vmul.f32 1.442695, %v674_v22  ;;  %v6784_v37 = vadd.f32 %v5500_v18, %v440_v35  ;;  %v5423_v26 = vadd.f32 %v5422_v20, %v5421_v60  ;;  %5852 = vset.pattern.permute.xlu1 %v6132_v13  ;;  %v6786_v62 = vpop.permute.xlu1 %1086 }
 0x107   : > { %v5503_v57 = vadd.f32 %v5502_v23, %v5501_v59  ;;  %v6788_v61 = vpop.permute.xlu0 %1090  ;;  %v5424_v0 = vpop.f32.mrf.mxu0  ;;  %1698 = vperm.xlu1 %5852, %v6343_v10  }
 0x108   : > { %v5504_v63 = vpop.f32.mrf.mxu1  ;;  %1730 = vperm.xlu0 %5853, %v6439_v34   ;;  %5936 = vpow2.f32 %v690_v30  ;;  %v675_v28 = vmin.f32 %v6784_v37, 0.0  ;;  %v445_v38 = vadd.f32 %v5423_v26, %v6661_v31  ;;  %vm659_vm3 = vcmp.gt.f32.partialorder %v6784_v37, 0.0 }
 0x109   : > { %v5425_v56 = vpop.f32.mrf.mxu0 }
 0x10a   : > { %v5505_v58 = vpop.f32.mrf.mxu1  ;;  %v692_v60 = vmul.f32 1.442695, %v675_v28  ;;  %v6794_v59 = vadd.f32 %v5503_v57, %v445_v38  ;;  %v5426_v13 = vadd.f32 %v5425_v56, %v5424_v0  ;;  %v6796_v22 = vpop.permute.xlu1 %1094 }
 0x10b   : > { %v5506_v29 = vadd.f32 %v5505_v58, %v5504_v63  ;;  %v6798_v35 = vpop.permute.xlu0 %1098  ;;  %v5427_v18 = vpop.f32.mrf.mxu0  ;;  %1706 = vperm.xlu1 %5852, %v6251_v3  }
 0x10c   : > { %10098 = vst [vmem:[#allocation21_spill] sm:$0xff] %v6798_v35  ;;  %v5507_v20 = vpop.f32.mrf.mxu1  ;;  %1738 = vperm.xlu0 %5853, %v6463_v40   ;;  %5938 = vpow2.f32 %v692_v60  ;;  %v676_v34 = vmin.f32 %v6794_v59, 0.0  ;;  %v450_v31 = vadd.f32 %v5426_v13, %v6666_v32  ;;  %vm660_vm4 = vcmp.gt.f32.partialorder %v6794_v59, 0.0 }
 0x10d   : > { %v5428_v23 = vpop.f32.mrf.mxu0 }
 0x10e   : > { %v5508_v30 = vpop.f32.mrf.mxu1  ;;  %v694_v26 = vmul.f32 1.442695, %v676_v34  ;;  %v6804_v0 = vadd.f32 %v5506_v29, %v450_v31  ;;  %v5429_v63 = vadd.f32 %v5428_v23, %v5427_v18  ;;  %v6806_v28 = vpop.permute.xlu1 %1102 }
 0x10f   : > { %v5509_v57 = vadd.f32 %v5508_v30, %v5507_v20  ;;  %10099 = vst [vmem:[#allocation22_spill] sm:$0xff] %v6806_v28  ;;  %v6808_v38 = vpop.permute.xlu0 %1106  ;;  %v5430_v56 = vpop.f32.mrf.mxu0  ;;  %1710 = vperm.xlu1 %5852, %v6338_v9  }
 0x110   : > { %10100 = vst [vmem:[#allocation23_spill] sm:$0xff] %v6808_v38  ;;  %v5510_v3 = vpop.f32.mrf.mxu1  ;;  %1746 = vperm.xlu0 %5853, %v6490_v47   ;;  %5940 = vpow2.f32 %v694_v26  ;;  %v677_v40 = vmin.f32 %v6804_v0, 0.0  ;;  %v455_v32 = vadd.f32 %v5429_v63, %v6679_v42  ;;  %vm661_vm5 = vcmp.gt.f32.partialorder %v6804_v0, 0.0 }
 0x111   : > { %v5431_v58 = vpop.f32.mrf.mxu0 }
 0x112   : > { %v5511_v60 = vpop.f32.mrf.mxu1  ;;  %v696_v13 = vmul.f32 1.442695, %v677_v40  ;;  %v6814_v29 = vadd.f32 %v5509_v57, %v455_v32  ;;  %v5432_v18 = vadd.f32 %v5431_v58, %v5430_v56  ;;  %v6816_v34 = vpop.permute.xlu1 %1110 }
 0x113   : > { %v5512_v20 = vadd.f32 %v5511_v60, %v5510_v3  ;;  %10101 = vst [vmem:[#allocation24_spill] sm:$0xff] %v6816_v34  ;;  %v6818_v31 = vpop.permute.xlu0 %1114  ;;  %v5433_v23 = vpop.f32.mrf.mxu0  ;;  %1718 = vperm.xlu1 %5852, %v6362_v15  }
 0x114   : > { %10102 = vst [vmem:[#allocation25_spill] sm:$0xff] %v6818_v31  ;;  %v5513_v30 = vpop.f32.mrf.mxu1  ;;  %1754 = vperm.xlu0 %5853, %v6509_v52   ;;  %5942 = vpow2.f32 %v696_v13  ;;  %v678_v47 = vmin.f32 %v6814_v29, 0.0  ;;  %v460_v42 = vadd.f32 %v5432_v18, %v6672_v36  ;;  %v10041_v52 = vmov 78  }
 0x115   : > { %v5937_v26 = vpop.eup %5936  ;;  %v5434_v63 = vpop.f32.mrf.mxu0  ;;  %vm662_vm6 = vcmp.gt.f32.partialorder %v6814_v29, 0.0 }
 0x116   : > { %v5514_v57 = vpop.f32.mrf.mxu1  ;;  %v698_v56 = vmul.f32 1.442695, %v678_v47  ;;  %v6824_v3 = vadd.f32 %v5512_v20, %v460_v42  ;;  %v5435_v40 = vadd.f32 %v5434_v63, %v5433_v23  ;;  %v5330_v2 = vadd.f32 -1.0, %v5937_v26  ;;  %v6831_v18 = vpop.permute.xlu1 %1118 }
 0x117   : > { %v5515_v32 = vadd.f32 %v5514_v57, %v5513_v30  ;;  %v5436_v58 = vpop.f32.mrf.mxu0  ;;  %1726 = vperm.xlu1 %5852, %v6386_v21   ;;  %10103 = vst [vmem:[#allocation26_spill] sm:$0xff] %v6831_v18 }
 0x118   : > { %v5516_v60 = vpop.f32.mrf.mxu1  ;;  %5854 = vset.pattern.permute.xlu0 %v10041_v52  ;;  %5944 = vpow2.f32 %v698_v56  ;;  %v679_v36 = vmin.f32 %v6824_v3, 0.0  ;;  %v465_v13 = vadd.f32 %v5435_v40, %v6685_v44  ;;  %v6833_v20 = vpop.permute.xlu0 %1218  ;;  %v738_v47 = vsel %vm658_vm2, %v6774_v55, %v5330_v2 }
 0x119   : > { %1858 = vperm.xlu0 %5854, %v6343_v10   ;;  %v5939_v23 = vpop.eup %5938  ;;  %v5437_v30 = vpop.f32.mrf.mxu0  ;;  %5635 = vmatprep.mubr.msk.f32.mxu0 %vm763_vm1, %v738_v47  ;;  %vm663_vm7 = vcmp.gt.f32.partialorder %v6824_v3, 0.0 }
 0x11a   : > { %v5517_v42 = vpop.f32.mrf.mxu1  ;;  %v5331_v26 = vadd.f32 -1.0, %v5939_v23  ;;  %v700_v63 = vmul.f32 1.442695, %v679_v36  ;;  %v6837_v57 = vadd.f32 %v5515_v32, %v465_v13  ;;  %v5438_v56 = vadd.f32 %v5437_v30, %v5436_v58 }
 0x11b   : > { %v5439_v44 = vpop.f32.mrf.mxu0  ;;  %v5518_v40 = vadd.f32 %v5517_v42, %v5516_v60  ;;  %1734 = vperm.xlu1 %5852, %v6410_v27   ;;  %v6845_v36 = vpop.permute.xlu1 %1222 }
 0x11c   : > { %v5519_v52 = vpop.f32.mrf.mxu1  ;;  %v739_v10 = vsel %vm659_vm3, %v6784_v37, %v5331_v26  ;;  %5946 = vpow2.f32 %v700_v63  ;;  %v680_v55 = vmin.f32 %v6837_v57, 0.0  ;;  %v470_v2 = vadd.f32 %v5438_v56, %v6677_v41  ;;  %v6847_v32 = vpop.permute.xlu0 %1230 }
 0x11d   : > { %1870 = vperm.xlu0 %5854, %v6338_v9   ;;  %v5941_v58 = vpop.eup %5940  ;;  %v5440_v13 = vpop.f32.mrf.mxu0  ;;  %5636 = vmatmul.mubr.msk.f32.vlgmr.msra.gmra.mxu0 %vm763_vm1, %v739_v10  ;;  %vm664_vm8 = vcmp.gt.f32.partialorder %v6837_v57, 0.0 }
 0x11e   : > { %v5520_v60 = vpop.f32.mrf.mxu1  ;;  %v702_v23 = vmul.f32 1.442695, %v680_v55  ;;  %v6851_v30 = vadd.f32 %v5518_v40, %v470_v2  ;;  %v5441_v37 = vadd.f32 %v5440_v13, %v5439_v44  ;;  %v5332_v63 = vadd.f32 -1.0, %v5941_v58 }
 0x11f   : > { %v5521_v47 = vadd.f32 %v5520_v60, %v5519_v52  ;;  %v5442_v42 = vpop.f32.mrf.mxu0  ;;  %1742 = vperm.xlu1 %5852, %v6434_v33   ;;  %v6857_v56 = vpop.permute.xlu1 %1226 }
 0x120   : > { %v5522_v26 = vpop.f32.mrf.mxu1  ;;  %5948 = vpow2.f32 %v702_v23  ;;  %v681_v41 = vmin.f32 %v6851_v30, 0.0  ;;  %v475_v9 = vadd.f32 %v5441_v37, %v6691_v48  ;;  %v6859_v10 = vpop.permute.xlu0 %1238  ;;  %v740_v40 = vsel %vm660_vm4, %v6794_v59, %v5332_v63 }
 0x121   : > { %1878 = vperm.xlu0 %5854, %v6362_v15   ;;  %v5943_v44 = vpop.eup %5942  ;;  %v5443_v52 = vpop.f32.mrf.mxu0  ;;  %5638 = vmatprep.mubr.msk.f32.mxu0 %vm763_vm1, %v740_v40  ;;  %vm665_vm9 = vcmp.gt.f32.partialorder %v6851_v30, 0.0 }
 0x122   : > { %v5523_v55 = vpop.f32.mrf.mxu1  ;;  %v704_v2 = vmul.f32 1.442695, %v681_v41  ;;  %v6863_v58 = vadd.f32 %v5521_v47, %v475_v9  ;;  %v5444_v13 = vadd.f32 %v5443_v52, %v5442_v42  ;;  %v5333_v37 = vadd.f32 -1.0, %v5943_v44 }
 0x123   : > { %v5524_v48 = vadd.f32 %v5523_v55, %v5522_v26  ;;  %v5445_v60 = vpop.f32.mrf.mxu0  ;;  %1750 = vperm.xlu1 %5852, %v6458_v39   ;;  %v6870_v59 = vpop.permute.xlu1 %1234 }
 0x124   : > { %v5525_v23 = vpop.f32.mrf.mxu1  ;;  %5950 = vpow2.f32 %v704_v2  ;;  %v682_v15 = vmin.f32 %v6863_v58, 0.0  ;;  %v480_v1 = vadd.f32 %v5444_v13, %v6683_v43  ;;  %v6872_v47 = vpop.permute.xlu0 %1246  ;;  %v741_v63 = vsel %vm661_vm5, %v6804_v0, %v5333_v37 }
 0x125   : > { %1886 = vperm.xlu0 %5854, %v6386_v21   ;;  %v5945_v42 = vpop.eup %5944  ;;  %v5446_v26 = vpop.f32.mrf.mxu0  ;;  %5639 = vmatmul.mubr.msk.f32.gmra.mxu0 %vm763_vm1, %v741_v63  ;;  %vm666_vm10 = vcmp.gt.f32.partialorder %v6863_v58, 0.0 }
 0x126   : > { %v5526_v41 = vpop.f32.mrf.mxu1  ;;  %v706_v9 = vmul.f32 1.442695, %v682_v15  ;;  %v6876_v44 = vadd.f32 %v5524_v48, %v480_v1  ;;  %v5447_v52 = vadd.f32 %v5446_v26, %v5445_v60  ;;  %v5334_v2 = vadd.f32 -1.0, %v5945_v42 }
 0x127   : > { %v5527_v43 = vadd.f32 %v5526_v41, %v5525_v23  ;;  %v5448_v40 = vpop.f32.mrf.mxu0  ;;  %1758 = vperm.xlu1 %5852, %v6485_v46   ;;  %v6883_v0 = vpop.permute.xlu1 %1242 }
 0x128   : > { %v5528_v55 = vpop.f32.mrf.mxu1  ;;  %5952 = vpow2.f32 %v706_v9  ;;  %v683_v21 = vmin.f32 %v6876_v44, 0.0  ;;  %v485_v13 = vadd.f32 %v5447_v52, %v6697_v50  ;;  %v6885_v1 = vpop.permute.xlu0 %1254  ;;  %v742_v23 = vsel %vm662_vm6, %v6814_v29, %v5334_v2 }
 0x129   : > { %1894 = vperm.xlu0 %5854, %v6410_v27   ;;  %v5947_v48 = vpop.eup %5946  ;;  %v5449_v60 = vpop.f32.mrf.mxu0  ;;  %5641 = vmatprep.mubr.msk.f32.mxu0 %vm763_vm1, %v742_v23  ;;  %v10104_v52 = vmov 78   ;;  %vm667_vm11 = vcmp.gt.f32.partialorder %v6876_v44, 0.0 }
 0x12a   : > { %v5529_v37 = vpop.f32.mrf.mxu1  ;;  %v708_v15 = vmul.f32 1.442695, %v683_v21  ;;  %v6889_v42 = vadd.f32 %v5527_v43, %v485_v13  ;;  %v5450_v26 = vadd.f32 %v5449_v60, %v5448_v40  ;;  %v5335_v9 = vadd.f32 -1.0, %v5947_v48 }
 0x12b   : > { %v5530_v50 = vadd.f32 %v5529_v37, %v5528_v55  ;;  %v5451_v63 = vpop.f32.mrf.mxu0  ;;  %5855 = vset.pattern.permute.xlu1 %v10104_v52  ;;  %v6897_v29 = vpop.permute.xlu1 %1250 }
 0x12c   : > { %v5531_v41 = vpop.f32.mrf.mxu1  ;;  %5954 = vpow2.f32 %v708_v15  ;;  %v684_v27 = vmin.f32 %v6889_v42, 0.0  ;;  %v490_v5 = vadd.f32 %v5450_v26, %v6689_v45  ;;  %1862 = vperm.xlu1 %5855, %v6367_v16   ;;  %v6899_v43 = vpop.permute.xlu0 %1262  ;;  %v743_v2 = vsel %vm663_vm7, %v6824_v3, %v5335_v9  ;;  %v6912_v3 = vld [vmem:[%s10039_s1 + $0xb8] sm:$0xff] }
 0x12d   : > { %10105 = vst [vmem:[#allocation27_spill] sm:$0xff] %v6899_v43  ;;  %1902 = vperm.xlu0 %5854, %v6434_v33   ;;  %v5949_v40 = vpop.eup %5948  ;;  %v5452_v55 = vpop.f32.mrf.mxu0  ;;  %5642 = vmatmul.mubr.msk.f32.gmra.mxu0 %vm763_vm1, %v743_v2  ;;  %10106 = vst [vmem:[#allocation28_spill] sm:$0xff] %v6912_v3  ;;  %vm668_vm12 = vcmp.gt.f32.partialorder %v6889_v42, 0.0 }
 0x12e   : > { %v5532_v21 = vpop.f32.mrf.mxu1  ;;  %v710_v13 = vmul.f32 1.442695, %v684_v27  ;;  %v6903_v48 = vadd.f32 %v5530_v50, %v490_v5  ;;  %v5453_v60 = vadd.f32 %v5452_v55, %v5451_v63  ;;  %v5336_v37 = vadd.f32 -1.0, %v5949_v40 }
 0x12f   : > { %v5533_v45 = vadd.f32 %v5532_v21, %v5531_v41  ;;  %v5454_v23 = vpop.f32.mrf.mxu0  ;;  %v6915_v5 = vpop.permute.xlu1 %1258 }
 0x130   : > { %v5534_v16 = vpop.f32.mrf.mxu1  ;;  %5956 = vpow2.f32 %v710_v13  ;;  %v685_v15 = vmin.f32 %v6903_v48, 0.0  ;;  %v495_v33 = vadd.f32 %v5453_v60, %v6703_v53  ;;  %1866 = vperm.xlu1 %5855, %v6912_v3   ;;  %10107 = vst [vmem:[#allocation29_spill] sm:$0xff] %v6915_v5  ;;  %v6917_v26 = vpop.permute.xlu0 %1270  ;;  %v744_v41 = vsel %vm664_vm8, %v6837_v57, %v5336_v37  ;;  %v6930_v57 = vld [vmem:[%s10039_s1 + $0x138] sm:$0xff] }
 0x131   : > { %10108 = vst [vmem:[#allocation30_spill] sm:$0xff] %v6917_v26  ;;  %1910 = vperm.xlu0 %5854, %v6458_v39   ;;  %v5951_v50 = vpop.eup %5950  ;;  %v5455_v63 = vpop.f32.mrf.mxu0  ;;  %5644 = vmatprep.mubr.msk.f32.mxu0 %vm763_vm1, %v744_v41  ;;  %10109 = vst [vmem:[#allocation31_spill] sm:$0xff] %v6930_v57  ;;  %vm669_vm13 = vcmp.gt.f32.partialorder %v6903_v48, 0.0 }
 0x132   : > { %v5535_v53 = vpop.f32.mrf.mxu1  ;;  %v712_v9 = vmul.f32 1.442695, %v685_v15  ;;  %v6921_v52 = vadd.f32 %v5533_v45, %v495_v33  ;;  %v5456_v27 = vadd.f32 %v5455_v63, %v5454_v23  ;;  %v5337_v21 = vadd.f32 -1.0, %v5951_v50 }
 0x133   : > { %v5536_v40 = vadd.f32 %v5535_v53, %v5534_v16  ;;  %v5457_v55 = vpop.f32.mrf.mxu0  ;;  %v6933_v60 = vpop.permute.xlu1 %1266 }
 0x134   : > { %v5537_v2 = vpop.f32.mrf.mxu1  ;;  %5958 = vpow2.f32 %v712_v9  ;;  %v686_v13 = vmin.f32 %v6921_v52, 0.0  ;;  %v500_v39 = vadd.f32 %v5456_v27, %v6695_v49  ;;  %1874 = vperm.xlu1 %5855, %v6930_v57   ;;  %10110 = vst [vmem:[#allocation32_spill] sm:$0xff] %v6933_v60  ;;  %v6935_v45 = vpop.permute.xlu0 %1278  ;;  %v745_v37 = vsel %vm665_vm9, %v6851_v30, %v5337_v21  ;;  %v6948_v30 = vld [vmem:[%s10039_s1 + $0x1b8] sm:$0xff] }
 0x135   : > { %10111 = vst [vmem:[#allocation33_spill] sm:$0xff] %v6935_v45  ;;  %1918 = vperm.xlu0 %5854, %v6485_v46   ;;  %v5953_v23 = vpop.eup %5952  ;;  %v5458_v16 = vpop.f32.mrf.mxu0  ;;  %5645 = vmatmul.mubr.msk.f32.gmra.mxu0 %vm763_vm1, %v745_v37  ;;  %10112 = vst [vmem:[#allocation34_spill] sm:$0xff] %v6948_v30  ;;  %vm670_vm14 = vcmp.gt.f32.partialorder %v6921_v52, 0.0 }
 0x136   : > { %v5538_v49 = vpop.f32.mrf.mxu1  ;;  %v714_v15 = vmul.f32 1.442695, %v686_v13  ;;  %v6939_v33 = vadd.f32 %v5536_v40, %v500_v39  ;;  %v5459_v50 = vadd.f32 %v5458_v16, %v5457_v55  ;;  %v5338_v9 = vadd.f32 -1.0, %v5953_v23  ;;  %v6960_v23 = vld [vmem:[%s10039_s1 + $0x78] sm:$0xff] }
 0x137   : > { %v5539_v63 = vadd.f32 %v5538_v49, %v5537_v2  ;;  %v5460_v41 = vpop.f32.mrf.mxu0  ;;  %v6951_v40 = vpop.permute.xlu1 %1274  ;;  %v10042_v2 = vmov 79   ;;  %10114 = vst [vmem:[#allocation36_spill] sm:$0xff] %v6960_v23 }
 0x138   : > { %v5540_v53 = vpop.f32.mrf.mxu1  ;;  %5960 = vpow2.f32 %v714_v15  ;;  %v687_v27 = vmin.f32 %v6939_v33, 0.0  ;;  %v505_v46 = vadd.f32 %v5459_v50, %v6707_v54  ;;  %1882 = vperm.xlu1 %5855, %v6948_v30   ;;  %10113 = vst [vmem:[#allocation35_spill] sm:$0xff] %v6951_v40  ;;  %v746_v54 = vsel %vm666_vm10, %v6863_v58, %v5338_v9  ;;  %v6972_v9 = vld [vmem:[%s10039_s1 + $0x238] sm:$0xff] }
 0x139   : > { %v6953_v55 = vpop.permute.xlu0 %1382  ;;  %5857 = vset.pattern.permute.xlu0 %v10042_v2  ;;  %v5955_v21 = vpop.eup %5954  ;;  %5647 = vmatprep.mubr.msk.f32.mxu0 %vm763_vm1, %v746_v54  ;;  %10115 = vst [vmem:[#allocation37_spill] sm:$0xff] %v6972_v9  ;;  %vm671_vm15 = vcmp.gt.f32.partialorder %v6939_v33, 0.0 }
 0x13a   : > { %v5461_v13 = vpop.f32.mrf.mxu0  ;;  %v5541_v39 = vpop.f32.mrf.mxu1  ;;  %2022 = vperm.xlu0 %5857, %v6960_v23   ;;  %v716_v16 = vmul.f32 1.442695, %v687_v27  ;;  %v6963_v37 = vadd.f32 %v5539_v63, %v505_v46  ;;  %v5339_v50 = vadd.f32 -1.0, %v5955_v21 }
 0x13b   : > { %v5462_v49 = vadd.f32 %v5461_v13, %v5460_v41  ;;  %v5542_v15 = vadd.f32 %v5541_v39, %v5540_v53  ;;  %v6987_v39 = vld [vmem:[%s10039_s1 + $0x2b8] sm:$0xff] }
 0x13c   : > { %5962 = vpow2.f32 %v716_v16  ;;  %v688_v2 = vmin.f32 %v6963_v37, 0.0  ;;  %1890 = vperm.xlu1 %5855, %v6972_v9   ;;  %v6975_v63 = vpop.permute.xlu1 %1378  ;;  %v747_v53 = vsel %vm667_vm11, %v6876_v44, %v5339_v50  ;;  %10116 = vst [vmem:[#allocation38_spill] sm:$0xff] %v6987_v39  ;;  %vm672_vm0 = vcmp.gt.f32.partialorder %v6963_v37, 0.0 }
 0x13d   : > { %v510_v58 = vadd.f32 %v5462_v49, %v6701_v51  ;;  %v5957_v41 = vpop.eup %5956  ;;  %5648 = vmatmul.mubr.msk.f32.gmra.mxu0 %vm763_vm1, %v747_v53  ;;  %v6981_v21 = vpop.permute.xlu0 %1394 }
 0x13e   : > { %2034 = vperm.xlu0 %5857, %v6930_v57   ;;  %v718_v27 = vmul.f32 1.442695, %v688_v2  ;;  %v5340_v51 = vadd.f32 -1.0, %v5957_v41 }
 0x13f   : > { %v655_v46 = vadd.f32 %v5542_v15, %v510_v58  ;;  %v6999_v15 = vld [vmem:[%s10039_s1 + $0x338] sm:$0xff] }
 0x140   : > { %5964 = vpow2.f32 %v718_v27  ;;  %v748_v54 = vsel %vm668_vm12, %v6889_v42, %v5340_v51  ;;  %1898 = vperm.xlu1 %5855, %v6987_v39   ;;  %v6990_v44 = vpop.permute.xlu1 %1386  ;;  %10117 = vst [vmem:[#allocation39_spill] sm:$0xff] %v6999_v15  ;;  %v7013_v27 = vld [vmem:[%s10039_s1 + $0x3b8] sm:$0xff] }
 0x141   : > { %v689_v13 = vmin.f32 %v655_v46, 0.0  ;;  %v5959_v2 = vpop.eup %5958  ;;  %5650 = vmatprep.mubr.msk.f32.mxu0 %vm763_vm1, %v748_v54  ;;  %v7005_v41 = vpop.permute.xlu0 %1402  ;;  %10118 = vst [vmem:[#allocation40_spill] sm:$0xff] %v7013_v27  ;;  %vm673_vm2 = vcmp.gt.f32.partialorder %v655_v46, 0.0 }
 0x142   : > { %2042 = vperm.xlu0 %5857, %v6948_v30   ;;  %v5341_v49 = vadd.f32 -1.0, %v5959_v2 }
 0x143   : > { %v720_v16 = vmul.f32 1.442695, %v689_v13 }
 0x144   : > { %v749_v42 = vsel %vm669_vm13, %v6903_v48, %v5341_v49  ;;  %1906 = vperm.xlu1 %5855, %v6999_v15   ;;  %v7002_v50 = vpop.permute.xlu1 %1390 }
 0x145   : > { %5966 = vpow2.f32 %v720_v16  ;;  %v5961_v58 = vpop.eup %5960  ;;  %5651 = vmatmul.mubr.msk.f32.gmra.mxu0 %vm763_vm1, %v749_v42  ;;  %v7021_v2 = vpop.permute.xlu0 %1410  ;;  %v10119_v16 = vmov 79  }
 0x146   : > { %2050 = vperm.xlu0 %5857, %v6972_v9   ;;  %v5342_v53 = vadd.f32 -1.0, %v5961_v58  ;;  %v7031_v58 = vld [vmem:[%s10039_s1 + $0x38] sm:$0xff] }
 0x147   : > { %10120 = vst [vmem:[#allocation41_spill] sm:$0xff] %v7031_v58  ;;  %v7102_v9 = vld [vmem:[%s10039_s1 + $0x3f8] sm:$0xff] }
 0x148   : > { %v750_v48 = vsel %vm670_vm14, %v6921_v52, %v5342_v53  ;;  %1914 = vperm.xlu1 %5855, %v7013_v27   ;;  %v7016_v51 = vpop.permute.xlu1 %1398  ;;  %10133 = vst [vmem:[#allocation54_spill] sm:$0xff] %v7102_v9 }
 0x149   : > { %v5963_v13 = vpop.eup %5962  ;;  %5653 = vmatprep.mubr.msk.f32.mxu0 %vm763_vm1, %v750_v48 }
 0x14a   : > { %2058 = vperm.xlu0 %5857, %v6987_v39   ;;  %v5343_v54 = vadd.f32 -1.0, %v5963_v13  ;;  %v7094_v39 = vld [vmem:[%s10039_s1 + $0x378] sm:$0xff] }
 0x14b   : > { %10132 = vst [vmem:[#allocation53_spill] sm:$0xff] %v7094_v39 }
 0x14c   : > { %v751_v52 = vsel %vm671_vm15, %v6939_v33, %v5343_v54  ;;  %5856 = vset.pattern.permute.xlu1 %v10119_v16  ;;  %v7025_v49 = vpop.permute.xlu1 %1406  ;;  %v7041_v54 = vpop.permute.xlu0 %1418 }
 0x14d   : > { %v5965_v42 = vpop.eup %5964  ;;  %5654 = vmatmul.mubr.msk.f32.gmra.mxu0 %vm763_vm1, %v751_v52  ;;  %2018 = vperm.xlu1 %5856, %v7031_v58   ;;  %10121 = vst [vmem:[#allocation42_spill] sm:$0xff] %v7041_v54 }
 0x14e   : > { %v5344_v53 = vadd.f32 -1.0, %v5965_v42  ;;  %2066 = vperm.xlu0 %5857, %v6999_v15  }
 0x150   : > { %v752_v33 = vsel %vm672_vm0, %v6963_v37, %v5344_v53  ;;  %v7037_v48 = vpop.permute.xlu1 %1414  ;;  %v7050_v37 = vld [vmem:[%s10039_s1 + $0xf8] sm:$0xff]  ;;  %v7053_v53 = vpop.permute.xlu0 %1426 }
 0x151   : > { %5656 = vmatprep.mubr.msk.f32.mxu0 %vm763_vm1, %v752_v33  ;;  %2026 = vperm.xlu1 %5856, %v6912_v3   ;;  %10123 = vst [vmem:[#allocation44_spill] sm:$0xff] %v7050_v37  ;;  %10124 = vst [vmem:[#allocation45_spill] sm:$0xff] %v7053_v53 }
 0x152   : > { %v5967_v13 = vpop.eup %5966  ;;  %2074 = vperm.xlu0 %5857, %v7013_v27  }
 0x153   : > { %v5345_v52 = vadd.f32 -1.0, %v5967_v13  ;;  %v7060_v13 = vld [vmem:[%s10039_s1 + $0x178] sm:$0xff] }
 0x154   : > { %v7044_v42 = vpop.permute.xlu1 %1422  ;;  %10126 = vst [vmem:[#allocation47_spill] sm:$0xff] %v7060_v13 }
 0x155   : > { %v753_v16 = vsel %vm673_vm2, %v655_v46, %v5345_v52  ;;  %10122 = vst [vmem:[#allocation43_spill] sm:$0xff] %v7044_v42  ;;  %2030 = vperm.xlu1 %5856, %v7050_v37   ;;  %v7068_v52 = vld [vmem:[%s10039_s1 + $0x1f8] sm:$0xff] }
 0x156   : > { %5657 = vmatmul.mubr.msk.f32.gmra.mxu0 %vm763_vm1, %v753_v16  ;;  %10128 = vst [vmem:[#allocation49_spill] sm:$0xff] %v7068_v52  ;;  %v7071_v16 = vpop.permute.xlu0 %1434 }
 0x157   : > { %10129 = vst [vmem:[#allocation50_spill] sm:$0xff] %v7071_v16 }
 0x158   : > { %v7055_v33 = vpop.permute.xlu1 %1430 }
 0x159   : > { %10125 = vst [vmem:[#allocation46_spill] sm:$0xff] %v7055_v33  ;;  %2038 = vperm.xlu1 %5856, %v7060_v13  }
 0x15a   : > { %v7079_v6 = vpop.permute.xlu0 %1538 }
 0x15c   : > { %v7063_v46 = vpop.permute.xlu1 %1438 }
 0x15d   : > { %10127 = vst [vmem:[#allocation48_spill] sm:$0xff] %v7063_v46  ;;  %2046 = vperm.xlu1 %5856, %v7068_v52  }
 0x15e   : > { %v7089_v15 = vpop.permute.xlu0 %1550 }
 0x161   : > { %2054 = vperm.xlu1 %5856, %v7076_v4   ;;  %v1543_v7 = vpop.permute.xlu1 %1542 }
 0x165   : > { %2062 = vperm.xlu1 %5856, %v7084_v11   ;;  %v7087_v27 = vpop.permute.xlu1 %1546  ;;  %v7105_v11 = vpop.permute.xlu0 %1558 }
 0x169   : > { %2070 = vperm.xlu1 %5856, %v7094_v39   ;;  %v7097_v4 = vpop.permute.xlu1 %1554  ;;  %v7109_v30 = vpop.permute.xlu0 %1566 }
 0x16d   : > { %2078 = vperm.xlu1 %5856, %v7102_v9   ;;  %v7107_v52 = vpop.permute.xlu1 %1562  ;;  %v7113_v57 = vpop.permute.xlu0 %1574 }
 0x171   : > { %v7111_v13 = vpop.permute.xlu1 %1570  ;;  %v7117_v37 = vpop.permute.xlu0 %1582 }
 0x172   : > { %10134 = vst [vmem:[#allocation55_spill] sm:$0xff] %v7111_v13  ;;  %10136 = vst [vmem:[#allocation57_spill] sm:$0xff] %v7117_v37 }
 0x175   : > { %v7115_v39 = vpop.permute.xlu1 %1578  ;;  %v7121_v58 = vpop.permute.xlu0 %1590 }
 0x176   : > { %10135 = vst [vmem:[#allocation56_spill] sm:$0xff] %v7115_v39  ;;  %10138 = vst [vmem:[#allocation59_spill] sm:$0xff] %v7121_v58 }
 0x179   : > { %v7119_v3 = vpop.permute.xlu1 %1586  ;;  %v7125_v9 = vpop.permute.xlu0 %1598 }
 0x17a   : > { %10137 = vst [vmem:[#allocation58_spill] sm:$0xff] %v7119_v3  ;;  %10140 = vst [vmem:[#allocation61_spill] sm:$0xff] %v7125_v9 }
 0x17d   : > { %v7123_v23 = vpop.permute.xlu1 %1594  ;;  %v1703_v31 = vpop.permute.xlu0 %1702 }
 0x17e   : > { %10139 = vst [vmem:[#allocation60_spill] sm:$0xff] %v7123_v23 }
 0x181   : > { %v7131_v46 = vpop.permute.xlu0 %1714 }
 0x182   : > { %v7127_v16 = vpop.permute.xlu1 %1698 }
 0x185   : > { %v7135_v45 = vpop.permute.xlu0 %1722 }
 0x186   : > { %v7129_v40 = vpop.permute.xlu1 %1706 }
 0x189   : > { %v7139_v3 = vpop.permute.xlu0 %1730 }
 0x18a   : > { %v7133_v18 = vpop.permute.xlu1 %1710  ;;  %10141 = vst [vmem:[#allocation62_spill] sm:$0xff] %v7139_v3 }
 0x18d   : > { %v7143_v23 = vpop.permute.xlu0 %1738 }
 0x18e   : > { %v7137_v53 = vpop.permute.xlu1 %1718  ;;  %10142 = vst [vmem:[#allocation63_spill] sm:$0xff] %v7143_v23 }
 0x191   : > { %v7147_v60 = vpop.permute.xlu0 %1746 }
 0x192   : > { %v7141_v38 = vpop.permute.xlu1 %1726  ;;  %10143 = vst [vmem:[#allocation64_spill] sm:$0xff] %v7147_v60 }
 0x195   : > { %v7151_v58 = vpop.permute.xlu0 %1754 }
 0x196   : > { %v7145_v9 = vpop.permute.xlu1 %1734  ;;  %10145 = vst [vmem:[#allocation66_spill] sm:$0xff] %v7151_v58 }
 0x199   : > { %v1859_v26 = vpop.permute.xlu0 %1858 }
 0x19a   : > { %v7149_v33 = vpop.permute.xlu1 %1742 }
 0x19b   : > { %10144 = vst [vmem:[#allocation65_spill] sm:$0xff] %v7149_v33 }
 0x19d   : > { %v7157_v54 = vpop.permute.xlu0 %1870 }
 0x19e   : > { %v7153_v34 = vpop.permute.xlu1 %1750 }
 0x19f   : > { %10146 = vst [vmem:[#allocation67_spill] sm:$0xff] %v7153_v34 }
 0x1a1   : > { %v7159_v35 = vpop.permute.xlu0 %1878 }
 0x1a2   : > { %v7155_v39 = vpop.permute.xlu1 %1758 }
 0x1a3   : > { %10147 = vst [vmem:[#allocation68_spill] sm:$0xff] %v7155_v39 }
 0x1a5   : > { %v7163_v23 = vpop.permute.xlu0 %1886 }
 0x1a7   : > { %v1863_v5 = vpop.permute.xlu1 %1862 }
 0x1a9   : > { %v7167_v60 = vpop.permute.xlu0 %1894 }
 0x1ab   : > { %v7161_v42 = vpop.permute.xlu1 %1866 }
 0x1ad   : > { %v7171_v58 = vpop.permute.xlu0 %1902 }
 0x1ae   : > { %10148 = vst [vmem:[#allocation69_spill] sm:$0xff] %v7171_v58 }
 0x1af   : > { %v7165_v37 = vpop.permute.xlu1 %1874 }
 0x1b1   : > { %v7181_v3 = vpop.permute.xlu0 %1910 }
 0x1b3   : > { %v7169_v33 = vpop.permute.xlu1 %1882 }
 0x1b7   : > { %v7173_v34 = vpop.permute.xlu1 %1890 }
 0x1b8   : > { %10149 = vst [vmem:[#allocation70_spill] sm:$0xff] %v7173_v34 }
 0x1bb   : > { %v7188_v13 = vpop.permute.xlu1 %1898 }
 0x1dd   : > { %v7175_v39 = vpop.f32.mrf.mxu0 }
 0x1de   : > { %v1282_v28 = vmul.f32 %v7175_v39, %v6845_v36  ;;  %v1122_v43 = vmul.f32 %v7175_v39, %v6764_v14  ;;  %v1602_v58 = vmul.f32 %v7175_v39, %v1543_v7  ;;  %v1442_v34 = vmul.f32 %v7175_v39, %v6953_v55  ;;  %v7192_v14 = vpop.permute.xlu0 %1918  ;;  %v7200_v7 = vpop.permute.xlu1 %1906 }
 0x1df   : > { %v1762_v36 = vmul.f32 %v7175_v39, %v1703_v31 }
 0x1e0   : > { %1315 = vrot.lane.b32.xlu0 %v1282_v28, %s6135_s30  ;;  %1155 = vrot.lane.b32.xlu1 %v1122_v43, %s6136_s3  ;;  %v1922_v28 = vmul.f32 %v7175_v39, %v1863_v5  ;;  %v7196_v43 = vpop.f32.mrf.mxu0 }
 0x1e1   : > { %10150 = vst [vmem:[#allocation71_spill] sm:$0xff] %v7196_v43  ;;  %v1281_v31 = vmul.f32 %v6833_v20, %v7196_v43  ;;  %v1441_v5 = vmul.f32 %v6975_v63, %v7196_v43 }
 0x1e2   : > { %v2023_v55 = vpop.permute.xlu0 %2022 }
 0x1e4   : > { %1635 = vrot.lane.b32.xlu0 %v1602_v58, %s6137_s4  ;;  %1475 = vrot.lane.b32.xlu1 %v1442_v34, %s6138_s5  ;;  %v2082_v58 = vmul.f32 %v7175_v39, %v2023_v55  ;;  %v1121_v34 = vmul.f32 %v6756_v8, %v7196_v43  ;;  %v1601_v8 = vmul.f32 %v7079_v6, %v7196_v43 }
 0x1e5   : > { %v1921_v55 = vmul.f32 %v1859_v26, %v7196_v43 }
 0x1e8   : > { %1955 = vrot.lane.b32.xlu0 %v1922_v28, %s6139_s6  ;;  %1795 = vrot.lane.b32.xlu1 %v1762_v36, %s6140_s7  ;;  %v7211_v28 = vpop.permute.xlu1 %1914  ;;  %v1761_v36 = vmul.f32 %v7127_v16, %v7196_v43 }
 0x1ec   : > { %2115 = vrot.lane.b32.xlu1 %v2082_v58, %s6141_s8  ;;  %1153 = vrot.lane.b32.xlu0 %v1121_v34, %s6136_s3  ;;  %v2019_v20 = vpop.permute.xlu1 %2018  ;;  %v7223_v58 = vpop.f32.mrf.mxu0 }
 0x1ed   : > { %v2081_v63 = vmul.f32 %v2019_v20, %v7196_v43  ;;  %v1284_v6 = vmul.f32 %v7223_v58, %v6847_v32  ;;  %v1124_v16 = vmul.f32 %v7223_v58, %v6768_v24  ;;  %v1604_v26 = vmul.f32 %v7223_v58, %v7089_v15 }
 0x1ee   : > { %v1444_v34 = vmul.f32 %v7223_v58, %v7002_v50  ;;  %v1924_v32 = vmul.f32 %v7223_v58, %v7157_v54  ;;  %v1764_v24 = vmul.f32 %v7223_v58, %v7133_v18 }
 0x1f0   : > { %1313 = vrot.lane.b32.xlu1 %v1281_v31, %s6135_s30  ;;  %1473 = vrot.lane.b32.xlu0 %v1441_v5, %s6138_s5  ;;  %v2027_v31 = vpop.permute.xlu1 %2026  ;;  %v7243_v5 = vpop.f32.mrf.mxu0 }
 0x1f1   : > { %v1283_v54 = vmul.f32 %v6857_v56, %v7243_v5  ;;  %v1443_v18 = vmul.f32 %v6990_v44, %v7243_v5  ;;  %v1923_v56 = vmul.f32 %v7161_v42, %v7243_v5  ;;  %v2083_v20 = vmul.f32 %v2027_v31, %v7243_v5 }
 0x1f2   : > { %v7267_v44 = vpop.f32.mrf.mxu0 }
 0x1f3   : > { %v1606_v42 = vmul.f32 %v7267_v44, %v7105_v11 }
 0x1f4   : > { %1633 = vrot.lane.b32.xlu1 %v1601_v8, %s6137_s4  ;;  %1793 = vrot.lane.b32.xlu0 %v1761_v36, %s6140_s7  ;;  %v2031_v15 = vpop.permute.xlu1 %2030  ;;  %v1123_v8 = vmul.f32 %v6762_v12, %v7243_v5  ;;  %v1603_v36 = vmul.f32 %v7087_v27, %v7243_v5  ;;  %v1763_v12 = vmul.f32 %v7129_v40, %v7243_v5 }
 0x1f5   : > { %v2084_v50 = vmul.f32 %v7223_v58, %v2031_v15  ;;  %v1286_v27 = vmul.f32 %v7267_v44, %v6859_v10  ;;  %v1126_v40 = vmul.f32 %v7267_v44, %v6777_v17  ;;  %v1926_v10 = vmul.f32 %v7267_v44, %v7159_v35 }
 0x1f6   : > { %v1766_v17 = vmul.f32 %v7267_v44, %v7137_v53 }
 0x1f8   : > { %1953 = vrot.lane.b32.xlu1 %v1921_v55, %s6139_s6  ;;  %2113 = vrot.lane.b32.xlu0 %v2081_v63, %s6141_s8  ;;  %v1446_v55 = vmul.f32 %v7267_v44, %v7016_v51  ;;  %v7287_v63 = vpop.f32.mrf.mxu0  ;;  %v2039_v11 = vpop.permute.xlu1 %2038 }
 0x1f9   : > { %v1125_v51 = vmul.f32 %v6770_v25, %v7287_v63  ;;  %v1285_v35 = vmul.f32 %v6870_v59, %v7287_v63  ;;  %v1445_v53 = vmul.f32 %v6981_v21, %v7287_v63  ;;  %v1765_v25 = vmul.f32 %v7131_v46, %v7287_v63 }
 0x1fa   : > { %v1925_v59 = vmul.f32 %v7165_v37, %v7287_v63 }
 0x1fc   : > { %1319 = vrot.lane.b32.xlu0 %v1284_v6, %s6135_s30  ;;  %1159 = vrot.lane.b32.xlu1 %v1124_v16, %s6136_s3  ;;  %v2086_v6 = vmul.f32 %v7267_v44, %v2039_v11  ;;  %v1605_v16 = vmul.f32 %v7097_v4, %v7287_v63  ;;  %v2047_v37 = vpop.permute.xlu1 %2046 }
 0x200   : > { %1639 = vrot.lane.b32.xlu0 %v1604_v26, %s6137_s4  ;;  %1479 = vrot.lane.b32.xlu1 %v1444_v34, %s6138_s5  ;;  %v2035_v26 = vpop.permute.xlu0 %2034  ;;  %v7311_v34 = vpop.f32.mrf.mxu0 }
 0x201   : > { %v2085_v21 = vmul.f32 %v2035_v26, %v7287_v63  ;;  %v1288_v4 = vmul.f32 %v7311_v34, %v6872_v47  ;;  %v1128_v46 = vmul.f32 %v7311_v34, %v6786_v62  ;;  %v1928_v47 = vmul.f32 %v7311_v34, %v7163_v23 }
 0x202   : > { %v1768_v62 = vmul.f32 %v7311_v34, %v7141_v38  ;;  %v7331_v15 = vpop.f32.mrf.mxu0 }
 0x204   : > { %1959 = vrot.lane.b32.xlu0 %v1924_v32, %s6139_s6  ;;  %1799 = vrot.lane.b32.xlu1 %v1764_v24, %s6140_s7  ;;  %v2043_v31 = vpop.permute.xlu0 %2042  ;;  %v1608_v32 = vmul.f32 %v7311_v34, %v7109_v30  ;;  %v1448_v24 = vmul.f32 %v7311_v34, %v7025_v49  ;;  %v2088_v30 = vmul.f32 %v7311_v34, %v2047_v37 }
 0x205   : > { %v1127_v49 = vmul.f32 %v6779_v19, %v7331_v15  ;;  %v1607_v19 = vmul.f32 %v7107_v52, %v7331_v15 }
 0x208   : > { %2119 = vrot.lane.b32.xlu1 %v2084_v50, %s6141_s8  ;;  %1157 = vrot.lane.b32.xlu0 %v1123_v8, %s6136_s3  ;;  %v7333_v50 = vpop.permute.xlu0 %2050  ;;  %v2055_v8 = vpop.permute.xlu1 %2054 }
 0x20c   : > { %1317 = vrot.lane.b32.xlu1 %v1283_v54, %s6135_s30  ;;  %1477 = vrot.lane.b32.xlu0 %v1443_v18, %s6138_s5  ;;  %v7342_v23 = vpop.permute.xlu0 %2058  ;;  %v7344_v38 = vpop.permute.xlu1 %2062  ;;  %v1287_v54 = vmul.f32 %v6883_v0, %v7331_v15  ;;  %v1447_v18 = vmul.f32 %v7005_v41, %v7331_v15  ;;  %v1927_v0 = vmul.f32 %v7169_v33, %v7331_v15 }
 0x20d   : > { %v2087_v41 = vmul.f32 %v2043_v31, %v7331_v15  ;;  %v10165_v31 = vld [vmem:[#allocation70_spill] sm:$0xff] }
 0x210   : > { %1637 = vrot.lane.b32.xlu1 %v1603_v36, %s6137_s4  ;;  %1797 = vrot.lane.b32.xlu0 %v1763_v12, %s6140_s7  ;;  %v6142_v36 = vmov 80   ;;  %v1767_v12 = vmul.f32 %v7135_v45, %v7331_v15 }
 0x211   : > { %5859 = vset.pattern.permute.xlu1 %v6142_v36  ;;  %5858 = vset.pattern.permute.xlu0 %v6142_v36  ;;  %v10172_v36 = vld [vmem:[#allocation57_spill] sm:$0xff] }
 0x214   : > { %1957 = vrot.lane.b32.xlu1 %v1923_v56, %s6139_s6  ;;  %2117 = vrot.lane.b32.xlu0 %v2083_v20, %s6141_s8  ;;  %v7356_v56 = vpop.permute.xlu0 %2066  ;;  %v7358_v20 = vpop.permute.xlu1 %2070 }
 0x218   : > { %1323 = vrot.lane.b32.xlu0 %v1286_v27, %s6135_s30  ;;  %1163 = vrot.lane.b32.xlu1 %v1126_v40, %s6136_s3  ;;  %v7365_v27 = vpop.f32.mrf.mxu0  ;;  %v7369_v45 = vpop.permute.xlu0 %2074 }
 0x219   : > { %v7371_v52 = vpop.permute.xlu1 %2078  ;;  %v1290_v40 = vmul.f32 %v7365_v27, %v6885_v1  ;;  %v1930_v11 = vmul.f32 %v7365_v27, %v7167_v60 }
 0x21c   : > { %1643 = vrot.lane.b32.xlu0 %v1606_v42, %s6137_s4  ;;  %1483 = vrot.lane.b32.xlu1 %v1446_v55, %s6138_s5  ;;  %v1130_v42 = vmul.f32 %v7365_v27, %v6796_v22 }
 0x220   : > { %1963 = vrot.lane.b32.xlu0 %v1926_v10, %s6139_s6  ;;  %1803 = vrot.lane.b32.xlu1 %v1766_v17, %s6140_s7  ;;  %v1610_v10 = vmul.f32 %v7365_v27, %v7113_v57  ;;  %v1450_v17 = vmul.f32 %v7365_v27, %v7037_v48 }
 0x224   : > { %2123 = vrot.lane.b32.xlu1 %v2086_v6, %s6141_s8  ;;  %1161 = vrot.lane.b32.xlu0 %v1125_v51, %s6136_s3  ;;  %v1770_v6 = vmul.f32 %v7365_v27, %v7145_v9  ;;  %v7397_v51 = vpop.f32.mrf.mxu0 }
 0x225   : > { %v1929_v37 = vmul.f32 %v10165_v31, %v7397_v51 }
 0x228   : > { %1321 = vrot.lane.b32.xlu1 %v1285_v35, %s6135_s30  ;;  %1481 = vrot.lane.b32.xlu0 %v1445_v53, %s6138_s5  ;;  %v2090_v35 = vmul.f32 %v7365_v27, %v2055_v8  ;;  %v1129_v53 = vmul.f32 %v6788_v61, %v7397_v51  ;;  %v10168_v8 = vld [vmem:[#allocation27_spill] sm:$0xff] }
 0x22c   : > { %1641 = vrot.lane.b32.xlu1 %v1605_v16, %s6137_s4  ;;  %1801 = vrot.lane.b32.xlu0 %v1765_v25, %s6140_s7  ;;  %v1289_v16 = vmul.f32 %v6897_v29, %v7397_v51  ;;  %v1449_v25 = vmul.f32 %v7021_v2, %v7397_v51 }
 0x230   : > { %1961 = vrot.lane.b32.xlu1 %v1925_v59, %s6139_s6  ;;  %2121 = vrot.lane.b32.xlu0 %v2085_v21, %s6141_s8  ;;  %v10161_v59 = vld [vmem:[#allocation55_spill] sm:$0xff] }
 0x231   : > { %v1609_v21 = vmul.f32 %v10161_v59, %v7397_v51 }
 0x234   : > { %1327 = vrot.lane.b32.xlu0 %v1288_v4, %s6135_s30  ;;  %1167 = vrot.lane.b32.xlu1 %v1128_v46, %s6136_s3  ;;  %v10162_v4 = vld [vmem:[#allocation62_spill] sm:$0xff] }
 0x235   : > { %v1769_v46 = vmul.f32 %v10162_v4, %v7397_v51 }
 0x238   : > { %1647 = vrot.lane.b32.xlu0 %v1608_v32, %s6137_s4  ;;  %1487 = vrot.lane.b32.xlu1 %v1448_v24, %s6138_s5  ;;  %v2089_v32 = vmul.f32 %v7333_v50, %v7397_v51  ;;  %v7438_v24 = vpop.f32.mrf.mxu0 }
 0x23c   : > { %1967 = vrot.lane.b32.xlu0 %v1928_v47, %s6139_s6  ;;  %1807 = vrot.lane.b32.xlu1 %v1768_v62, %s6140_s7 }
 0x240   : > { %2127 = vrot.lane.b32.xlu1 %v2088_v30, %s6141_s8  ;;  %1165 = vrot.lane.b32.xlu0 %v1127_v49, %s6136_s3  ;;  %v1292_v30 = vmul.f32 %v7438_v24, %v10168_v8  ;;  %v10169_v49 = vld [vmem:[#allocation22_spill] sm:$0xff] }
 0x244   : > { %1325 = vrot.lane.b32.xlu1 %v1287_v54, %s6135_s30  ;;  %1485 = vrot.lane.b32.xlu0 %v1447_v18, %s6138_s5  ;;  %v1132_v54 = vmul.f32 %v7438_v24, %v10169_v49 }
 0x248   : > { %1645 = vrot.lane.b32.xlu1 %v1607_v19, %s6137_s4  ;;  %1805 = vrot.lane.b32.xlu0 %v1767_v12, %s6140_s7  ;;  %v1612_v19 = vmul.f32 %v7438_v24, %v10172_v36  ;;  %v10173_v12 = vld [vmem:[#allocation43_spill] sm:$0xff] }
 0x24c   : > { %1965 = vrot.lane.b32.xlu1 %v1927_v0, %s6139_s6  ;;  %2125 = vrot.lane.b32.xlu0 %v2087_v41, %s6141_s8  ;;  %v1452_v0 = vmul.f32 %v7438_v24, %v10173_v12 }
 0x250   : > { %1331 = vrot.lane.b32.xlu0 %v1290_v40, %s6135_s30  ;;  %1171 = vrot.lane.b32.xlu1 %v1130_v42, %s6136_s3  ;;  %v10176_v42 = vld [vmem:[#allocation69_spill] sm:$0xff] }
 0x252   : > { %v7379_v33 = vpop.permute.xlu0 %1315  ;;  %v7381_v55 = vpop.permute.xlu1 %1155 }
 0x253   : > { %10151 = vst [vmem:[#allocation72_spill] sm:$0xff] %v7379_v33  ;;  %10152 = vst [vmem:[#allocation73_spill] sm:$0xff] %v7381_v55  ;;  %v10258_v33 = vld [vmem:[#allocation51_spill] sm:$0xff] }
 0x254   : > { %1651 = vrot.lane.b32.xlu0 %v1610_v10, %s6137_s4  ;;  %1491 = vrot.lane.b32.xlu1 %v1450_v17, %s6138_s5  ;;  %v1932_v10 = vmul.f32 %v7438_v24, %v10176_v42  ;;  %v10177_v17 = vld [vmem:[#allocation65_spill] sm:$0xff] }
 0x256   : > { %v7389_v1 = vpop.permute.xlu0 %1635  ;;  %v7391_v22 = vpop.permute.xlu1 %1475 }
 0x257   : > { %10153 = vst [vmem:[#allocation74_spill] sm:$0xff] %v7389_v1  ;;  %10154 = vst [vmem:[#allocation75_spill] sm:$0xff] %v7391_v22 }
 0x258   : > { %1971 = vrot.lane.b32.xlu0 %v1930_v11, %s6139_s6  ;;  %1811 = vrot.lane.b32.xlu1 %v1770_v6, %s6140_s7  ;;  %v1772_v11 = vmul.f32 %v7438_v24, %v10177_v17  ;;  %v7470_v6 = vpop.f32.mrf.mxu0 }
 0x259   : > { %v2091_v42 = vmul.f32 %v7342_v23, %v7470_v6 }
 0x25a   : > { %v7401_v57 = vpop.permute.xlu0 %1955  ;;  %v7403_v48 = vpop.permute.xlu1 %1795 }
 0x25b   : > { %10155 = vst [vmem:[#allocation76_spill] sm:$0xff] %v7401_v57  ;;  %10156 = vst [vmem:[#allocation77_spill] sm:$0xff] %v7403_v48 }
 0x25c   : > { %2131 = vrot.lane.b32.xlu1 %v2090_v35, %s6141_s8  ;;  %1169 = vrot.lane.b32.xlu0 %v1129_v53, %s6136_s3 }
 0x25e   : > { %v7410_v60 = vpop.permute.xlu1 %2115  ;;  %v7412_v9 = vpop.permute.xlu0 %1153 }
 0x25f   : > { %10157 = vst [vmem:[#allocation78_spill] sm:$0xff] %v7410_v60  ;;  %10158 = vst [vmem:[#allocation79_spill] sm:$0xff] %v7412_v9  ;;  %v10250_v9 = vld [vmem:[#allocation47_spill] sm:$0xff] }
 0x260   : > { %1329 = vrot.lane.b32.xlu1 %v1289_v16, %s6135_s30  ;;  %1489 = vrot.lane.b32.xlu0 %v1449_v25, %s6138_s5  ;;  %v2092_v16 = vmul.f32 %v7438_v24, %v7344_v38  ;;  %v10180_v25 = vld [vmem:[#allocation21_spill] sm:$0xff] }
 0x261   : > { %v1131_v59 = vmul.f32 %v10180_v25, %v7470_v6 }
 0x262   : > { %v7420_v26 = vpop.permute.xlu1 %1313  ;;  %v7422_v61 = vpop.permute.xlu0 %1473 }
 0x263   : > { %10159 = vst [vmem:[#allocation80_spill] sm:$0xff] %v7420_v26  ;;  %10160 = vst [vmem:[#allocation81_spill] sm:$0xff] %v7422_v61 }
 0x264   : > { %1649 = vrot.lane.b32.xlu1 %v1609_v21, %s6137_s4  ;;  %1809 = vrot.lane.b32.xlu0 %v1769_v46, %s6140_s7  ;;  %v10183_v46 = vld [vmem:[#allocation29_spill] sm:$0xff] }
 0x265   : > { %v1291_v31 = vmul.f32 %v10183_v46, %v7470_v6 }
 0x266   : > { %v7430_v29 = vpop.permute.xlu1 %1633  ;;  %v7432_v2 = vpop.permute.xlu0 %1793 }
 0x267   : > { %10163 = vst [vmem:[#allocation55_spill] sm:$0xff] %v7430_v29  ;;  %10164 = vst [vmem:[#allocation62_spill] sm:$0xff] %v7432_v2  ;;  %v10216_v2 = vld [vmem:[#allocation26_spill] sm:$0xff] }
 0x268   : > { %1969 = vrot.lane.b32.xlu1 %v1929_v37, %s6139_s6  ;;  %2129 = vrot.lane.b32.xlu0 %v2089_v32, %s6141_s8  ;;  %v10184_v37 = vld [vmem:[#allocation42_spill] sm:$0xff] }
 0x269   : > { %v1451_v32 = vmul.f32 %v10184_v37, %v7470_v6 }
 0x26a   : > { %v7442_v47 = vpop.permute.xlu1 %1953  ;;  %v7444_v62 = vpop.permute.xlu0 %2113 }
 0x26b   : > { %10166 = vst [vmem:[#allocation70_spill] sm:$0xff] %v7442_v47  ;;  %10167 = vst [vmem:[#allocation82_spill] sm:$0xff] %v7444_v62 }
 0x26c   : > { %1335 = vrot.lane.b32.xlu0 %v1292_v30, %s6135_s30  ;;  %1175 = vrot.lane.b32.xlu1 %v1132_v54, %s6136_s3  ;;  %v10187_v30 = vld [vmem:[#allocation56_spill] sm:$0xff]  ;;  %v10188_v54 = vld [vmem:[#allocation63_spill] sm:$0xff] }
 0x26d   : > { %v1611_v49 = vmul.f32 %v10187_v30, %v7470_v6  ;;  %v1771_v36 = vmul.f32 %v10188_v54, %v7470_v6 }
 0x26e   : > { %v7452_v50 = vpop.permute.xlu0 %1319  ;;  %v7454_v18 = vpop.permute.xlu1 %1159 }
 0x26f   : > { %10170 = vst [vmem:[#allocation27_spill] sm:$0xff] %v7452_v50  ;;  %10171 = vst [vmem:[#allocation22_spill] sm:$0xff] %v7454_v18  ;;  %v10269_v50 = vld [vmem:[#allocation40_spill] sm:$0xff] }
 0x270   : > { %1655 = vrot.lane.b32.xlu0 %v1612_v19, %s6137_s4  ;;  %1495 = vrot.lane.b32.xlu1 %v1452_v0, %s6138_s5  ;;  %v1931_v0 = vmul.f32 %v7188_v13, %v7470_v6 }
 0x272   : > { %v7462_v41 = vpop.permute.xlu0 %1639  ;;  %v7464_v40 = vpop.permute.xlu1 %1479 }
 0x273   : > { %10174 = vst [vmem:[#allocation57_spill] sm:$0xff] %v7462_v41  ;;  %10175 = vst [vmem:[#allocation43_spill] sm:$0xff] %v7464_v40  ;;  %v10257_v41 = vld [vmem:[#allocation37_spill] sm:$0xff]  ;;  %v10262_v40 = vld [vmem:[#allocation52_spill] sm:$0xff] }
 0x274   : > { %1975 = vrot.lane.b32.xlu0 %v1932_v10, %s6139_s6  ;;  %1815 = vrot.lane.b32.xlu1 %v1772_v11, %s6140_s7  ;;  %v7512_v10 = vpop.f32.mrf.mxu0 }
 0x276   : > { %v7474_v35 = vpop.permute.xlu0 %1959  ;;  %v7476_v53 = vpop.permute.xlu1 %1799 }
 0x277   : > { %10178 = vst [vmem:[#allocation69_spill] sm:$0xff] %v7474_v35  ;;  %10179 = vst [vmem:[#allocation65_spill] sm:$0xff] %v7476_v53  ;;  %v10231_v35 = vld [vmem:[#allocation50_spill] sm:$0xff]  ;;  %v10246_v53 = vld [vmem:[#allocation44_spill] sm:$0xff] }
 0x278   : > { %2135 = vrot.lane.b32.xlu1 %v2092_v16, %s6141_s8  ;;  %1173 = vrot.lane.b32.xlu0 %v1131_v59, %s6136_s3  ;;  %v10193_v16 = vld [vmem:[#allocation30_spill] sm:$0xff]  ;;  %v10194_v59 = vld [vmem:[#allocation24_spill] sm:$0xff] }
 0x279   : > { %v1294_v25 = vmul.f32 %v7512_v10, %v10193_v16  ;;  %v1134_v46 = vmul.f32 %v7512_v10, %v10194_v59  ;;  %v7544_v16 = vpop.f32.mrf.mxu0 }
 0x27a   : > { %v7484_v21 = vpop.permute.xlu1 %2119  ;;  %v7486_v4 = vpop.permute.xlu0 %1157 }
 0x27b   : > { %10181 = vst [vmem:[#allocation21_spill] sm:$0xff] %v7484_v21  ;;  %10182 = vst [vmem:[#allocation83_spill] sm:$0xff] %v7486_v4  ;;  %v7576_v60 = vpop.f32.mrf.mxu0 }
 0x27c   : > { %1333 = vrot.lane.b32.xlu1 %v1291_v31, %s6135_s30  ;;  %1493 = vrot.lane.b32.xlu0 %v1451_v32, %s6138_s5  ;;  %v10197_v31 = vld [vmem:[#allocation59_spill] sm:$0xff]  ;;  %v10198_v32 = vld [vmem:[#allocation46_spill] sm:$0xff]  ;;  %v1136_v57 = vmul.f32 %v7576_v60, %v10216_v2 }
 0x27d   : > { %v1614_v37 = vmul.f32 %v7512_v10, %v10197_v31  ;;  %v1454_v30 = vmul.f32 %v7512_v10, %v10198_v32  ;;  %v7608_v48 = vpop.f32.mrf.mxu0 }
 0x27e   : > { %v7494_v38 = vpop.permute.xlu1 %1317  ;;  %v7496_v8 = vpop.permute.xlu0 %1477  ;;  %v1455_v1 = vmul.f32 %v10231_v35, %v7608_v48 }
 0x27f   : > { %10185 = vst [vmem:[#allocation29_spill] sm:$0xff] %v7494_v38  ;;  %10186 = vst [vmem:[#allocation42_spill] sm:$0xff] %v7496_v8  ;;  %v10261_v8 = vld [vmem:[#allocation38_spill] sm:$0xff]  ;;  %v10266_v38 = vld [vmem:[#allocation53_spill] sm:$0xff] }
 0x280   : > { %1653 = vrot.lane.b32.xlu1 %v1611_v49, %s6137_s4  ;;  %1813 = vrot.lane.b32.xlu0 %v1771_v36, %s6140_s7  ;;  %v1934_v36 = vmul.f32 %v7512_v10, %v7181_v3 }
 0x282   : > { %v7504_v19 = vpop.permute.xlu1 %1637  ;;  %v7506_v12 = vpop.permute.xlu0 %1797 }
 0x283   : > { %10189 = vst [vmem:[#allocation56_spill] sm:$0xff] %v7504_v19  ;;  %10190 = vst [vmem:[#allocation63_spill] sm:$0xff] %v7506_v12 }
 0x284   : > { %1973 = vrot.lane.b32.xlu1 %v1931_v0, %s6139_s6  ;;  %2133 = vrot.lane.b32.xlu0 %v2091_v42, %s6141_s8  ;;  %v10201_v0 = vld [vmem:[#allocation67_spill] sm:$0xff] }
 0x285   : > { %v1774_v42 = vmul.f32 %v7512_v10, %v10201_v0 }
 0x286   : > { %v7516_v17 = vpop.permute.xlu1 %1957  ;;  %v7518_v11 = vpop.permute.xlu0 %2117 }
 0x287   : > { %10191 = vst [vmem:[#allocation84_spill] sm:$0xff] %v7516_v17  ;;  %10192 = vst [vmem:[#allocation85_spill] sm:$0xff] %v7518_v11  ;;  %v10220_v11 = vld [vmem:[#allocation48_spill] sm:$0xff]  ;;  %v10227_v17 = vld [vmem:[#allocation25_spill] sm:$0xff] }
 0x288   : > { %1339 = vrot.lane.b32.xlu0 %v1294_v25, %s6135_s30  ;;  %1179 = vrot.lane.b32.xlu1 %v1134_v46, %s6136_s3  ;;  %v10204_v46 = vld [vmem:[#allocation32_spill] sm:$0xff]  ;;  %v1456_v29 = vmul.f32 %v7576_v60, %v10220_v11  ;;  %v1135_v61 = vmul.f32 %v10227_v17, %v7608_v48 }
 0x289   : > { %v1293_v31 = vmul.f32 %v10204_v46, %v7544_v16 }
 0x28a   : > { %v7526_v13 = vpop.permute.xlu0 %1323  ;;  %v7528_v23 = vpop.permute.xlu1 %1163 }
 0x28b   : > { %10195 = vst [vmem:[#allocation30_spill] sm:$0xff] %v7526_v13  ;;  %10196 = vst [vmem:[#allocation24_spill] sm:$0xff] %v7528_v23 }
 0x28c   : > { %1659 = vrot.lane.b32.xlu0 %v1614_v37, %s6137_s4  ;;  %1499 = vrot.lane.b32.xlu1 %v1454_v30, %s6138_s5  ;;  %v10205_v37 = vld [vmem:[#allocation23_spill] sm:$0xff] }
 0x28d   : > { %v1133_v32 = vmul.f32 %v10205_v37, %v7544_v16 }
 0x28e   : > { %v7536_v49 = vpop.permute.xlu0 %1643  ;;  %v7538_v54 = vpop.permute.xlu1 %1483 }
 0x28f   : > { %10199 = vst [vmem:[#allocation59_spill] sm:$0xff] %v7536_v49  ;;  %10200 = vst [vmem:[#allocation46_spill] sm:$0xff] %v7538_v54 }
 0x290   : > { %1979 = vrot.lane.b32.xlu0 %v1934_v36, %s6139_s6  ;;  %1819 = vrot.lane.b32.xlu1 %v1774_v42, %s6140_s7  ;;  %v10208_v36 = vld [vmem:[#allocation58_spill] sm:$0xff]  ;;  %v10209_v42 = vld [vmem:[#allocation45_spill] sm:$0xff] }
 0x291   : > { %v1613_v0 = vmul.f32 %v10208_v36, %v7544_v16  ;;  %v1453_v62 = vmul.f32 %v10209_v42, %v7544_v16 }
 0x292   : > { %v7548_v25 = vpop.permute.xlu0 %1963  ;;  %v7550_v59 = vpop.permute.xlu1 %1803 }
 0x293   : > { %10202 = vst [vmem:[#allocation67_spill] sm:$0xff] %v7548_v25  ;;  %10203 = vst [vmem:[#allocation86_spill] sm:$0xff] %v7550_v59 }
 0x294   : > { %1337 = vrot.lane.b32.xlu1 %v1293_v31, %s6135_s30  ;;  %1177 = vrot.lane.b32.xlu0 %v1133_v32, %s6136_s3  ;;  %v1933_v31 = vmul.f32 %v7200_v7, %v7544_v16  ;;  %v10212_v32 = vld [vmem:[#allocation64_spill] sm:$0xff] }
 0x295   : > { %v1773_v47 = vmul.f32 %v10212_v32, %v7544_v16 }
 0x296   : > { %v7558_v3 = vpop.permute.xlu1 %2123  ;;  %v7560_v30 = vpop.permute.xlu0 %1161 }
 0x297   : > { %10206 = vst [vmem:[#allocation32_spill] sm:$0xff] %v7558_v3  ;;  %10207 = vst [vmem:[#allocation23_spill] sm:$0xff] %v7560_v30 }
 0x298   : > { %1657 = vrot.lane.b32.xlu1 %v1613_v0, %s6137_s4  ;;  %1497 = vrot.lane.b32.xlu0 %v1453_v62, %s6138_s5  ;;  %v10215_v62 = vld [vmem:[#allocation33_spill] sm:$0xff] }
 0x299   : > { %v1296_v42 = vmul.f32 %v7576_v60, %v10215_v62 }
 0x29a   : > { %v7568_v46 = vpop.permute.xlu1 %1321  ;;  %v7570_v37 = vpop.permute.xlu0 %1481 }
 0x29b   : > { %10210 = vst [vmem:[#allocation58_spill] sm:$0xff] %v7568_v46  ;;  %10211 = vst [vmem:[#allocation45_spill] sm:$0xff] %v7570_v37  ;;  %v10270_v37 = vld [vmem:[#allocation54_spill] sm:$0xff]  ;;  %v6143_v46 = vmov 81  }
 0x29c   : > { %1977 = vrot.lane.b32.xlu1 %v1933_v31, %s6139_s6  ;;  %1817 = vrot.lane.b32.xlu0 %v1773_v47, %s6140_s7  ;;  %v10219_v31 = vld [vmem:[#allocation61_spill] sm:$0xff] }
 0x29d   : > { %v1616_v47 = vmul.f32 %v7576_v60, %v10219_v31 }
 0x29e   : > { %v7580_v36 = vpop.permute.xlu1 %1641  ;;  %v7582_v0 = vpop.permute.xlu0 %1801 }
 0x29f   : > { %10213 = vst [vmem:[#allocation64_spill] sm:$0xff] %v7580_v36  ;;  %10214 = vst [vmem:[#allocation87_spill] sm:$0xff] %v7582_v0  ;;  %v10265_v36 = vld [vmem:[#allocation39_spill] sm:$0xff] }
 0x2a0   : > { %1343 = vrot.lane.b32.xlu0 %v1296_v42, %s6135_s30  ;;  %1183 = vrot.lane.b32.xlu1 %v1136_v57, %s6136_s3  ;;  %v1936_v57 = vmul.f32 %v7576_v60, %v7192_v14  ;;  %v10223_v42 = vld [vmem:[#allocation68_spill] sm:$0xff] }
 0x2a1   : > { %v1776_v21 = vmul.f32 %v7576_v60, %v10223_v42 }
 0x2a2   : > { %v7590_v7 = vpop.permute.xlu1 %1961  ;;  %v7592_v32 = vpop.permute.xlu0 %2121 }
 0x2a3   : > { %10217 = vst [vmem:[#allocation33_spill] sm:$0xff] %v7590_v7  ;;  %10218 = vst [vmem:[#allocation26_spill] sm:$0xff] %v7592_v32  ;;  %v10254_v7 = vld [vmem:[#allocation49_spill] sm:$0xff] }
 0x2a4   : > { %1663 = vrot.lane.b32.xlu0 %v1616_v47, %s6137_s4  ;;  %1503 = vrot.lane.b32.xlu1 %v1456_v29, %s6138_s5  ;;  %v10226_v29 = vld [vmem:[#allocation35_spill] sm:$0xff] }
 0x2a5   : > { %v1295_v47 = vmul.f32 %v10226_v29, %v7608_v48 }
 0x2a6   : > { %v7600_v62 = vpop.permute.xlu0 %1327  ;;  %v7602_v2 = vpop.permute.xlu1 %1167 }
 0x2a7   : > { %10221 = vst [vmem:[#allocation61_spill] sm:$0xff] %v7600_v62  ;;  %10222 = vst [vmem:[#allocation48_spill] sm:$0xff] %v7602_v2 }
 0x2a8   : > { %1983 = vrot.lane.b32.xlu0 %v1936_v57, %s6139_s6  ;;  %1823 = vrot.lane.b32.xlu1 %v1776_v21, %s6140_s7  ;;  %v10230_v21 = vld [vmem:[#allocation60_spill] sm:$0xff] }
 0x2a9   : > { %v1615_v57 = vmul.f32 %v10230_v21, %v7608_v48 }
 0x2aa   : > { %v7612_v11 = vpop.permute.xlu0 %1647  ;;  %v7614_v31 = vpop.permute.xlu1 %1487 }
 0x2ab   : > { %10224 = vst [vmem:[#allocation68_spill] sm:$0xff] %v7612_v11  ;;  %10225 = vst [vmem:[#allocation88_spill] sm:$0xff] %v7614_v31 }
 0x2ac   : > { %1341 = vrot.lane.b32.xlu1 %v1295_v47, %s6135_s30  ;;  %1181 = vrot.lane.b32.xlu0 %v1135_v61, %s6136_s3  ;;  %v1935_v61 = vmul.f32 %v7211_v28, %v7608_v48  ;;  %v10234_v47 = vld [vmem:[#allocation66_spill] sm:$0xff]  ;;  %s6174_s30 = smov 73  }
 0x2ad   : > { %v1775_v32 = vmul.f32 %v10234_v47, %v7608_v48 }
 0x2ae   : > { %v7622_v14 = vpop.permute.xlu0 %1967  ;;  %v7624_v42 = vpop.permute.xlu1 %1807 }
 0x2af   : > { %10228 = vst [vmem:[#allocation35_spill] sm:$0xff] %v7622_v14  ;;  %10229 = vst [vmem:[#allocation25_spill] sm:$0xff] %v7624_v42 }
 0x2b0   : > { %1661 = vrot.lane.b32.xlu1 %v1615_v57, %s6137_s4  ;;  %1501 = vrot.lane.b32.xlu0 %v1455_v1, %s6138_s5  ;;  %v2094_v1 = vmul.f32 %v7512_v10, %v7358_v20  ;;  %v2093_v57 = vmul.f32 %v7356_v56, %v7544_v16  ;;  %s6148_s5 = smov 118  }
 0x2b2   : > { %v7632_v29 = vpop.permute.xlu1 %2127  ;;  %v7634_v17 = vpop.permute.xlu0 %1165 }
 0x2b3   : > { %10232 = vst [vmem:[#allocation60_spill] sm:$0xff] %v7632_v29  ;;  %10233 = vst [vmem:[#allocation50_spill] sm:$0xff] %v7634_v17 }
 0x2b4   : > { %1981 = vrot.lane.b32.xlu1 %v1935_v61, %s6139_s6  ;;  %1821 = vrot.lane.b32.xlu0 %v1775_v32, %s6140_s7  ;;  %v2096_v32 = vmul.f32 %v7576_v60, %v7371_v52  ;;  %v2095_v61 = vmul.f32 %v7369_v45, %v7608_v48  ;;  %v10245_v52 = vld [vmem:[#allocation28_spill] sm:$0xff]  ;;  %s6150_s6 = smov 117   ;;  %s6152_s7 = smov 116  }
 0x2b6   : > { %v7642_v21 = vpop.permute.xlu1 %1325  ;;  %v7644_v35 = vpop.permute.xlu0 %1485 }
 0x2b7   : > { %10235 = vst [vmem:[#allocation66_spill] sm:$0xff] %v7642_v21  ;;  %10236 = vst [vmem:[#allocation89_spill] sm:$0xff] %v7644_v35 }
 0x2b8   : > { %2139 = vrot.lane.b32.xlu1 %v2094_v1, %s6141_s8  ;;  %2137 = vrot.lane.b32.xlu0 %v2093_v57, %s6141_s8  ;;  %v10241_v1 = vld [vmem:[#allocation36_spill] sm:$0xff]  ;;  %v10242_v57 = vld [vmem:[#allocation41_spill] sm:$0xff] }
 0x2ba   : > { %v7652_v28 = vpop.permute.xlu1 %1645  ;;  %v7654_v47 = vpop.permute.xlu0 %1805 }
 0x2bb   : > { %10237 = vst [vmem:[#allocation90_spill] sm:$0xff] %v7652_v28  ;;  %10238 = vst [vmem:[#allocation91_spill] sm:$0xff] %v7654_v47 }
 0x2bc   : > { %2143 = vrot.lane.b32.xlu1 %v2096_v32, %s6141_s8  ;;  %2141 = vrot.lane.b32.xlu0 %v2095_v61, %s6141_s8  ;;  %v10249_v61 = vld [vmem:[#allocation31_spill] sm:$0xff]  ;;  %s6154_s8 = smov 115  }
 0x2be   : > { %v7662_v20 = vpop.permute.xlu1 %1965  ;;  %v7664_v56 = vpop.permute.xlu0 %2125 }
 0x2bf   : > { %10239 = vst [vmem:[#allocation92_spill] sm:$0xff] %v7662_v20  ;;  %10240 = vst [vmem:[#allocation93_spill] sm:$0xff] %v7664_v56 }
 0x2c0   : > { %2182 = vperm.xlu1 %5859, %v10241_v1   ;;  %2178 = vperm.xlu0 %5858, %v10242_v57   ;;  %v10253_v57 = vld [vmem:[#allocation34_spill] sm:$0xff] }
 0x2c2   : > { %v7668_v12 = vpop.permute.xlu0 %1331  ;;  %v7670_v26 = vpop.permute.xlu1 %1171 }
 0x2c3   : > { %10243 = vst [vmem:[#allocation36_spill] sm:$0xff] %v7668_v12  ;;  %10244 = vst [vmem:[#allocation41_spill] sm:$0xff] %v7670_v26 }
 0x2c4   : > { %2186 = vperm.xlu1 %5859, %v10245_v52   ;;  %2190 = vperm.xlu0 %5858, %v10246_v53  }
 0x2c6   : > { %v7674_v45 = vpop.permute.xlu0 %1651  ;;  %v7676_v32 = vpop.permute.xlu1 %1491 }
 0x2c7   : > { %10247 = vst [vmem:[#allocation28_spill] sm:$0xff] %v7674_v45  ;;  %10248 = vst [vmem:[#allocation44_spill] sm:$0xff] %v7676_v32 }
 0x2c8   : > { %2194 = vperm.xlu1 %5859, %v10249_v61   ;;  %2198 = vperm.xlu0 %5858, %v10250_v9  }
 0x2ca   : > { %v7680_v22 = vpop.permute.xlu0 %1971  ;;  %v7682_v1 = vpop.permute.xlu1 %1811 }
 0x2cb   : > { %10251 = vst [vmem:[#allocation31_spill] sm:$0xff] %v7680_v22  ;;  %10252 = vst [vmem:[#allocation47_spill] sm:$0xff] %v7682_v1 }
 0x2cc   : > { %2202 = vperm.xlu1 %5859, %v10253_v57   ;;  %2206 = vperm.xlu0 %5858, %v10254_v7  }
 0x2ce   : > { %v7686_v19 = vpop.permute.xlu1 %2131  ;;  %v7688_v52 = vpop.permute.xlu0 %1169 }
 0x2cf   : > { %10255 = vst [vmem:[#allocation34_spill] sm:$0xff] %v7686_v19  ;;  %10256 = vst [vmem:[#allocation49_spill] sm:$0xff] %v7688_v52 }
 0x2d0   : > { %2210 = vperm.xlu1 %5859, %v10257_v41   ;;  %2214 = vperm.xlu0 %5858, %v10258_v33  }
 0x2d2   : > { %v7692_v0 = vpop.permute.xlu1 %1329  ;;  %v7694_v61 = vpop.permute.xlu0 %1489 }
 0x2d3   : > { %10259 = vst [vmem:[#allocation37_spill] sm:$0xff] %v7692_v0  ;;  %10260 = vst [vmem:[#allocation51_spill] sm:$0xff] %v7694_v61 }
 0x2d4   : > { %2218 = vperm.xlu1 %5859, %v10261_v8   ;;  %2222 = vperm.xlu0 %5858, %v10262_v40  }
 0x2d6   : > { %v7698_v55 = vpop.permute.xlu1 %1649  ;;  %v7700_v57 = vpop.permute.xlu0 %1809 }
 0x2d7   : > { %10263 = vst [vmem:[#allocation38_spill] sm:$0xff] %v7698_v55  ;;  %10264 = vst [vmem:[#allocation52_spill] sm:$0xff] %v7700_v57 }
 0x2d8   : > { %2226 = vperm.xlu1 %5859, %v10265_v36   ;;  %2230 = vperm.xlu0 %5858, %v10266_v38  }
 0x2da   : > { %v7704_v4 = vpop.permute.xlu1 %1969  ;;  %v7706_v41 = vpop.permute.xlu0 %2129 }
 0x2db   : > { %10267 = vst [vmem:[#allocation39_spill] sm:$0xff] %v7704_v4  ;;  %10268 = vst [vmem:[#allocation53_spill] sm:$0xff] %v7706_v41 }
 0x2dc   : > { %2234 = vperm.xlu1 %5859, %v10269_v50   ;;  %2238 = vperm.xlu0 %5858, %v10270_v37  }
 0x2de   : > { %v7710_v18 = vpop.permute.xlu0 %1335  ;;  %v7712_v8 = vpop.permute.xlu1 %1175 }
 0x2df   : > { %10271 = vst [vmem:[#allocation40_spill] sm:$0xff] %v7710_v18  ;;  %10272 = vst [vmem:[#allocation54_spill] sm:$0xff] %v7712_v8 }
 0x2e0   : > { %5860 = vset.pattern.permute.xlu1 %v6143_v46  ;;  %5861 = vset.pattern.permute.xlu0 %v6143_v46 }
 0x2e2   : > { %v7714_v30 = vpop.permute.xlu0 %1655  ;;  %v7716_v36 = vpop.permute.xlu1 %1495 }
 0x2e3   : > { %10273 = vst [vmem:[#allocation94_spill] sm:$0xff] %v7714_v30  ;;  %10274 = vst [vmem:[#allocation95_spill] sm:$0xff] %v7716_v36 }
 0x2e6   : > { %v7718_v3 = vpop.permute.xlu0 %1975  ;;  %v7720_v25 = vpop.permute.xlu1 %1815 }
 0x2e7   : > { %10275 = vst [vmem:[#allocation96_spill] sm:$0xff] %v7718_v3  ;;  %10276 = vst [vmem:[#allocation97_spill] sm:$0xff] %v7720_v25 }
 0x2ea   : > { %v7722_v59 = vpop.permute.xlu1 %2135  ;;  %v7724_v50 = vpop.permute.xlu0 %1173 }
 0x2eb   : > { %10277 = vst [vmem:[#allocation98_spill] sm:$0xff] %v7722_v59  ;;  %10278 = vst [vmem:[#allocation99_spill] sm:$0xff] %v7724_v50 }
 0x2ee   : > { %v7726_v56 = vpop.permute.xlu1 %1333  ;;  %v7728_v49 = vpop.permute.xlu0 %1493 }
 0x2ef   : > { %10279 = vst [vmem:[#allocation100_spill] sm:$0xff] %v7726_v56  ;;  %10280 = vst [vmem:[#allocation101_spill] sm:$0xff] %v7728_v49 }
 0x2f2   : > { %v7730_v20 = vpop.permute.xlu1 %1653  ;;  %v7732_v54 = vpop.permute.xlu0 %1813 }
 0x2f3   : > { %10281 = vst [vmem:[#allocation102_spill] sm:$0xff] %v7730_v20  ;;  %10282 = vst [vmem:[#allocation103_spill] sm:$0xff] %v7732_v54 }
 0x2f6   : > { %v7734_v46 = vpop.permute.xlu1 %1973  ;;  %v7736_v47 = vpop.permute.xlu0 %2133 }
 0x2f7   : > { %10283 = vst [vmem:[#allocation104_spill] sm:$0xff] %v7734_v46  ;;  %10284 = vst [vmem:[#allocation105_spill] sm:$0xff] %v7736_v47 }
 0x2fa   : > { %v7738_v13 = vpop.permute.xlu0 %1339  ;;  %v7740_v29 = vpop.permute.xlu1 %1179 }
 0x2fb   : > { %10285 = vst [vmem:[#allocation106_spill] sm:$0xff] %v7738_v13  ;;  %10286 = vst [vmem:[#allocation107_spill] sm:$0xff] %v7740_v29 }
 0x2fe   : > { %v7742_v28 = vpop.permute.xlu0 %1659  ;;  %v7744_v23 = vpop.permute.xlu1 %1499 }
 0x2ff   : > { %10287 = vst [vmem:[#allocation108_spill] sm:$0xff] %v7742_v28  ;;  %10288 = vst [vmem:[#allocation109_spill] sm:$0xff] %v7744_v23 }
 0x302   : > { %v7746_v14 = vpop.permute.xlu0 %1979  ;;  %v7748_v35 = vpop.permute.xlu1 %1819 }
 0x303   : > { %10289 = vst [vmem:[#allocation110_spill] sm:$0xff] %v7746_v14  ;;  %10290 = vst [vmem:[#allocation111_spill] sm:$0xff] %v7748_v35 }
 0x306   : > { %v7750_v42 = vpop.permute.xlu1 %1337  ;;  %v7752_v21 = vpop.permute.xlu0 %1177 }
 0x307   : > { %10291 = vst [vmem:[#allocation112_spill] sm:$0xff] %v7750_v42  ;;  %10292 = vst [vmem:[#allocation113_spill] sm:$0xff] %v7752_v21 }
 0x30a   : > { %v7754_v17 = vpop.permute.xlu1 %1657  ;;  %v7756_v41 = vpop.permute.xlu0 %1497 }
 0x30b   : > { %10293 = vst [vmem:[#allocation114_spill] sm:$0xff] %v7754_v17  ;;  %10294 = vst [vmem:[#allocation115_spill] sm:$0xff] %v7756_v41 }
 0x30e   : > { %v7758_v11 = vpop.permute.xlu1 %1977  ;;  %v7760_v4 = vpop.permute.xlu0 %1817 }
 0x30f   : > { %10295 = vst [vmem:[#allocation116_spill] sm:$0xff] %v7758_v11  ;;  %10296 = vst [vmem:[#allocation117_spill] sm:$0xff] %v7760_v4 }
 0x312   : > { %v7762_v31 = vpop.permute.xlu0 %1343  ;;  %v7764_v57 = vpop.permute.xlu1 %1183 }
 0x313   : > { %10297 = vst [vmem:[#allocation118_spill] sm:$0xff] %v7762_v31  ;;  %10298 = vst [vmem:[#allocation119_spill] sm:$0xff] %v7764_v57 }
 0x316   : > { %v7766_v62 = vpop.permute.xlu0 %1663  ;;  %v7768_v55 = vpop.permute.xlu1 %1503 }
 0x317   : > { %10299 = vst [vmem:[#allocation120_spill] sm:$0xff] %v7766_v62  ;;  %10300 = vst [vmem:[#allocation121_spill] sm:$0xff] %v7768_v55 }
 0x31a   : > { %v7770_v19 = vpop.permute.xlu0 %1983  ;;  %v7772_v2 = vpop.permute.xlu1 %1823 }
 0x31b   : > { %10301 = vst [vmem:[#allocation122_spill] sm:$0xff] %v7770_v19  ;;  %10302 = vst [vmem:[#allocation123_spill] sm:$0xff] %v7772_v2 }
 0x31e   : > { %v7774_v61 = vpop.permute.xlu1 %1341  ;;  %v7776_v22 = vpop.permute.xlu0 %1181 }
 0x31f   : > { %10303 = vst [vmem:[#allocation124_spill] sm:$0xff] %v7774_v61  ;;  %10304 = vst [vmem:[#allocation125_spill] sm:$0xff] %v7776_v22 }
 0x322   : > { %v7778_v0 = vpop.permute.xlu1 %1661  ;;  %v7780_v1 = vpop.permute.xlu0 %1501 }
 0x323   : > { %10305 = vst [vmem:[#allocation126_spill] sm:$0xff] %v7778_v0  ;;  %10306 = vst [vmem:[#allocation127_spill] sm:$0xff] %v7780_v1 }
 0x326   : > { %v7782_v52 = vpop.permute.xlu1 %1981  ;;  %v7784_v47 = vpop.permute.xlu0 %1821 }
 0x327   : > { %10307 = vst [vmem:[#allocation128_spill] sm:$0xff] %v7782_v52  ;;  %10308 = vst [vmem:[#allocation129_spill] sm:$0xff] %v7784_v47 }
 0x32a   : > { %v7786_v45 = vpop.permute.xlu1 %2139  ;;  %v7788_v46 = vpop.permute.xlu0 %2137 }
 0x32b   : > { %10309 = vst [vmem:[#allocation130_spill] sm:$0xff] %v7786_v45  ;;  %10310 = vst [vmem:[#allocation131_spill] sm:$0xff] %v7788_v46 }
 0x32e   : > { %v7790_v32 = vpop.permute.xlu1 %2143  ;;  %v7792_v54 = vpop.permute.xlu0 %2141 }
 0x32f   : > { %10311 = vst [vmem:[#allocation132_spill] sm:$0xff] %v7790_v32  ;;  %10312 = vst [vmem:[#allocation133_spill] sm:$0xff] %v7792_v54 }
 0x33b   : > { %v2183_v12 = vpop.permute.xlu1 %2182  ;;  %v2179_v59 = vpop.permute.xlu0 %2178 }
 0x33c   : > { %v2242_v20 = vmul.f32 %v7175_v39, %v2183_v12  ;;  %v2241_v26 = vmul.f32 %v2179_v59, %v7196_v43 }
 0x33e   : > { %2275 = vrot.lane.b32.xlu0 %v2242_v20, %s6144_s14  ;;  %2273 = vrot.lane.b32.xlu1 %v2241_v26, %s6144_s14 }
 0x33f   : > { %v2187_v3 = vpop.permute.xlu1 %2186  ;;  %v2191_v49 = vpop.permute.xlu0 %2190 }
 0x340   : > { %v2243_v25 = vmul.f32 %v2187_v3, %v7243_v5  ;;  %v2244_v56 = vmul.f32 %v7223_v58, %v2191_v49 }
 0x342   : > { %2277 = vrot.lane.b32.xlu1 %v2243_v25, %s6144_s14  ;;  %2279 = vrot.lane.b32.xlu0 %v2244_v56, %s6144_s14 }
 0x343   : > { %v2195_v46 = vpop.permute.xlu1 %2194  ;;  %v2199_v30 = vpop.permute.xlu0 %2198 }
 0x344   : > { %v2245_v12 = vmul.f32 %v2195_v46, %v7287_v63  ;;  %v2246_v59 = vmul.f32 %v7267_v44, %v2199_v30 }
 0x346   : > { %2281 = vrot.lane.b32.xlu1 %v2245_v12, %s6144_s14  ;;  %2283 = vrot.lane.b32.xlu0 %v2246_v59, %s6144_s14 }
 0x347   : > { %v2203_v26 = vpop.permute.xlu1 %2202  ;;  %v2207_v20 = vpop.permute.xlu0 %2206 }
 0x348   : > { %v2247_v3 = vmul.f32 %v2203_v26, %v7331_v15  ;;  %v2248_v49 = vmul.f32 %v7311_v34, %v2207_v20 }
 0x34a   : > { %2285 = vrot.lane.b32.xlu1 %v2247_v3, %s6144_s14  ;;  %2287 = vrot.lane.b32.xlu0 %v2248_v49, %s6144_s14 }
 0x34b   : > { %v2211_v25 = vpop.permute.xlu1 %2210  ;;  %v2215_v56 = vpop.permute.xlu0 %2214 }
 0x34c   : > { %v2249_v46 = vmul.f32 %v2211_v25, %v7397_v51  ;;  %v2250_v30 = vmul.f32 %v7365_v27, %v2215_v56 }
 0x34e   : > { %2289 = vrot.lane.b32.xlu1 %v2249_v46, %s6144_s14  ;;  %2291 = vrot.lane.b32.xlu0 %v2250_v30, %s6144_s14 }
 0x34f   : > { %v2219_v12 = vpop.permute.xlu1 %2218  ;;  %v2223_v59 = vpop.permute.xlu0 %2222 }
 0x350   : > { %v2251_v26 = vmul.f32 %v2219_v12, %v7470_v6  ;;  %v2252_v20 = vmul.f32 %v7438_v24, %v2223_v59 }
 0x352   : > { %2293 = vrot.lane.b32.xlu1 %v2251_v26, %s6144_s14  ;;  %2295 = vrot.lane.b32.xlu0 %v2252_v20, %s6144_s14  ;;  %v7829_v26 = vld [vmem:[%s10039_s1 + $0x38] sm:$0xff] }
 0x353   : > { %v2227_v3 = vpop.permute.xlu1 %2226  ;;  %v2231_v49 = vpop.permute.xlu0 %2230  ;;  %v7835_v20 = vld [vmem:[%s10039_s1 + $0x78] sm:$0xff] }
 0x354   : > { %v2253_v25 = vmul.f32 %v2227_v3, %v7544_v16  ;;  %v2254_v56 = vmul.f32 %v7512_v10, %v2231_v49  ;;  %v7841_v3 = vld [vmem:[%s10039_s1 + $0xb8] sm:$0xff] }
 0x355   : > { %v7847_v49 = vld [vmem:[%s10039_s1 + $0x138] sm:$0xff] }
 0x356   : > { %2297 = vrot.lane.b32.xlu1 %v2253_v25, %s6144_s14  ;;  %2299 = vrot.lane.b32.xlu0 %v2254_v56, %s6144_s14  ;;  %v7854_v25 = vld [vmem:[%s10039_s1 + $0x1b8] sm:$0xff] }
 0x357   : > { %v2235_v46 = vpop.permute.xlu1 %2234  ;;  %v2239_v30 = vpop.permute.xlu0 %2238  ;;  %v7861_v56 = vld [vmem:[%s10039_s1 + $0x238] sm:$0xff] }
 0x358   : > { %v2255_v12 = vmul.f32 %v2235_v46, %v7608_v48  ;;  %v2256_v59 = vmul.f32 %v7576_v60, %v2239_v30  ;;  %v6145_v46 = vmov 82  }
 0x35a   : > { %2301 = vrot.lane.b32.xlu1 %v2255_v12, %s6144_s14  ;;  %2303 = vrot.lane.b32.xlu0 %v2256_v59, %s6144_s14  ;;  %s6146_s14 = smov 119  }
 0x35e   : > { %2338 = vperm.xlu1 %5860, %v7829_v26   ;;  %2342 = vperm.xlu0 %5861, %v7835_v20  }
 0x362   : > { %2346 = vperm.xlu1 %5860, %v7841_v3   ;;  %2354 = vperm.xlu0 %5861, %v7847_v49  }
 0x366   : > { %2350 = vperm.xlu1 %5860, %v10246_v53   ;;  %2362 = vperm.xlu0 %5861, %v7854_v25   ;;  %v7868_v53 = vld [vmem:[%s10039_s1 + $0x2b8] sm:$0xff] }
 0x36a   : > { %2358 = vperm.xlu1 %5860, %v10250_v9   ;;  %2370 = vperm.xlu0 %5861, %v7861_v56   ;;  %v7875_v9 = vld [vmem:[%s10039_s1 + $0x338] sm:$0xff] }
 0x36e   : > { %2366 = vperm.xlu1 %5860, %v10254_v7   ;;  %2378 = vperm.xlu0 %5861, %v7868_v53   ;;  %v7882_v7 = vld [vmem:[%s10039_s1 + $0x3b8] sm:$0xff] }
 0x372   : > { %2374 = vperm.xlu1 %5860, %v10258_v33   ;;  %2386 = vperm.xlu0 %5861, %v7875_v9  }
 0x376   : > { %2382 = vperm.xlu1 %5860, %v10262_v40   ;;  %2394 = vperm.xlu0 %5861, %v7882_v7  }
 0x37a   : > { %2390 = vperm.xlu1 %5860, %v10266_v38   ;;  %5862 = vset.pattern.permute.xlu0 %v6145_v46 }
 0x37e   : > { %2398 = vperm.xlu1 %5860, %v10270_v37  }
 0x382   : > { %5863 = vset.pattern.permute.xlu1 %v6145_v46 }
 0x3b0   : > { %v7887_v33 = vpop.permute.xlu1 %2273  ;;  %v7889_v30 = vpop.permute.xlu0 %2275 }
 0x3b1   : > { %10313 = vst [vmem:[#allocation134_spill] sm:$0xff] %v7887_v33  ;;  %10314 = vst [vmem:[#allocation135_spill] sm:$0xff] %v7889_v30 }
 0x3b4   : > { %v7891_v12 = vpop.permute.xlu1 %2277  ;;  %v7893_v40 = vpop.permute.xlu0 %2279 }
 0x3b5   : > { %10315 = vst [vmem:[#allocation136_spill] sm:$0xff] %v7891_v12  ;;  %10316 = vst [vmem:[#allocation137_spill] sm:$0xff] %v7893_v40 }
 0x3b8   : > { %v7895_v59 = vpop.permute.xlu1 %2281  ;;  %v7897_v50 = vpop.permute.xlu0 %2283 }
 0x3b9   : > { %10317 = vst [vmem:[#allocation138_spill] sm:$0xff] %v7895_v59  ;;  %10318 = vst [vmem:[#allocation139_spill] sm:$0xff] %v7897_v50 }
 0x3bc   : > { %v7899_v11 = vpop.permute.xlu1 %2285  ;;  %v7901_v38 = vpop.permute.xlu0 %2287 }
 0x3bd   : > { %10319 = vst [vmem:[#allocation140_spill] sm:$0xff] %v7899_v11  ;;  %10320 = vst [vmem:[#allocation141_spill] sm:$0xff] %v7901_v38 }
 0x3c0   : > { %v7903_v36 = vpop.permute.xlu1 %2289  ;;  %v7905_v37 = vpop.permute.xlu0 %2291 }
 0x3c1   : > { %10321 = vst [vmem:[#allocation142_spill] sm:$0xff] %v7903_v36  ;;  %10322 = vst [vmem:[#allocation143_spill] sm:$0xff] %v7905_v37 }
 0x3c4   : > { %v7907_v46 = vpop.permute.xlu1 %2293  ;;  %v7909_v33 = vpop.permute.xlu0 %2295 }
 0x3c5   : > { %10323 = vst [vmem:[#allocation144_spill] sm:$0xff] %v7907_v46  ;;  %10324 = vst [vmem:[#allocation145_spill] sm:$0xff] %v7909_v33 }
 0x3c8   : > { %v7911_v30 = vpop.permute.xlu1 %2297  ;;  %v7913_v12 = vpop.permute.xlu0 %2299 }
 0x3c9   : > { %10325 = vst [vmem:[#allocation146_spill] sm:$0xff] %v7911_v30  ;;  %10326 = vst [vmem:[#allocation147_spill] sm:$0xff] %v7913_v12 }
 0x3cc   : > { %v7915_v40 = vpop.permute.xlu1 %2301  ;;  %v7917_v59 = vpop.permute.xlu0 %2303 }
 0x3cd   : > { %10327 = vst [vmem:[#allocation148_spill] sm:$0xff] %v7915_v40  ;;  %10328 = vst [vmem:[#allocation149_spill] sm:$0xff] %v7917_v59 }
 0x3d9   : > { %v2339_v50 = vpop.permute.xlu1 %2338  ;;  %v2343_v11 = vpop.permute.xlu0 %2342 }
 0x3da   : > { %v2401_v38 = vmul.f32 %v2339_v50, %v7196_v43  ;;  %v2402_v36 = vmul.f32 %v7175_v39, %v2343_v11 }
 0x3dc   : > { %2433 = vrot.lane.b32.xlu0 %v2401_v38, %s6146_s14  ;;  %2435 = vrot.lane.b32.xlu1 %v2402_v36, %s6146_s14 }
 0x3dd   : > { %v2347_v37 = vpop.permute.xlu1 %2346  ;;  %v2355_v46 = vpop.permute.xlu0 %2354 }
 0x3de   : > { %v2403_v33 = vmul.f32 %v2347_v37, %v7243_v5  ;;  %v2405_v18 = vmul.f32 %v2355_v46, %v7287_v63 }
 0x3e0   : > { %2437 = vrot.lane.b32.xlu0 %v2403_v33, %s6146_s14 }
 0x3e1   : > { %v2351_v30 = vpop.permute.xlu1 %2350  ;;  %v2363_v4 = vpop.permute.xlu0 %2362 }
 0x3e2   : > { %v2404_v17 = vmul.f32 %v7223_v58, %v2351_v30  ;;  %v2407_v36 = vmul.f32 %v2363_v4, %v7331_v15 }
 0x3e4   : > { %2439 = vrot.lane.b32.xlu1 %v2404_v17, %s6146_s14  ;;  %2441 = vrot.lane.b32.xlu0 %v2405_v18, %s6146_s14 }
 0x3e5   : > { %v2359_v11 = vpop.permute.xlu1 %2358  ;;  %v2371_v50 = vpop.permute.xlu0 %2370 }
 0x3e6   : > { %v2406_v38 = vmul.f32 %v7267_v44, %v2359_v11  ;;  %v2409_v46 = vmul.f32 %v2371_v50, %v7397_v51 }
 0x3e8   : > { %2443 = vrot.lane.b32.xlu1 %v2406_v38, %s6146_s14  ;;  %2445 = vrot.lane.b32.xlu0 %v2407_v36, %s6146_s14 }
 0x3e9   : > { %v2367_v33 = vpop.permute.xlu1 %2366  ;;  %v2379_v37 = vpop.permute.xlu0 %2378 }
 0x3ea   : > { %v2408_v30 = vmul.f32 %v7311_v34, %v2367_v33  ;;  %v2411_v4 = vmul.f32 %v2379_v37, %v7470_v6 }
 0x3ec   : > { %2447 = vrot.lane.b32.xlu1 %v2408_v30, %s6146_s14  ;;  %2449 = vrot.lane.b32.xlu0 %v2409_v46, %s6146_s14 }
 0x3ed   : > { %v2375_v18 = vpop.permute.xlu1 %2374  ;;  %v2387_v17 = vpop.permute.xlu0 %2386 }
 0x3ee   : > { %v2410_v11 = vmul.f32 %v7365_v27, %v2375_v18  ;;  %v2413_v38 = vmul.f32 %v2387_v17, %v7544_v16  ;;  %v7956_v17 = vld [vmem:[%s10039_s1 + $0xf8] sm:$0xff] }
 0x3f0   : > { %2451 = vrot.lane.b32.xlu1 %v2410_v11, %s6146_s14  ;;  %2453 = vrot.lane.b32.xlu0 %v2411_v4, %s6146_s14  ;;  %v7963_v11 = vld [vmem:[%s10039_s1 + $0x178] sm:$0xff] }
 0x3f1   : > { %v2383_v36 = vpop.permute.xlu1 %2382  ;;  %v2395_v33 = vpop.permute.xlu0 %2394 }
 0x3f2   : > { %v2412_v50 = vmul.f32 %v7438_v24, %v2383_v36  ;;  %v2415_v30 = vmul.f32 %v2395_v33, %v7608_v48  ;;  %v7970_v36 = vld [vmem:[%s10039_s1 + $0x1f8] sm:$0xff] }
 0x3f3   : > { %v7991_v33 = vld [vmem:[%s10039_s1 + $0x378] sm:$0xff] }
 0x3f4   : > { %2455 = vrot.lane.b32.xlu1 %v2412_v50, %s6146_s14  ;;  %2457 = vrot.lane.b32.xlu0 %v2413_v38, %s6146_s14  ;;  %v7977_v38 = vld [vmem:[%s10039_s1 + $0x278] sm:$0xff] }
 0x3f5   : > { %v2391_v46 = vpop.permute.xlu1 %2390  ;;  %v7984_v50 = vld [vmem:[%s10039_s1 + $0x2f8] sm:$0xff] }
 0x3f6   : > { %v2414_v37 = vmul.f32 %v7512_v10, %v2391_v46  ;;  %v7998_v46 = vld [vmem:[%s10039_s1 + $0x3f8] sm:$0xff] }
 0x3f8   : > { %2459 = vrot.lane.b32.xlu1 %v2414_v37, %s6146_s14  ;;  %2461 = vrot.lane.b32.xlu0 %v2415_v30, %s6146_s14  ;;  %v6147_v30 = vmov 83  }
 0x3f9   : > { %v2399_v18 = vpop.permute.xlu1 %2398 }
 0x3fa   : > { %v2416_v4 = vmul.f32 %v7576_v60, %v2399_v18 }
 0x3fc   : > { %2463 = vrot.lane.b32.xlu1 %v2416_v4, %s6146_s14  ;;  %2498 = vperm.xlu0 %5862, %v7829_v26   ;;  %s6156_s14 = smov 114  }
 0x400   : > { %2502 = vperm.xlu1 %5863, %v7835_v20   ;;  %2510 = vperm.xlu0 %5862, %v7956_v17  }
 0x404   : > { %2506 = vperm.xlu1 %5863, %v7841_v3   ;;  %2518 = vperm.xlu0 %5862, %v7963_v11  }
 0x408   : > { %2514 = vperm.xlu1 %5863, %v7847_v49   ;;  %2526 = vperm.xlu0 %5862, %v7970_v36  }
 0x40c   : > { %2522 = vperm.xlu1 %5863, %v7854_v25   ;;  %2534 = vperm.xlu0 %5862, %v7977_v38  }
 0x410   : > { %2530 = vperm.xlu1 %5863, %v7861_v56   ;;  %2542 = vperm.xlu0 %5862, %v7984_v50  }
 0x414   : > { %2538 = vperm.xlu1 %5863, %v7868_v53   ;;  %2550 = vperm.xlu0 %5862, %v7991_v33  }
 0x418   : > { %2546 = vperm.xlu1 %5863, %v7875_v9   ;;  %2558 = vperm.xlu0 %5862, %v7998_v46  }
 0x41c   : > { %2554 = vperm.xlu1 %5863, %v7882_v7   ;;  %5865 = vset.pattern.permute.xlu0 %v6147_v30 }
 0x420   : > { %5864 = vset.pattern.permute.xlu1 %v6147_v30 }
 0x44e   : > { %v8002_v37 = vpop.permute.xlu0 %2433  ;;  %v8004_v18 = vpop.permute.xlu1 %2435 }
 0x44f   : > { %10329 = vst [vmem:[#allocation150_spill] sm:$0xff] %v8002_v37  ;;  %10330 = vst [vmem:[#allocation151_spill] sm:$0xff] %v8004_v18 }
 0x452   : > { %v8006_v4 = vpop.permute.xlu0 %2437 }
 0x453   : > { %10331 = vst [vmem:[#allocation152_spill] sm:$0xff] %v8006_v4 }
 0x456   : > { %v8008_v12 = vpop.permute.xlu1 %2439  ;;  %v8010_v8 = vpop.permute.xlu0 %2441 }
 0x457   : > { %10332 = vst [vmem:[#allocation153_spill] sm:$0xff] %v8008_v12  ;;  %10333 = vst [vmem:[#allocation154_spill] sm:$0xff] %v8010_v8 }
 0x45a   : > { %v8012_v45 = vpop.permute.xlu1 %2443  ;;  %v8014_v41 = vpop.permute.xlu0 %2445 }
 0x45b   : > { %10334 = vst [vmem:[#allocation155_spill] sm:$0xff] %v8012_v45  ;;  %10335 = vst [vmem:[#allocation156_spill] sm:$0xff] %v8014_v41 }
 0x45e   : > { %v8016_v14 = vpop.permute.xlu1 %2447  ;;  %v8018_v42 = vpop.permute.xlu0 %2449 }
 0x45f   : > { %10336 = vst [vmem:[#allocation157_spill] sm:$0xff] %v8016_v14  ;;  %10337 = vst [vmem:[#allocation158_spill] sm:$0xff] %v8018_v42 }
 0x462   : > { %v8020_v35 = vpop.permute.xlu1 %2451  ;;  %v8022_v30 = vpop.permute.xlu0 %2453 }
 0x463   : > { %10338 = vst [vmem:[#allocation159_spill] sm:$0xff] %v8020_v35  ;;  %10339 = vst [vmem:[#allocation160_spill] sm:$0xff] %v8022_v30 }
 0x466   : > { %v8024_v37 = vpop.permute.xlu1 %2455  ;;  %v8026_v18 = vpop.permute.xlu0 %2457 }
 0x467   : > { %10340 = vst [vmem:[#allocation161_spill] sm:$0xff] %v8024_v37  ;;  %10341 = vst [vmem:[#allocation162_spill] sm:$0xff] %v8026_v18 }
 0x46a   : > { %v8028_v4 = vpop.permute.xlu1 %2459  ;;  %v8030_v12 = vpop.permute.xlu0 %2461 }
 0x46b   : > { %10342 = vst [vmem:[#allocation163_spill] sm:$0xff] %v8028_v4  ;;  %10343 = vst [vmem:[#allocation164_spill] sm:$0xff] %v8030_v12 }
 0x46e   : > { %v8032_v8 = vpop.permute.xlu1 %2463 }
 0x46f   : > { %10344 = vst [vmem:[#allocation165_spill] sm:$0xff] %v8032_v8 }
 0x477   : > { %v2499_v45 = vpop.permute.xlu0 %2498 }
 0x478   : > { %v2561_v41 = vmul.f32 %v2499_v45, %v7196_v43 }
 0x47a   : > { %2593 = vrot.lane.b32.xlu1 %v2561_v41, %s6148_s5 }
 0x47b   : > { %v2503_v14 = vpop.permute.xlu1 %2502  ;;  %v2511_v42 = vpop.permute.xlu0 %2510 }
 0x47c   : > { %v2562_v35 = vmul.f32 %v7175_v39, %v2503_v14  ;;  %v2564_v18 = vmul.f32 %v7223_v58, %v2511_v42 }
 0x47e   : > { %2595 = vrot.lane.b32.xlu0 %v2562_v35, %s6148_s5 }
 0x47f   : > { %v2507_v30 = vpop.permute.xlu1 %2506  ;;  %v2519_v37 = vpop.permute.xlu0 %2518 }
 0x480   : > { %v2563_v4 = vmul.f32 %v2507_v30, %v7243_v5  ;;  %v2566_v41 = vmul.f32 %v7267_v44, %v2519_v37 }
 0x482   : > { %2597 = vrot.lane.b32.xlu1 %v2563_v4, %s6148_s5  ;;  %2599 = vrot.lane.b32.xlu0 %v2564_v18, %s6148_s5 }
 0x483   : > { %v2515_v45 = vpop.permute.xlu1 %2514  ;;  %v2527_v12 = vpop.permute.xlu0 %2526 }
 0x484   : > { %v2565_v21 = vmul.f32 %v2515_v45, %v7287_v63  ;;  %v2568_v42 = vmul.f32 %v7311_v34, %v2527_v12 }
 0x486   : > { %2601 = vrot.lane.b32.xlu1 %v2565_v21, %s6148_s5  ;;  %2603 = vrot.lane.b32.xlu0 %v2566_v41, %s6148_s5 }
 0x487   : > { %v2523_v14 = vpop.permute.xlu1 %2522  ;;  %v2535_v35 = vpop.permute.xlu0 %2534 }
 0x488   : > { %v2567_v30 = vmul.f32 %v2523_v14, %v7331_v15  ;;  %v2570_v37 = vmul.f32 %v7365_v27, %v2535_v35 }
 0x48a   : > { %2605 = vrot.lane.b32.xlu1 %v2567_v30, %s6148_s5  ;;  %2607 = vrot.lane.b32.xlu0 %v2568_v42, %s6148_s5 }
 0x48b   : > { %v2531_v18 = vpop.permute.xlu1 %2530  ;;  %v2543_v4 = vpop.permute.xlu0 %2542 }
 0x48c   : > { %v2569_v45 = vmul.f32 %v2531_v18, %v7397_v51  ;;  %v2572_v12 = vmul.f32 %v7438_v24, %v2543_v4 }
 0x48e   : > { %2609 = vrot.lane.b32.xlu1 %v2569_v45, %s6148_s5  ;;  %2611 = vrot.lane.b32.xlu0 %v2570_v37, %s6148_s5 }
 0x48f   : > { %v2539_v21 = vpop.permute.xlu1 %2538  ;;  %v2551_v41 = vpop.permute.xlu0 %2550 }
 0x490   : > { %v2571_v14 = vmul.f32 %v2539_v21, %v7470_v6  ;;  %v2574_v30 = vmul.f32 %v7512_v10, %v2551_v41  ;;  %v6149_v21 = vmov 84  }
 0x492   : > { %2613 = vrot.lane.b32.xlu1 %v2571_v14, %s6148_s5  ;;  %2615 = vrot.lane.b32.xlu0 %v2572_v12, %s6148_s5 }
 0x493   : > { %v2547_v42 = vpop.permute.xlu1 %2546  ;;  %v2559_v18 = vpop.permute.xlu0 %2558 }
 0x494   : > { %v2573_v35 = vmul.f32 %v2547_v42, %v7544_v16  ;;  %v2576_v45 = vmul.f32 %v7576_v60, %v2559_v18 }
 0x496   : > { %2617 = vrot.lane.b32.xlu1 %v2573_v35, %s6148_s5  ;;  %2619 = vrot.lane.b32.xlu0 %v2574_v30, %s6148_s5 }
 0x497   : > { %v2555_v37 = vpop.permute.xlu1 %2554 }
 0x498   : > { %v2575_v4 = vmul.f32 %v2555_v37, %v7608_v48 }
 0x49a   : > { %2621 = vrot.lane.b32.xlu1 %v2575_v4, %s6148_s5  ;;  %2623 = vrot.lane.b32.xlu0 %v2576_v45, %s6148_s5  ;;  %s6164_s5 = smov 112  }
 0x49e   : > { %2658 = vperm.xlu1 %5864, %v7829_v26   ;;  %2662 = vperm.xlu0 %5865, %v7835_v20  }
 0x4a2   : > { %2666 = vperm.xlu1 %5864, %v7841_v3   ;;  %2674 = vperm.xlu0 %5865, %v7847_v49  }
 0x4a6   : > { %2670 = vperm.xlu1 %5864, %v7956_v17   ;;  %2682 = vperm.xlu0 %5865, %v7854_v25  }
 0x4aa   : > { %2678 = vperm.xlu1 %5864, %v7963_v11   ;;  %2690 = vperm.xlu0 %5865, %v7861_v56  }
 0x4ae   : > { %2686 = vperm.xlu1 %5864, %v7970_v36   ;;  %2698 = vperm.xlu0 %5865, %v7868_v53  }
 0x4b2   : > { %2694 = vperm.xlu1 %5864, %v7977_v38   ;;  %2706 = vperm.xlu0 %5865, %v7875_v9  }
 0x4b6   : > { %2702 = vperm.xlu1 %5864, %v7984_v50   ;;  %2714 = vperm.xlu0 %5865, %v7882_v7  }
 0x4ba   : > { %2710 = vperm.xlu1 %5864, %v7991_v33   ;;  %5866 = vset.pattern.permute.xlu0 %v6149_v21 }
 0x4be   : > { %2718 = vperm.xlu1 %5864, %v7998_v46  }
 0x4c2   : > { %5867 = vset.pattern.permute.xlu1 %v6149_v21 }
 0x4ec   : > { %v8082_v41 = vpop.permute.xlu1 %2593 }
 0x4ed   : > { %10345 = vst [vmem:[#allocation166_spill] sm:$0xff] %v8082_v41 }
 0x4f0   : > { %v8084_v12 = vpop.permute.xlu0 %2595 }
 0x4f1   : > { %10346 = vst [vmem:[#allocation167_spill] sm:$0xff] %v8084_v12 }
 0x4f4   : > { %v8086_v14 = vpop.permute.xlu1 %2597  ;;  %v8088_v42 = vpop.permute.xlu0 %2599 }
 0x4f5   : > { %10347 = vst [vmem:[#allocation168_spill] sm:$0xff] %v8086_v14  ;;  %10348 = vst [vmem:[#allocation169_spill] sm:$0xff] %v8088_v42 }
 0x4f8   : > { %v8090_v30 = vpop.permute.xlu1 %2601  ;;  %v8092_v35 = vpop.permute.xlu0 %2603 }
 0x4f9   : > { %10349 = vst [vmem:[#allocation170_spill] sm:$0xff] %v8090_v30  ;;  %10350 = vst [vmem:[#allocation171_spill] sm:$0xff] %v8092_v35 }
 0x4fc   : > { %v8094_v18 = vpop.permute.xlu1 %2605  ;;  %v8096_v37 = vpop.permute.xlu0 %2607 }
 0x4fd   : > { %10351 = vst [vmem:[#allocation172_spill] sm:$0xff] %v8094_v18  ;;  %10352 = vst [vmem:[#allocation173_spill] sm:$0xff] %v8096_v37 }
 0x500   : > { %v8098_v45 = vpop.permute.xlu1 %2609  ;;  %v8100_v4 = vpop.permute.xlu0 %2611 }
 0x501   : > { %10353 = vst [vmem:[#allocation174_spill] sm:$0xff] %v8098_v45  ;;  %10354 = vst [vmem:[#allocation175_spill] sm:$0xff] %v8100_v4 }
 0x504   : > { %v8102_v21 = vpop.permute.xlu1 %2613  ;;  %v8104_v41 = vpop.permute.xlu0 %2615 }
 0x505   : > { %10355 = vst [vmem:[#allocation176_spill] sm:$0xff] %v8102_v21  ;;  %10356 = vst [vmem:[#allocation177_spill] sm:$0xff] %v8104_v41 }
 0x508   : > { %v8106_v12 = vpop.permute.xlu1 %2617  ;;  %v8108_v14 = vpop.permute.xlu0 %2619 }
 0x509   : > { %10357 = vst [vmem:[#allocation178_spill] sm:$0xff] %v8106_v12  ;;  %10358 = vst [vmem:[#allocation179_spill] sm:$0xff] %v8108_v14 }
 0x50c   : > { %v8110_v42 = vpop.permute.xlu1 %2621  ;;  %v8112_v30 = vpop.permute.xlu0 %2623 }
 0x50d   : > { %10359 = vst [vmem:[#allocation180_spill] sm:$0xff] %v8110_v42  ;;  %10360 = vst [vmem:[#allocation181_spill] sm:$0xff] %v8112_v30 }
 0x519   : > { %v2659_v35 = vpop.permute.xlu1 %2658  ;;  %v2663_v18 = vpop.permute.xlu0 %2662 }
 0x51a   : > { %v2721_v37 = vmul.f32 %v2659_v35, %v7196_v43  ;;  %v2722_v45 = vmul.f32 %v7175_v39, %v2663_v18 }
 0x51c   : > { %2753 = vrot.lane.b32.xlu0 %v2721_v37, %s6150_s6  ;;  %2755 = vrot.lane.b32.xlu1 %v2722_v45, %s6150_s6 }
 0x51d   : > { %v2667_v4 = vpop.permute.xlu1 %2666  ;;  %v2675_v21 = vpop.permute.xlu0 %2674 }
 0x51e   : > { %v2723_v41 = vmul.f32 %v2667_v4, %v7243_v5  ;;  %v2725_v42 = vmul.f32 %v2675_v21, %v7287_v63 }
 0x520   : > { %2757 = vrot.lane.b32.xlu0 %v2723_v41, %s6150_s6 }
 0x521   : > { %v2671_v12 = vpop.permute.xlu1 %2670  ;;  %v2683_v14 = vpop.permute.xlu0 %2682 }
 0x522   : > { %v2724_v40 = vmul.f32 %v7223_v58, %v2671_v12  ;;  %v2727_v37 = vmul.f32 %v2683_v14, %v7331_v15 }
 0x524   : > { %2759 = vrot.lane.b32.xlu1 %v2724_v40, %s6150_s6  ;;  %2761 = vrot.lane.b32.xlu0 %v2725_v42, %s6150_s6 }
 0x525   : > { %v2679_v35 = vpop.permute.xlu1 %2678  ;;  %v2691_v18 = vpop.permute.xlu0 %2690 }
 0x526   : > { %v2726_v45 = vmul.f32 %v7267_v44, %v2679_v35  ;;  %v2729_v21 = vmul.f32 %v2691_v18, %v7397_v51 }
 0x528   : > { %2763 = vrot.lane.b32.xlu1 %v2726_v45, %s6150_s6  ;;  %2765 = vrot.lane.b32.xlu0 %v2727_v37, %s6150_s6 }
 0x529   : > { %v2687_v41 = vpop.permute.xlu1 %2686  ;;  %v2699_v4 = vpop.permute.xlu0 %2698 }
 0x52a   : > { %v2728_v12 = vmul.f32 %v7311_v34, %v2687_v41  ;;  %v2731_v14 = vmul.f32 %v2699_v4, %v7470_v6 }
 0x52c   : > { %2767 = vrot.lane.b32.xlu1 %v2728_v12, %s6150_s6  ;;  %2769 = vrot.lane.b32.xlu0 %v2729_v21, %s6150_s6 }
 0x52d   : > { %v2695_v40 = vpop.permute.xlu1 %2694  ;;  %v2707_v42 = vpop.permute.xlu0 %2706 }
 0x52e   : > { %v2730_v35 = vmul.f32 %v7365_v27, %v2695_v40  ;;  %v2733_v45 = vmul.f32 %v2707_v42, %v7544_v16  ;;  %v6151_v42 = vmov 85  }
 0x530   : > { %2771 = vrot.lane.b32.xlu1 %v2730_v35, %s6150_s6  ;;  %2773 = vrot.lane.b32.xlu0 %v2731_v14, %s6150_s6 }
 0x531   : > { %v2703_v37 = vpop.permute.xlu1 %2702  ;;  %v2715_v41 = vpop.permute.xlu0 %2714 }
 0x532   : > { %v2732_v18 = vmul.f32 %v7438_v24, %v2703_v37  ;;  %v2735_v12 = vmul.f32 %v2715_v41, %v7608_v48 }
 0x534   : > { %2775 = vrot.lane.b32.xlu1 %v2732_v18, %s6150_s6  ;;  %2777 = vrot.lane.b32.xlu0 %v2733_v45, %s6150_s6 }
 0x535   : > { %v2711_v21 = vpop.permute.xlu1 %2710 }
 0x536   : > { %v2734_v4 = vmul.f32 %v7512_v10, %v2711_v21 }
 0x538   : > { %2779 = vrot.lane.b32.xlu1 %v2734_v4, %s6150_s6  ;;  %2781 = vrot.lane.b32.xlu0 %v2735_v12, %s6150_s6 }
 0x539   : > { %v2719_v40 = vpop.permute.xlu1 %2718 }
 0x53a   : > { %v2736_v14 = vmul.f32 %v7576_v60, %v2719_v40 }
 0x53c   : > { %2783 = vrot.lane.b32.xlu1 %v2736_v14, %s6150_s6  ;;  %2818 = vperm.xlu0 %5866, %v7829_v26   ;;  %s6165_s6 = smov 111  }
 0x540   : > { %2822 = vperm.xlu1 %5867, %v7835_v20   ;;  %2830 = vperm.xlu0 %5866, %v7956_v17  }
 0x544   : > { %2826 = vperm.xlu1 %5867, %v7841_v3   ;;  %2838 = vperm.xlu0 %5866, %v7963_v11  }
 0x548   : > { %2834 = vperm.xlu1 %5867, %v7847_v49   ;;  %2846 = vperm.xlu0 %5866, %v7970_v36  }
 0x54c   : > { %2842 = vperm.xlu1 %5867, %v7854_v25   ;;  %2854 = vperm.xlu0 %5866, %v7977_v38  }
 0x550   : > { %2850 = vperm.xlu1 %5867, %v7861_v56   ;;  %2862 = vperm.xlu0 %5866, %v7984_v50  }
 0x554   : > { %2858 = vperm.xlu1 %5867, %v7868_v53   ;;  %2870 = vperm.xlu0 %5866, %v7991_v33  }
 0x558   : > { %2866 = vperm.xlu1 %5867, %v7875_v9   ;;  %2878 = vperm.xlu0 %5866, %v7998_v46  }
 0x55c   : > { %2874 = vperm.xlu1 %5867, %v7882_v7   ;;  %5869 = vset.pattern.permute.xlu0 %v6151_v42 }
 0x560   : > { %5868 = vset.pattern.permute.xlu1 %v6151_v42 }
 0x58e   : > { %v8162_v35 = vpop.permute.xlu0 %2753  ;;  %v8164_v37 = vpop.permute.xlu1 %2755 }
 0x58f   : > { %10361 = vst [vmem:[#allocation182_spill] sm:$0xff] %v8162_v35  ;;  %10362 = vst [vmem:[#allocation183_spill] sm:$0xff] %v8164_v37 }
 0x592   : > { %v8166_v45 = vpop.permute.xlu0 %2757 }
 0x593   : > { %10363 = vst [vmem:[#allocation184_spill] sm:$0xff] %v8166_v45 }
 0x596   : > { %v8168_v18 = vpop.permute.xlu1 %2759  ;;  %v8170_v41 = vpop.permute.xlu0 %2761 }
 0x597   : > { %10364 = vst [vmem:[#allocation185_spill] sm:$0xff] %v8168_v18  ;;  %10365 = vst [vmem:[#allocation186_spill] sm:$0xff] %v8170_v41 }
 0x59a   : > { %v8172_v21 = vpop.permute.xlu1 %2763  ;;  %v8174_v12 = vpop.permute.xlu0 %2765 }
 0x59b   : > { %10366 = vst [vmem:[#allocation187_spill] sm:$0xff] %v8172_v21  ;;  %10367 = vst [vmem:[#allocation188_spill] sm:$0xff] %v8174_v12 }
 0x59e   : > { %v8176_v4 = vpop.permute.xlu1 %2767  ;;  %v8178_v40 = vpop.permute.xlu0 %2769 }
 0x59f   : > { %10368 = vst [vmem:[#allocation189_spill] sm:$0xff] %v8176_v4  ;;  %10369 = vst [vmem:[#allocation190_spill] sm:$0xff] %v8178_v40 }
 0x5a2   : > { %v8180_v14 = vpop.permute.xlu1 %2771  ;;  %v8182_v42 = vpop.permute.xlu0 %2773 }
 0x5a3   : > { %10370 = vst [vmem:[#allocation191_spill] sm:$0xff] %v8180_v14  ;;  %10371 = vst [vmem:[#allocation192_spill] sm:$0xff] %v8182_v42 }
 0x5a6   : > { %v8184_v35 = vpop.permute.xlu1 %2775  ;;  %v8186_v37 = vpop.permute.xlu0 %2777 }
 0x5a7   : > { %10372 = vst [vmem:[#allocation193_spill] sm:$0xff] %v8184_v35  ;;  %10373 = vst [vmem:[#allocation194_spill] sm:$0xff] %v8186_v37 }
 0x5aa   : > { %v8188_v45 = vpop.permute.xlu1 %2779  ;;  %v8190_v18 = vpop.permute.xlu0 %2781 }
 0x5ab   : > { %10374 = vst [vmem:[#allocation195_spill] sm:$0xff] %v8188_v45  ;;  %10375 = vst [vmem:[#allocation196_spill] sm:$0xff] %v8190_v18 }
 0x5ae   : > { %v8192_v41 = vpop.permute.xlu1 %2783 }
 0x5af   : > { %10376 = vst [vmem:[#allocation197_spill] sm:$0xff] %v8192_v41 }
 0x5b7   : > { %v2819_v21 = vpop.permute.xlu0 %2818 }
 0x5b8   : > { %v2881_v12 = vmul.f32 %v2819_v21, %v7196_v43 }
 0x5ba   : > { %2913 = vrot.lane.b32.xlu1 %v2881_v12, %s6152_s7 }
 0x5bb   : > { %v2823_v4 = vpop.permute.xlu1 %2822  ;;  %v2831_v40 = vpop.permute.xlu0 %2830 }
 0x5bc   : > { %v2882_v14 = vmul.f32 %v7175_v39, %v2823_v4  ;;  %v2884_v37 = vmul.f32 %v7223_v58, %v2831_v40 }
 0x5be   : > { %2915 = vrot.lane.b32.xlu0 %v2882_v14, %s6152_s7 }
 0x5bf   : > { %v2827_v42 = vpop.permute.xlu1 %2826  ;;  %v2839_v35 = vpop.permute.xlu0 %2838 }
 0x5c0   : > { %v2883_v45 = vmul.f32 %v2827_v42, %v7243_v5  ;;  %v2886_v12 = vmul.f32 %v7267_v44, %v2839_v35 }
 0x5c2   : > { %2917 = vrot.lane.b32.xlu1 %v2883_v45, %s6152_s7  ;;  %2919 = vrot.lane.b32.xlu0 %v2884_v37, %s6152_s7 }
 0x5c3   : > { %v2835_v21 = vpop.permute.xlu1 %2834  ;;  %v2847_v18 = vpop.permute.xlu0 %2846 }
 0x5c4   : > { %v2885_v28 = vmul.f32 %v2835_v21, %v7287_v63  ;;  %v2888_v40 = vmul.f32 %v7311_v34, %v2847_v18 }
 0x5c6   : > { %2921 = vrot.lane.b32.xlu1 %v2885_v28, %s6152_s7  ;;  %2923 = vrot.lane.b32.xlu0 %v2886_v12, %s6152_s7 }
 0x5c7   : > { %v2843_v4 = vpop.permute.xlu1 %2842  ;;  %v2855_v14 = vpop.permute.xlu0 %2854 }
 0x5c8   : > { %v2887_v42 = vmul.f32 %v2843_v4, %v7331_v15  ;;  %v2890_v35 = vmul.f32 %v7365_v27, %v2855_v14 }
 0x5ca   : > { %2925 = vrot.lane.b32.xlu1 %v2887_v42, %s6152_s7  ;;  %2927 = vrot.lane.b32.xlu0 %v2888_v40, %s6152_s7 }
 0x5cb   : > { %v2851_v37 = vpop.permute.xlu1 %2850  ;;  %v2863_v45 = vpop.permute.xlu0 %2862 }
 0x5cc   : > { %v2889_v21 = vmul.f32 %v2851_v37, %v7397_v51  ;;  %v2892_v18 = vmul.f32 %v7438_v24, %v2863_v45 }
 0x5ce   : > { %2929 = vrot.lane.b32.xlu1 %v2889_v21, %s6152_s7  ;;  %2931 = vrot.lane.b32.xlu0 %v2890_v35, %s6152_s7 }
 0x5cf   : > { %v2859_v28 = vpop.permute.xlu1 %2858  ;;  %v2871_v12 = vpop.permute.xlu0 %2870 }
 0x5d0   : > { %v2891_v4 = vmul.f32 %v2859_v28, %v7470_v6  ;;  %v2894_v42 = vmul.f32 %v7512_v10, %v2871_v12  ;;  %v6153_v28 = vmov 86  }
 0x5d2   : > { %2933 = vrot.lane.b32.xlu1 %v2891_v4, %s6152_s7  ;;  %2935 = vrot.lane.b32.xlu0 %v2892_v18, %s6152_s7 }
 0x5d3   : > { %v2867_v40 = vpop.permute.xlu1 %2866  ;;  %v2879_v37 = vpop.permute.xlu0 %2878 }
 0x5d4   : > { %v2893_v14 = vmul.f32 %v2867_v40, %v7544_v16  ;;  %v2896_v21 = vmul.f32 %v7576_v60, %v2879_v37 }
 0x5d6   : > { %2937 = vrot.lane.b32.xlu1 %v2893_v14, %s6152_s7  ;;  %2939 = vrot.lane.b32.xlu0 %v2894_v42, %s6152_s7 }
 0x5d7   : > { %v2875_v35 = vpop.permute.xlu1 %2874 }
 0x5d8   : > { %v2895_v45 = vmul.f32 %v2875_v35, %v7608_v48 }
 0x5da   : > { %2941 = vrot.lane.b32.xlu1 %v2895_v45, %s6152_s7  ;;  %2943 = vrot.lane.b32.xlu0 %v2896_v21, %s6152_s7  ;;  %s6166_s7 = smov 110  }
 0x5de   : > { %2978 = vperm.xlu1 %5868, %v7829_v26   ;;  %2982 = vperm.xlu0 %5869, %v7835_v20  }
 0x5e2   : > { %2986 = vperm.xlu1 %5868, %v7841_v3   ;;  %2994 = vperm.xlu0 %5869, %v7847_v49  }
 0x5e6   : > { %2990 = vperm.xlu1 %5868, %v7956_v17   ;;  %3002 = vperm.xlu0 %5869, %v7854_v25  }
 0x5ea   : > { %2998 = vperm.xlu1 %5868, %v7963_v11   ;;  %3010 = vperm.xlu0 %5869, %v7861_v56  }
 0x5ee   : > { %3006 = vperm.xlu1 %5868, %v7970_v36   ;;  %3018 = vperm.xlu0 %5869, %v7868_v53  }
 0x5f2   : > { %3014 = vperm.xlu1 %5868, %v7977_v38   ;;  %3026 = vperm.xlu0 %5869, %v7875_v9  }
 0x5f6   : > { %3022 = vperm.xlu1 %5868, %v7984_v50   ;;  %3034 = vperm.xlu0 %5869, %v7882_v7  }
 0x5fa   : > { %3030 = vperm.xlu1 %5868, %v7991_v33   ;;  %5870 = vset.pattern.permute.xlu0 %v6153_v28 }
 0x5fe   : > { %3038 = vperm.xlu1 %5868, %v7998_v46  }
 0x602   : > { %5871 = vset.pattern.permute.xlu1 %v6153_v28 }
 0x62c   : > { %v8242_v12 = vpop.permute.xlu1 %2913 }
 0x62d   : > { %10377 = vst [vmem:[#allocation198_spill] sm:$0xff] %v8242_v12 }
 0x630   : > { %v8244_v18 = vpop.permute.xlu0 %2915 }
 0x631   : > { %10378 = vst [vmem:[#allocation199_spill] sm:$0xff] %v8244_v18 }
 0x634   : > { %v8246_v4 = vpop.permute.xlu1 %2917  ;;  %v8248_v40 = vpop.permute.xlu0 %2919 }
 0x635   : > { %10379 = vst [vmem:[#allocation200_spill] sm:$0xff] %v8246_v4  ;;  %10380 = vst [vmem:[#allocation201_spill] sm:$0xff] %v8248_v40 }
 0x638   : > { %v8250_v42 = vpop.permute.xlu1 %2921  ;;  %v8252_v14 = vpop.permute.xlu0 %2923 }
 0x639   : > { %10381 = vst [vmem:[#allocation202_spill] sm:$0xff] %v8250_v42  ;;  %10382 = vst [vmem:[#allocation203_spill] sm:$0xff] %v8252_v14 }
 0x63c   : > { %v8254_v37 = vpop.permute.xlu1 %2925  ;;  %v8256_v35 = vpop.permute.xlu0 %2927 }
 0x63d   : > { %10383 = vst [vmem:[#allocation204_spill] sm:$0xff] %v8254_v37  ;;  %10384 = vst [vmem:[#allocation205_spill] sm:$0xff] %v8256_v35 }
 0x640   : > { %v8258_v21 = vpop.permute.xlu1 %2929  ;;  %v8260_v45 = vpop.permute.xlu0 %2931 }
 0x641   : > { %10385 = vst [vmem:[#allocation206_spill] sm:$0xff] %v8258_v21  ;;  %10386 = vst [vmem:[#allocation207_spill] sm:$0xff] %v8260_v45 }
 0x644   : > { %v8262_v28 = vpop.permute.xlu1 %2933  ;;  %v8264_v12 = vpop.permute.xlu0 %2935 }
 0x645   : > { %10387 = vst [vmem:[#allocation208_spill] sm:$0xff] %v8262_v28  ;;  %10388 = vst [vmem:[#allocation209_spill] sm:$0xff] %v8264_v12 }
 0x648   : > { %v8266_v18 = vpop.permute.xlu1 %2937  ;;  %v8268_v4 = vpop.permute.xlu0 %2939 }
 0x649   : > { %10389 = vst [vmem:[#allocation210_spill] sm:$0xff] %v8266_v18  ;;  %10390 = vst [vmem:[#allocation211_spill] sm:$0xff] %v8268_v4 }
 0x64c   : > { %v8270_v40 = vpop.permute.xlu1 %2941  ;;  %v8272_v42 = vpop.permute.xlu0 %2943 }
 0x64d   : > { %10391 = vst [vmem:[#allocation212_spill] sm:$0xff] %v8270_v40  ;;  %10392 = vst [vmem:[#allocation213_spill] sm:$0xff] %v8272_v42 }
 0x659   : > { %v2979_v14 = vpop.permute.xlu1 %2978  ;;  %v2983_v37 = vpop.permute.xlu0 %2982 }
 0x65a   : > { %v3041_v35 = vmul.f32 %v2979_v14, %v7196_v43  ;;  %v3042_v21 = vmul.f32 %v7175_v39, %v2983_v37 }
 0x65c   : > { %3073 = vrot.lane.b32.xlu0 %v3041_v35, %s6154_s8  ;;  %3075 = vrot.lane.b32.xlu1 %v3042_v21, %s6154_s8 }
 0x65d   : > { %v2987_v45 = vpop.permute.xlu1 %2986  ;;  %v2995_v28 = vpop.permute.xlu0 %2994 }
 0x65e   : > { %v3043_v12 = vmul.f32 %v2987_v45, %v7243_v5  ;;  %v3045_v40 = vmul.f32 %v2995_v28, %v7287_v63 }
 0x660   : > { %3077 = vrot.lane.b32.xlu0 %v3043_v12, %s6154_s8 }
 0x661   : > { %v2991_v18 = vpop.permute.xlu1 %2990  ;;  %v3003_v4 = vpop.permute.xlu0 %3002 }
 0x662   : > { %v3044_v54 = vmul.f32 %v7223_v58, %v2991_v18  ;;  %v3047_v35 = vmul.f32 %v3003_v4, %v7331_v15 }
 0x664   : > { %3079 = vrot.lane.b32.xlu1 %v3044_v54, %s6154_s8  ;;  %3081 = vrot.lane.b32.xlu0 %v3045_v40, %s6154_s8 }
 0x665   : > { %v2999_v14 = vpop.permute.xlu1 %2998  ;;  %v3011_v37 = vpop.permute.xlu0 %3010 }
 0x666   : > { %v3046_v21 = vmul.f32 %v7267_v44, %v2999_v14  ;;  %v3049_v28 = vmul.f32 %v3011_v37, %v7397_v51 }
 0x668   : > { %3083 = vrot.lane.b32.xlu1 %v3046_v21, %s6154_s8  ;;  %3085 = vrot.lane.b32.xlu0 %v3047_v35, %s6154_s8 }
 0x669   : > { %v3007_v12 = vpop.permute.xlu1 %3006  ;;  %v3019_v45 = vpop.permute.xlu0 %3018 }
 0x66a   : > { %v3048_v18 = vmul.f32 %v7311_v34, %v3007_v12  ;;  %v3051_v4 = vmul.f32 %v3019_v45, %v7470_v6 }
 0x66c   : > { %3087 = vrot.lane.b32.xlu1 %v3048_v18, %s6154_s8  ;;  %3089 = vrot.lane.b32.xlu0 %v3049_v28, %s6154_s8 }
 0x66d   : > { %v3015_v54 = vpop.permute.xlu1 %3014  ;;  %v3027_v40 = vpop.permute.xlu0 %3026 }
 0x66e   : > { %v3050_v14 = vmul.f32 %v7365_v27, %v3015_v54  ;;  %v3053_v21 = vmul.f32 %v3027_v40, %v7544_v16  ;;  %v6155_v40 = vmov 87  }
 0x670   : > { %3091 = vrot.lane.b32.xlu1 %v3050_v14, %s6154_s8  ;;  %3093 = vrot.lane.b32.xlu0 %v3051_v4, %s6154_s8 }
 0x671   : > { %v3023_v35 = vpop.permute.xlu1 %3022  ;;  %v3035_v12 = vpop.permute.xlu0 %3034 }
 0x672   : > { %v3052_v37 = vmul.f32 %v7438_v24, %v3023_v35  ;;  %v3055_v18 = vmul.f32 %v3035_v12, %v7608_v48 }
 0x674   : > { %3095 = vrot.lane.b32.xlu1 %v3052_v37, %s6154_s8  ;;  %3097 = vrot.lane.b32.xlu0 %v3053_v21, %s6154_s8 }
 0x675   : > { %v3031_v28 = vpop.permute.xlu1 %3030 }
 0x676   : > { %v3054_v45 = vmul.f32 %v7512_v10, %v3031_v28 }
 0x678   : > { %3099 = vrot.lane.b32.xlu1 %v3054_v45, %s6154_s8  ;;  %3101 = vrot.lane.b32.xlu0 %v3055_v18, %s6154_s8 }
 0x679   : > { %v3039_v54 = vpop.permute.xlu1 %3038 }
 0x67a   : > { %v3056_v4 = vmul.f32 %v7576_v60, %v3039_v54 }
 0x67c   : > { %3103 = vrot.lane.b32.xlu1 %v3056_v4, %s6154_s8  ;;  %3138 = vperm.xlu0 %5870, %v7829_v26   ;;  %s6167_s8 = smov 108  }
 0x680   : > { %3142 = vperm.xlu1 %5871, %v7835_v20   ;;  %3150 = vperm.xlu0 %5870, %v7956_v17  }
 0x684   : > { %3146 = vperm.xlu1 %5871, %v7841_v3   ;;  %3158 = vperm.xlu0 %5870, %v7963_v11  }
 0x688   : > { %3154 = vperm.xlu1 %5871, %v7847_v49   ;;  %3166 = vperm.xlu0 %5870, %v7970_v36  }
 0x68c   : > { %3162 = vperm.xlu1 %5871, %v7854_v25   ;;  %3174 = vperm.xlu0 %5870, %v7977_v38  }
 0x690   : > { %3170 = vperm.xlu1 %5871, %v7861_v56   ;;  %3182 = vperm.xlu0 %5870, %v7984_v50  }
 0x694   : > { %3178 = vperm.xlu1 %5871, %v7868_v53   ;;  %3190 = vperm.xlu0 %5870, %v7991_v33  }
 0x698   : > { %3186 = vperm.xlu1 %5871, %v7875_v9   ;;  %3198 = vperm.xlu0 %5870, %v7998_v46  }
 0x69c   : > { %3194 = vperm.xlu1 %5871, %v7882_v7   ;;  %5873 = vset.pattern.permute.xlu0 %v6155_v40 }
 0x6a0   : > { %5872 = vset.pattern.permute.xlu1 %v6155_v40 }
 0x6ce   : > { %v8322_v14 = vpop.permute.xlu0 %3073  ;;  %v8324_v35 = vpop.permute.xlu1 %3075 }
 0x6cf   : > { %10393 = vst [vmem:[#allocation214_spill] sm:$0xff] %v8322_v14  ;;  %10394 = vst [vmem:[#allocation215_spill] sm:$0xff] %v8324_v35 }
 0x6d2   : > { %v8326_v21 = vpop.permute.xlu0 %3077 }
 0x6d3   : > { %10395 = vst [vmem:[#allocation216_spill] sm:$0xff] %v8326_v21 }
 0x6d6   : > { %v8328_v37 = vpop.permute.xlu1 %3079  ;;  %v8330_v12 = vpop.permute.xlu0 %3081 }
 0x6d7   : > { %10396 = vst [vmem:[#allocation217_spill] sm:$0xff] %v8328_v37  ;;  %10397 = vst [vmem:[#allocation218_spill] sm:$0xff] %v8330_v12 }
 0x6da   : > { %v8332_v28 = vpop.permute.xlu1 %3083  ;;  %v8334_v18 = vpop.permute.xlu0 %3085 }
 0x6db   : > { %10398 = vst [vmem:[#allocation219_spill] sm:$0xff] %v8332_v28  ;;  %10399 = vst [vmem:[#allocation220_spill] sm:$0xff] %v8334_v18 }
 0x6de   : > { %v8336_v45 = vpop.permute.xlu1 %3087  ;;  %v8338_v54 = vpop.permute.xlu0 %3089 }
 0x6df   : > { %10400 = vst [vmem:[#allocation221_spill] sm:$0xff] %v8336_v45  ;;  %10401 = vst [vmem:[#allocation222_spill] sm:$0xff] %v8338_v54 }
 0x6e2   : > { %v8340_v4 = vpop.permute.xlu1 %3091  ;;  %v8342_v40 = vpop.permute.xlu0 %3093 }
 0x6e3   : > { %10402 = vst [vmem:[#allocation223_spill] sm:$0xff] %v8340_v4  ;;  %10403 = vst [vmem:[#allocation224_spill] sm:$0xff] %v8342_v40 }
 0x6e6   : > { %v8344_v14 = vpop.permute.xlu1 %3095  ;;  %v8346_v35 = vpop.permute.xlu0 %3097 }
 0x6e7   : > { %10404 = vst [vmem:[#allocation225_spill] sm:$0xff] %v8344_v14  ;;  %10405 = vst [vmem:[#allocation226_spill] sm:$0xff] %v8346_v35 }
 0x6ea   : > { %v8348_v21 = vpop.permute.xlu1 %3099  ;;  %v8350_v37 = vpop.permute.xlu0 %3101 }
 0x6eb   : > { %10406 = vst [vmem:[#allocation227_spill] sm:$0xff] %v8348_v21  ;;  %10407 = vst [vmem:[#allocation228_spill] sm:$0xff] %v8350_v37 }
 0x6ee   : > { %v8352_v12 = vpop.permute.xlu1 %3103 }
 0x6ef   : > { %10408 = vst [vmem:[#allocation229_spill] sm:$0xff] %v8352_v12 }
 0x6f7   : > { %v3139_v28 = vpop.permute.xlu0 %3138 }
 0x6f8   : > { %v3201_v18 = vmul.f32 %v3139_v28, %v7196_v43 }
 0x6fa   : > { %3233 = vrot.lane.b32.xlu1 %v3201_v18, %s6156_s14 }
 0x6fb   : > { %v3143_v45 = vpop.permute.xlu1 %3142  ;;  %v3151_v54 = vpop.permute.xlu0 %3150 }
 0x6fc   : > { %v3202_v4 = vmul.f32 %v7175_v39, %v3143_v45  ;;  %v3204_v35 = vmul.f32 %v7223_v58, %v3151_v54 }
 0x6fe   : > { %3235 = vrot.lane.b32.xlu0 %v3202_v4, %s6156_s14 }
 0x6ff   : > { %v3147_v40 = vpop.permute.xlu1 %3146  ;;  %v3159_v14 = vpop.permute.xlu0 %3158 }
 0x700   : > { %v3203_v21 = vmul.f32 %v3147_v40, %v7243_v5  ;;  %v3206_v18 = vmul.f32 %v7267_v44, %v3159_v14 }
 0x702   : > { %3237 = vrot.lane.b32.xlu1 %v3203_v21, %s6156_s14  ;;  %3239 = vrot.lane.b32.xlu0 %v3204_v35, %s6156_s14 }
 0x703   : > { %v3155_v28 = vpop.permute.xlu1 %3154  ;;  %v3167_v37 = vpop.permute.xlu0 %3166 }
 0x704   : > { %v3205_v12 = vmul.f32 %v3155_v28, %v7287_v63  ;;  %v3208_v54 = vmul.f32 %v7311_v34, %v3167_v37 }
 0x706   : > { %3241 = vrot.lane.b32.xlu1 %v3205_v12, %s6156_s14  ;;  %3243 = vrot.lane.b32.xlu0 %v3206_v18, %s6156_s14 }
 0x707   : > { %v3163_v45 = vpop.permute.xlu1 %3162  ;;  %v3175_v4 = vpop.permute.xlu0 %3174 }
 0x708   : > { %v3207_v40 = vmul.f32 %v3163_v45, %v7331_v15  ;;  %v3210_v14 = vmul.f32 %v7365_v27, %v3175_v4 }
 0x70a   : > { %3245 = vrot.lane.b32.xlu1 %v3207_v40, %s6156_s14  ;;  %3247 = vrot.lane.b32.xlu0 %v3208_v54, %s6156_s14 }
 0x70b   : > { %v3171_v35 = vpop.permute.xlu1 %3170  ;;  %v3183_v21 = vpop.permute.xlu0 %3182 }
 0x70c   : > { %v3209_v28 = vmul.f32 %v3171_v35, %v7397_v51  ;;  %v3212_v37 = vmul.f32 %v7438_v24, %v3183_v21 }
 0x70e   : > { %3249 = vrot.lane.b32.xlu1 %v3209_v28, %s6156_s14  ;;  %3251 = vrot.lane.b32.xlu0 %v3210_v14, %s6156_s14 }
 0x70f   : > { %v3179_v12 = vpop.permute.xlu1 %3178  ;;  %v3191_v18 = vpop.permute.xlu0 %3190 }
 0x710   : > { %v3211_v45 = vmul.f32 %v3179_v12, %v7470_v6  ;;  %v3214_v40 = vmul.f32 %v7512_v10, %v3191_v18 }
 0x712   : > { %3253 = vrot.lane.b32.xlu1 %v3211_v45, %s6156_s14  ;;  %3255 = vrot.lane.b32.xlu0 %v3212_v37, %s6156_s14 }
 0x713   : > { %v3187_v54 = vpop.permute.xlu1 %3186  ;;  %v3199_v35 = vpop.permute.xlu0 %3198 }
 0x714   : > { %v3213_v4 = vmul.f32 %v3187_v54, %v7544_v16  ;;  %v3216_v28 = vmul.f32 %v7576_v60, %v3199_v35 }
 0x716   : > { %3257 = vrot.lane.b32.xlu1 %v3213_v4, %s6156_s14  ;;  %3259 = vrot.lane.b32.xlu0 %v3214_v40, %s6156_s14 }
 0x717   : > { %v3195_v14 = vpop.permute.xlu1 %3194 }
 0x718   : > { %v3215_v21 = vmul.f32 %v3195_v14, %v7608_v48 }
 0x71a   : > { %3261 = vrot.lane.b32.xlu1 %v3215_v21, %s6156_s14  ;;  %3263 = vrot.lane.b32.xlu0 %v3216_v28, %s6156_s14  ;;  %s6168_s14 = smov 109  }
 0x71e   : > { %3298 = vperm.xlu1 %5872, %v7829_v26   ;;  %3302 = vperm.xlu0 %5873, %v7835_v20   ;;  %v10066_v26 = vmov 88  }
 0x722   : > { %3306 = vperm.xlu1 %5872, %v7841_v3   ;;  %3314 = vperm.xlu0 %5873, %v7847_v49  }
 0x726   : > { %3310 = vperm.xlu1 %5872, %v7956_v17   ;;  %3322 = vperm.xlu0 %5873, %v7854_v25  }
 0x72a   : > { %3318 = vperm.xlu1 %5872, %v7963_v11   ;;  %3330 = vperm.xlu0 %5873, %v7861_v56  }
 0x72e   : > { %3326 = vperm.xlu1 %5872, %v7970_v36   ;;  %3338 = vperm.xlu0 %5873, %v7868_v53  }
 0x732   : > { %3334 = vperm.xlu1 %5872, %v7977_v38   ;;  %3346 = vperm.xlu0 %5873, %v7875_v9  }
 0x736   : > { %3342 = vperm.xlu1 %5872, %v7984_v50   ;;  %3354 = vperm.xlu0 %5873, %v7882_v7  }
 0x73a   : > { %3350 = vperm.xlu1 %5872, %v7991_v33   ;;  %5874 = vset.pattern.permute.xlu0 %v10066_v26 }
 0x73e   : > { %3358 = vperm.xlu1 %5872, %v7998_v46  }
 0x742   : > { %5875 = vset.pattern.permute.xlu1 %v10066_v26 }
 0x76c   : > { %v8404_v20 = vpop.permute.xlu1 %3233 }
 0x76d   : > { %10409 = vst [vmem:[#allocation230_spill] sm:$0xff] %v8404_v20 }
 0x770   : > { %v8406_v3 = vpop.permute.xlu0 %3235 }
 0x771   : > { %10410 = vst [vmem:[#allocation231_spill] sm:$0xff] %v8406_v3 }
 0x774   : > { %v8408_v49 = vpop.permute.xlu1 %3237  ;;  %v8410_v25 = vpop.permute.xlu0 %3239 }
 0x775   : > { %10411 = vst [vmem:[#allocation232_spill] sm:$0xff] %v8408_v49  ;;  %10412 = vst [vmem:[#allocation233_spill] sm:$0xff] %v8410_v25 }
 0x778   : > { %v8412_v56 = vpop.permute.xlu1 %3241  ;;  %v8414_v53 = vpop.permute.xlu0 %3243 }
 0x779   : > { %10413 = vst [vmem:[#allocation234_spill] sm:$0xff] %v8412_v56  ;;  %10414 = vst [vmem:[#allocation235_spill] sm:$0xff] %v8414_v53 }
 0x77c   : > { %v8416_v9 = vpop.permute.xlu1 %3245  ;;  %v8418_v7 = vpop.permute.xlu0 %3247 }
 0x77d   : > { %10415 = vst [vmem:[#allocation236_spill] sm:$0xff] %v8416_v9  ;;  %10416 = vst [vmem:[#allocation237_spill] sm:$0xff] %v8418_v7  ;;  %v10429_v7 = vmov 89  }
 0x780   : > { %v8420_v12 = vpop.permute.xlu1 %3249  ;;  %v8422_v18 = vpop.permute.xlu0 %3251 }
 0x781   : > { %10417 = vst [vmem:[#allocation238_spill] sm:$0xff] %v8420_v12  ;;  %10418 = vst [vmem:[#allocation239_spill] sm:$0xff] %v8422_v18  ;;  %v10430_v12 = vmov 90  }
 0x784   : > { %v8424_v37 = vpop.permute.xlu1 %3253  ;;  %v8426_v45 = vpop.permute.xlu0 %3255 }
 0x785   : > { %10419 = vst [vmem:[#allocation240_spill] sm:$0xff] %v8424_v37  ;;  %10420 = vst [vmem:[#allocation241_spill] sm:$0xff] %v8426_v45  ;;  %v10443_v37 = vmov 93  }
 0x788   : > { %v8428_v54 = vpop.permute.xlu1 %3257  ;;  %v8430_v40 = vpop.permute.xlu0 %3259 }
 0x789   : > { %10421 = vst [vmem:[#allocation242_spill] sm:$0xff] %v8428_v54  ;;  %10422 = vst [vmem:[#allocation243_spill] sm:$0xff] %v8430_v40 }
 0x78c   : > { %v8432_v4 = vpop.permute.xlu1 %3261  ;;  %v8434_v35 = vpop.permute.xlu0 %3263 }
 0x78d   : > { %10423 = vst [vmem:[#allocation244_spill] sm:$0xff] %v8432_v4  ;;  %10424 = vst [vmem:[#allocation245_spill] sm:$0xff] %v8434_v35 }
 0x799   : > { %v3299_v14 = vpop.permute.xlu1 %3298  ;;  %v3303_v28 = vpop.permute.xlu0 %3302 }
 0x79a   : > { %v3361_v21 = vmul.f32 %v3299_v14, %v7196_v43  ;;  %v3362_v26 = vmul.f32 %v7175_v39, %v3303_v28 }
 0x79c   : > { %3393 = vrot.lane.b32.xlu0 %v3361_v21, %s6158_s16  ;;  %3395 = vrot.lane.b32.xlu1 %v3362_v26, %s6158_s16 }
 0x79d   : > { %v3307_v20 = vpop.permute.xlu1 %3306  ;;  %v3315_v3 = vpop.permute.xlu0 %3314 }
 0x79e   : > { %v3363_v49 = vmul.f32 %v3307_v20, %v7243_v5  ;;  %v3365_v53 = vmul.f32 %v3315_v3, %v7287_v63 }
 0x7a0   : > { %3397 = vrot.lane.b32.xlu0 %v3363_v49, %s6158_s16 }
 0x7a1   : > { %v3311_v25 = vpop.permute.xlu1 %3310  ;;  %v3323_v56 = vpop.permute.xlu0 %3322 }
 0x7a2   : > { %v3364_v9 = vmul.f32 %v7223_v58, %v3311_v25  ;;  %v3367_v26 = vmul.f32 %v3323_v56, %v7331_v15 }
 0x7a4   : > { %3399 = vrot.lane.b32.xlu1 %v3364_v9, %s6158_s16  ;;  %3401 = vrot.lane.b32.xlu0 %v3365_v53, %s6158_s16 }
 0x7a5   : > { %v3319_v14 = vpop.permute.xlu1 %3318  ;;  %v3331_v28 = vpop.permute.xlu0 %3330 }
 0x7a6   : > { %v3366_v21 = vmul.f32 %v7267_v44, %v3319_v14  ;;  %v3369_v3 = vmul.f32 %v3331_v28, %v7397_v51 }
 0x7a8   : > { %3403 = vrot.lane.b32.xlu1 %v3366_v21, %s6158_s16  ;;  %3405 = vrot.lane.b32.xlu0 %v3367_v26, %s6158_s16 }
 0x7a9   : > { %v3327_v20 = vpop.permute.xlu1 %3326  ;;  %v3339_v49 = vpop.permute.xlu0 %3338 }
 0x7aa   : > { %v3368_v25 = vmul.f32 %v7311_v34, %v3327_v20  ;;  %v3371_v56 = vmul.f32 %v3339_v49, %v7470_v6 }
 0x7ac   : > { %3407 = vrot.lane.b32.xlu1 %v3368_v25, %s6158_s16  ;;  %3409 = vrot.lane.b32.xlu0 %v3369_v3, %s6158_s16 }
 0x7ad   : > { %v3335_v53 = vpop.permute.xlu1 %3334  ;;  %v3347_v9 = vpop.permute.xlu0 %3346 }
 0x7ae   : > { %v3370_v14 = vmul.f32 %v7365_v27, %v3335_v53  ;;  %v3373_v21 = vmul.f32 %v3347_v9, %v7544_v16  ;;  %v8471_v9 = vld [vmem:[%s10039_s1 + $0x38] sm:$0xff] }
 0x7b0   : > { %3411 = vrot.lane.b32.xlu1 %v3370_v14, %s6158_s16  ;;  %3413 = vrot.lane.b32.xlu0 %v3371_v56, %s6158_s16  ;;  %v8477_v14 = vld [vmem:[%s10039_s1 + $0x78] sm:$0xff] }
 0x7b1   : > { %v3343_v26 = vpop.permute.xlu1 %3342  ;;  %v3355_v20 = vpop.permute.xlu0 %3354 }
 0x7b2   : > { %v3372_v28 = vmul.f32 %v7438_v24, %v3343_v26  ;;  %v3375_v25 = vmul.f32 %v3355_v20, %v7608_v48  ;;  %v8484_v26 = vld [vmem:[%s10039_s1 + $0xb8] sm:$0xff]  ;;  %v10425_v20 = vmov 88  }
 0x7b4   : > { %3415 = vrot.lane.b32.xlu1 %v3372_v28, %s6158_s16  ;;  %3417 = vrot.lane.b32.xlu0 %v3373_v21, %s6158_s16  ;;  %v8491_v21 = vld [vmem:[%s10039_s1 + $0x138] sm:$0xff]  ;;  %v10070_v28 = vmov 89  }
 0x7b5   : > { %v3351_v3 = vpop.permute.xlu1 %3350 }
 0x7b6   : > { %v3374_v49 = vmul.f32 %v7512_v10, %v3351_v3  ;;  %v10074_v3 = vmov 91  }
 0x7b8   : > { %3419 = vrot.lane.b32.xlu1 %v3374_v49, %s6158_s16  ;;  %3421 = vrot.lane.b32.xlu0 %v3375_v25, %s6158_s16  ;;  %v6043_v25 = vld [vmem:[%s10039_s1 + $0x3f8] sm:$0xff]  ;;  %v10068_v49 = vmov 92  }
 0x7b9   : > { %v3359_v53 = vpop.permute.xlu1 %3358 }
 0x7ba   : > { %v3376_v56 = vmul.f32 %v7576_v60, %v3359_v53  ;;  %v10072_v53 = vmov 90  }
 0x7bc   : > { %3423 = vrot.lane.b32.xlu1 %v3376_v56, %s6158_s16  ;;  %3458 = vperm.xlu0 %5874, %v8471_v9   ;;  %v8569_v56 = vld [vmem:[%s10039_s1 + $0x2b8] sm:$0xff]  ;;  %s6169_s16 = smov 107  }
 0x7c0   : > { %3462 = vperm.xlu1 %5875, %v8477_v14   ;;  %3470 = vperm.xlu0 %5874, %v7956_v17   ;;  %v8498_v17 = vld [vmem:[%s10039_s1 + $0x1b8] sm:$0xff] }
 0x7c4   : > { %3466 = vperm.xlu1 %5875, %v8484_v26   ;;  %3478 = vperm.xlu0 %5874, %v7963_v11   ;;  %v8505_v11 = vld [vmem:[%s10039_s1 + $0x238] sm:$0xff] }
 0x7c8   : > { %3474 = vperm.xlu1 %5875, %v8491_v21   ;;  %3486 = vperm.xlu0 %5874, %v7970_v36   ;;  %v8511_v36 = vld [vmem:[%s10039_s1 + $0x3b8] sm:$0xff] }
 0x7cc   : > { %3482 = vperm.xlu1 %5875, %v8498_v17   ;;  %3494 = vperm.xlu0 %5874, %v7977_v38   ;;  %v8524_v38 = vld [vmem:[%s10039_s1 + $0x2f8] sm:$0xff] }
 0x7d0   : > { %3490 = vperm.xlu1 %5875, %v8505_v11   ;;  %3514 = vperm.xlu0 %5874, %v8511_v36  }
 0x7d4   : > { %3518 = vperm.xlu1 %5875, %v7998_v46   ;;  %3510 = vperm.xlu0 %5874, %v7991_v33   ;;  %v8538_v33 = vld [vmem:[%s10039_s1 + $0x178] sm:$0xff] }
 0x7d8   : > { %5876 = vset.pattern.permute.xlu1 %v10070_v28  ;;  %3502 = vperm.xlu0 %5874, %v7984_v50   ;;  %v8532_v50 = vld [vmem:[%s10039_s1 + $0x338] sm:$0xff] }
 0x7d9   : > { %3678 = vperm.xlu1 %5876, %v7998_v46   ;;  %v8545_v46 = vld [vmem:[%s10039_s1 + $0x378] sm:$0xff] }
 0x7dc   : > { %5884 = vset.pattern.permute.xlu0 %v10070_v28 }
 0x7dd   : > { %3674 = vperm.xlu1 %5876, %v8511_v36   ;;  %3662 = vperm.xlu0 %5884, %v8524_v38  }
 0x7e1   : > { %5877 = vset.pattern.permute.xlu1 %v10425_v20  ;;  %3650 = vperm.xlu0 %5884, %v8505_v11  }
 0x7e2   : > { %3506 = vperm.xlu1 %5877, %v8532_v50  }
 0x7e5   : > { %3638 = vperm.xlu0 %5884, %v8538_v33  }
 0x7e6   : > { %5878 = vset.pattern.permute.xlu1 %v10070_v28 }
 0x7e7   : > { %3670 = vperm.xlu1 %5878, %v8545_v46  }
 0x7e9   : > { %3626 = vperm.xlu0 %5884, %v8484_v26  }
 0x7eb   : > { %5879 = vset.pattern.permute.xlu1 %v10074_v3 }
 0x7ec   : > { %3998 = vperm.xlu1 %5879, %v6043_v25  }
 0x7ed   : > { %5915 = vset.pattern.permute.xlu0 %v10068_v49 }
 0x7ee   : > { %4154 = vperm.xlu0 %5915, %v8511_v36  }
 0x7f0   : > { %5880 = vset.pattern.permute.xlu1 %v10070_v28 }
 0x7f1   : > { %3666 = vperm.xlu1 %5880, %v8532_v50  }
 0x7f2   : > { %4142 = vperm.xlu0 %5915, %v8524_v38  }
 0x7f5   : > { %5881 = vset.pattern.permute.xlu1 %v10072_v53 }
 0x7f6   : > { %3830 = vperm.xlu1 %5881, %v8545_v46   ;;  %4130 = vperm.xlu0 %5915, %v8505_v11  }
 0x7fa   : > { %5882 = vset.pattern.permute.xlu1 %v10068_v49  ;;  %4118 = vperm.xlu0 %5915, %v8538_v33  }
 0x7fb   : > { %4158 = vperm.xlu1 %5882, %v6043_v25  }
 0x7fe   : > { %5918 = vset.pattern.permute.xlu0 %v10074_v3 }
 0x7ff   : > { %5883 = vset.pattern.permute.xlu1 %v10425_v20  ;;  %3994 = vperm.xlu0 %5918, %v8511_v36   ;;  %v10076_v20 = vmov 93  }
 0x800   : > { %3498 = vperm.xlu1 %5883, %v8569_v56  }
 0x803   : > { %3982 = vperm.xlu0 %5918, %v8524_v38  }
 0x804   : > { %5885 = vset.pattern.permute.xlu1 %v10072_v53 }
 0x805   : > { %3826 = vperm.xlu1 %5885, %v8532_v50  }
 0x807   : > { %3970 = vperm.xlu0 %5918, %v8505_v11  }
 0x809   : > { %5886 = vset.pattern.permute.xlu1 %v10074_v3 }
 0x80a   : > { %3990 = vperm.xlu1 %5886, %v8545_v46  }
 0x80b   : > { %3958 = vperm.xlu0 %5918, %v8538_v33  }
 0x80e   : > { %5887 = vset.pattern.permute.xlu1 %v10076_v20  ;;  %v8580_v49 = vpop.permute.xlu0 %3393  ;;  %v8583_v28 = vpop.permute.xlu1 %3395  ;;  %v10433_v20 = vmov 91  }
 0x80f   : > { %10426 = vst [vmem:[#allocation246_spill] sm:$0xff] %v8580_v49  ;;  %4318 = vperm.xlu1 %5887, %v6043_v25   ;;  %3946 = vperm.xlu0 %5918, %v8484_v26   ;;  %10427 = vst [vmem:[#allocation247_spill] sm:$0xff] %v8583_v28 }
 0x812   : > { %v8585_v53 = vpop.permute.xlu0 %3397 }
 0x813   : > { %10428 = vst [vmem:[#allocation248_spill] sm:$0xff] %v8585_v53  ;;  %5888 = vset.pattern.permute.xlu1 %v10429_v7  ;;  %5925 = vset.pattern.permute.xlu0 %v10430_v12  ;;  %v10436_v53 = vmov 92  }
 0x814   : > { %3658 = vperm.xlu1 %5888, %v8569_v56   ;;  %3838 = vperm.xlu0 %5925, %v6043_v25  }
 0x816   : > { %v8590_v3 = vpop.permute.xlu1 %3399  ;;  %v8592_v18 = vpop.permute.xlu0 %3401 }
 0x817   : > { %10431 = vst [vmem:[#allocation249_spill] sm:$0xff] %v8590_v3  ;;  %10432 = vst [vmem:[#allocation250_spill] sm:$0xff] %v8592_v18  ;;  %v8613_v18 = vld [vmem:[%s10039_s1 + $0x278] sm:$0xff] }
 0x818   : > { %5889 = vset.pattern.permute.xlu1 %v10433_v20  ;;  %3834 = vperm.xlu0 %5925, %v8511_v36  }
 0x819   : > { %3986 = vperm.xlu1 %5889, %v8532_v50  }
 0x81a   : > { %v8597_v49 = vpop.permute.xlu1 %3403  ;;  %v8599_v28 = vpop.permute.xlu0 %3405 }
 0x81b   : > { %10434 = vst [vmem:[#allocation251_spill] sm:$0xff] %v8597_v49  ;;  %10435 = vst [vmem:[#allocation252_spill] sm:$0xff] %v8599_v28 }
 0x81c   : > { %3822 = vperm.xlu0 %5925, %v8524_v38  }
 0x81d   : > { %5890 = vset.pattern.permute.xlu1 %v10436_v53 }
 0x81e   : > { %4150 = vperm.xlu1 %5890, %v8545_v46   ;;  %v8604_v25 = vpop.permute.xlu1 %3407  ;;  %v8607_v3 = vpop.permute.xlu0 %3409 }
 0x81f   : > { %10437 = vst [vmem:[#allocation253_spill] sm:$0xff] %v8604_v25  ;;  %10438 = vst [vmem:[#allocation254_spill] sm:$0xff] %v8607_v3 }
 0x820   : > { %3810 = vperm.xlu0 %5925, %v8505_v11  }
 0x822   : > { %5891 = vset.pattern.permute.xlu1 %v10429_v7  ;;  %v8617_v49 = vpop.permute.xlu1 %3411  ;;  %v8619_v28 = vpop.permute.xlu0 %3413 }
 0x823   : > { %3654 = vperm.xlu1 %5891, %v8613_v18   ;;  %10439 = vst [vmem:[#allocation255_spill] sm:$0xff] %v8617_v49  ;;  %10440 = vst [vmem:[#allocation256_spill] sm:$0xff] %v8619_v28 }
 0x824   : > { %3798 = vperm.xlu0 %5925, %v8538_v33  }
 0x826   : > { %v8624_v25 = vpop.permute.xlu1 %3415  ;;  %v8628_v3 = vpop.permute.xlu0 %3417 }
 0x827   : > { %5892 = vset.pattern.permute.xlu1 %v10430_v12  ;;  %10441 = vst [vmem:[#allocation257_spill] sm:$0xff] %v8624_v25  ;;  %10442 = vst [vmem:[#allocation258_spill] sm:$0xff] %v8628_v3 }
 0x828   : > { %3818 = vperm.xlu1 %5892, %v8569_v56   ;;  %3786 = vperm.xlu0 %5925, %v8484_v26  }
 0x82a   : > { %v8632_v49 = vpop.permute.xlu1 %3419  ;;  %v8637_v28 = vpop.permute.xlu0 %3421 }
 0x82b   : > { %10444 = vst [vmem:[#allocation259_spill] sm:$0xff] %v8632_v49  ;;  %10445 = vst [vmem:[#allocation260_spill] sm:$0xff] %v8637_v28 }
 0x82c   : > { %5893 = vset.pattern.permute.xlu1 %v10436_v53  ;;  %3778 = vperm.xlu0 %5925, %v8471_v9  }
 0x82d   : > { %4146 = vperm.xlu1 %5893, %v8532_v50  }
 0x82e   : > { %v8641_v25 = vpop.permute.xlu1 %3423 }
 0x82f   : > { %10446 = vst [vmem:[#allocation261_spill] sm:$0xff] %v8641_v25 }
 0x830   : > { %5928 = vset.pattern.permute.xlu0 %v10443_v37 }
 0x831   : > { %5894 = vset.pattern.permute.xlu1 %v10443_v37  ;;  %4314 = vperm.xlu0 %5928, %v8511_v36  }
 0x832   : > { %4310 = vperm.xlu1 %5894, %v8545_v46  }
 0x835   : > { %4302 = vperm.xlu0 %5928, %v8524_v38  }
 0x836   : > { %5895 = vset.pattern.permute.xlu1 %v10430_v12 }
 0x837   : > { %3814 = vperm.xlu1 %5895, %v8613_v18   ;;  %v8644_v45 = vpop.permute.xlu0 %3458 }
 0x838   : > { %10447 = vst [vmem:[#allocation262_spill] sm:$0xff] %v8644_v45 }
 0x839   : > { %4290 = vperm.xlu0 %5928, %v8505_v11   ;;  %v8663_v11 = vld [vmem:[%s10039_s1 + $0xf8] sm:$0xff] }
 0x83b   : > { %5896 = vset.pattern.permute.xlu1 %v10433_v20  ;;  %v8648_v3 = vpop.permute.xlu1 %3462  ;;  %v8650_v36 = vpop.permute.xlu0 %3470 }
 0x83c   : > { %10448 = vst [vmem:[#allocation263_spill] sm:$0xff] %v8648_v3  ;;  %10449 = vst [vmem:[#allocation264_spill] sm:$0xff] %v8650_v36  ;;  %3978 = vperm.xlu1 %5896, %v8569_v56  }
 0x83d   : > { %4278 = vperm.xlu0 %5928, %v8538_v33   ;;  %v8675_v33 = vld [vmem:[%s10039_s1 + $0x1f8] sm:$0xff] }
 0x83f   : > { %v8654_v38 = vpop.permute.xlu1 %3466  ;;  %v8656_v46 = vpop.permute.xlu0 %3478 }
 0x840   : > { %10450 = vst [vmem:[#allocation265_spill] sm:$0xff] %v8654_v38  ;;  %5897 = vset.pattern.permute.xlu1 %v10443_v37 }
 0x841   : > { %4306 = vperm.xlu1 %5897, %v8532_v50   ;;  %4270 = vperm.xlu0 %5928, %v8663_v11  }
 0x843   : > { %v8666_v54 = vpop.permute.xlu1 %3474  ;;  %v8668_v49 = vpop.permute.xlu0 %3486 }
 0x844   : > { %10451 = vst [vmem:[#allocation266_spill] sm:$0xff] %v8666_v54 }
 0x845   : > { %5898 = vset.pattern.permute.xlu1 %v10429_v7  ;;  %4266 = vperm.xlu0 %5928, %v8484_v26  }
 0x846   : > { %3646 = vperm.xlu1 %5898, %v8675_v33  }
 0x847   : > { %v8678_v50 = vpop.permute.xlu1 %3482  ;;  %v8680_v40 = vpop.permute.xlu0 %3494 }
 0x849   : > { %4262 = vperm.xlu0 %5928, %v8477_v14  }
 0x84a   : > { %5899 = vset.pattern.permute.xlu1 %v10433_v20 }
 0x84b   : > { %3974 = vperm.xlu1 %5899, %v8613_v18   ;;  %v8685_v45 = vpop.permute.xlu1 %3490  ;;  %v8687_v28 = vpop.permute.xlu0 %3514 }
 0x84f   : > { %5900 = vset.pattern.permute.xlu1 %v10436_v53  ;;  %v3519_v4 = vpop.permute.xlu1 %3518  ;;  %v8690_v3 = vpop.permute.xlu0 %3510 }
 0x850   : > { %v3536_v25 = vmul.f32 %v7576_v60, %v3519_v4  ;;  %4138 = vperm.xlu1 %5900, %v8569_v56  }
 0x852   : > { %3583 = vrot.lane.b32.xlu0 %v3536_v25, %s6164_s5 }
 0x853   : > { %v8695_v35 = vpop.permute.xlu0 %3502 }
 0x854   : > { %5901 = vset.pattern.permute.xlu1 %v10429_v7  ;;  %v3679_v52 = vpop.permute.xlu1 %3678  ;;  %v3532_v54 = vmul.f32 %v7438_v24, %v8695_v35 }
 0x855   : > { %v3696_v23 = vmul.f32 %v7576_v60, %v3679_v52  ;;  %3642 = vperm.xlu1 %5901, %v8498_v17  }
 0x857   : > { %3743 = vrot.lane.b32.xlu0 %v3696_v23, %s6165_s6 }
 0x858   : > { %v3675_v42 = vpop.permute.xlu1 %3674  ;;  %v8701_v41 = vpop.permute.xlu0 %3662 }
 0x859   : > { %v3695_v4 = vmul.f32 %v3675_v42, %v7608_v48  ;;  %5902 = vset.pattern.permute.xlu1 %v10430_v12 }
 0x85a   : > { %3806 = vperm.xlu1 %5902, %v8675_v33  }
 0x85b   : > { %3741 = vrot.lane.b32.xlu0 %v3695_v4, %s6165_s6 }
 0x85c   : > { %v8707_v25 = vpop.permute.xlu0 %3650 }
 0x85d   : > { %v3507_v47 = vpop.permute.xlu1 %3506 }
 0x85e   : > { %v3533_v52 = vmul.f32 %v3507_v47, %v7544_v16  ;;  %5903 = vset.pattern.permute.xlu1 %v10436_v53 }
 0x85f   : > { %4134 = vperm.xlu1 %5903, %v8613_v18  }
 0x860   : > { %3577 = vrot.lane.b32.xlu0 %v3533_v52, %s6164_s5  ;;  %v8713_v23 = vpop.permute.xlu0 %3638 }
 0x862   : > { %v8715_v42 = vpop.permute.xlu1 %3670 }
 0x863   : > { %5904 = vset.pattern.permute.xlu1 %v10443_v37 }
 0x864   : > { %4298 = vperm.xlu1 %5904, %v8569_v56   ;;  %v8719_v4 = vpop.permute.xlu0 %3626 }
 0x867   : > { %v8721_v13 = vpop.permute.xlu1 %3998 }
 0x868   : > { %5905 = vset.pattern.permute.xlu1 %v10430_v12 }
 0x869   : > { %3802 = vperm.xlu1 %5905, %v8498_v17   ;;  %v8725_v47 = vpop.permute.xlu0 %4154 }
 0x86c   : > { %v8727_v38 = vpop.permute.xlu1 %3666 }
 0x86d   : > { %5906 = vset.pattern.permute.xlu1 %v10433_v20  ;;  %v8730_v52 = vpop.permute.xlu0 %4142 }
 0x86e   : > { %3966 = vperm.xlu1 %5906, %v8675_v33  }
 0x871   : > { %v3831_v30 = vpop.permute.xlu1 %3830  ;;  %v8733_v56 = vpop.permute.xlu0 %4130 }
 0x872   : > { %10452 = vst [vmem:[#allocation267_spill] sm:$0xff] %v8733_v56  ;;  %5907 = vset.pattern.permute.xlu1 %v10443_v37 }
 0x873   : > { %4294 = vperm.xlu1 %5907, %v8613_v18  }
 0x875   : > { %v8737_v8 = vpop.permute.xlu0 %4118 }
 0x876   : > { %10453 = vst [vmem:[#allocation268_spill] sm:$0xff] %v8737_v8  ;;  %v4159_v0 = vpop.permute.xlu1 %4158 }
 0x877   : > { %5908 = vset.pattern.permute.xlu1 %v10429_v7 }
 0x878   : > { %3634 = vperm.xlu1 %5908, %v8491_v21  }
 0x87a   : > { %v8741_v29 = vpop.permute.xlu0 %3994 }
 0x87b   : > { %v8743_v59 = vpop.permute.xlu1 %3498 }
 0x87c   : > { %5909 = vset.pattern.permute.xlu1 %v10433_v20 }
 0x87d   : > { %3962 = vperm.xlu1 %5909, %v8498_v17  }
 0x87e   : > { %v8747_v32 = vpop.permute.xlu0 %3982 }
 0x880   : > { %v8749_v1 = vpop.permute.xlu1 %3826 }
 0x881   : > { %5910 = vset.pattern.permute.xlu1 %v10436_v53 }
 0x882   : > { %4126 = vperm.xlu1 %5910, %v8675_v33   ;;  %v8753_v18 = vpop.permute.xlu0 %3970 }
 0x885   : > { %v3991_v8 = vpop.permute.xlu1 %3990 }
 0x886   : > { %5911 = vset.pattern.permute.xlu1 %v10429_v7  ;;  %v8756_v19 = vpop.permute.xlu0 %3958 }
 0x887   : > { %3630 = vperm.xlu1 %5911, %v8663_v11  }
 0x88a   : > { %v4319_v61 = vpop.permute.xlu1 %4318  ;;  %v8759_v36 = vpop.permute.xlu0 %3946 }
 0x88b   : > { %10454 = vst [vmem:[#allocation269_spill] sm:$0xff] %v8759_v36  ;;  %5912 = vset.pattern.permute.xlu1 %v10430_v12 }
 0x88c   : > { %3794 = vperm.xlu1 %5912, %v8491_v21  }
 0x88f   : > { %v3659_v2 = vpop.permute.xlu1 %3658  ;;  %v8763_v22 = vpop.permute.xlu0 %3838 }
 0x890   : > { %5913 = vset.pattern.permute.xlu1 %v10436_v53 }
 0x891   : > { %4122 = vperm.xlu1 %5913, %v8498_v17  }
 0x893   : > { %v3835_v56 = vpop.permute.xlu0 %3834 }
 0x894   : > { %v3855_v62 = vmul.f32 %v3835_v56, %v7608_v48  ;;  %v3987_v55 = vpop.permute.xlu1 %3986  ;;  %v3854_v56 = vmul.f32 %v7512_v10, %v3831_v30  ;;  %v3692_v30 = vmul.f32 %v7438_v24, %v8701_v41  ;;  %v4336_v41 = vmul.f32 %v7576_v60, %v4319_v61 }
 0x895   : > { %5914 = vset.pattern.permute.xlu1 %v10443_v37  ;;  %v4013_v61 = vmul.f32 %v3987_v55, %v7544_v16  ;;  %v4012_v55 = vmul.f32 %v7438_v24, %v8747_v32 }
 0x896   : > { %4286 = vperm.xlu1 %5914, %v8675_v33   ;;  %3901 = vrot.lane.b32.xlu0 %v3855_v62, %s6166_s7  ;;  %v4176_v62 = vmul.f32 %v7576_v60, %v4159_v0  ;;  %v4014_v0 = vmul.f32 %v7512_v10, %v3991_v8 }
 0x897   : > { %v8771_v36 = vpop.permute.xlu0 %3822 }
 0x899   : > { %v8775_v31 = vpop.permute.xlu1 %4150 }
 0x89a   : > { %5916 = vset.pattern.permute.xlu1 %v10430_v12  ;;  %3575 = vrot.lane.b32.xlu0 %v3532_v54, %s6164_s5 }
 0x89b   : > { %3790 = vperm.xlu1 %5916, %v8663_v11   ;;  %v8781_v57 = vpop.permute.xlu0 %3810 }
 0x89e   : > { %v3655_v33 = vpop.permute.xlu1 %3654  ;;  %3899 = vrot.lane.b32.xlu0 %v3854_v56, %s6166_s7 }
 0x89f   : > { %5917 = vset.pattern.permute.xlu1 %v10433_v20  ;;  %v8788_v35 = vpop.permute.xlu0 %3798 }
 0x8a0   : > { %3954 = vperm.xlu1 %5917, %v8491_v21  }
 0x8a2   : > { %4223 = vrot.lane.b32.xlu0 %v4176_v62, %s6167_s8 }
 0x8a3   : > { %v8790_v54 = vpop.permute.xlu1 %3818  ;;  %v8800_v43 = vpop.permute.xlu0 %3786 }
 0x8a4   : > { %5919 = vset.pattern.permute.xlu1 %v10443_v37  ;;  %10455 = vst [vmem:[#allocation270_spill] sm:$0xff] %v8800_v43 }
 0x8a5   : > { %4282 = vperm.xlu1 %5919, %v8498_v17   ;;  %v3691_v17 = vmul.f32 %v3659_v2, %v7470_v6  ;;  %v3690_v2 = vmul.f32 %v7365_v27, %v3655_v33 }
 0x8a6   : > { %3735 = vrot.lane.b32.xlu0 %v3692_v30, %s6165_s6 }
 0x8a7   : > { %v8808_v8 = vpop.permute.xlu0 %3778 }
 0x8a8   : > { %v8798_v56 = vpop.permute.xlu1 %4146 }
 0x8a9   : > { %5920 = vset.pattern.permute.xlu1 %v10429_v7 }
 0x8aa   : > { %3622 = vperm.xlu1 %5920, %v8477_v14   ;;  %4059 = vrot.lane.b32.xlu0 %v4014_v0, %s6168_s14 }
 0x8ac   : > { %v4315_v0 = vpop.permute.xlu0 %4314 }
 0x8ad   : > { %v4311_v62 = vpop.permute.xlu1 %4310  ;;  %v4335_v43 = vmul.f32 %v4315_v0, %v7608_v48 }
 0x8ae   : > { %5921 = vset.pattern.permute.xlu1 %v10433_v20  ;;  %4383 = vrot.lane.b32.xlu0 %v4336_v41, %s6169_s16 }
 0x8af   : > { %3950 = vperm.xlu1 %5921, %v8663_v11  }
 0x8b2   : > { %v8812_v30 = vpop.permute.xlu1 %3814  ;;  %3733 = vrot.lane.b32.xlu0 %v3691_v17, %s6165_s6 }
 0x8b3   : > { %5922 = vset.pattern.permute.xlu1 %v10436_v53 }
 0x8b4   : > { %4114 = vperm.xlu1 %5922, %v8491_v21  }
 0x8b6   : > { %4057 = vrot.lane.b32.xlu0 %v4013_v61, %s6168_s14 }
 0x8b7   : > { %v3979_v41 = vpop.permute.xlu1 %3978 }
 0x8b8   : > { %5923 = vset.pattern.permute.xlu1 %v10429_v7  ;;  %v4011_v33 = vmul.f32 %v3979_v41, %v7470_v6  ;;  %v4303_v41 = vpop.permute.xlu0 %4302 }
 0x8b9   : > { %3618 = vperm.xlu1 %5923, %v8471_v9  }
 0x8ba   : > { %4381 = vrot.lane.b32.xlu0 %v4335_v43, %s6169_s16  ;;  %v4334_v43 = vmul.f32 %v7512_v10, %v4311_v62 }
 0x8bc   : > { %v4307_v17 = vpop.permute.xlu1 %4306 }
 0x8bd   : > { %5924 = vset.pattern.permute.xlu1 %v10430_v12  ;;  %v3689_v12 = vmul.f32 %v8707_v25, %v7397_v51 }
 0x8be   : > { %3782 = vperm.xlu1 %5924, %v8477_v14   ;;  %3731 = vrot.lane.b32.xlu0 %v3690_v2, %s6165_s6 }
 0x8c1   : > { %v3647_v61 = vpop.permute.xlu1 %3646 }
 0x8c2   : > { %5926 = vset.pattern.permute.xlu1 %v10436_v53  ;;  %4055 = vrot.lane.b32.xlu0 %v4012_v55, %s6168_s14  ;;  %v4009_v55 = vmul.f32 %v8753_v18, %v7397_v51  ;;  %v3534_v18 = vmul.f32 %v7512_v10, %v8690_v3  ;;  %v3694_v3 = vmul.f32 %v7512_v10, %v8715_v42 }
 0x8c3   : > { %4110 = vperm.xlu1 %5926, %v8663_v11   ;;  %v4333_v11 = vmul.f32 %v4307_v17, %v7544_v16  ;;  %v3693_v42 = vmul.f32 %v8727_v38, %v7544_v16  ;;  %v3531_v38 = vmul.f32 %v8743_v59, %v7470_v6  ;;  %v4175_v59 = vmul.f32 %v8725_v47, %v7608_v48 }
 0x8c4   : > { %v3683_v47 = vmul.f32 %v8719_v4, %v7243_v5  ;;  %v3851_v4 = vmul.f32 %v8790_v54, %v7470_v6  ;;  %v3528_v54 = vmul.f32 %v7311_v34, %v8668_v49 }
 0x8c6   : > { %v3975_v7 = vpop.permute.xlu1 %3974  ;;  %4379 = vrot.lane.b32.xlu0 %v4334_v43, %s6169_s16 }
 0x8c7   : > { %5927 = vset.pattern.permute.xlu1 %v10443_v37  ;;  %v4010_v0 = vmul.f32 %v7365_v27, %v3975_v7  ;;  %v4291_v7 = vpop.permute.xlu0 %4290 }
 0x8c8   : > { %4274 = vperm.xlu1 %5927, %v8491_v21   ;;  %v3688_v21 = vmul.f32 %v7311_v34, %v3647_v61 }
 0x8ca   : > { %3729 = vrot.lane.b32.xlu0 %v3689_v12, %s6165_s6 }
 0x8cb   : > { %v8839_v32 = vpop.permute.xlu1 %4138 }
 0x8cc   : > { %5929 = vset.pattern.permute.xlu1 %v10433_v20 }
 0x8cd   : > { %3942 = vperm.xlu1 %5929, %v8477_v14  }
 0x8ce   : > { %4053 = vrot.lane.b32.xlu0 %v4011_v33, %s6168_s14  ;;  %v8888_v33 = vpop.permute.xlu0 %4278 }
 0x8cf   : > { %v4326_v49 = vmul.f32 %v7267_v44, %v8888_v33 }
 0x8d0   : > { %v3643_v62 = vpop.permute.xlu1 %3642 }
 0x8d1   : > { %5930 = vset.pattern.permute.xlu1 %v10436_v53  ;;  %v3687_v17 = vmul.f32 %v3643_v62, %v7331_v15 }
 0x8d2   : > { %4106 = vperm.xlu1 %5930, %v8484_v26   ;;  %4377 = vrot.lane.b32.xlu0 %v4333_v11, %s6169_s16  ;;  %v4332_v26 = vmul.f32 %v7438_v24, %v4303_v41  ;;  %v8898_v62 = vpop.permute.xlu0 %4270 }
 0x8d5   : > { %v8850_v25 = vpop.permute.xlu1 %3806 }
 0x8d6   : > { %5931 = vset.pattern.permute.xlu1 %v10433_v20  ;;  %3727 = vrot.lane.b32.xlu0 %v3688_v21, %s6165_s6 }
 0x8d7   : > { %3938 = vperm.xlu1 %5931, %v8471_v9  }
 0x8da   : > { %v8856_v2 = vpop.permute.xlu1 %4134  ;;  %4051 = vrot.lane.b32.xlu0 %v4010_v0, %s6168_s14 }
 0x8db   : > { %5932 = vset.pattern.permute.xlu1 %v10436_v53 }
 0x8dc   : > { %4102 = vperm.xlu1 %5932, %v8477_v14   ;;  %v3535_v14 = vmul.f32 %v8687_v28, %v7608_v48  ;;  %v3856_v28 = vmul.f32 %v7576_v60, %v8763_v22  ;;  %v4016_v22 = vmul.f32 %v7576_v60, %v8721_v13  ;;  %v4015_v13 = vmul.f32 %v8741_v29, %v7608_v48 }
 0x8dd   : > { %v3853_v29 = vmul.f32 %v8749_v1, %v7544_v16  ;;  %v3530_v1 = vmul.f32 %v7365_v27, %v8680_v40 }
 0x8de   : > { %4375 = vrot.lane.b32.xlu0 %v4332_v26, %s6169_s16 }
 0x8df   : > { %v4299_v20 = vpop.permute.xlu1 %4298 }
 0x8e0   : > { %4098 = vperm.xlu1 %5932, %v8471_v9   ;;  %v4331_v53 = vmul.f32 %v4299_v20, %v7470_v6  ;;  %v8909_v20 = vpop.permute.xlu0 %4266 }
 0x8e2   : > { %3725 = vrot.lane.b32.xlu0 %v3687_v17, %s6165_s6  ;;  %v4329_v17 = vmul.f32 %v4291_v7, %v7397_v51 }
 0x8e4   : > { %5933 = vset.pattern.permute.xlu1 %v10443_v37  ;;  %v8869_v61 = vpop.permute.xlu1 %3802  ;;  %v3686_v37 = vmul.f32 %v7267_v44, %v8713_v23 }
 0x8e5   : > { %4258 = vperm.xlu1 %5933, %v8471_v9  }
 0x8e6   : > { %4049 = vrot.lane.b32.xlu0 %v4009_v55, %s6168_s14 }
 0x8e9   : > { %v3967_v43 = vpop.permute.xlu1 %3966  ;;  %3581 = vrot.lane.b32.xlu1 %v3535_v14, %s6164_s5 }
 0x8ea   : > { %4373 = vrot.lane.b32.xlu0 %v4331_v53, %s6169_s16  ;;  %v4008_v12 = vmul.f32 %v7311_v34, %v3967_v43  ;;  %v8920_v53 = vpop.permute.xlu0 %4262 }
 0x8ed   : > { %3579 = vrot.lane.b32.xlu1 %v3534_v18, %s6164_s5  ;;  %v4006_v18 = vmul.f32 %v7267_v44, %v8756_v19 }
 0x8ee   : > { %v4295_v9 = vpop.permute.xlu1 %4294  ;;  %3723 = vrot.lane.b32.xlu0 %v3686_v37, %s6165_s6  ;;  %v8931_v37 = vpop.permute.xlu0 %3583 }
 0x8ef   : > { %v4330_v11 = vmul.f32 %v7365_v27, %v4295_v9 }
 0x8f1   : > { %3903 = vrot.lane.b32.xlu1 %v3856_v28, %s6166_s7 }
 0x8f2   : > { %4047 = vrot.lane.b32.xlu0 %v4008_v12, %s6168_s14  ;;  %v8941_v9 = vpop.permute.xlu0 %3743  ;;  %v3852_v12 = vmul.f32 %v7438_v24, %v8771_v36  ;;  %v3529_v36 = vmul.f32 %v8685_v45, %v7397_v51  ;;  %v4173_v45 = vmul.f32 %v8798_v56, %v7544_v16  ;;  %v3850_v56 = vmul.f32 %v7365_v27, %v8812_v30 }
 0x8f3   : > { %v3635_v23 = vpop.permute.xlu1 %3634 }
 0x8f4   : > { %v3685_v21 = vmul.f32 %v3635_v23, %v7287_v63  ;;  %v4174_v23 = vmul.f32 %v7512_v10, %v8775_v31 }
 0x8f5   : > { %3739 = vrot.lane.b32.xlu1 %v3694_v3, %s6165_s6 }
 0x8f6   : > { %4371 = vrot.lane.b32.xlu0 %v4330_v11, %s6169_s16  ;;  %v8951_v3 = vpop.permute.xlu0 %3741 }
 0x8f8   : > { %v3963_v0 = vpop.permute.xlu1 %3962 }
 0x8f9   : > { %4063 = vrot.lane.b32.xlu1 %v4016_v22, %s6168_s14  ;;  %v4007_v41 = vmul.f32 %v3963_v0, %v7331_v15 }
 0x8fa   : > { %3721 = vrot.lane.b32.xlu0 %v3685_v21, %s6165_s6  ;;  %v8961_v22 = vpop.permute.xlu0 %3577 }
 0x8fd   : > { %v8906_v26 = vpop.permute.xlu1 %4126  ;;  %3737 = vrot.lane.b32.xlu1 %v3693_v42, %s6165_s6 }
 0x8fe   : > { %4045 = vrot.lane.b32.xlu0 %v4007_v41, %s6168_s14 }
 0x901   : > { %4061 = vrot.lane.b32.xlu1 %v4015_v13, %s6168_s14 }
 0x902   : > { %v3631_v55 = vpop.permute.xlu1 %3630  ;;  %4369 = vrot.lane.b32.xlu0 %v4329_v17, %s6169_s16 }
 0x903   : > { %v3684_v14 = vmul.f32 %v7223_v58, %v3631_v55 }
 0x905   : > { %3573 = vrot.lane.b32.xlu1 %v3531_v38, %s6164_s5 }
 0x906   : > { %3719 = vrot.lane.b32.xlu0 %v3684_v14, %s6165_s6 }
 0x907   : > { %v8926_v43 = vpop.permute.xlu1 %3794 }
 0x908   : > { %v8968_v31 = vpop.permute.xlu0 %3901 }
 0x909   : > { %3897 = vrot.lane.b32.xlu1 %v3853_v29, %s6166_s7  ;;  %v4172_v29 = vmul.f32 %v7438_v24, %v8730_v52  ;;  %v3849_v52 = vmul.f32 %v8781_v57, %v7397_v51  ;;  %v3526_v57 = vmul.f32 %v7267_v44, %v8656_v46  ;;  %v10458_v46 = vld [vmem:[#allocation119_spill] sm:$0xff] }
 0x90a   : > { %4043 = vrot.lane.b32.xlu0 %v4006_v18, %s6168_s14 }
 0x90c   : > { %v8936_v7 = vpop.permute.xlu1 %4122  ;;  %v8976_v13 = vpop.permute.xlu0 %3575 }
 0x90d   : > { %4221 = vrot.lane.b32.xlu1 %v4175_v59, %s6167_s8  ;;  %v3527_v59 = vmul.f32 %v8678_v50, %v7331_v15 }
 0x910   : > { %v8986_v14 = vpop.permute.xlu0 %3899 }
 0x911   : > { %v4287_v28 = vpop.permute.xlu1 %4286  ;;  %3571 = vrot.lane.b32.xlu1 %v3530_v1, %s6164_s5 }
 0x912   : > { %v4328_v19 = vmul.f32 %v7311_v34, %v4287_v28 }
 0x914   : > { %4367 = vrot.lane.b32.xlu0 %v4328_v19, %s6169_s16  ;;  %v8998_v30 = vpop.permute.xlu0 %4223 }
 0x915   : > { %3895 = vrot.lane.b32.xlu1 %v3852_v12, %s6166_s7  ;;  %v4171_v12 = vmul.f32 %v8839_v32, %v7470_v6  ;;  %v3848_v32 = vmul.f32 %v7311_v34, %v8850_v25 }
 0x916   : > { %v8953_v40 = vpop.permute.xlu1 %3790 }
 0x918   : > { %3717 = vrot.lane.b32.xlu0 %v3683_v47, %s6165_s6  ;;  %v9007_v28 = vpop.permute.xlu0 %3735 }
 0x919   : > { %4219 = vrot.lane.b32.xlu1 %v4174_v23, %s6167_s8 }
 0x91b   : > { %v3955_v11 = vpop.permute.xlu1 %3954 }
 0x91c   : > { %v4005_v21 = vmul.f32 %v3955_v11, %v7287_v63  ;;  %v9015_v50 = vpop.permute.xlu0 %4059 }
 0x91d   : > { %3569 = vrot.lane.b32.xlu1 %v3529_v36, %s6164_s5  ;;  %v10456_v36 = vld [vmem:[#allocation71_spill] sm:$0xff] }
 0x91e   : > { %4041 = vrot.lane.b32.xlu0 %v4005_v21, %s6168_s14  ;;  %v3841_v11 = vmul.f32 %v8808_v8, %v10456_v36 }
 0x920   : > { %v4283_v0 = vpop.permute.xlu1 %4282 }
 0x921   : > { %v4327_v42 = vmul.f32 %v4283_v0, %v7331_v15  ;;  %3893 = vrot.lane.b32.xlu1 %v3851_v4, %s6166_s7  ;;  %v9028_v4 = vpop.permute.xlu0 %4383  ;;  %v10457_v0 = vld [vmem:[#allocation20_spill] sm:$0xff] }
 0x923   : > { %4365 = vrot.lane.b32.xlu0 %v4327_v42, %s6169_s16  ;;  %v1040_v42 = vmul.f32 %v7576_v60, %v10457_v0 }
 0x925   : > { %v3623_v41 = vpop.permute.xlu1 %3622  ;;  %4217 = vrot.lane.b32.xlu1 %v4173_v45, %s6167_s8  ;;  %v1216_v45 = vadd.f32 %v10458_v46, %v1040_v42  ;;  %v9040_v25 = vpop.permute.xlu0 %3733  ;;  %v10466_v42 = vld [vmem:[#allocation123_spill] sm:$0xff] }
 0x926   : > { %v3682_v17 = vmul.f32 %v7175_v39, %v3623_v41  ;;  %v4170_v41 = vmul.f32 %v7365_v27, %v8856_v2  ;;  %v3847_v2 = vmul.f32 %v8869_v61, %v7331_v15 }
 0x928   : > { %3715 = vrot.lane.b32.xlu0 %v3682_v17, %s6165_s6  ;;  %v10459_v17 = vld [vmem:[#allocation118_spill] sm:$0xff] }
 0x929   : > { %3567 = vrot.lane.b32.xlu1 %v3528_v54, %s6164_s5  ;;  %v1376_v54 = vadd.f32 %v10459_v17, %v1216_v45  ;;  %v10467_v45 = vld [vmem:[#allocation264_spill] sm:$0xff] }
 0x92a   : > { %v3951_v55 = vpop.permute.xlu1 %3950 }
 0x92b   : > { %v4004_v38 = vmul.f32 %v7223_v58, %v3951_v55  ;;  %v10460_v55 = vld [vmem:[#allocation266_spill] sm:$0xff] }
 0x92c   : > { %v3525_v60 = vmul.f32 %v10460_v55, %v7287_v63 }
 0x92d   : > { %3891 = vrot.lane.b32.xlu1 %v3850_v56, %s6166_s7  ;;  %4039 = vrot.lane.b32.xlu0 %v4004_v38, %s6168_s14 }
 0x92f   : > { %v8994_v18 = vpop.permute.xlu1 %4114 }
 0x931   : > { %4215 = vrot.lane.b32.xlu1 %v4172_v29, %s6167_s8  ;;  %4363 = vrot.lane.b32.xlu0 %v4326_v49, %s6169_s16  ;;  %v10461_v29 = vld [vmem:[#allocation121_spill] sm:$0xff] }
 0x932   : > { %v1536_v49 = vadd.f32 %v10461_v29, %v1376_v54  ;;  %v10468_v54 = vld [vmem:[#allocation124_spill] sm:$0xff]  ;;  %v4322_v29 = vmul.f32 %v7175_v39, %v8920_v53  ;;  %v4168_v53 = vmul.f32 %v7311_v34, %v8906_v26  ;;  %v10479_v26 = vld [vmem:[#allocation106_spill] sm:$0xff] }
 0x934   : > { %v9002_v1 = vpop.permute.xlu1 %3618 }
 0x935   : > { %3565 = vrot.lane.b32.xlu1 %v3527_v59, %s6164_s5  ;;  %v9050_v59 = vpop.permute.xlu0 %4057 }
 0x939   : > { %v3783_v33 = vpop.permute.xlu1 %3782  ;;  %3889 = vrot.lane.b32.xlu1 %v3849_v52, %s6166_s7  ;;  %v9063_v61 = vpop.permute.xlu0 %4381 }
 0x93a   : > { %v3842_v19 = vmul.f32 %v7175_v39, %v3783_v33  ;;  %v10462_v33 = vld [vmem:[#allocation120_spill] sm:$0xff] }
 0x93c   : > { %3875 = vrot.lane.b32.xlu0 %v3842_v19, %s6166_s7  ;;  %v1696_v19 = vadd.f32 %v10462_v33, %v1536_v49  ;;  %v10471_v33 = vld [vmem:[#allocation132_spill] sm:$0xff] }
 0x93d   : > { %4213 = vrot.lane.b32.xlu1 %v4171_v12, %s6167_s8  ;;  %v10463_v12 = vld [vmem:[#allocation18_spill] sm:$0xff] }
 0x93e   : > { %v4111_v47 = vpop.permute.xlu1 %4110  ;;  %v1856_v46 = vadd.f32 %v10466_v42, %v1696_v19 }
 0x93f   : > { %v4164_v23 = vmul.f32 %v7223_v58, %v4111_v47  ;;  %v1039_v47 = vmul.f32 %v10463_v12, %v7608_v48  ;;  %v4323_v48 = vmul.f32 %v8909_v20, %v7243_v5  ;;  %v10470_v20 = vld [vmem:[#allocation127_spill] sm:$0xff] }
 0x940   : > { %v10472_v12 = vld [vmem:[#allocation19_spill] sm:$0xff] }
 0x941   : > { %3563 = vrot.lane.b32.xlu1 %v3526_v57, %s6164_s5  ;;  %4199 = vrot.lane.b32.xlu0 %v4164_v23, %s6167_s8  ;;  %v10464_v57 = vld [vmem:[#allocation267_spill] sm:$0xff] }
 0x942   : > { %v4169_v23 = vmul.f32 %v10464_v57, %v7397_v51  ;;  %v10473_v57 = vld [vmem:[#allocation149_spill] sm:$0xff] }
 0x943   : > { %v9026_v21 = vpop.permute.xlu1 %4274 }
 0x945   : > { %3887 = vrot.lane.b32.xlu1 %v3848_v32, %s6166_s7  ;;  %3873 = vrot.lane.b32.xlu0 %v3841_v11, %s6166_s7  ;;  %v10465_v32 = vld [vmem:[#allocation125_spill] sm:$0xff] }
 0x946   : > { %v1215_v0 = vadd.f32 %v10465_v32, %v1039_v47  ;;  %v1038_v47 = vmul.f32 %v7512_v10, %v10472_v12  ;;  %v10478_v10 = vld [vmem:[#allocation265_spill] sm:$0xff]  ;;  %v3845_v12 = vmul.f32 %v8926_v43, %v7287_v63  ;;  %v10488_v43 = vld [vmem:[#allocation16_spill] sm:$0xff] }
 0x948   : > { %v9037_v8 = vpop.permute.xlu1 %3942  ;;  %v1375_v55 = vadd.f32 %v10468_v54, %v1215_v0  ;;  %v10475_v0 = vld [vmem:[#allocation126_spill] sm:$0xff] }
 0x949   : > { %4211 = vrot.lane.b32.xlu1 %v4170_v41, %s6167_s8  ;;  %v3524_v41 = vmul.f32 %v7223_v58, %v10467_v45 }
 0x94d   : > { %v4107_v56 = vpop.permute.xlu1 %4106  ;;  %3561 = vrot.lane.b32.xlu1 %v3525_v60, %s6164_s5  ;;  %v10469_v60 = vld [vmem:[#allocation122_spill] sm:$0xff] }
 0x94e   : > { %v4163_v38 = vmul.f32 %v4107_v56, %v7243_v5  ;;  %v2016_v56 = vadd.f32 %v10469_v60, %v1856_v46  ;;  %v10476_v46 = vld [vmem:[#allocation165_spill] sm:$0xff] }
 0x950   : > { %4197 = vrot.lane.b32.xlu0 %v4163_v38, %s6167_s8  ;;  %v3846_v38 = vmul.f32 %v7267_v44, %v8788_v35  ;;  %v2176_v19 = vadd.f32 %v10471_v33, %v2016_v56 }
 0x951   : > { %3885 = vrot.lane.b32.xlu1 %v3847_v2, %s6166_s7  ;;  %v9082_v2 = vpop.permute.xlu0 %3731 }
 0x952   : > { %v3939_v52 = vpop.permute.xlu1 %3938  ;;  %v2336_v35 = vadd.f32 %v10473_v57, %v2176_v19 }
 0x953   : > { %v4001_v11 = vmul.f32 %v3939_v52, %v10456_v36  ;;  %v1535_v52 = vadd.f32 %v10470_v20, %v1375_v55  ;;  %v3523_v55 = vmul.f32 %v10478_v10, %v7243_v5  ;;  %v10481_v20 = vld [vmem:[#allocation197_spill] sm:$0xff]  ;;  %v4167_v10 = vmul.f32 %v8936_v7, %v7331_v15 }
 0x954   : > { %v2496_v45 = vadd.f32 %v10476_v46, %v2336_v35  ;;  %v10483_v35 = vld [vmem:[#allocation109_spill] sm:$0xff] }
 0x955   : > { %4209 = vrot.lane.b32.xlu1 %v4169_v23, %s6167_s8  ;;  %4033 = vrot.lane.b32.xlu0 %v4001_v11, %s6168_s14  ;;  %v10474_v11 = vld [vmem:[#allocation107_spill] sm:$0xff]  ;;  %v1695_v42 = vadd.f32 %v10475_v0, %v1535_v52  ;;  %v10482_v52 = vld [vmem:[#allocation213_spill] sm:$0xff] }
 0x956   : > { %v1214_v32 = vadd.f32 %v10474_v11, %v1038_v47  ;;  %v10484_v11 = vld [vmem:[#allocation128_spill] sm:$0xff] }
 0x957   : > { %v9070_v17 = vpop.permute.xlu1 %4102 }
 0x958   : > { %v1374_v56 = vadd.f32 %v10479_v26, %v1214_v32  ;;  %v10485_v32 = vld [vmem:[#allocation229_spill] sm:$0xff] }
 0x959   : > { %3559 = vrot.lane.b32.xlu1 %v3524_v41, %s6164_s5  ;;  %4357 = vrot.lane.b32.xlu0 %v4323_v48, %s6169_s16  ;;  %v9099_v41 = vpop.permute.xlu0 %4055  ;;  %v10477_v48 = vld [vmem:[#allocation181_spill] sm:$0xff] }
 0x95a   : > { %v2656_v54 = vadd.f32 %v10477_v48, %v2496_v45  ;;  %v10487_v48 = vld [vmem:[#allocation245_spill] sm:$0xff] }
 0x95b   : > { %v9080_v49 = vpop.permute.xlu1 %4098 }
 0x95c   : > { %v2816_v33 = vadd.f32 %v10481_v20, %v2656_v54 }
 0x95d   : > { %3883 = vrot.lane.b32.xlu1 %v3846_v38, %s6166_s7  ;;  %4355 = vrot.lane.b32.xlu0 %v4322_v29, %s6169_s16  ;;  %v10480_v38 = vld [vmem:[#allocation129_spill] sm:$0xff]  ;;  %v9113_v47 = vpop.permute.xlu0 %4379 }
 0x95e   : > { %v1855_v29 = vadd.f32 %v10480_v38, %v1695_v42  ;;  %v2976_v19 = vadd.f32 %v10482_v52, %v2816_v33  ;;  %v10486_v42 = vld [vmem:[#allocation133_spill] sm:$0xff]  ;;  %v10489_v38 = vld [vmem:[#allocation108_spill] sm:$0xff] }
 0x960   : > { %v9093_v23 = vpop.permute.xlu1 %4258  ;;  %v2015_v0 = vadd.f32 %v10484_v11, %v1855_v29  ;;  %v3136_v46 = vadd.f32 %v10485_v32, %v2976_v19  ;;  %v10491_v29 = vld [vmem:[#allocation261_spill] sm:$0xff]  ;;  %v10493_v11 = vld [vmem:[#allocation164_spill] sm:$0xff]  ;;  %v10494_v32 = vld [vmem:[#allocation263_spill] sm:$0xff] }
 0x961   : > { %4207 = vrot.lane.b32.xlu1 %v4168_v53, %s6167_s8  ;;  %v1534_v53 = vadd.f32 %v10483_v35, %v1374_v56  ;;  %v10490_v56 = vld [vmem:[#allocation148_spill] sm:$0xff]  ;;  %v10492_v19 = vld [vmem:[#allocation113_spill] sm:$0xff]  ;;  %v9132_v35 = vpop.permute.xlu0 %3729  ;;  %v3522_v7 = vmul.f32 %v7175_v39, %v10494_v32 }
 0x962   : > { %v2175_v45 = vadd.f32 %v10486_v42, %v2015_v0  ;;  %v3296_v54 = vadd.f32 %v10487_v48, %v3136_v46 }
 0x963   : > { %v1694_v20 = vadd.f32 %v10489_v38, %v1534_v53  ;;  %v10495_v53 = vld [vmem:[#allocation111_spill] sm:$0xff] }
 0x964   : > { %v9104_v60 = vpop.permute.xlu1 %3581  ;;  %v2335_v33 = vadd.f32 %v10490_v56, %v2175_v45  ;;  %v3456_v52 = vadd.f32 %v10491_v29, %v3296_v54  ;;  %v10496_v45 = vld [vmem:[#allocation180_spill] sm:$0xff]  ;;  %v3844_v56 = vmul.f32 %v7223_v58, %v8953_v40 }
 0x965   : > { %3557 = vrot.lane.b32.xlu1 %v3523_v55, %s6164_s5  ;;  %v1037_v55 = vmul.f32 %v10488_v43, %v7544_v16  ;;  %v1854_v42 = vadd.f32 %v10495_v53, %v1694_v20  ;;  %v9148_v29 = vpop.permute.xlu0 %4053  ;;  %v10500_v20 = vld [vmem:[#allocation212_spill] sm:$0xff] }
 0x966   : > { %v2495_v0 = vadd.f32 %v10493_v11, %v2335_v33  ;;  %v3616_v16 = vadd.f32 %v8931_v37, %v3456_v52  ;;  %v10499_v52 = vld [vmem:[#allocation110_spill] sm:$0xff] }
 0x968   : > { %v9115_v57 = vpop.permute.xlu1 %3579  ;;  %v2655_v48 = vadd.f32 %v10496_v45, %v2495_v0  ;;  %v3776_v54 = vadd.f32 %v8941_v9, %v3616_v16  ;;  %v10501_v9 = vld [vmem:[#allocation17_spill] sm:$0xff]  ;;  %v10503_v16 = vld [vmem:[#allocation130_spill] sm:$0xff]  ;;  %v10504_v45 = vld [vmem:[#allocation228_spill] sm:$0xff] }
 0x969   : > { %3881 = vrot.lane.b32.xlu1 %v3845_v12, %s6166_s7  ;;  %v1213_v12 = vadd.f32 %v10492_v19, %v1037_v55  ;;  %v10498_v55 = vld [vmem:[#allocation196_spill] sm:$0xff]  ;;  %v2014_v19 = vadd.f32 %v10499_v52, %v1854_v42  ;;  %v1036_v32 = vmul.f32 %v7438_v24, %v10501_v9  ;;  %v10509_v52 = vld [vmem:[#allocation114_spill] sm:$0xff] }
 0x96a   : > { %v2815_v38 = vadd.f32 %v10498_v55, %v2655_v48  ;;  %v10511_v9 = vld [vmem:[#allocation260_spill] sm:$0xff] }
 0x96b   : > { %v2174_v53 = vadd.f32 %v10503_v16, %v2014_v19  ;;  %v10513_v16 = vld [vmem:[#allocation40_spill] sm:$0xff] }
 0x96c   : > { %v3904_v26 = vpop.permute.xlu1 %3903  ;;  %v2975_v11 = vadd.f32 %v10500_v20, %v2815_v38  ;;  %v10507_v38 = vld [vmem:[#allocation147_spill] sm:$0xff] }
 0x96d   : > { %4205 = vrot.lane.b32.xlu1 %v4167_v10, %s6167_s8  ;;  %v10497_v10 = vld [vmem:[#allocation112_spill] sm:$0xff]  ;;  %v3936_v33 = vadd.f32 %v3904_v26, %v3776_v54  ;;  %v10510_v20 = vld [vmem:[#allocation163_spill] sm:$0xff] }
 0x96e   : > { %v1373_v43 = vadd.f32 %v10497_v10, %v1213_v12  ;;  %v10502_v12 = vld [vmem:[#allocation115_spill] sm:$0xff]  ;;  %v3135_v40 = vadd.f32 %v10504_v45, %v2975_v11  ;;  %v10505_v26 = vld [vmem:[#allocation268_spill] sm:$0xff]  ;;  %v10506_v10 = vld [vmem:[#allocation54_spill] sm:$0xff] }
 0x96f   : > { %v4166_v48 = vmul.f32 %v7267_v44, %v10505_v26  ;;  %v1212_v55 = vadd.f32 %v10506_v10, %v1036_v32  ;;  %v10514_v45 = vld [vmem:[#allocation179_spill] sm:$0xff]  ;;  %v10515_v26 = vld [vmem:[#allocation117_spill] sm:$0xff]  ;;  %v10517_v10 = vld [vmem:[#allocation270_spill] sm:$0xff] }
 0x970   : > { %v9138_v46 = vpop.permute.xlu1 %3739 }
 0x971   : > { %3555 = vrot.lane.b32.xlu1 %v3522_v7, %s6164_s5  ;;  %v1533_v7 = vadd.f32 %v10502_v12, %v1373_v43  ;;  %v9168_v43 = vpop.permute.xlu0 %4377 }
 0x973   : > { %v1693_v19 = vadd.f32 %v10509_v52, %v1533_v7 }
 0x974   : > { %v4064_v37 = vpop.permute.xlu1 %4063 }
 0x975   : > { %v4096_v0 = vadd.f32 %v4064_v37, %v3936_v33  ;;  %3879 = vrot.lane.b32.xlu1 %v3844_v56, %s6166_s7  ;;  %v2334_v56 = vadd.f32 %v10507_v38, %v2174_v53  ;;  %v10508_v33 = vld [vmem:[#allocation244_spill] sm:$0xff]  ;;  %v1372_v53 = vadd.f32 %v10513_v16, %v1212_v55  ;;  %v1853_v7 = vadd.f32 %v10515_v26, %v1693_v19  ;;  %v10519_v55 = vld [vmem:[#allocation211_spill] sm:$0xff] }
 0x976   : > { %v3295_v37 = vadd.f32 %v10508_v33, %v3135_v40  ;;  %v3843_v38 = vmul.f32 %v10517_v10, %v7243_v5  ;;  %v10523_v16 = vld [vmem:[#allocation99_spill] sm:$0xff] }
 0x977   : > { %v4256_v54 = vadd.f32 %v8998_v30, %v4096_v0  ;;  %v2494_v11 = vadd.f32 %v10510_v20, %v2334_v56  ;;  %v10512_v0 = vld [vmem:[#allocation262_spill] sm:$0xff]  ;;  %v9183_v56 = vpop.permute.xlu0 %3727 }
 0x978   : > { %v9161_v42 = vpop.permute.xlu1 %3737  ;;  %v3455_v30 = vadd.f32 %v10511_v9, %v3295_v37  ;;  %v3521_v12 = vmul.f32 %v10512_v0, %v10456_v36  ;;  %v10518_v37 = vld [vmem:[#allocation95_spill] sm:$0xff] }
 0x979   : > { %4203 = vrot.lane.b32.xlu1 %v4166_v48, %s6167_s8  ;;  %v4416_v24 = vadd.f32 %v9028_v4, %v4256_v54  ;;  %v2654_v40 = vadd.f32 %v10514_v45, %v2494_v11  ;;  %v10516_v48 = vld [vmem:[#allocation195_spill] sm:$0xff]  ;;  %v10521_v11 = vld [vmem:[#allocation116_spill] sm:$0xff] }
 0x97a   : > { %v3615_v4 = vadd.f32 %v9104_v60, %v3455_v30  ;;  %v10520_v60 = vld [vmem:[#allocation14_spill] sm:$0xff]  ;;  %v2013_v9 = vadd.f32 %v10521_v11, %v1853_v7  ;;  %v10522_v30 = vld [vmem:[#allocation227_spill] sm:$0xff]  ;;  %v10530_v11 = vld [vmem:[#allocation97_spill] sm:$0xff] }
 0x97b   : > { %5659 = vmatprep.subr.mxu1 %v4416_v24  ;;  %v2814_v54 = vadd.f32 %v10516_v48, %v2654_v40  ;;  %v1035_v19 = vmul.f32 %v10520_v60, %v7470_v6  ;;  %v10525_v48 = vld [vmem:[#allocation131_spill] sm:$0xff]  ;;  %v10527_v6 = vld [vmem:[#allocation100_spill] sm:$0xff]  ;;  %v3681_v60 = vmul.f32 %v9002_v1, %v10456_v36 }
 0x97c   : > { %v4062_v32 = vpop.permute.xlu1 %4061  ;;  %5660 = vmatpush3.msra.mxu1 %v4416_v24  ;;  %v1532_v24 = vadd.f32 %v10518_v37, %v1372_v53  ;;  %v3775_v20 = vadd.f32 %v8951_v3, %v3615_v4  ;;  %v10524_v53 = vld [vmem:[#allocation94_spill] sm:$0xff]  ;;  %v2173_v3 = vadd.f32 %v10525_v48, %v2013_v9  ;;  %v10526_v4 = vld [vmem:[#allocation243_spill] sm:$0xff]  ;;  %v10534_v48 = vld [vmem:[#allocation269_spill] sm:$0xff] }
 0x97d   : > { %3553 = vrot.lane.b32.xlu1 %v3521_v12, %s6164_s5  ;;  %v2974_v52 = vadd.f32 %v10519_v55, %v2814_v54  ;;  %v4165_v12 = vmul.f32 %v8994_v18, %v7287_v63  ;;  %v1211_v45 = vadd.f32 %v10523_v16, %v1035_v19  ;;  %v10528_v37 = vld [vmem:[#allocation146_spill] sm:$0xff]  ;;  %v10529_v55 = vld [vmem:[#allocation259_spill] sm:$0xff] }
 0x97e   : > { %v1692_v26 = vadd.f32 %v10524_v53, %v1532_v24  ;;  %v3935_v10 = vadd.f32 %v8968_v31, %v3775_v20  ;;  %v2333_v18 = vadd.f32 %v10528_v37, %v2173_v3  ;;  %v4003_v3 = vmul.f32 %v10534_v48, %v7243_v5  ;;  %v10537_v37 = vld [vmem:[#allocation194_spill] sm:$0xff] }
 0x97f   : > { %v3134_v0 = vadd.f32 %v10522_v30, %v2974_v52  ;;  %v1371_v7 = vadd.f32 %v10527_v6, %v1211_v45  ;;  %v10531_v30 = vld [vmem:[#allocation162_spill] sm:$0xff] }
 0x980   : > { %v9185_v33 = vpop.permute.xlu1 %3573  ;;  %v4095_v24 = vadd.f32 %v4062_v32, %v3935_v10  ;;  %v1852_v9 = vadd.f32 %v10530_v11, %v1692_v26  ;;  %v10533_v45 = vld [vmem:[#allocation178_spill] sm:$0xff]  ;;  %v10536_v10 = vld [vmem:[#allocation96_spill] sm:$0xff] }
 0x981   : > { %3877 = vrot.lane.b32.xlu1 %v3843_v38, %s6166_s7  ;;  %v3294_v54 = vadd.f32 %v10526_v4, %v3134_v0  ;;  %v9206_v38 = vpop.permute.xlu0 %4051  ;;  %v2493_v0 = vadd.f32 %v10531_v30, %v2333_v18  ;;  %v10535_v4 = vld [vmem:[#allocation15_spill] sm:$0xff]  ;;  %v10538_v18 = vld [vmem:[#allocation41_spill] sm:$0xff]  ;;  %v10541_v11 = vld [vmem:[#allocation98_spill] sm:$0xff]  ;;  %s135_s7 = sand.u32 1, %s6116_s10  }
 0x982   : > { %v1034_v26 = vmul.f32 %v7365_v27, %v10535_v4  ;;  %v2012_v6 = vadd.f32 %v10536_v10, %v1852_v9  ;;  %v4325_v27 = vmul.f32 %v9026_v21, %v7287_v63  ;;  %v10542_v30 = vld [vmem:[#allocation226_spill] sm:$0xff]  ;;  %v10547_v4 = vld [vmem:[#allocation161_spill] sm:$0xff]  ;;  %s5251_s24 = scalar_lea.sflag [#allocation3], %s135_s7 }
 0x983   : > { %v3454_v52 = vadd.f32 %v10529_v55, %v3294_v54  ;;  %v2653_v53 = vadd.f32 %v10533_v45, %v2493_v0  ;;  %v10548_v10 = vld [vmem:[#allocation258_spill] sm:$0xff] }
 0x984   : > { %v9198_v40 = vpop.permute.xlu1 %3897  ;;  %v1210_v55 = vadd.f32 %v10538_v18, %v1034_v26  ;;  %v2172_v9 = vadd.f32 %v10541_v11, %v2012_v6  ;;  %v10552_v11 = vld [vmem:[#allocation193_spill] sm:$0xff] }
 0x985   : > { %4201 = vrot.lane.b32.xlu1 %v4165_v12, %s6167_s8  ;;  %v3614_v31 = vadd.f32 %v9115_v57, %v3454_v52  ;;  %v10532_v12 = vld [vmem:[#allocation101_spill] sm:$0xff]  ;;  %v9224_v54 = vpop.permute.xlu0 %4375  ;;  %v10539_v52 = vld [vmem:[#allocation102_spill] sm:$0xff] }
 0x986   : > { %v1531_v16 = vadd.f32 %v10532_v12, %v1371_v7  ;;  %v2813_v7 = vadd.f32 %v10537_v37, %v2653_v53  ;;  %v10544_v12 = vld [vmem:[#allocation103_spill] sm:$0xff]  ;;  %v10545_v53 = vld [vmem:[#allocation145_spill] sm:$0xff] }
 0x987   : > { %v3774_v1 = vadd.f32 %v9138_v46, %v3614_v31  ;;  %v10543_v31 = vld [vmem:[#allocation36_spill] sm:$0xff]  ;;  %v2332_v48 = vadd.f32 %v10545_v53, %v2172_v9  ;;  %v4162_v53 = vmul.f32 %v7175_v39, %v9070_v17 }
 0x988   : > { %v4222_v19 = vpop.permute.xlu1 %4221  ;;  %v1691_v46 = vadd.f32 %v10539_v52, %v1531_v16 }
 0x989   : > { %v4255_v20 = vadd.f32 %v4222_v19, %v4095_v24  ;;  %3713 = vrot.lane.b32.xlu1 %v3681_v60, %s6165_s6  ;;  %v3934_v24 = vadd.f32 %v8986_v14, %v3774_v1  ;;  %v9244_v45 = vpop.permute.xlu0 %3725  ;;  %v4002_v14 = vmul.f32 %v7175_v39, %v9037_v8  ;;  %v2492_v26 = vadd.f32 %v10547_v4, %v2332_v48 }
 0x98a   : > { %v1851_v16 = vadd.f32 %v10544_v12, %v1691_v46  ;;  %v10551_v46 = vld [vmem:[#allocation177_spill] sm:$0xff] }
 0x98b   : > { %v4415_v32 = vadd.f32 %v9063_v61, %v4255_v20  ;;  %v10540_v61 = vld [vmem:[#allocation210_spill] sm:$0xff]  ;;  %v1370_v20 = vadd.f32 %v10543_v31, %v1210_v55  ;;  %v4094_v1 = vadd.f32 %v9015_v50, %v3934_v24  ;;  %v10550_v55 = vld [vmem:[#allocation104_spill] sm:$0xff] }
 0x98c   : > { %v9226_v57 = vpop.permute.xlu1 %3571  ;;  %v2973_v60 = vadd.f32 %v10540_v61, %v2813_v7  ;;  %v10549_v7 = vld [vmem:[#allocation44_spill] sm:$0xff]  ;;  %v2011_v52 = vadd.f32 %v10550_v55, %v1851_v16  ;;  %v2652_v61 = vadd.f32 %v10551_v46, %v2492_v26  ;;  %v4161_v55 = vmul.f32 %v9080_v49, %v10456_v36 }
 0x98d   : > { %4037 = vrot.lane.b32.xlu1 %v4003_v3, %s6168_s14  ;;  %5661 = vmatprep.subr.mxu1 %v4415_v32  ;;  %v10546_v3 = vld [vmem:[#allocation242_spill] sm:$0xff]  ;;  %v1530_v18 = vadd.f32 %v10549_v7, %v1370_v20  ;;  %v10554_v20 = vld [vmem:[#allocation12_spill] sm:$0xff]  ;;  %v4321_v49 = vmul.f32 %v9093_v23, %v10456_v36 }
 0x98e   : > { %5662 = vmatpush3.msra.mxu1 %v4415_v32  ;;  %v3133_v0 = vadd.f32 %v10542_v30, %v2973_v60  ;;  %v4324_v60 = vmul.f32 %v7223_v58, %v8898_v62  ;;  %v2812_v9 = vadd.f32 %v10552_v11, %v2652_v61  ;;  %v1033_v62 = vmul.f32 %v10554_v20, %v7397_v51  ;;  %v10560_v51 = vld [vmem:[#allocation47_spill] sm:$0xff]  ;;  %v10562_v7 = vld [vmem:[#allocation160_spill] sm:$0xff] }
 0x98f   : > { %v10564_v61 = vld [vmem:[#allocation176_spill] sm:$0xff] }
 0x990   : > { %v9237_v19 = vpop.permute.xlu1 %3895  ;;  %v3293_v21 = vadd.f32 %v10546_v3, %v3133_v0  ;;  %v10553_v0 = vld [vmem:[#allocation28_spill] sm:$0xff]  ;;  %v10557_v3 = vld [vmem:[#allocation49_spill] sm:$0xff] }
 0x991   : > { %4361 = vrot.lane.b32.xlu1 %v4325_v27, %s6169_s16  ;;  %v9261_v27 = vpop.permute.xlu0 %4049  ;;  %v1690_v31 = vadd.f32 %v10553_v0, %v1530_v18  ;;  %v10563_v18 = vld [vmem:[#allocation241_spill] sm:$0xff]  ;;  %v10567_v0 = vld [vmem:[#allocation51_spill] sm:$0xff]  ;;  %v10568_v20 = vld [vmem:[#allocation192_spill] sm:$0xff] }
 0x992   : > { %v3453_v6 = vadd.f32 %v10548_v10, %v3293_v21  ;;  %v10561_v10 = vld [vmem:[#allocation37_spill] sm:$0xff]  ;;  %v10571_v23 = vld [vmem:[#allocation48_spill] sm:$0xff] }
 0x993   : > { %v1850_v26 = vadd.f32 %v10560_v51, %v1690_v31 }
 0x994   : > { %v4220_v32 = vpop.permute.xlu1 %4219  ;;  %v3613_v8 = vadd.f32 %v8961_v22, %v3453_v6  ;;  %v10555_v22 = vld [vmem:[#allocation105_spill] sm:$0xff] }
 0x995   : > { %v4254_v37 = vadd.f32 %v4220_v32, %v4094_v1  ;;  %4035 = vrot.lane.b32.xlu1 %v4002_v14, %s6168_s14  ;;  %v2171_v12 = vadd.f32 %v10555_v22, %v2011_v52  ;;  %v10558_v14 = vld [vmem:[#allocation144_spill] sm:$0xff]  ;;  %v10559_v32 = vld [vmem:[#allocation225_spill] sm:$0xff] }
 0x996   : > { %v3773_v30 = vadd.f32 %v9161_v42, %v3613_v8  ;;  %v1209_v42 = vadd.f32 %v10557_v3, %v1033_v62  ;;  %v10565_v8 = vld [vmem:[#allocation257_spill] sm:$0xff]  ;;  %v10570_v3 = vld [vmem:[#allocation208_spill] sm:$0xff] }
 0x997   : > { %v4414_v50 = vadd.f32 %v9113_v47, %v4254_v37  ;;  %v10556_v47 = vld [vmem:[#allocation209_spill] sm:$0xff]  ;;  %v2331_v1 = vadd.f32 %v10558_v14, %v2171_v12  ;;  %v9284_v37 = vpop.permute.xlu0 %4373 }
 0x998   : > { %v9263_v24 = vpop.permute.xlu1 %3569  ;;  %v2972_v16 = vadd.f32 %v10556_v47, %v2812_v9  ;;  %v3933_v48 = vadd.f32 %v9198_v40, %v3773_v30  ;;  %v1369_v6 = vadd.f32 %v10561_v10, %v1209_v42  ;;  %v10566_v9 = vld [vmem:[#allocation31_spill] sm:$0xff]  ;;  %v10569_v12 = vld [vmem:[#allocation13_spill] sm:$0xff] }
 0x999   : > { %4359 = vrot.lane.b32.xlu1 %v4324_v60, %s6169_s16  ;;  %5663 = vmatprep.subr.mxu1 %v4414_v50  ;;  %v2491_v17 = vadd.f32 %v10562_v7, %v2331_v1  ;;  %v2010_v30 = vadd.f32 %v10566_v9, %v1850_v26  ;;  %v1032_v47 = vmul.f32 %v7311_v34, %v10569_v12  ;;  %v10572_v34 = vld [vmem:[#allocation34_spill] sm:$0xff] }
 0x99a   : > { %5664 = vmatpush3.msra.mxu1 %v4414_v50  ;;  %v3132_v4 = vadd.f32 %v10559_v32, %v2972_v16  ;;  %v4093_v52 = vadd.f32 %v9050_v59, %v3933_v48  ;;  %v1529_v31 = vadd.f32 %v10567_v0, %v1369_v6  ;;  %v4417_v48 = vld [vmem:[%s10039_s1 + $0x20] sm:$0xff]  ;;  %v10573_v1 = vld [vmem:[#allocation38_spill] sm:$0xff] }
 0x99b   : > { %v2651_v60 = vadd.f32 %v10564_v61, %v2491_v17  ;;  %v9303_v16 = vpop.permute.xlu0 %3723  ;;  %5691 = vmatprep.mubr.f32.mxu1 %v4417_v48  ;;  %v2170_v14 = vadd.f32 %v10572_v34, %v2010_v30  ;;  %v10575_v6 = vld [vmem:[#allocation143_spill] sm:$0xff]  ;;  %v10576_v17 = vld [vmem:[#allocation240_spill] sm:$0xff] }
 0x99c   : > { %v9277_v21 = vpop.permute.xlu1 %3893  ;;  %v3292_v40 = vadd.f32 %v10563_v18, %v3132_v4  ;;  %v1689_v32 = vadd.f32 %v10573_v1, %v1529_v31  ;;  %v10574_v4 = vld [vmem:[#allocation224_spill] sm:$0xff]  ;;  %v10577_v18 = vld [vmem:[#allocation61_spill] sm:$0xff]  ;;  %v10579_v61 = vld [vmem:[#allocation159_spill] sm:$0xff] }
 0x99d   : > { %4195 = vrot.lane.b32.xlu1 %v4162_v53, %s6167_s8  ;;  %v2811_v62 = vadd.f32 %v10568_v20, %v2651_v60  ;;  %v2330_v7 = vadd.f32 %v10575_v6, %v2170_v14  ;;  %v10581_v30 = vld [vmem:[#allocation175_spill] sm:$0xff]  ;;  %v10582_v20 = vld [vmem:[#allocation88_spill] sm:$0xff]  ;;  %v10588_v14 = vld [vmem:[#allocation53_spill] sm:$0xff] }
 0x99e   : > { %v3452_v50 = vadd.f32 %v10565_v8, %v3292_v40  ;;  %v10580_v8 = vld [vmem:[#allocation256_spill] sm:$0xff] }
 0x99f   : > { %v2971_v42 = vadd.f32 %v10570_v3, %v2811_v62  ;;  %v2490_v60 = vadd.f32 %v10579_v61, %v2330_v7  ;;  %v10591_v7 = vld [vmem:[#allocation142_spill] sm:$0xff] }
 0x9a0   : > { %v4218_v46 = vpop.permute.xlu1 %4217  ;;  %v3612_v22 = vadd.f32 %v8976_v13, %v3452_v50  ;;  %v10595_v61 = vld [vmem:[#allocation158_spill] sm:$0xff] }
 0x9a1   : > { %v4253_v11 = vadd.f32 %v4218_v46, %v4093_v52  ;;  %4193 = vrot.lane.b32.xlu1 %v4161_v55, %s6167_s8  ;;  %v3131_v51 = vadd.f32 %v10574_v4, %v2971_v42  ;;  %v9321_v55 = vpop.permute.xlu0 %4047  ;;  %v10578_v52 = vld [vmem:[#allocation52_spill] sm:$0xff]  ;;  %v10585_v42 = vld [vmem:[#allocation207_spill] sm:$0xff]  ;;  %s5327_s8 = sshll.u32 %s135_s7, 3 }
 0x9a2   : > { %v3772_v13 = vadd.f32 %v9007_v28, %v3612_v22  ;;  %v1849_v46 = vadd.f32 %v10578_v52, %v1689_v32  ;;  %v10583_v22 = vld [vmem:[#allocation39_spill] sm:$0xff]  ;;  %v10594_v52 = vld [vmem:[#allocation25_spill] sm:$0xff]  ;;  %s137_s14 = scalar_lea.vmem [#allocation2], %s5327_s8 }
 0x9a3   : > { %v4413_v59 = vadd.f32 %v9168_v43, %v4253_v11  ;;  %v1208_v43 = vadd.f32 %v10571_v23, %v1032_v47  ;;  %v3291_v28 = vadd.f32 %v10576_v17, %v3131_v51  ;;  %v10589_v32 = vld [vmem:[#allocation223_spill] sm:$0xff]  ;;  %v10590_v51 = vld [vmem:[#allocation50_spill] sm:$0xff] }
 0x9a4   : > { %v9305_v53 = vpop.permute.xlu1 %3567  ;;  %v3932_v26 = vadd.f32 %v9237_v19, %v3772_v13  ;;  %v2650_v19 = vadd.f32 %v10581_v30, %v2490_v60 }
 0x9a5   : > { %4353 = vrot.lane.b32.xlu1 %v4321_v49, %s6169_s16  ;;  %5665 = vmatprep.subr.mxu1 %v4413_v59  ;;  %v1368_v40 = vadd.f32 %v10577_v18, %v1208_v43  ;;  %v3451_v50 = vadd.f32 %v10580_v8, %v3291_v28  ;;  %v2009_v49 = vadd.f32 %v10583_v22, %v1849_v46  ;;  %v9333_v48 = vpop.permute.xlu0 %4371  ;;  %v10587_v43 = vld [vmem:[#allocation68_spill] sm:$0xff]  ;;  %v10593_v18 = vld [vmem:[#allocation66_spill] sm:$0xff]  ;;  %v10596_v8 = vld [vmem:[#allocation255_spill] sm:$0xff]  ;;  %s5264_s16 = sshll.u32 %s137_s14, 4  ;;  %s9994_s16 = int_to_ptr.vmem [resolvable:$true] %s5264_s16 }
 0x9a6   : > { %5666 = vmatpush3.msra.mxu1 %v4413_v59  ;;  %v4092_v11 = vadd.f32 %v9099_v41, %v3932_v26  ;;  %v10584_v59 = vld [vmem:[#allocation191_spill] sm:$0xff]  ;;  %s6064_s25 = scalar_lea.vmem %s9994_s16, 128  ;;  %p6071_p0 = scmp.lt.s32.totalorder %s9994_s16, %s6069_s26 }
 0x9a7   : > { %v3611_v0 = vadd.f32 %v9185_v33, %v3451_v50  ;;  %v1528_v62 = vadd.f32 %v10582_v20, %v1368_v40  ;;  %v2810_v12 = vadd.f32 %v10584_v59, %v2650_v19  ;;  %v10586_v33 = vld [vmem:[#allocation10_spill] sm:$0xff]  ;;  %v2169_v1 = vadd.f32 %v10588_v14, %v2009_v49  ;;  %p6065_p11 = scmp.ne.s32.totalorder %s9994_s16, %s6064_s25 }
 0x9a8   : > { %v3892_v10 = vpop.permute.xlu1 %3891  ;;  %v1031_v23 = vmul.f32 %v10586_v33, %v7331_v15  ;;  %v10600_v49 = vld [vmem:[#allocation190_spill] sm:$0xff] }
 0x9a9   : > { %v2970_v41 = vadd.f32 %v10585_v42, %v2810_v12  ;;  %v3771_v13 = vadd.f32 %v9040_v25, %v3611_v0  ;;  %v1688_v34 = vadd.f32 %v10587_v43, %v1528_v62  ;;  %v2329_v17 = vadd.f32 %v10591_v7, %v2169_v1  ;;  %v10592_v25 = vld [vmem:[#allocation239_spill] sm:$0xff]  ;;  %v9351_v15 = vpop.permute.xlu0 %3721  ;;  %v10605_v1 = vld [vmem:[#allocation60_spill] sm:$0xff]  ;;  %v10608_v7 = vld [vmem:[#allocation238_spill] sm:$0xff]  ;;  %p6066_p12 = pnand %p6065_p11, %p6231_p5 }
 0x9aa   : > { %v1207_v26 = vadd.f32 %v10590_v51, %v1031_v23  ;;  %v10599_v62 = vld [vmem:[#allocation35_spill] sm:$0xff]  ;;  %v10603_v23 = vld [vmem:[#allocation24_spill] sm:$0xff]  ;;  %v10607_v51 = vld [vmem:[#allocation141_spill] sm:$0xff] }
 0x9ab   : > { %v3130_v4 = vadd.f32 %v10589_v32, %v2970_v41  ;;  %v1848_v46 = vadd.f32 %v10594_v52, %v1688_v34  ;;  %v2489_v60 = vadd.f32 %v10595_v61, %v2329_v17  ;;  %v10604_v34 = vld [vmem:[#allocation90_spill] sm:$0xff]  ;;  %v6170_v52 = vmov 95   ;;  %p6067_p13 = pneg %p6066_p12 }
 0x9ac   : > { %v4216_v9 = vpop.permute.xlu1 %4215  ;;  %v1367_v40 = vadd.f32 %v10593_v18, %v1207_v26  ;;  %5935 = vset.pattern.permute.xlu1 %v6170_v52  ;;  %5934 = vset.pattern.permute.xlu0 %v6170_v52 }
 0x9ad   : > { %v4252_v31 = vadd.f32 %v4216_v9, %v4092_v11  ;;  %v3290_v28 = vadd.f32 %v10592_v25, %v3130_v4  ;;  %v10597_v9 = vld [vmem:[#allocation174_spill] sm:$0xff]  ;;  %v2008_v22 = vadd.f32 %v10599_v62, %v1848_v46  ;;  %v9365_v41 = vpop.permute.xlu0 %4045  ;;  %v10611_v46 = vld [vmem:[#allocation157_spill] sm:$0xff] }
 0x9ae   : > { %v2649_v30 = vadd.f32 %v10597_v9, %v2489_v60  ;;  %v10609_v25 = vld [vmem:[#allocation30_spill] sm:$0xff]  ;;  %v10613_v9 = vld [vmem:[#allocation173_spill] sm:$0xff] }
 0x9af   : > { %v4412_v47 = vadd.f32 %v9224_v54, %v4252_v31  ;;  %v3931_v54 = vadd.f32 %v9277_v21, %v3771_v13  ;;  %v3450_v50 = vadd.f32 %v10596_v8, %v3290_v28  ;;  %v10598_v31 = vld [vmem:[#allocation89_spill] sm:$0xff]  ;;  %v10602_v13 = vld [vmem:[#allocation206_spill] sm:$0xff]  ;;  %v2168_v32 = vadd.f32 %v10605_v1, %v2008_v22 }
 0x9b0   : > { %v9335_v3 = vpop.permute.xlu1 %3565  ;;  %v1527_v20 = vadd.f32 %v10598_v31, %v1367_v40  ;;  %v2809_v59 = vadd.f32 %v10600_v49, %v2649_v30  ;;  %v10612_v60 = vld [vmem:[#allocation254_spill] sm:$0xff]  ;;  %v10616_v22 = vld [vmem:[#allocation189_spill] sm:$0xff] }
 0x9b1   : > { %5667 = vmatprep.subr.mxu1 %v4412_v47  ;;  %v4091_v21 = vadd.f32 %v9148_v29, %v3931_v54  ;;  %v3610_v19 = vadd.f32 %v9226_v57, %v3450_v50  ;;  %v2328_v26 = vadd.f32 %v10607_v51, %v2168_v32  ;;  %v4370_v40 = vpop.permute.xlu0 %4369  ;;  %v9387_v50 = vld [vmem:[%s10039_s1 + $0x3b8] sm:$0xff] }
 0x9b2   : > { %5668 = vmatpush3.msra.mxu1 %v4412_v47  ;;  %v10601_v47 = vld [vmem:[#allocation11_spill] sm:$0xff]  ;;  %v2969_v33 = vadd.f32 %v10602_v13, %v2809_v59  ;;  %v1687_v14 = vadd.f32 %v10604_v34, %v1527_v20  ;;  %4490 = vperm.xlu1 %5935, %v9387_v50   ;;  %v10615_v20 = vld [vmem:[#allocation92_spill] sm:$0xff]  ;;  %v10617_v13 = vld [vmem:[#allocation205_spill] sm:$0xff] }
 0x9b3   : > { %v1030_v42 = vmul.f32 %v7267_v44, %v10601_v47  ;;  %v3770_v57 = vadd.f32 %v9082_v2, %v3610_v19  ;;  %v10610_v2 = vld [vmem:[#allocation91_spill] sm:$0xff]  ;;  %v2488_v61 = vadd.f32 %v10611_v46, %v2328_v26  ;;  %v10622_v26 = vld [vmem:[#allocation237_spill] sm:$0xff] }
 0x9b4   : > { %v9346_v6 = vpop.permute.xlu1 %3889  ;;  %v1847_v18 = vadd.f32 %v10610_v2, %v1687_v14  ;;  %v10620_v14 = vld [vmem:[#allocation221_spill] sm:$0xff] }
 0x9b5   : > { %v1206_v43 = vadd.f32 %v10603_v23, %v1030_v42  ;;  %v3930_v54 = vadd.f32 %v3892_v10, %v3770_v57  ;;  %v2648_v30 = vadd.f32 %v10613_v9, %v2488_v61  ;;  %v9414_v47 = vpop.permute.xlu0 %3719  ;;  %v10618_v57 = vld [vmem:[#allocation59_spill] sm:$0xff]  ;;  %v9449_v61 = vld [vmem:[%s10039_s1 + $0x278] sm:$0xff] }
 0x9b6   : > { %v2007_v62 = vadd.f32 %v10615_v20, %v1847_v18  ;;  %v10625_v18 = vld [vmem:[#allocation253_spill] sm:$0xff] }
 0x9b7   : > { %v1366_v28 = vadd.f32 %v10609_v25, %v1206_v43  ;;  %v4090_v10 = vadd.f32 %v9206_v38, %v3930_v54  ;;  %v2808_v49 = vadd.f32 %v10616_v22, %v2648_v30  ;;  %v10619_v43 = vld [vmem:[#allocation93_spill] sm:$0xff]  ;;  %v10621_v54 = vld [vmem:[#allocation140_spill] sm:$0xff]  ;;  %v10627_v30 = vld [vmem:[#allocation67_spill] sm:$0xff] }
 0x9b8   : > { %v4214_v11 = vpop.permute.xlu1 %4213  ;;  %v2167_v34 = vadd.f32 %v10619_v43, %v2007_v62  ;;  %v9465_v62 = vld [vmem:[%s10039_s1 + $0x1f8] sm:$0xff] }
 0x9b9   : > { %v4251_v0 = vadd.f32 %v4214_v11, %v4091_v21  ;;  %v9393_v21 = vld [vmem:[%s10039_s1 + $0x3f8] sm:$0xff]  ;;  %v9441_v25 = vpop.permute.xlu0 %4043 }
 0x9ba   : > { %4494 = vperm.xlu0 %5934, %v9393_v21   ;;  %v2327_v51 = vadd.f32 %v10621_v54, %v2167_v34  ;;  %v9471_v22 = vld [vmem:[%s10039_s1 + $0x1b8] sm:$0xff]  ;;  %v10633_v34 = vld [vmem:[#allocation220_spill] sm:$0xff] }
 0x9bb   : > { %v4411_v12 = vadd.f32 %v9284_v37, %v4251_v0  ;;  %v10606_v37 = vld [vmem:[#allocation222_spill] sm:$0xff] }
 0x9bc   : > { %v9367_v29 = vpop.permute.xlu1 %3563  ;;  %v3129_v4 = vadd.f32 %v10606_v37, %v2969_v33  ;;  %v10614_v0 = vld [vmem:[#allocation46_spill] sm:$0xff] }
 0x9bd   : > { %5669 = vmatprep.subr.mxu1 %v4411_v12  ;;  %v1526_v31 = vadd.f32 %v10614_v0, %v1366_v28  ;;  %v9427_v37 = vld [vmem:[%s10039_s1 + $0x2f8] sm:$0xff]  ;;  %v10624_v28 = vld [vmem:[#allocation156_spill] sm:$0xff] }
 0x9be   : > { %5670 = vmatpush3.msra.mxu1 %v4411_v12  ;;  %v3289_v17 = vadd.f32 %v10608_v7, %v3129_v4  ;;  %v9405_v12 = vld [vmem:[%s10039_s1 + $0x378] sm:$0xff]  ;;  %v2487_v2 = vadd.f32 %v10624_v28, %v2327_v51  ;;  %v10628_v0 = vld [vmem:[#allocation188_spill] sm:$0xff] }
 0x9bf   : > { %4486 = vperm.xlu1 %5935, %v9405_v12   ;;  %v1686_v23 = vadd.f32 %v10618_v57, %v1526_v31  ;;  %v10623_v7 = vld [vmem:[#allocation86_spill] sm:$0xff]  ;;  %v10637_v28 = vld [vmem:[#allocation236_spill] sm:$0xff] }
 0x9c0   : > { %v9375_v44 = vpop.permute.xlu1 %3887  ;;  %v3449_v8 = vadd.f32 %v10612_v60, %v3289_v17  ;;  %v9455_v60 = vld [vmem:[%s10039_s1 + $0x238] sm:$0xff] }
 0x9c1   : > { %v1846_v17 = vadd.f32 %v10623_v7, %v1686_v23  ;;  %v10632_v23 = vld [vmem:[#allocation23_spill] sm:$0xff] }
 0x9c2   : > { %v3609_v19 = vadd.f32 %v9263_v24, %v3449_v8  ;;  %v9411_v24 = vld [vmem:[%s10039_s1 + $0x338] sm:$0xff]  ;;  %v10636_v7 = vld [vmem:[#allocation139_spill] sm:$0xff] }
 0x9c3   : > { %4482 = vperm.xlu0 %5934, %v9411_v24   ;;  %4478 = vperm.xlu1 %5935, %v9427_v37  }
 0x9c4   : > { %v4212_v11 = vpop.permute.xlu1 %4211  ;;  %v3769_v33 = vadd.f32 %v9132_v35, %v3609_v19  ;;  %v9433_v35 = vld [vmem:[%s10039_s1 + $0x2b8] sm:$0xff]  ;;  %v2006_v19 = vadd.f32 %v10627_v30, %v1846_v17 }
 0x9c5   : > { %v4250_v38 = vadd.f32 %v4212_v11, %v4090_v10  ;;  %v10626_v10 = vld [vmem:[#allocation172_spill] sm:$0xff]  ;;  %v10641_v30 = vld [vmem:[#allocation6_spill] sm:$0xff] }
 0x9c6   : > { %v3929_v32 = vadd.f32 %v9346_v6, %v3769_v33  ;;  %v2647_v11 = vadd.f32 %v10626_v10, %v2487_v2  ;;  %v10631_v33 = vld [vmem:[#allocation32_spill] sm:$0xff] }
 0x9c7   : > { %v4410_v59 = vadd.f32 %v9333_v48, %v4250_v38  ;;  %v2968_v48 = vadd.f32 %v10617_v13, %v2808_v49  ;;  %4474 = vperm.xlu0 %5934, %v9433_v35   ;;  %4470 = vperm.xlu1 %5935, %v9449_v61   ;;  %v4368_v38 = vpop.permute.xlu0 %4367  ;;  %v10629_v49 = vld [vmem:[#allocation8_spill] sm:$0xff]  ;;  %v2166_v57 = vadd.f32 %v10631_v33, %v2006_v19 }
 0x9c8   : > { %v9416_v42 = vpop.permute.xlu1 %3561  ;;  %v4089_v46 = vadd.f32 %v9261_v27, %v3929_v32  ;;  %v2807_v31 = vadd.f32 %v10628_v0, %v2647_v11  ;;  %v9487_v32 = vld [vmem:[%s10039_s1 + $0x178] sm:$0xff]  ;;  %v10640_v10 = vld [vmem:[#allocation252_spill] sm:$0xff]  ;;  %v1027_v19 = vmul.f32 %v10641_v30, %v7243_v5 }
 0x9c9   : > { %5671 = vmatprep.subr.mxu1 %v4410_v59  ;;  %v3128_v1 = vadd.f32 %v10620_v14, %v2968_v48  ;;  %v2326_v17 = vadd.f32 %v10636_v7, %v2166_v57  ;;  %v10645_v57 = vld [vmem:[#allocation83_spill] sm:$0xff]  ;;  %v9534_v5 = vld [vmem:[%s10039_s1 + $0x78] sm:$0xff] }
 0x9ca   : > { %5672 = vmatpush3.msra.mxu1 %v4410_v59  ;;  %v1029_v59 = vmul.f32 %v10629_v49, %v7287_v63  ;;  %v9493_v63 = vld [vmem:[%s10039_s1 + $0x138] sm:$0xff]  ;;  %v10643_v49 = vld [vmem:[#allocation171_spill] sm:$0xff] }
 0x9cb   : > { %v3288_v6 = vadd.f32 %v10622_v26, %v3128_v1  ;;  %4466 = vperm.xlu0 %5934, %v9455_v60   ;;  %4462 = vperm.xlu1 %5935, %v9465_v62   ;;  %v9498_v51 = vpop.permute.xlu0 %3717  ;;  %v10635_v26 = vld [vmem:[#allocation58_spill] sm:$0xff] }
 0x9cc   : > { %v9436_v4 = vpop.permute.xlu1 %3885  ;;  %v1205_v43 = vadd.f32 %v10632_v23, %v1029_v59  ;;  %v1203_v23 = vadd.f32 %v10645_v57, %v1027_v19  ;;  %v10654_v19 = vld [vmem:[#allocation42_spill] sm:$0xff]  ;;  %v10659_v57 = vld [vmem:[#allocation251_spill] sm:$0xff] }
 0x9cd   : > { %v3448_v52 = vadd.f32 %v10625_v18, %v3288_v6  ;;  %v10638_v18 = vld [vmem:[#allocation22_spill] sm:$0xff] }
 0x9ce   : > { %v1365_v6 = vadd.f32 %v10635_v26, %v1205_v43  ;;  %v10646_v43 = vld [vmem:[#allocation187_spill] sm:$0xff] }
 0x9cf   : > { %v3608_v9 = vadd.f32 %v9305_v53, %v3448_v52  ;;  %4458 = vperm.xlu0 %5934, %v9471_v22   ;;  %4454 = vperm.xlu1 %5935, %v9487_v32   ;;  %v9523_v0 = vpop.permute.xlu0 %4041 }
 0x9d0   : > { %v4210_v8 = vpop.permute.xlu1 %4209 }
 0x9d1   : > { %v4249_v27 = vadd.f32 %v4210_v8, %v4089_v46  ;;  %v3768_v48 = vadd.f32 %v9183_v56, %v3608_v9  ;;  %v10634_v56 = vld [vmem:[#allocation9_spill] sm:$0xff]  ;;  %v10639_v46 = vld [vmem:[#allocation155_spill] sm:$0xff] }
 0x9d2   : > { %v1028_v54 = vmul.f32 %v7223_v58, %v10634_v56  ;;  %v2486_v8 = vadd.f32 %v10639_v46, %v2326_v17  ;;  %v9512_v58 = vld [vmem:[%s10039_s1 + $0xf8] sm:$0xff]  ;;  %v10650_v17 = vld [vmem:[#allocation203_spill] sm:$0xff] }
 0x9d3   : > { %v4409_v20 = vadd.f32 %v4370_v40, %v4249_v27  ;;  %v10630_v40 = vld [vmem:[#allocation204_spill] sm:$0xff]  ;;  %v3928_v1 = vadd.f32 %v9375_v44, %v3768_v48  ;;  %4450 = vperm.xlu0 %5934, %v9493_v63   ;;  %4446 = vperm.xlu1 %5935, %v9512_v58   ;;  %v9518_v27 = vld [vmem:[%s10039_s1 + $0xb8] sm:$0xff]  ;;  %v10644_v48 = vld [vmem:[#allocation27_spill] sm:$0xff]  ;;  %v4366_v46 = vpop.permute.xlu0 %4365 }
 0x9d4   : > { %v9474_v53 = vpop.permute.xlu1 %3559  ;;  %v2967_v13 = vadd.f32 %v10630_v40, %v2807_v31  ;;  %v1204_v52 = vadd.f32 %v10638_v18, %v1028_v54  ;;  %v10642_v31 = vld [vmem:[#allocation45_spill] sm:$0xff]  ;;  %v2646_v59 = vadd.f32 %v10643_v49, %v2486_v8  ;;  %v10652_v8 = vld [vmem:[#allocation43_spill] sm:$0xff] }
 0x9d5   : > { %5673 = vmatprep.subr.mxu1 %v4409_v20  ;;  %v4088_v9 = vadd.f32 %v9321_v55, %v3928_v1  ;;  %v9540_v1 = vld [vmem:[%s10039_s1 + $0x38] sm:$0xff]  ;;  %v10651_v18 = vld [vmem:[#allocation73_spill] sm:$0xff]  ;;  %v10656_v49 = vld [vmem:[#allocation235_spill] sm:$0xff] }
 0x9d6   : > { %5674 = vmatpush3.msra.mxu1 %v4409_v20  ;;  %v3127_v14 = vadd.f32 %v10633_v34, %v2967_v13  ;;  %v1525_v20 = vadd.f32 %v10642_v31, %v1365_v6  ;;  %v1364_v33 = vadd.f32 %v10644_v48, %v1204_v52  ;;  %v2806_v34 = vadd.f32 %v10646_v43, %v2646_v59  ;;  %v10649_v6 = vld [vmem:[#allocation64_spill] sm:$0xff]  ;;  %v10655_v31 = vld [vmem:[#allocation87_spill] sm:$0xff] }
 0x9d7   : > { %4442 = vperm.xlu0 %5934, %v9518_v27   ;;  %4438 = vperm.xlu1 %5935, %v9534_v5   ;;  %v10660_v43 = vld [vmem:[#allocation7_spill] sm:$0xff] }
 0x9d8   : > { %v9500_v44 = vpop.permute.xlu1 %3883  ;;  %v3287_v2 = vadd.f32 %v10637_v28, %v3127_v14  ;;  %v1685_v7 = vadd.f32 %v10649_v6, %v1525_v20  ;;  %v2966_v28 = vadd.f32 %v10650_v17, %v2806_v34  ;;  %v1025_v34 = vmul.f32 %v10660_v43, %v10456_v36  ;;  %v10663_v17 = vld [vmem:[#allocation75_spill] sm:$0xff] }
 0x9da   : > { %v3447_v11 = vadd.f32 %v10640_v10, %v3287_v2  ;;  %v1524_v10 = vadd.f32 %v10652_v8, %v1364_v33  ;;  %v1845_v20 = vadd.f32 %v10655_v31, %v1685_v7 }
 0x9db   : > { %4434 = vperm.xlu0 %5934, %v9540_v1  }
 0x9dc   : > { %v4208_v55 = vpop.permute.xlu1 %4207  ;;  %v3607_v40 = vadd.f32 %v9335_v3, %v3447_v11  ;;  %v10647_v3 = vld [vmem:[#allocation5_spill] sm:$0xff]  ;;  %v10653_v11 = vld [vmem:[#allocation219_spill] sm:$0xff] }
 0x9dd   : > { %v4248_v13 = vadd.f32 %v4208_v55, %v4088_v9  ;;  %v1026_v56 = vmul.f32 %v7175_v39, %v10647_v3  ;;  %v3126_v9 = vadd.f32 %v10653_v11, %v2966_v28  ;;  %v10661_v3 = vld [vmem:[#allocation56_spill] sm:$0xff] }
 0x9de   : > { %v3767_v2 = vadd.f32 %v9244_v45, %v3607_v40  ;;  %v10657_v45 = vld [vmem:[#allocation72_spill] sm:$0xff] }
 0x9df   : > { %v4408_v14 = vadd.f32 %v4368_v38, %v4248_v13  ;;  %v10648_v38 = vld [vmem:[#allocation29_spill] sm:$0xff]  ;;  %v1202_v52 = vadd.f32 %v10651_v18, %v1026_v56  ;;  %v3286_v59 = vadd.f32 %v10656_v49, %v3126_v9  ;;  %v10667_v9 = vld [vmem:[#allocation63_spill] sm:$0xff] }
 0x9e0   : > { %v9545_v54 = vpop.permute.xlu1 %3557  ;;  %v1363_v26 = vadd.f32 %v10648_v38, %v1203_v23  ;;  %v3927_v39 = vadd.f32 %v9436_v4, %v3767_v2  ;;  %v10658_v13 = vld [vmem:[#allocation57_spill] sm:$0xff]  ;;  %v9566_v4 = vpop.permute.xlu0 %3715  ;;  %v10664_v2 = vld [vmem:[#allocation79_spill] sm:$0xff] }
 0x9e1   : > { %5675 = vmatprep.subr.mxu1 %v4408_v14  ;;  %v1362_v40 = vadd.f32 %v10657_v45, %v1202_v52  ;;  %v1684_v48 = vadd.f32 %v10658_v13, %v1524_v10  ;;  %v3446_v23 = vadd.f32 %v10659_v57, %v3286_v59  ;;  %v10662_v38 = vld [vmem:[#allocation33_spill] sm:$0xff]  ;;  %v1201_v18 = vadd.f32 %v10664_v2, %v1025_v34  ;;  %v10666_v10 = vld [vmem:[#allocation80_spill] sm:$0xff]  ;;  %v10674_v34 = vld [vmem:[#allocation154_spill] sm:$0xff] }
 0x9e2   : > { %5676 = vmatpush3.msra.mxu1 %v4408_v14  ;;  %v1523_v55 = vadd.f32 %v10654_v19, %v1363_v26  ;;  %v4087_v33 = vadd.f32 %v9365_v41, %v3927_v39  ;;  %v2005_v26 = vadd.f32 %v10662_v38, %v1845_v20  ;;  %v10665_v52 = vld [vmem:[#allocation65_spill] sm:$0xff]  ;;  %v10668_v19 = vld [vmem:[#allocation26_spill] sm:$0xff] }
 0x9e3   : > { %v3606_v6 = vadd.f32 %v9367_v29, %v3446_v23  ;;  %v1522_v28 = vadd.f32 %v10663_v17, %v1362_v40  ;;  %v1844_v8 = vadd.f32 %v10665_v52, %v1684_v48  ;;  %v1361_v11 = vadd.f32 %v10666_v10, %v1201_v18  ;;  %v10669_v29 = vld [vmem:[#allocation74_spill] sm:$0xff]  ;;  %v10670_v59 = vld [vmem:[#allocation69_spill] sm:$0xff]  ;;  %v10678_v17 = vld [vmem:[#allocation55_spill] sm:$0xff] }
 0x9e4   : > { %v9555_v30 = vpop.permute.xlu1 %3881  ;;  %v1683_v56 = vadd.f32 %v10661_v3, %v1523_v55  ;;  %v2165_v55 = vadd.f32 %v10668_v19, %v2005_v26  ;;  %v9581_v49 = vpop.permute.xlu0 %4039  ;;  %v10671_v40 = vld [vmem:[#allocation138_spill] sm:$0xff]  ;;  %v10672_v48 = vld [vmem:[#allocation81_spill] sm:$0xff] }
 0x9e5   : > { %v3766_v31 = vadd.f32 %v9303_v16, %v3606_v6  ;;  %v1682_v20 = vadd.f32 %v10669_v29, %v1522_v28  ;;  %v2004_v45 = vadd.f32 %v10670_v59, %v1844_v8  ;;  %v1521_v57 = vadd.f32 %v10672_v48, %v1361_v11  ;;  %v10677_v26 = vld [vmem:[#allocation170_spill] sm:$0xff]  ;;  %v10679_v18 = vld [vmem:[#allocation85_spill] sm:$0xff] }
 0x9e6   : > { %v1843_v39 = vadd.f32 %v10667_v9, %v1683_v56  ;;  %v10676_v56 = vld [vmem:[#allocation21_spill] sm:$0xff]  ;;  %v10681_v10 = vld [vmem:[#allocation186_spill] sm:$0xff] }
 0x9e7   : > { %v3926_v13 = vadd.f32 %v9500_v44, %v3766_v31  ;;  %v2164_v38 = vadd.f32 %v10676_v56, %v2004_v45  ;;  %v1681_v28 = vadd.f32 %v10678_v17, %v1521_v57  ;;  %v10680_v8 = vld [vmem:[#allocation137_spill] sm:$0xff]  ;;  %v10685_v59 = vld [vmem:[#allocation202_spill] sm:$0xff]  ;;  %v10687_v57 = vld [vmem:[#allocation152_spill] sm:$0xff] }
 0x9e8   : > { %v4206_v14 = vpop.permute.xlu1 %4205  ;;  %v4364_v2 = vpop.permute.xlu0 %4363  ;;  %v10684_v29 = vld [vmem:[#allocation153_spill] sm:$0xff]  ;;  %v10693_v17 = vld [vmem:[#allocation234_spill] sm:$0xff] }
 0x9e9   : > { %v4247_v7 = vadd.f32 %v4206_v14, %v4087_v33  ;;  %v10673_v33 = vld [vmem:[#allocation84_spill] sm:$0xff]  ;;  %v10675_v14 = vld [vmem:[#allocation77_spill] sm:$0xff] }
 0x9ea   : > { %v2003_v43 = vadd.f32 %v10673_v33, %v1843_v39  ;;  %v1842_v3 = vadd.f32 %v10675_v14, %v1682_v20  ;;  %v10682_v39 = vld [vmem:[#allocation76_spill] sm:$0xff] }
 0x9eb   : > { %v4407_v41 = vadd.f32 %v4366_v46, %v4247_v7  ;;  %v2325_v46 = vadd.f32 %v10671_v40, %v2165_v55  ;;  %v4086_v7 = vadd.f32 %v9441_v25, %v3926_v13  ;;  %v10683_v55 = vld [vmem:[#allocation136_spill] sm:$0xff]  ;;  %v10686_v40 = vld [vmem:[#allocation62_spill] sm:$0xff] }
 0x9ec   : > { %v9575_v36 = vpop.permute.xlu1 %3555  ;;  %v2163_v52 = vadd.f32 %v10679_v18, %v2003_v43  ;;  %v2002_v19 = vadd.f32 %v10682_v39, %v1842_v3  ;;  %v9604_v13 = vpop.permute.xlu0 %3875  ;;  %v10688_v43 = vld [vmem:[#allocation169_spill] sm:$0xff]  ;;  %v10690_v3 = vld [vmem:[#allocation78_spill] sm:$0xff] }
 0x9ed   : > { %5677 = vmatprep.subr.mxu1 %v4407_v41  ;;  %v2485_v16 = vadd.f32 %v10674_v34, %v2325_v46  ;;  %v1841_v46 = vadd.f32 %v10686_v40, %v1681_v28  ;;  %v10698_v39 = vld [vmem:[#allocation250_spill] sm:$0xff] }
 0x9ee   : > { %5678 = vmatpush3.msra.mxu1 %v4407_v41  ;;  %v2324_v41 = vadd.f32 %v10680_v8, %v2164_v38  ;;  %v2323_v31 = vadd.f32 %v10683_v55, %v2163_v52  ;;  %v2162_v56 = vadd.f32 %v10690_v3, %v2002_v19  ;;  %v10691_v38 = vld [vmem:[#allocation168_spill] sm:$0xff]  ;;  %v10695_v52 = vld [vmem:[#allocation135_spill] sm:$0xff]  ;;  %v10705_v3 = vld [vmem:[#allocation233_spill] sm:$0xff] }
 0x9ef   : > { %v2645_v6 = vadd.f32 %v10677_v26, %v2485_v16  ;;  %v10689_v16 = vld [vmem:[#allocation218_spill] sm:$0xff] }
 0x9f0   : > { %v9587_v23 = vpop.permute.xlu1 %3879  ;;  %v2484_v20 = vadd.f32 %v10684_v29, %v2324_v41  ;;  %v2483_v33 = vadd.f32 %v10687_v57, %v2323_v31  ;;  %v2322_v8 = vadd.f32 %v10695_v52, %v2162_v56  ;;  %v10696_v41 = vld [vmem:[#allocation184_spill] sm:$0xff]  ;;  %v4200_v31 = vpop.permute.xlu0 %4199  ;;  %v10699_v29 = vld [vmem:[#allocation151_spill] sm:$0xff]  ;;  %v10702_v57 = vld [vmem:[#allocation82_spill] sm:$0xff] }
 0x9f1   : > { %v2805_v11 = vadd.f32 %v10681_v10, %v2645_v6  ;;  %v10692_v6 = vld [vmem:[#allocation185_spill] sm:$0xff] }
 0x9f2   : > { %v2644_v34 = vadd.f32 %v10688_v43, %v2484_v20  ;;  %v2643_v26 = vadd.f32 %v10691_v38, %v2483_v33  ;;  %v2482_v19 = vadd.f32 %v10699_v29, %v2322_v8  ;;  %v10700_v20 = vld [vmem:[#allocation200_spill] sm:$0xff]  ;;  %v10703_v43 = vld [vmem:[#allocation167_spill] sm:$0xff]  ;;  %v10706_v38 = vld [vmem:[#allocation134_spill] sm:$0xff] }
 0x9f3   : > { %v2965_v45 = vadd.f32 %v10685_v59, %v2805_v11  ;;  %v10697_v11 = vld [vmem:[#allocation201_spill] sm:$0xff] }
 0x9f4   : > { %v4204_v44 = vpop.permute.xlu1 %4203  ;;  %v2803_v10 = vadd.f32 %v10696_v41, %v2643_v26 }
 0x9f5   : > { %v4246_v9 = vadd.f32 %v4204_v44, %v4086_v7  ;;  %v3125_v14 = vadd.f32 %v10689_v16, %v2965_v45  ;;  %v2804_v7 = vadd.f32 %v10692_v6, %v2644_v34  ;;  %v10701_v45 = vld [vmem:[#allocation217_spill] sm:$0xff]  ;;  %v2642_v34 = vadd.f32 %v10703_v43, %v2482_v19  ;;  %v10704_v16 = vld [vmem:[#allocation216_spill] sm:$0xff]  ;;  %v10707_v6 = vld [vmem:[#allocation183_spill] sm:$0xff] }
 0x9f6   : > { %v2963_v59 = vadd.f32 %v10700_v20, %v2803_v10  ;;  %v10713_v20 = vld [vmem:[#allocation166_spill] sm:$0xff] }
 0x9f7   : > { %v4406_v25 = vadd.f32 %v4364_v2, %v4246_v9  ;;  %v3285_v28 = vadd.f32 %v10693_v17, %v3125_v14  ;;  %v10694_v2 = vld [vmem:[#allocation70_spill] sm:$0xff]  ;;  %v2964_v9 = vadd.f32 %v10697_v11, %v2804_v7  ;;  %v2802_v7 = vadd.f32 %v10707_v6, %v2642_v34  ;;  %v10708_v17 = vld [vmem:[#allocation232_spill] sm:$0xff]  ;;  %v10711_v11 = vld [vmem:[#allocation199_spill] sm:$0xff] }
 0x9f8   : > { %v9606_v48 = vpop.permute.xlu1 %3553  ;;  %v2001_v44 = vadd.f32 %v10694_v2, %v1841_v46  ;;  %v3123_v14 = vadd.f32 %v10704_v16, %v2963_v59  ;;  %v10709_v2 = vld [vmem:[#allocation249_spill] sm:$0xff]  ;;  %v10716_v34 = vld [vmem:[#allocation231_spill] sm:$0xff] }
 0x9f9   : > { %5679 = vmatprep.subr.mxu1 %v4406_v25  ;;  %v3445_v55 = vadd.f32 %v10698_v39, %v3285_v28  ;;  %v10712_v39 = vld [vmem:[#allocation248_spill] sm:$0xff] }
 0x9fa   : > { %5680 = vmatpush3.msra.mxu1 %v4406_v25  ;;  %v3124_v25 = vadd.f32 %v10701_v45, %v2964_v9  ;;  %v2161_v46 = vadd.f32 %v10702_v57, %v2001_v44  ;;  %v3283_v28 = vadd.f32 %v10708_v17, %v3123_v14  ;;  %v3874_v44 = vpop.permute.xlu0 %3873  ;;  %v2962_v9 = vadd.f32 %v10711_v11, %v2802_v7  ;;  %v10714_v45 = vld [vmem:[#allocation215_spill] sm:$0xff]  ;;  %v10719_v17 = vld [vmem:[#allocation214_spill] sm:$0xff] }
 0x9fb   : > { %v3605_v40 = vadd.f32 %v9416_v42, %v3445_v55  ;;  %v10710_v42 = vld [vmem:[#allocation150_spill] sm:$0xff] }
 0x9fc   : > { %v3878_v18 = vpop.permute.xlu1 %3877  ;;  %v3284_v56 = vadd.f32 %v10705_v3, %v3124_v25  ;;  %v2321_v26 = vadd.f32 %v10706_v38, %v2161_v46  ;;  %v3443_v55 = vadd.f32 %v10712_v39, %v3283_v28  ;;  %v3122_v25 = vadd.f32 %v10714_v45, %v2962_v9  ;;  %v10715_v46 = vld [vmem:[#allocation182_spill] sm:$0xff]  ;;  %v10718_v38 = vld [vmem:[#allocation247_spill] sm:$0xff] }
 0x9fd   : > { %v3765_v8 = vadd.f32 %v9351_v15, %v3605_v40 }
 0x9fe   : > { %v3444_v52 = vadd.f32 %v10709_v2, %v3284_v56  ;;  %v2481_v41 = vadd.f32 %v10710_v42, %v2321_v26  ;;  %v3603_v57 = vadd.f32 %v9545_v54, %v3443_v55  ;;  %v4198_v40 = vpop.permute.xlu0 %4197  ;;  %v3282_v16 = vadd.f32 %v10716_v34, %v3122_v25  ;;  %v10717_v56 = vld [vmem:[#allocation198_spill] sm:$0xff]  ;;  %v4420_v34 = vld [vmem:[%s10039_s1 + $0xe0] sm:$0xff] }
 0x9ff   : > { %v3925_v19 = vadd.f32 %v9555_v30, %v3765_v8 }
 0xa00   : > { %v4202_v33 = vpop.permute.xlu1 %4201  ;;  %v3604_v29 = vadd.f32 %v9474_v53, %v3444_v52  ;;  %v2641_v59 = vadd.f32 %v10713_v20, %v2481_v41  ;;  %v3442_v30 = vadd.f32 %v10718_v38, %v3282_v16  ;;  %v3763_v6 = vadd.f32 %v9498_v51, %v3603_v57  ;;  %v4421_v16 = vld [vmem:[%s10039_s1 + $0x120] sm:$0xff] }
 0xa01   : > { %v4085_v3 = vadd.f32 %v9523_v0, %v3925_v19  ;;  %v4426_v38 = vld [vmem:[%s10039_s1 + $0x260] sm:$0xff] }
 0xa02   : > { %v2801_v15 = vadd.f32 %v10715_v46, %v2641_v59  ;;  %v3764_v14 = vadd.f32 %v9414_v47, %v3604_v29  ;;  %v3602_v2 = vadd.f32 %v9575_v36, %v3442_v30  ;;  %v3923_v52 = vadd.f32 %v3878_v18, %v3763_v6  ;;  %v4034_v42 = vpop.permute.xlu0 %4033  ;;  %v10720_v47 = vld [vmem:[#allocation230_spill] sm:$0xff]  ;;  %v4427_v30 = vld [vmem:[%s10039_s1 + $0x2a0] sm:$0xff] }
 0xa03   : > { %v4245_v7 = vadd.f32 %v4202_v33, %v4085_v3  ;;  %v4423_v3 = vld [vmem:[%s10039_s1 + $0x1a0] sm:$0xff] }
 0xa04   : > { %v3714_v10 = vpop.permute.xlu1 %3713  ;;  %v2961_v53 = vadd.f32 %v10717_v56, %v2801_v15  ;;  %v3924_v26 = vadd.f32 %v9587_v23, %v3764_v14  ;;  %v10721_v23 = vld [vmem:[#allocation246_spill] sm:$0xff]  ;;  %v3762_v51 = vadd.f32 %v9566_v4, %v3602_v2  ;;  %v4422_v14 = vld [vmem:[%s10039_s1 + $0x160] sm:$0xff] }
 0xa05   : > { %v4424_v56 = vld [vmem:[%s10039_s1 + $0x1e0] sm:$0xff] }
 0xa06   : > { %v3121_v28 = vadd.f32 %v10719_v17, %v2961_v53  ;;  %v4084_v0 = vadd.f32 %v9581_v49, %v3924_v26  ;;  %v4358_v36 = vpop.permute.xlu0 %4357  ;;  %v3922_v20 = vadd.f32 %v9604_v13, %v3762_v51  ;;  %v4418_v13 = vld [vmem:[%s10039_s1 + $0x60] sm:$0xff] }
 0xa07   : > { %v4425_v53 = vld [vmem:[%s10039_s1 + $0x220] sm:$0xff] }
 0xa08   : > { %v4038_v43 = vpop.permute.xlu1 %4037  ;;  %v3281_v41 = vadd.f32 %v10720_v47, %v3121_v28  ;;  %v4244_v29 = vadd.f32 %v4200_v31, %v4084_v0  ;;  %v4428_v26 = vld [vmem:[%s10039_s1 + $0x2e0] sm:$0xff] }
 0xa09   : > { %v4083_v11 = vadd.f32 %v4038_v43, %v3923_v52  ;;  %v4429_v6 = vld [vmem:[%s10039_s1 + $0x320] sm:$0xff] }
 0xa0a   : > { %v3441_v39 = vadd.f32 %v10721_v23, %v3281_v41  ;;  %v4356_v15 = vpop.permute.xlu0 %4355  ;;  %v4432_v17 = vld [vmem:[%s10039_s1 + $0x3e0] sm:$0xff] }
 0xa0b   : > { %v4243_v55 = vadd.f32 %v4198_v40, %v4083_v11 }
 0xa0c   : > { %v4362_v54 = vpop.permute.xlu1 %4361  ;;  %v3601_v33 = vadd.f32 %v9606_v48, %v3441_v39 }
 0xa0d   : > { %v4405_v8 = vadd.f32 %v4362_v54, %v4245_v7  ;;  %v4403_v49 = vadd.f32 %v4358_v36, %v4243_v55  ;;  %v4430_v7 = vld [vmem:[%s10039_s1 + $0x360] sm:$0xff] }
 0xa0e   : > { %v3761_v19 = vadd.f32 %v3714_v10, %v3601_v33  ;;  %v4431_v54 = vld [vmem:[%s10039_s1 + $0x3a0] sm:$0xff] }
 0xa0f   : > { %5681 = vmatprep.subr.mxu1 %v4405_v8 }
 0xa10   : > { %v4036_v9 = vpop.permute.xlu1 %4035  ;;  %5682 = vmatpush3.msra.mxu1 %v4405_v8  ;;  %v3921_v57 = vadd.f32 %v3874_v44, %v3761_v19  ;;  %v4419_v44 = vld [vmem:[%s10039_s1 + $0xa0] sm:$0xff] }
 0xa11   : > { %v4082_v45 = vadd.f32 %v4036_v9, %v3922_v20 }
 0xa12   : > { %v4081_v40 = vadd.f32 %v4034_v42, %v3921_v57 }
 0xa14   : > { %v4360_v18 = vpop.permute.xlu1 %4359 }
 0xa15   : > { %v4404_v59 = vadd.f32 %v4360_v18, %v4244_v29 }
 0xa17   : > { %5683 = vmatprep.subr.mxu1 %v4404_v59 }
 0xa18   : > { %v4196_v25 = vpop.permute.xlu1 %4195  ;;  %5684 = vmatpush3.msra.mxu1 %v4404_v59 }
 0xa19   : > { %v4242_v46 = vadd.f32 %v4196_v25, %v4082_v45  ;;  %5685 = vmatprep.subr.mxu1 %v4403_v49 }
 0xa1a   : > { %5686 = vmatpush3.msra.mxu1 %v4403_v49 }
 0xa1b   : > { %v4402_v4 = vadd.f32 %v4356_v15, %v4242_v46 }
 0xa1c   : > { %v4194_v48 = vpop.permute.xlu1 %4193 }
 0xa1d   : > { %5687 = vmatprep.subr.mxu1 %v4402_v4  ;;  %v4241_v31 = vadd.f32 %v4194_v48, %v4081_v40 }
 0xa1e   : > { %5688 = vmatpush3.msra.mxu1 %v4402_v4 }
 0xa20   : > { %v4354_v10 = vpop.permute.xlu1 %4353 }
 0xa21   : > { %v4401_v43 = vadd.f32 %v4354_v10, %v4241_v31 }
 0xa23   : > { %5689 = vmatprep.subr.mxu1 %v4401_v43 }
 0xa24   : > { %5690 = vmatpush3.msra.mxu1 %v4401_v43 }
 0xa25   : > { %5692 = vmatmul.mubr.f32.vlgmr.msra.gmra.mxu1 %v4418_v13 }
 0xa26   : > { %5694 = vmatprep.mubr.f32.mxu1 %v4419_v44 }
 0xa29   : > { %5695 = vmatmul.mubr.f32.gmra.mxu1 %v4420_v34 }
 0xa2a   : > { %5697 = vmatprep.mubr.f32.mxu1 %v4421_v16 }
 0xa2d   : > { %5698 = vmatmul.mubr.f32.gmra.mxu1 %v4422_v14  ;;  %v4491_v9 = vpop.permute.xlu1 %4490 }
 0xa2e   : > { %5700 = vmatprep.mubr.f32.mxu1 %v4423_v3 }
 0xa31   : > { %5701 = vmatmul.mubr.f32.gmra.mxu1 %v4424_v56 }
 0xa32   : > { %5703 = vmatprep.mubr.f32.mxu1 %v4425_v53 }
 0xa35   : > { %5704 = vmatmul.mubr.f32.gmra.mxu1 %v4426_v38  ;;  %v4495_v33 = vpop.permute.xlu0 %4494 }
 0xa36   : > { %5706 = vmatprep.mubr.f32.mxu1 %v4427_v30 }
 0xa39   : > { %5707 = vmatmul.mubr.f32.gmra.mxu1 %v4428_v26 }
 0xa3a   : > { %5709 = vmatprep.mubr.f32.mxu1 %v4429_v6  ;;  %v4487_v55 = vpop.permute.xlu1 %4486 }
 0xa3d   : > { %5710 = vmatmul.mubr.f32.gmra.mxu1 %v4430_v7 }
 0xa3e   : > { %5712 = vmatprep.mubr.f32.mxu1 %v4431_v54  ;;  %v4483_v20 = vpop.permute.xlu0 %4482  ;;  %v4479_v15 = vpop.permute.xlu1 %4478 }
 0xa41   : > { %5713 = vmatmul.mubr.f32.gmra.mxu1 %v4432_v17 }
 0xa42   : > { %v4475_v13 = vpop.permute.xlu0 %4474  ;;  %v4471_v14 = vpop.permute.xlu1 %4470 }
 0xa46   : > { %v4467_v38 = vpop.permute.xlu0 %4466  ;;  %v4463_v54 = vpop.permute.xlu1 %4462 }
 0xae5   : > { %v9702_v28 = vpop.f32.mrf.mxu1 }
 0xae7   : > { %v9704_v2 = vpop.f32.mrf.mxu1 }
 0xae9   : > { %v9706_v52 = vpop.f32.mrf.mxu1 }
 0xaeb   : > { %v9708_v8 = vpop.f32.mrf.mxu1 }
 0xaed   : > { %v9710_v42 = vpop.f32.mrf.mxu1 }
 0xaef   : > { %v9712_v47 = vpop.f32.mrf.mxu1 }
 0xaf1   : > { %v5702_v41 = vpop.f32.mrf.mxu1 }
 0xaf2   : > { %v9731_v17 = vadd.f32 %v5702_v41, %v4463_v54 }
 0xaf3   : > { %v4593_v0 = vpop.f32.mrf.mxu1 }
 0xaf4   : > { %vm4649_vm10 = vcmp.gt.f32.partialorder %v9731_v17, 0.0 }
 0xaf5   : > { %v5705_v11 = vpop.f32.mrf.mxu1 }
 0xaf6   : > { %v9725_v3 = vadd.f32 %v5705_v11, %v4471_v14 }
 0xaf7   : > { %v4603_v23 = vpop.f32.mrf.mxu1 }
 0xaf8   : > { %v4667_v30 = vmin.f32 %v9725_v3, 0.0  ;;  %v9729_v26 = vadd.f32 %v4603_v23, %v4467_v38  ;;  %vm4651_vm8 = vcmp.gt.f32.partialorder %v9725_v3, 0.0 }
 0xaf9   : > { %v5708_v39 = vpop.f32.mrf.mxu1 }
 0xafa   : > { %v9719_v40 = vadd.f32 %v5708_v39, %v4479_v15  ;;  %v4666_v11 = vmin.f32 %v9729_v26, 0.0  ;;  %vm4650_vm9 = vcmp.gt.f32.partialorder %v9729_v26, 0.0 }
 0xafb   : > { %v4613_v51 = vpop.f32.mrf.mxu1 }
 0xafc   : > { %v4669_v44 = vmin.f32 %v9719_v40, 0.0  ;;  %v9723_v34 = vadd.f32 %v4613_v51, %v4475_v13  ;;  %v4692_v51 = vmul.f32 1.442695, %v4667_v30  ;;  %v4690_v41 = vmul.f32 1.442695, %v4666_v11 }
 0xafd   : > { %v5711_v29 = vpop.f32.mrf.mxu1  ;;  %vm4653_vm6 = vcmp.gt.f32.partialorder %v9719_v40, 0.0 }
 0xafe   : > { %v9714_v36 = vadd.f32 %v5711_v29, %v4487_v55  ;;  %v4696_v56 = vmul.f32 1.442695, %v4669_v44  ;;  %v4668_v53 = vmin.f32 %v9723_v34, 0.0  ;;  %v4459_v29 = vpop.permute.xlu0 %4458  ;;  %vm4652_vm7 = vcmp.gt.f32.partialorder %v9723_v34, 0.0 }
 0xaff   : > { %v4623_v18 = vpop.f32.mrf.mxu1 }
 0xb00   : > { %v4671_v59 = vmin.f32 %v9714_v36, 0.0  ;;  %v9717_v49 = vadd.f32 %v4623_v18, %v4483_v20  ;;  %v4694_v6 = vmul.f32 1.442695, %v4668_v53  ;;  %v4665_v18 = vmin.f32 %v9731_v17, 0.0 }
 0xb01   : > { %v5714_v19 = vpop.f32.mrf.mxu1  ;;  %vm4655_vm4 = vcmp.gt.f32.partialorder %v9714_v36, 0.0 }
 0xb02   : > { %v4639_v45 = vadd.f32 %v5714_v19, %v4495_v33  ;;  %v4700_v4 = vmul.f32 1.442695, %v4671_v59  ;;  %v4670_v31 = vmin.f32 %v9717_v49, 0.0  ;;  %v9736_v19 = vadd.f32 %v4593_v0, %v4459_v29 }
 0xb03   : > { %v4633_v25 = vpop.f32.mrf.mxu1  ;;  %v4688_v15 = vmul.f32 1.442695, %v4665_v18  ;;  %vm4654_vm5 = vcmp.gt.f32.partialorder %v9717_v49, 0.0 }
 0xb04   : > { %v4673_v57 = vmin.f32 %v4639_v45, 0.0  ;;  %v4634_v46 = vadd.f32 %v4633_v25, %v4491_v9  ;;  %v4698_v16 = vmul.f32 1.442695, %v4670_v31  ;;  %vm4657_vm1 = vcmp.gt.f32.partialorder %v4639_v45, 0.0  ;;  %v4451_v31 = vpop.permute.xlu0 %4450 }
 0xb05   : > { %v4664_v0 = vmin.f32 %v9736_v19, 0.0  ;;  %vm4648_vm11 = vcmp.gt.f32.partialorder %v9736_v19, 0.0 }
 0xb06   : > { %v4704_v48 = vmul.f32 1.442695, %v4673_v57  ;;  %v4672_v10 = vmin.f32 %v4634_v46, 0.0  ;;  %vm4656_vm3 = vcmp.gt.f32.partialorder %v4634_v46, 0.0  ;;  %v4455_v57 = vpop.permute.xlu1 %4454 }
 0xb08   : > { %5968 = vpow2.f32 %v4704_v48  ;;  %v4702_v43 = vmul.f32 1.442695, %v4672_v10  ;;  %v4443_v30 = vpop.permute.xlu0 %4442 }
 0xb09   : > { %5970 = vpow2.f32 %v4700_v4 }
 0xb0a   : > { %5972 = vpow2.f32 %v4702_v43  ;;  %v4686_v43 = vmul.f32 1.442695, %v4664_v0 }
 0xb0b   : > { %5974 = vpow2.f32 %v4698_v16  ;;  %v4447_v16 = vpop.permute.xlu1 %4446 }
 0xb0c   : > { %5976 = vpow2.f32 %v4696_v56  ;;  %v9757_v14 = vadd.f32 %v9706_v52, %v4447_v16  ;;  %v9766_v52 = vadd.f32 %v9708_v8, %v4443_v30  ;;  %v4435_v8 = vpop.permute.xlu0 %4434 }
 0xb0d   : > { %5978 = vpow2.f32 %v4694_v6 }
 0xb0e   : > { %5980 = vpow2.f32 %v4692_v51  ;;  %v4661_v6 = vmin.f32 %v9757_v14, 0.0  ;;  %vm4645_vm14 = vcmp.gt.f32.partialorder %v9757_v14, 0.0  ;;  %vm4644_vm15 = vcmp.gt.f32.partialorder %v9766_v52, 0.0 }
 0xb0f   : > { %5982 = vpow2.f32 %v4690_v41 }
 0xb10   : > { %5984 = vpow2.f32 %v4688_v15  ;;  %v4680_v11 = vmul.f32 1.442695, %v4661_v6 }
 0xb11   : > { %5986 = vpow2.f32 %v4686_v43 }
 0xb15   : > { %v5969_v7 = vpop.eup %5968 }
 0xb16   : > { %v5378_v9 = vadd.f32 -1.0, %v5969_v7  ;;  %v5971_v39 = vpop.eup %5970  ;;  %v4439_v7 = vpop.permute.xlu1 %4438 }
 0xb17   : > { %v5973_v33 = vpop.eup %5972  ;;  %v5376_v59 = vadd.f32 -1.0, %v5971_v39  ;;  %v9773_v51 = vadd.f32 %v9702_v28, %v4439_v7  ;;  %v4564_v28 = vadd.f32 %v9704_v2, %v4435_v8 }
 0xb18   : > { %v4737_v55 = vsel %vm4657_vm1, %v4639_v45, %v5378_v9  ;;  %v5377_v23 = vadd.f32 -1.0, %v5973_v33  ;;  %v5975_v25 = vpop.eup %5974  ;;  %v9741_v45 = vadd.f32 %v9710_v42, %v4455_v57  ;;  %v9750_v42 = vadd.f32 %v9712_v47, %v4451_v31 }
 0xb19   : > { %4787 = vrot.lane.b32.xlu1 %v4737_v55, %s6171_s27  ;;  %v4735_v4 = vsel %vm4655_vm4, %v9714_v36, %v5376_v59  ;;  %v5977_v48 = vpop.eup %5976  ;;  %v4660_v33 = vmin.f32 %v9766_v52, 0.0  ;;  %vm4643_vm0 = vcmp.gt.f32.partialorder %v9773_v51, 0.0  ;;  %vm4642_vm2 = vcmp.gt.f32.partialorder %v4564_v28, 0.0 }
 0xb1a   : > { %v4736_v20 = vsel %vm4656_vm3, %v4634_v46, %v5377_v23  ;;  %v5375_v46 = vadd.f32 -1.0, %v5975_v25  ;;  %v4663_v10 = vmin.f32 %v9741_v45, 0.0  ;;  %v5374_v44 = vadd.f32 -1.0, %v5977_v48  ;;  %v5979_v36 = vpop.eup %5978 }
 0xb1b   : > { %4785 = vrot.lane.b32.xlu0 %v4736_v20, %s6171_s27  ;;  %v4662_v47 = vmin.f32 %v9750_v42, 0.0  ;;  %v5373_v38 = vadd.f32 -1.0, %v5979_v36  ;;  %v4659_v23 = vmin.f32 %v9773_v51, 0.0  ;;  %v4678_v18 = vmul.f32 1.442695, %v4660_v33 }
 0xb1c   : > { %v4734_v13 = vsel %vm4654_vm5, %v9717_v49, %v5375_v46  ;;  %v4684_v56 = vmul.f32 1.442695, %v4663_v10  ;;  %v4733_v53 = vsel %vm4653_vm6, %v9719_v40, %v5374_v44  ;;  %v5981_v49 = vpop.eup %5980  ;;  %v4658_v25 = vmin.f32 %v4564_v28, 0.0 }
 0xb1d   : > { %4998 = vrot.lane.b32.xlu1 %v4737_v55, %s6172_s28  ;;  %v4682_v54 = vmul.f32 1.442695, %v4662_v47  ;;  %v4732_v9 = vsel %vm4652_vm7, %v9723_v34, %v5373_v38  ;;  %v5372_v40 = vadd.f32 -1.0, %v5981_v49  ;;  %v5983_v39 = vpop.eup %5982  ;;  %vm4647_vm12 = vcmp.gt.f32.partialorder %v9741_v45, 0.0 }
 0xb1e   : > { %5988 = vpow2.f32 %v4684_v56  ;;  %v5371_v29 = vadd.f32 -1.0, %v5983_v39  ;;  %v5985_v34 = vpop.eup %5984  ;;  %vm4646_vm13 = vcmp.gt.f32.partialorder %v9750_v42, 0.0  ;;  %vm4885_vm1 = vcmask 138240  }
 0xb1f   : > { %4783 = vrot.lane.b32.xlu0 %v4735_v4, %s6171_s27  ;;  %5990 = vpow2.f32 %v4682_v54  ;;  %v4731_v55 = vsel %vm4651_vm8, %v9725_v3, %v5372_v40  ;;  %v5987_v59 = vpop.eup %5986  ;;  %v4676_v3 = vmul.f32 1.442695, %v4659_v23  ;;  %vm6176_vm3 = vmmov 0  }
 0xb20   : > { %5992 = vpow2.f32 %v4680_v11  ;;  %v4730_v41 = vsel %vm4650_vm9, %v9729_v26, %v5371_v29  ;;  %v5369_v2 = vadd.f32 -1.0, %v5987_v59  ;;  %v4674_v26 = vmul.f32 1.442695, %v4658_v25 }
 0xb21   : > { %4996 = vrot.lane.b32.xlu1 %v4736_v20, %s6172_s28  ;;  %v5370_v20 = vadd.f32 -1.0, %v5985_v34  ;;  %5994 = vpow2.f32 %v4678_v18 }
 0xb22   : > { %5996 = vpow2.f32 %v4676_v3  ;;  %v4728_v0 = vsel %vm4648_vm11, %v9736_v19, %v5369_v2 }
 0xb23   : > { %4781 = vrot.lane.b32.xlu0 %v4734_v13, %s6171_s27  ;;  %v4729_v57 = vsel %vm4649_vm10, %v9731_v17, %v5370_v20  ;;  %5998 = vpow2.f32 %v4674_v26 }
 0xb25   : > { %4994 = vrot.lane.b32.xlu1 %v4735_v4, %s6172_s28 }
 0xb27   : > { %4779 = vrot.lane.b32.xlu0 %v4733_v53, %s6171_s27 }
 0xb29   : > { %4992 = vrot.lane.b32.xlu1 %v4734_v13, %s6172_s28 }
 0xb2b   : > { %4777 = vrot.lane.b32.xlu0 %v4732_v9, %s6171_s27  ;;  %v5989_v15 = vpop.eup %5988 }
 0xb2c   : > { %v5368_v4 = vadd.f32 -1.0, %v5989_v15  ;;  %v5991_v46 = vpop.eup %5990 }
 0xb2d   : > { %4990 = vrot.lane.b32.xlu1 %v4733_v53, %s6172_s28  ;;  %v5367_v48 = vadd.f32 -1.0, %v5991_v46  ;;  %v5993_v31 = vpop.eup %5992 }
 0xb2e   : > { %v4727_v17 = vsel %vm4647_vm12, %v9741_v45, %v5368_v4  ;;  %v5366_v10 = vadd.f32 -1.0, %v5993_v31  ;;  %v5995_v43 = vpop.eup %5994 }
 0xb2f   : > { %4775 = vrot.lane.b32.xlu0 %v4731_v55, %s6171_s27  ;;  %v4726_v19 = vsel %vm4646_vm13, %v9750_v42, %v5367_v48  ;;  %v5365_v13 = vadd.f32 -1.0, %v5995_v43  ;;  %v5997_v44 = vpop.eup %5996 }
 0xb30   : > { %v4725_v45 = vsel %vm4645_vm14, %v9757_v14, %v5366_v10  ;;  %v5364_v36 = vadd.f32 -1.0, %v5997_v44  ;;  %v5999_v16 = vpop.eup %5998 }
 0xb31   : > { %4988 = vrot.lane.b32.xlu1 %v4732_v9, %s6172_s28  ;;  %v4724_v42 = vsel %vm4644_vm15, %v9766_v52, %v5365_v13  ;;  %v5363_v56 = vadd.f32 -1.0, %v5999_v16  ;;  %v6175_v16 = vmov 0.0  }
 0xb32   : > { %v4723_v14 = vsel %vm4643_vm0, %v9773_v51, %v5364_v36  ;;  %5715 = vmatprep.subr.mxu0 %v6175_v16  ;;  %5747 = vmatprep.mubr.msk.f32.mxu0 %vm6176_vm3, %v6175_v16 }
 0xb33   : > { %4773 = vrot.lane.b32.xlu0 %v4730_v41, %s6171_s27  ;;  %v4722_v47 = vsel %vm4642_vm2, %v4564_v28, %v5363_v56 }
 0xb35   : > { %4986 = vrot.lane.b32.xlu1 %v4731_v55, %s6172_s28 }
 0xb37   : > { %4771 = vrot.lane.b32.xlu0 %v4729_v57, %s6171_s27 }
 0xb39   : > { %4984 = vrot.lane.b32.xlu1 %v4730_v41, %s6172_s28 }
 0xb3b   : > { %4769 = vrot.lane.b32.xlu0 %v4728_v0, %s6171_s27 }
 0xb3d   : > { %4982 = vrot.lane.b32.xlu1 %v4729_v57, %s6172_s28 }
 0xb3f   : > { %4767 = vrot.lane.b32.xlu0 %v4727_v17, %s6171_s27 }
 0xb41   : > { %4980 = vrot.lane.b32.xlu1 %v4728_v0, %s6172_s28 }
 0xb43   : > { %4765 = vrot.lane.b32.xlu0 %v4726_v19, %s6171_s27 }
 0xb45   : > { %4978 = vrot.lane.b32.xlu1 %v4727_v17, %s6172_s28 }
 0xb47   : > { %4763 = vrot.lane.b32.xlu0 %v4725_v45, %s6171_s27 }
 0xb49   : > { %4976 = vrot.lane.b32.xlu1 %v4726_v19, %s6172_s28 }
 0xb4b   : > { %4761 = vrot.lane.b32.xlu0 %v4724_v42, %s6171_s27 }
 0xb4d   : > { %4974 = vrot.lane.b32.xlu1 %v4725_v45, %s6172_s28 }
 0xb4f   : > { %4759 = vrot.lane.b32.xlu0 %v4723_v14, %s6171_s27 }
 0xb51   : > { %4972 = vrot.lane.b32.xlu1 %v4724_v42, %s6172_s28 }
 0xb53   : > { %4757 = vrot.lane.b32.xlu0 %v4722_v47, %s6171_s27  ;;  %s6070_s27 = scalar_lea.vmem %s6069_s26, 256 }
 0xb54   : > { %p6072_p1 = scmp.lt.s32.totalorder %s6070_s27, %s6064_s25 }
 0xb55   : > { %4970 = vrot.lane.b32.xlu1 %v4723_v14, %s6172_s28 }
 0xb56   : > { %p6073_p2 = por %p6072_p1, %p6071_p0 }
 0xb57   : > { %4968 = vrot.lane.b32.xlu0 %v4722_v47, %s6172_s28 }
 0xb58   : > { %p6074_p3 = pnand %p6073_p2, %p6067_p13 }
 0xb8b   : > { %v4788_v53 = vpop.permute.xlu1 %4787 }
 0xb8c   : > { %v4820_v38 = vmul.f32 %v9393_v21, %v4788_v53 }
 0xb8d   : > { %v4786_v49 = vpop.permute.xlu0 %4785 }
 0xb8e   : > { %4867 = vrot.lane.b32.xlu1 %v4820_v38, %s6173_s29  ;;  %v4819_v30 = vmul.f32 %v9387_v50, %v4786_v49 }
 0xb8f   : > { %v4999_v6 = vpop.permute.xlu1 %4998 }
 0xb90   : > { %v5031_v52 = vmul.f32 %v9393_v21, %v4999_v6  ;;  %4865 = vrot.lane.b32.xlu0 %v4819_v30, %s6173_s29 }
 0xb91   : > { %v4784_v7 = vpop.permute.xlu0 %4783 }
 0xb92   : > { %5078 = vrot.lane.b32.xlu1 %v5031_v52, %s6174_s30  ;;  %v4818_v54 = vmul.f32 %v9405_v12, %v4784_v7 }
 0xb93   : > { %v4997_v9 = vpop.permute.xlu1 %4996 }
 0xb94   : > { %v5030_v40 = vmul.f32 %v9387_v50, %v4997_v9  ;;  %4863 = vrot.lane.b32.xlu0 %v4818_v54, %s6173_s29 }
 0xb95   : > { %v4782_v39 = vpop.permute.xlu0 %4781 }
 0xb96   : > { %5076 = vrot.lane.b32.xlu1 %v5030_v40, %s6174_s30  ;;  %v4817_v51 = vmul.f32 %v9411_v24, %v4782_v39 }
 0xb97   : > { %v4995_v11 = vpop.permute.xlu1 %4994 }
 0xb98   : > { %v5029_v21 = vmul.f32 %v9405_v12, %v4995_v11  ;;  %4861 = vrot.lane.b32.xlu0 %v4817_v51, %s6173_s29 }
 0xb99   : > { %v4780_v8 = vpop.permute.xlu0 %4779 }
 0xb9a   : > { %5074 = vrot.lane.b32.xlu1 %v5029_v21, %s6174_s30  ;;  %v4816_v33 = vmul.f32 %v9427_v37, %v4780_v8 }
 0xb9b   : > { %v4993_v55 = vpop.permute.xlu1 %4992 }
 0xb9c   : > { %v5028_v50 = vmul.f32 %v9411_v24, %v4993_v55  ;;  %4859 = vrot.lane.b32.xlu0 %v4816_v33, %s6173_s29 }
 0xb9d   : > { %v4778_v29 = vpop.permute.xlu0 %4777 }
 0xb9e   : > { %5072 = vrot.lane.b32.xlu1 %v5028_v50, %s6174_s30  ;;  %v4815_v34 = vmul.f32 %v9433_v35, %v4778_v29 }
 0xb9f   : > { %v4991_v23 = vpop.permute.xlu1 %4990 }
 0xba0   : > { %v5027_v12 = vmul.f32 %v9427_v37, %v4991_v23  ;;  %4857 = vrot.lane.b32.xlu0 %v4815_v34, %s6173_s29 }
 0xba1   : > { %v4776_v28 = vpop.permute.xlu0 %4775 }
 0xba2   : > { %5070 = vrot.lane.b32.xlu1 %v5027_v12, %s6174_s30  ;;  %v4814_v18 = vmul.f32 %v9449_v61, %v4776_v28 }
 0xba3   : > { %v4989_v41 = vpop.permute.xlu1 %4988 }
 0xba4   : > { %v5026_v24 = vmul.f32 %v9433_v35, %v4989_v41  ;;  %4855 = vrot.lane.b32.xlu0 %v4814_v18, %s6173_s29 }
 0xba5   : > { %v4774_v20 = vpop.permute.xlu0 %4773 }
 0xba6   : > { %5068 = vrot.lane.b32.xlu1 %v5026_v24, %s6174_s30  ;;  %v4813_v59 = vmul.f32 %v9455_v60, %v4774_v20 }
 0xba7   : > { %v4987_v3 = vpop.permute.xlu1 %4986 }
 0xba8   : > { %v5025_v37 = vmul.f32 %v9449_v61, %v4987_v3  ;;  %4853 = vrot.lane.b32.xlu0 %v4813_v59, %s6173_s29 }
 0xba9   : > { %v4772_v25 = vpop.permute.xlu0 %4771 }
 0xbaa   : > { %5066 = vrot.lane.b32.xlu1 %v5025_v37, %s6174_s30  ;;  %v4812_v57 = vmul.f32 %v9465_v62, %v4772_v25 }
 0xbab   : > { %v4985_v2 = vpop.permute.xlu1 %4984 }
 0xbac   : > { %v5024_v35 = vmul.f32 %v9455_v60, %v4985_v2  ;;  %4851 = vrot.lane.b32.xlu0 %v4812_v57, %s6173_s29 }
 0xbad   : > { %v4770_v15 = vpop.permute.xlu0 %4769 }
 0xbae   : > { %5064 = vrot.lane.b32.xlu1 %v5024_v35, %s6174_s30  ;;  %v4811_v26 = vmul.f32 %v9471_v22, %v4770_v15 }
 0xbaf   : > { %v4983_v0 = vpop.permute.xlu1 %4982 }
 0xbb0   : > { %v5023_v61 = vmul.f32 %v9465_v62, %v4983_v0  ;;  %4849 = vrot.lane.b32.xlu0 %v4811_v26, %s6173_s29 }
 0xbb1   : > { %v4768_v4 = vpop.permute.xlu0 %4767 }
 0xbb2   : > { %5062 = vrot.lane.b32.xlu1 %v5023_v61, %s6174_s30  ;;  %v4810_v46 = vmul.f32 %v9487_v32, %v4768_v4 }
 0xbb3   : > { %v4981_v17 = vpop.permute.xlu1 %4980 }
 0xbb4   : > { %v5022_v60 = vmul.f32 %v9471_v22, %v4981_v17  ;;  %4847 = vrot.lane.b32.xlu0 %v4810_v46, %s6173_s29 }
 0xbb5   : > { %v4766_v48 = vpop.permute.xlu0 %4765 }
 0xbb6   : > { %5060 = vrot.lane.b32.xlu1 %v5022_v60, %s6174_s30  ;;  %v4809_v31 = vmul.f32 %v9493_v63, %v4766_v48 }
 0xbb7   : > { %v4979_v19 = vpop.permute.xlu1 %4978 }
 0xbb8   : > { %v5021_v62 = vmul.f32 %v9487_v32, %v4979_v19  ;;  %4845 = vrot.lane.b32.xlu0 %v4809_v31, %s6173_s29 }
 0xbb9   : > { %v4764_v10 = vpop.permute.xlu0 %4763 }
 0xbba   : > { %5058 = vrot.lane.b32.xlu1 %v5021_v62, %s6174_s30  ;;  %v4808_v43 = vmul.f32 %v9512_v58, %v4764_v10 }
 0xbbb   : > { %v4977_v45 = vpop.permute.xlu1 %4976 }
 0xbbc   : > { %v5020_v22 = vmul.f32 %v9493_v63, %v4977_v45  ;;  %4843 = vrot.lane.b32.xlu0 %v4808_v43, %s6173_s29 }
 0xbbd   : > { %v4762_v13 = vpop.permute.xlu0 %4761 }
 0xbbe   : > { %5056 = vrot.lane.b32.xlu1 %v5020_v22, %s6174_s30  ;;  %v4807_v44 = vmul.f32 %v9518_v27, %v4762_v13 }
 0xbbf   : > { %v4975_v42 = vpop.permute.xlu1 %4974 }
 0xbc0   : > { %v5019_v32 = vmul.f32 %v9512_v58, %v4975_v42  ;;  %4841 = vrot.lane.b32.xlu0 %v4807_v44, %s6173_s29 }
 0xbc1   : > { %v4760_v36 = vpop.permute.xlu0 %4759 }
 0xbc2   : > { %5054 = vrot.lane.b32.xlu1 %v5019_v32, %s6174_s30  ;;  %v4806_v63 = vmul.f32 %v9534_v5, %v4760_v36 }
 0xbc3   : > { %v4973_v14 = vpop.permute.xlu1 %4972 }
 0xbc4   : > { %v5018_v56 = vmul.f32 %v9518_v27, %v4973_v14  ;;  %4839 = vrot.lane.b32.xlu0 %v4806_v63, %s6173_s29 }
 0xbc5   : > { %v4758_v47 = vpop.permute.xlu0 %4757 }
 0xbc6   : > { %5052 = vrot.lane.b32.xlu1 %v5018_v56, %s6174_s30  ;;  %v4805_v58 = vmul.f32 %v9540_v1, %v4758_v47 }
 0xbc7   : > { %v4971_v53 = vpop.permute.xlu1 %4970 }
 0xbc8   : > { %v5017_v38 = vmul.f32 %v9534_v5, %v4971_v53  ;;  %4837 = vrot.lane.b32.xlu0 %v4805_v58, %s6173_s29 }
 0xbc9   : > { %v4969_v49 = vpop.permute.xlu0 %4968 }
 0xbca   : > { %5050 = vrot.lane.b32.xlu1 %v5017_v38, %s6174_s30  ;;  %v5016_v30 = vmul.f32 %v9540_v1, %v4969_v49 }
 0xbcc   : > { %5048 = vrot.lane.b32.xlu0 %v5016_v30, %s6174_s30 }
 0xc00   : > { %v4868_v27 = vpop.permute.xlu1 %4867 }
 0xc01   : > { %v4931_v6 = vsel %vm4885_vm1, %v4868_v27, 0.0 }
 0xc02   : > { %4932 = vadd.xlane.f32.xlu1 %v4931_v6  ;;  %v4866_v52 = vpop.permute.xlu0 %4865  ;;  %v4738_v6 = vlaneseq }
 0xc03   : > { %v4928_v7 = vsel %vm4885_vm1, %v4866_v52, 0.0 }
 0xc04   : > { %v5079_v54 = vpop.permute.xlu1 %5078  ;;  %4929 = vadd.xlane.f32.xlu0 %v4928_v7  ;;  %v4739_v52 = vand.u32 127, %v4738_v6 }
 0xc05   : > { %v5141_v9 = vsel %vm4885_vm1, %v5079_v54, 0.0 }
 0xc06   : > { %v4864_v5 = vpop.permute.xlu0 %4863  ;;  %vm4934_vm4 = vcmp.eq.s32.totalorder %v4739_v52, 0  ;;  %vm5144_vm5 = vcmp.eq.s32.totalorder %v4739_v52, 1 }
 0xc07   : > { %v4925_v40 = vsel %vm4885_vm1, %v4864_v5, 0.0  ;;  %v9916_v7 = vsel %vm4934_vm4, 1.0, %v6175_v16 }
 0xc08   : > { %v5077_v39 = vpop.permute.xlu1 %5076  ;;  %5142 = vadd.xlane.f32.xlu0 %v5141_v9  ;;  %4926 = vadd.xlane.f32.xlu1 %v4925_v40  ;;  %v9922_v40 = vld [vmem:[%s10039_s1 + $0x30] ss:$0 sm:$0xff] }
 0xc09   : > { %v5138_v51 = vsel %vm4885_vm1, %v5077_v39, 0.0  ;;  %v9925_v39 = vsel %vm5144_vm5, 1.0, %v6175_v16 }
 0xc0a   : > { %v4862_v1 = vpop.permute.xlu0 %4861 }
 0xc0b   : > { %v4922_v11 = vsel %vm4885_vm1, %v4862_v1, 0.0 }
 0xc0c   : > { %v5075_v21 = vpop.permute.xlu1 %5074  ;;  %5139 = vadd.xlane.f32.xlu0 %v5138_v51  ;;  %4923 = vadd.xlane.f32.xlu1 %v4922_v11 }
 0xc0d   : > { %v5135_v33 = vsel %vm4885_vm1, %v5075_v21, 0.0 }
 0xc0e   : > { %v4860_v8 = vpop.permute.xlu0 %4859 }
 0xc0f   : > { %v4919_v55 = vsel %vm4885_vm1, %v4860_v8, 0.0 }
 0xc10   : > { %v5073_v50 = vpop.permute.xlu1 %5072  ;;  %5136 = vadd.xlane.f32.xlu0 %v5135_v33  ;;  %4920 = vadd.xlane.f32.xlu1 %v4919_v55 }
 0xc11   : > { %v5132_v34 = vsel %vm4885_vm1, %v5073_v50, 0.0 }
 0xc12   : > { %v4858_v29 = vpop.permute.xlu0 %4857 }
 0xc13   : > { %v4916_v23 = vsel %vm4885_vm1, %v4858_v29, 0.0 }
 0xc14   : > { %v5071_v12 = vpop.permute.xlu1 %5070  ;;  %5133 = vadd.xlane.f32.xlu0 %v5132_v34  ;;  %4917 = vadd.xlane.f32.xlu1 %v4916_v23 }
 0xc15   : > { %v5129_v18 = vsel %vm4885_vm1, %v5071_v12, 0.0 }
 0xc16   : > { %v4856_v28 = vpop.permute.xlu0 %4855 }
 0xc17   : > { %v4913_v41 = vsel %vm4885_vm1, %v4856_v28, 0.0 }
 0xc18   : > { %v5069_v24 = vpop.permute.xlu1 %5068  ;;  %5130 = vadd.xlane.f32.xlu0 %v5129_v18  ;;  %4914 = vadd.xlane.f32.xlu1 %v4913_v41 }
 0xc19   : > { %v5126_v59 = vsel %vm4885_vm1, %v5069_v24, 0.0 }
 0xc1a   : > { %v4854_v20 = vpop.permute.xlu0 %4853 }
 0xc1b   : > { %v4910_v3 = vsel %vm4885_vm1, %v4854_v20, 0.0 }
 0xc1c   : > { %v5067_v37 = vpop.permute.xlu1 %5066  ;;  %5127 = vadd.xlane.f32.xlu0 %v5126_v59  ;;  %4911 = vadd.xlane.f32.xlu1 %v4910_v3 }
 0xc1d   : > { %v5123_v57 = vsel %vm4885_vm1, %v5067_v37, 0.0 }
 0xc1e   : > { %v4852_v25 = vpop.permute.xlu0 %4851 }
 0xc1f   : > { %v4907_v2 = vsel %vm4885_vm1, %v4852_v25, 0.0 }
 0xc20   : > { %v5065_v35 = vpop.permute.xlu1 %5064  ;;  %5124 = vadd.xlane.f32.xlu0 %v5123_v57  ;;  %4908 = vadd.xlane.f32.xlu1 %v4907_v2 }
 0xc21   : > { %v5120_v26 = vsel %vm4885_vm1, %v5065_v35, 0.0 }
 0xc22   : > { %v4850_v15 = vpop.permute.xlu0 %4849 }
 0xc23   : > { %v4904_v0 = vsel %vm4885_vm1, %v4850_v15, 0.0 }
 0xc24   : > { %v5063_v61 = vpop.permute.xlu1 %5062  ;;  %5121 = vadd.xlane.f32.xlu0 %v5120_v26  ;;  %4905 = vadd.xlane.f32.xlu1 %v4904_v0 }
 0xc25   : > { %v5117_v46 = vsel %vm4885_vm1, %v5063_v61, 0.0 }
 0xc26   : > { %v4848_v4 = vpop.permute.xlu0 %4847 }
 0xc27   : > { %v4901_v17 = vsel %vm4885_vm1, %v4848_v4, 0.0 }
 0xc28   : > { %v5061_v60 = vpop.permute.xlu1 %5060  ;;  %5118 = vadd.xlane.f32.xlu0 %v5117_v46  ;;  %4902 = vadd.xlane.f32.xlu1 %v4901_v17 }
 0xc29   : > { %v5114_v31 = vsel %vm4885_vm1, %v5061_v60, 0.0 }
 0xc2a   : > { %v4846_v48 = vpop.permute.xlu0 %4845 }
 0xc2b   : > { %v4898_v19 = vsel %vm4885_vm1, %v4846_v48, 0.0 }
 0xc2c   : > { %v5059_v62 = vpop.permute.xlu1 %5058  ;;  %5115 = vadd.xlane.f32.xlu0 %v5114_v31  ;;  %4899 = vadd.xlane.f32.xlu1 %v4898_v19 }
 0xc2d   : > { %v5111_v43 = vsel %vm4885_vm1, %v5059_v62, 0.0 }
 0xc2e   : > { %v4844_v10 = vpop.permute.xlu0 %4843 }
 0xc2f   : > { %v4895_v45 = vsel %vm4885_vm1, %v4844_v10, 0.0 }
 0xc30   : > { %v5057_v22 = vpop.permute.xlu1 %5056  ;;  %5112 = vadd.xlane.f32.xlu0 %v5111_v43  ;;  %4896 = vadd.xlane.f32.xlu1 %v4895_v45 }
 0xc31   : > { %v5108_v44 = vsel %vm4885_vm1, %v5057_v22, 0.0 }
 0xc32   : > { %v4842_v13 = vpop.permute.xlu0 %4841 }
 0xc33   : > { %v4892_v42 = vsel %vm4885_vm1, %v4842_v13, 0.0 }
 0xc34   : > { %v5055_v32 = vpop.permute.xlu1 %5054  ;;  %5109 = vadd.xlane.f32.xlu0 %v5108_v44  ;;  %4893 = vadd.xlane.f32.xlu1 %v4892_v42 }
 0xc35   : > { %v5105_v63 = vsel %vm4885_vm1, %v5055_v32, 0.0 }
 0xc36   : > { %v4840_v36 = vpop.permute.xlu0 %4839 }
 0xc37   : > { %v4889_v14 = vsel %vm4885_vm1, %v4840_v36, 0.0 }
 0xc38   : > { %v5053_v56 = vpop.permute.xlu1 %5052  ;;  %5106 = vadd.xlane.f32.xlu0 %v5105_v63  ;;  %4890 = vadd.xlane.f32.xlu1 %v4889_v14 }
 0xc39   : > { %v5102_v58 = vsel %vm4885_vm1, %v5053_v56, 0.0 }
 0xc3a   : > { %v4838_v47 = vpop.permute.xlu0 %4837 }
 0xc3b   : > { %v4886_v53 = vsel %vm4885_vm1, %v4838_v47, 0.0 }
 0xc3c   : > { %v5051_v38 = vpop.permute.xlu1 %5050  ;;  %5103 = vadd.xlane.f32.xlu0 %v5102_v58  ;;  %4887 = vadd.xlane.f32.xlu1 %v4886_v53 }
 0xc3d   : > { %v5099_v30 = vsel %vm4885_vm1, %v5051_v38, 0.0 }
 0xc3e   : > { %v5049_v49 = vpop.permute.xlu0 %5048 }
 0xc3f   : > { %v5096_v27 = vsel %vm4885_vm1, %v5049_v49, 0.0 }
 0xc40   : > { %5100 = vadd.xlane.f32.xlu0 %v5099_v30  ;;  %5097 = vadd.xlane.f32.xlu1 %v5096_v27 }
 0xc8b   : > { %v4933_v54 = vpop.xlane.xlu1 %4932 }
 0xc8c   : > { %v4951_v9 = vmul.f32 %v9916_v7, %v4933_v54 }
 0xc8d   : > { %v4930_v5 = vpop.xlane.xlu0 %4929 }
 0xc8e   : > { %v4967_v11 = vadd.f32 %v4951_v9, %v9922_v40  ;;  %v4950_v21 = vmul.f32 %v9916_v7, %v4930_v5 }
 0xc90   : > { %v4966_v29 = vadd.f32 %v4950_v21, %v9922_v40 }
 0xc91   : > { %v4927_v1 = vpop.xlane.xlu1 %4926  ;;  %v5143_v51 = vpop.xlane.xlu0 %5142 }
 0xc92   : > { %v5161_v8 = vmul.f32 %v9925_v39, %v5143_v51  ;;  %v4949_v34 = vmul.f32 %v9916_v7, %v4927_v1 }
 0xc94   : > { %v5177_v33 = vadd.f32 %v5161_v8, %v4967_v11  ;;  %v4965_v41 = vadd.f32 %v4949_v34, %v9922_v40 }
 0xc95   : > { %v4924_v55 = vpop.xlane.xlu1 %4923  ;;  %v5140_v50 = vpop.xlane.xlu0 %5139 }
 0xc96   : > { %v5160_v23 = vmul.f32 %v9925_v39, %v5140_v50  ;;  %5716 = vmatpush3.msra.mxu0 %v5177_v33  ;;  %v4948_v24 = vmul.f32 %v9916_v7, %v4924_v55 }
 0xc97   : > { %5717 = vmatprep.subr.mxu0 %v6175_v16 }
 0xc98   : > { %v5176_v12 = vadd.f32 %v5160_v23, %v4966_v29  ;;  %v4964_v25 = vadd.f32 %v4948_v24, %v9922_v40 }
 0xc99   : > { %v4921_v28 = vpop.xlane.xlu1 %4920  ;;  %v5137_v18 = vpop.xlane.xlu0 %5136 }
 0xc9a   : > { %v5159_v20 = vmul.f32 %v9925_v39, %v5137_v18  ;;  %5718 = vmatpush3.msra.mxu0 %v5176_v12  ;;  %v4947_v57 = vmul.f32 %v9916_v7, %v4921_v28 }
 0xc9b   : > { %5719 = vmatprep.subr.mxu0 %v6175_v16 }
 0xc9c   : > { %v5175_v59 = vadd.f32 %v5159_v20, %v4965_v41  ;;  %v4963_v0 = vadd.f32 %v4947_v57, %v9922_v40 }
 0xc9d   : > { %v4918_v3 = vpop.xlane.xlu1 %4917  ;;  %v5134_v37 = vpop.xlane.xlu0 %5133 }
 0xc9e   : > { %v5158_v2 = vmul.f32 %v9925_v39, %v5134_v37  ;;  %5720 = vmatpush3.msra.mxu0 %v5175_v59  ;;  %v4946_v61 = vmul.f32 %v9916_v7, %v4918_v3 }
 0xc9f   : > { %5721 = vmatprep.subr.mxu0 %v6175_v16 }
 0xca0   : > { %v5174_v35 = vadd.f32 %v5158_v2, %v4964_v25  ;;  %v4962_v48 = vadd.f32 %v4946_v61, %v9922_v40 }
 0xca1   : > { %v4915_v15 = vpop.xlane.xlu1 %4914  ;;  %v5131_v26 = vpop.xlane.xlu0 %5130 }
 0xca2   : > { %v5157_v4 = vmul.f32 %v9925_v39, %v5131_v26  ;;  %5722 = vmatpush3.msra.mxu0 %v5174_v35  ;;  %v4945_v31 = vmul.f32 %v9916_v7, %v4915_v15 }
 0xca3   : > { %5723 = vmatprep.subr.mxu0 %v6175_v16 }
 0xca4   : > { %v5173_v46 = vadd.f32 %v5157_v4, %v4963_v0  ;;  %v4961_v45 = vadd.f32 %v4945_v31, %v9922_v40 }
 0xca5   : > { %v4912_v17 = vpop.xlane.xlu1 %4911  ;;  %v5128_v60 = vpop.xlane.xlu0 %5127 }
 0xca6   : > { %v5156_v19 = vmul.f32 %v9925_v39, %v5128_v60  ;;  %5724 = vmatpush3.msra.mxu0 %v5173_v46  ;;  %v4944_v22 = vmul.f32 %v9916_v7, %v4912_v17 }
 0xca7   : > { %5725 = vmatprep.subr.mxu0 %v6175_v16 }
 0xca8   : > { %v5172_v62 = vadd.f32 %v5156_v19, %v4962_v48  ;;  %v4960_v36 = vadd.f32 %v4944_v22, %v9922_v40 }
 0xca9   : > { %v4909_v10 = vpop.xlane.xlu1 %4908  ;;  %v5125_v43 = vpop.xlane.xlu0 %5124 }
 0xcaa   : > { %v5155_v13 = vmul.f32 %v9925_v39, %v5125_v43  ;;  %5726 = vmatpush3.msra.mxu0 %v5172_v62  ;;  %v4943_v63 = vmul.f32 %v9916_v7, %v4909_v10 }
 0xcab   : > { %5727 = vmatprep.subr.mxu0 %v6175_v16 }
 0xcac   : > { %v5171_v44 = vadd.f32 %v5155_v13, %v4961_v45  ;;  %v4959_v53 = vadd.f32 %v4943_v63, %v9922_v40 }
 0xcad   : > { %v4906_v42 = vpop.xlane.xlu1 %4905  ;;  %v5122_v32 = vpop.xlane.xlu0 %5121 }
 0xcae   : > { %v5154_v14 = vmul.f32 %v9925_v39, %v5122_v32  ;;  %5728 = vmatpush3.msra.mxu0 %v5171_v44  ;;  %v4942_v38 = vmul.f32 %v9916_v7, %v4906_v42 }
 0xcaf   : > { %5729 = vmatprep.subr.mxu0 %v6175_v16 }
 0xcb0   : > { %v5170_v56 = vadd.f32 %v5154_v14, %v4960_v36  ;;  %v4958_v52 = vadd.f32 %v4942_v38, %v9922_v40 }
 0xcb1   : > { %v4903_v47 = vpop.xlane.xlu1 %4902  ;;  %v5119_v58 = vpop.xlane.xlu0 %5118 }
 0xcb2   : > { %v5153_v49 = vmul.f32 %v9925_v39, %v5119_v58  ;;  %5730 = vmatpush3.msra.mxu0 %v5170_v56  ;;  %v4941_v54 = vmul.f32 %v9916_v7, %v4903_v47 }
 0xcb3   : > { %5731 = vmatprep.subr.mxu0 %v6175_v16 }
 0xcb4   : > { %v5169_v30 = vadd.f32 %v5153_v49, %v4959_v53  ;;  %v4957_v11 = vadd.f32 %v4941_v54, %v9922_v40 }
 0xcb5   : > { %v4900_v27 = vpop.xlane.xlu1 %4899  ;;  %v5116_v6 = vpop.xlane.xlu0 %5115 }
 0xcb6   : > { %v5152_v5 = vmul.f32 %v9925_v39, %v5116_v6  ;;  %5732 = vmatpush3.msra.mxu0 %v5169_v30  ;;  %v4940_v21 = vmul.f32 %v9916_v7, %v4900_v27 }
 0xcb7   : > { %5733 = vmatprep.subr.mxu0 %v6175_v16 }
 0xcb8   : > { %v5168_v9 = vadd.f32 %v5152_v5, %v4958_v52  ;;  %v4956_v29 = vadd.f32 %v4940_v21, %v9922_v40 }
 0xcb9   : > { %v4897_v1 = vpop.xlane.xlu1 %4896  ;;  %v5113_v51 = vpop.xlane.xlu0 %5112 }
 0xcba   : > { %v5151_v8 = vmul.f32 %v9925_v39, %v5113_v51  ;;  %5734 = vmatpush3.msra.mxu0 %v5168_v9  ;;  %v4939_v34 = vmul.f32 %v9916_v7, %v4897_v1 }
 0xcbb   : > { %5735 = vmatprep.subr.mxu0 %v6175_v16 }
 0xcbc   : > { %v5167_v33 = vadd.f32 %v5151_v8, %v4957_v11  ;;  %v4955_v41 = vadd.f32 %v4939_v34, %v9922_v40 }
 0xcbd   : > { %v4894_v55 = vpop.xlane.xlu1 %4893  ;;  %v5110_v50 = vpop.xlane.xlu0 %5109 }
 0xcbe   : > { %v5150_v23 = vmul.f32 %v9925_v39, %v5110_v50  ;;  %5736 = vmatpush3.msra.mxu0 %v5167_v33  ;;  %v4938_v24 = vmul.f32 %v9916_v7, %v4894_v55 }
 0xcbf   : > { %5737 = vmatprep.subr.mxu0 %v6175_v16 }
 0xcc0   : > { %v5166_v12 = vadd.f32 %v5150_v23, %v4956_v29  ;;  %v4954_v25 = vadd.f32 %v4938_v24, %v9922_v40 }
 0xcc1   : > { %v4891_v28 = vpop.xlane.xlu1 %4890  ;;  %v5107_v18 = vpop.xlane.xlu0 %5106 }
 0xcc2   : > { %v5149_v20 = vmul.f32 %v9925_v39, %v5107_v18  ;;  %5738 = vmatpush3.msra.mxu0 %v5166_v12  ;;  %v4937_v57 = vmul.f32 %v9916_v7, %v4891_v28 }
 0xcc3   : > { %5739 = vmatprep.subr.mxu0 %v6175_v16 }
 0xcc4   : > { %v5165_v59 = vadd.f32 %v5149_v20, %v4955_v41  ;;  %v4953_v61 = vadd.f32 %v4937_v57, %v9922_v40 }
 0xcc5   : > { %v4888_v3 = vpop.xlane.xlu1 %4887  ;;  %v5104_v37 = vpop.xlane.xlu0 %5103 }
 0xcc6   : > { %v5148_v2 = vmul.f32 %v9925_v39, %v5104_v37  ;;  %5740 = vmatpush3.msra.mxu0 %v5165_v59  ;;  %v4936_v35 = vmul.f32 %v9916_v7, %v4888_v3  ;;  %v5178_v7 = vld [vmem:[%s10039_s1 + $0x28] sm:$0xff] }
 0xcc7   : > { %5741 = vmatprep.subr.mxu0 %v6175_v16 }
 0xcc8   : > { %v5164_v15 = vadd.f32 %v5148_v2, %v4954_v25  ;;  %v4952_v17 = vadd.f32 %v4936_v35, %v9922_v40 }
 0xcc9   : > { %v5098_v26 = vpop.xlane.xlu1 %5097  ;;  %v5101_v0 = vpop.xlane.xlu0 %5100 }
 0xcca   : > { %v5146_v4 = vmul.f32 %v9925_v39, %v5098_v26  ;;  %v5147_v46 = vmul.f32 %v9925_v39, %v5101_v0  ;;  %5742 = vmatpush3.msra.mxu0 %v5164_v15 }
 0xccb   : > { %5743 = vmatprep.subr.mxu0 %v6175_v16 }
 0xccc   : > { %v5163_v60 = vadd.f32 %v5147_v46, %v4953_v61  ;;  %v5162_v48 = vadd.f32 %v5146_v4, %v4952_v17 }
 0xcce   : > { %5744 = vmatpush3.msra.mxu0 %v5163_v60 }
 0xccf   : > { %5745 = vmatprep.subr.mxu0 %v6175_v16 }
 0xcd0   : > { %5746 = vmatpush3.msra.mxu0 %v5162_v48 }
 0xcd1   : > { %5748 = vmatmul.mubr.f32.vlgmr.msra.gmra.mxu0 %v5178_v7 }
 0xd91   : > { %v5245_v40 = vpop.f32.mrf.mxu0 }
 0xd92   : > { %5249 = vst [vmem:[%s137_s14] sm:$0xff] %v5245_v40 }
 0xd93   : > { %v5749_v16 = vpop.f32.mrf.mxu0 }
 0xd94   : > { %6077 = shalt.err (!%p6074_p3)
}
 0xd95   : > { %s6078_s28 = scalar_lea.hbm %s9999_s23, 128  ;;  %s6082_s3 = scalar_lea.hbm %s10040_s2, 256 }
 0xd96   : > { %p6079_p4 = scmp.ne.s32.totalorder %s9999_s23, %s6078_s28  ;;  %p6083_p9 = scmp.lt.s32.totalorder %s9999_s23, %s10040_s2 }
 0xd97   : > { %p6084_p10 = scmp.lt.s32.totalorder %s6082_s3, %s6078_s28 }
 0xd98   : > { %p6080_p7 = pnand %p6079_p4, %p6231_p5 }
 0xd99   : > { %p6085_p11 = por %p6084_p10, %p6083_p9 }
 0xd9a   : > { %p6081_p8 = pneg %p6080_p7 }
 0xd9c   : > { %p6086_p12 = pnand %p6085_p11, %p6081_p8 }
 0xd9e   : > { %6089 = shalt.err (!%p6086_p12)
}
 0xd9f   : > { %5750 = dma.vmem_to_hbm [thread:$0]  (%p6231_p5), %s9994_s16, 128, %s9999_s23, %s5251_s24  }
 0xda0 PF: > { %p5756_p13 = scmp.ge.s32.totalorder %s6124_s12, 2  ;;  %s5276_s6 = sand.u32 1, %s6112_s9  }
 0xda1   : > { %s5277_s7 = scalar_lea.sflag [#allocation3], %s5276_s6 }
 0xda2   : > { %p5753_p0 = pnand %p5756_p13, %p6235_p6 }
 0xda4   : > { %p5754_p1 = pneg %p5753_p0 }
 0xda6   : > { %6107 = dma.done.wait (%p5754_p1), %s5277_s7, 128  }
 0xda7   : > { %6109 = vsyncadd (%p5754_p1), %s5277_s7, 4294967168  ;;  %p12_p2 = scmp.ge.s32.totalorder %s6218_s15, 4   ;;  %s10722_s9 = smov %s6116_s10 }
 0xda8   : > { %s10723_s10 = smov %s6120_s11  ;;  %s10724_s11 = smov %s6229_s18 }
 0xda9   : > { %s10725_s12 = smov %s6218_s15  ;;  %14 = sbr.rel (!%p12_p2) target bundleno = 3 (0x3), region = 63 }
 0xdae   :  { %5282 = vsyncpa [#allocation3], 1 }
 0xdaf   :  { %5284 = vsyncpa [#allocation3 + $0x1], 1 }

</bundles_post_ra>
